<compile_context>
chip_gen: v7x
topology: tpu7x:2x2x1
jax: 0.10.0
libtpu: 0.0.40
codegen_flags: <defaults>
</compile_context>

<pallas_src>
import jax
import jax.numpy as jnp
from jax.experimental import pallas as pl
from jax.experimental.pallas import tpu as pltpu


# -------- fixed model dims (implied by the PyTorch module: 3x32x32 input) --------
H = 32
W = 32
C_IN, C1, C2 = 3, 32, 64
P1 = 15                 # conv1 30x30 -> pool -> 15x15
P2 = 6                  # conv2 13x13 -> pool(floor) -> 6x6
HID, NCLS = 128, 100
NCLS_PAD = 128          # pad logits to a full 128-lane row (sliced back in wrapper)

K1 = W * C_IN           # 96   (flattened width*chan lanes of the input rows)
N1 = P1 * C1            # 480  (pooled-width * conv1-chan lanes)
N2 = P2 * C2            # 384  (pooled-width * conv2-chan lanes)


def _toeplitz_sel(m_size, n_pos, q_size, step):
    """sel[pc, m, j, q] = 1.0 iff m == (2*j + pc)*step + q  (conv-as-matmul band placement)."""
    m = jnp.arange(m_size)[:, None, None]
    j = jnp.arange(n_pos)[None, :, None]
    q = jnp.arange(q_size)[None, None, :]
    return jnp.stack([(m == (2 * j + pc) * step + q) for pc in (0, 1)]).astype(jnp.float32)


def prepare_params(params):
    """One-time repack of PyTorch-layout weights into kernel layout (hoist / cache this)."""
    w1, b1, w2, b2, fw1, fb1, fw2, fb2 = params
    f32, bf16 = jnp.float32, jnp.bfloat16

    w1_hwio = jnp.transpose(w1.astype(f32), (2, 3, 1, 0))       # (3,3,3,32)
    w2_hwio = jnp.transpose(w2.astype(f32), (2, 3, 1, 0))       # (3,3,32,64)
    w1_flat = w1_hwio.reshape(3, 9, C1)                         # [kh, kw*3+ci,  co]
    w2_flat = w2_hwio.reshape(3, 96, C2)                        # [kh, kw*32+ci, c2]

    # Banded conv weights, split by even/odd output column so pooling is element-wise.
    sel1 = _toeplitz_sel(K1, P1, 9, C_IN)                       # (2, 96, 15, 9)
    sel2 = _toeplitz_sel(N1, P2, 96, C1)                        # (2, 480, 6, 96)
    w1c = jnp.einsum('pmjq,kqc->pkmjc', sel1, w1_flat).reshape(2, 3, K1, N1)
    w2c = jnp.einsum('pmjq,kqc->pkmjc', sel2, w2_flat).reshape(2, 3, N1, N2)

    b1t = jnp.tile(b1.astype(f32), P1).reshape(1, N1)           # bias tiled per pooled col
    b2t = jnp.tile(b2.astype(f32), P2).reshape(1, N2)

    # torch fc1 indexes a (c,h,w)-flattened vector; kernel features are (h,w,c) -> permute K.
    fw1_k = (fw1.astype(f32).reshape(HID, C2, P2, P2)
             .transpose(2, 3, 1, 0).reshape(P2, P2 * C2, HID))  # (6, 384, 128)
    fw2_k = jnp.zeros((HID, NCLS_PAD), f32).at[:, :NCLS].set(fw2.T.astype(f32))
    fb2_k = jnp.zeros((1, NCLS_PAD), f32).at[0, :NCLS].set(fb2.astype(f32))

    return (w1c.astype(bf16), b1t, w2c.astype(bf16), b2t,
            fw1_k.astype(bf16), fb1.astype(f32).reshape(1, HID),
            fw2_k.astype(bf16), fb2_k)


def cifar_kernel(x_ref, w1c_ref, b1_ref, w2c_ref, b2_ref,
                 fw1_ref, fb1_ref, fw2_ref, fb2_ref, o_ref, p1_ref):
    """x_ref: (32, TB, 96) bf16  -- rows are (input_row, image, width*chan)
       p1_ref (scratch): (15, TB, 480) bf16 -- pooled conv1 in (row, image, width*chan) form
       o_ref: (TB, 128) f32 logits (cols >= 100 are zero padding)."""
    tb = x_ref.shape[1]
    f32, bf16 = jnp.float32, jnp.bfloat16

    # ---- conv1 (3x3, 3->32) + bias + relu + 2x2 max-pool ----
    acc = [None, None]
    for kh in range(3):
        lhs = x_ref[kh:kh + 30].reshape(30 * tb, K1)            # row = conv_row*tb + img
        for pc in range(2):
            d = jnp.dot(lhs, w1c_ref[pc, kh], preferred_element_type=f32)
            acc[pc] = d if acc[pc] is None else acc[pc] + d
    a = jnp.maximum(acc[0], acc[1])                             # pool over even/odd columns
    a = a.reshape(15, 2, tb, N1)
    a = jnp.maximum(a[:, 0], a[:, 1])                           # pool over even/odd rows
    a = jnp.maximum(a + b1_ref[...], 0.0)                       # bias + relu (f32, VPU)
    p1_ref[...] = a.astype(bf16)

    # ---- conv2 (3x3, 32->64) + bias + relu + 2x2 max-pool (floor: row/col 12 dropped) ----
    acc = [None, None]
    for kh in range(3):
        lhs = p1_ref[kh:kh + 12].reshape(12 * tb, N1)
        for pc in range(2):
            d = jnp.dot(lhs, w2c_ref[pc, kh], preferred_element_type=f32)
            acc[pc] = d if acc[pc] is None else acc[pc] + d
    c = jnp.maximum(acc[0], acc[1])
    c = c.reshape(6, 2, tb, N2)
    c = jnp.maximum(c[:, 0], c[:, 1])
    c = jnp.maximum(c + b2_ref[...], 0.0)                       # (6, tb, 384) = (h, img, w*c)
    feat = c.astype(bf16)

    # ---- fc1 (2304->128) + relu + dropout(eval = identity) + fc2 (128->100 padded) ----
    h = None
    for j in range(6):
        d = jnp.dot(feat[j], fw1_ref[j], preferred_element_type=f32)   # (tb, 128)
        h = d if h is None else h + d
    h = jnp.maximum(h + fb1_ref[...], 0.0)
    # nn.Dropout(0.25): inference (eval) semantics -> identity.
    o_ref[...] = jnp.dot(h.astype(bf16), fw2_ref[...],
                         preferred_element_type=f32) + fb2_ref[...]


def cifar100_forward(x_nchw, kparams, *, tb=16):
    w1c, b1t, w2c, b2t, fw1_k, fb1_k, fw2_k, fb2_k = kparams
    B = x_nchw.shape[0]
    bp = ((B + tb - 1) // tb) * tb

    # NCHW -> (H, B, W*C), batch padded to a multiple of the batch tile, bf16 for the MXU.
    x_t = jnp.transpose(x_nchw.astype(jnp.float32), (2, 0, 3, 1))       # (H, B, W, C)
    x_t = x_t.reshape(H, B, W * C_IN)
    x_t = jnp.pad(x_t, ((0, 0), (0, bp - B), (0, 0))).astype(jnp.bfloat16)

    out = pl.pallas_call(
        cifar_kernel,
        out_shape=jax.ShapeDtypeStruct((bp, NCLS_PAD), jnp.float32),
        grid_spec=pltpu.PrefetchScalarGridSpec(
            num_scalar_prefetch=0,
            grid=(bp // tb,),
            in_specs=[
                pl.BlockSpec((H, tb, W * C_IN), lambda b: (0, b, 0)),
                pl.BlockSpec((2, 3, K1, N1), lambda b: (0, 0, 0, 0)),
                pl.BlockSpec((1, N1), lambda b: (0, 0)),
                pl.BlockSpec((2, 3, N1, N2), lambda b: (0, 0, 0, 0)),
                pl.BlockSpec((1, N2), lambda b: (0, 0)),
                pl.BlockSpec((P2, P2 * C2, HID), lambda b: (0, 0, 0)),
                pl.BlockSpec((1, HID), lambda b: (0, 0)),
                pl.BlockSpec((HID, NCLS_PAD), lambda b: (0, 0)),
                pl.BlockSpec((1, NCLS_PAD), lambda b: (0, 0)),
            ],
            out_specs=pl.BlockSpec((tb, NCLS_PAD), lambda b: (b, 0)),
            scratch_shapes=[pltpu.VMEM((P1, tb, N1), jnp.bfloat16)],
        ),
        compiler_params=pltpu.CompilerParams(dimension_semantics=("parallel",)),
    )(x_t, w1c, b1t, w2c, b2t, fw1_k, fb1_k, fw2_k, fb2_k)
    return out[:B, :NCLS]


def init_params(key):
    ks = jax.random.split(key, 8)
    w1 = jax.random.normal(ks[0], (32, 3, 3, 3), jnp.float32) * 0.10    # conv1 (OIHW)
    b1 = jax.random.normal(ks[1], (32,), jnp.float32) * 0.10
    w2 = jax.random.normal(ks[2], (64, 32, 3, 3), jnp.float32) * 0.05   # conv2 (OIHW)
    b2 = jax.random.normal(ks[3], (64,), jnp.float32) * 0.05
    fw1 = jax.random.normal(ks[4], (128, 2304), jnp.float32) * 0.02     # fc1 (out, in)
    fb1 = jax.random.normal(ks[5], (128,), jnp.float32) * 0.02
    fw2 = jax.random.normal(ks[6], (100, 128), jnp.float32) * 0.05      # fc2 (out, in)
    fb2 = jax.random.normal(ks[7], (100,), jnp.float32) * 0.05
    return (w1, b1, w2, b2, fw1, fb1, fw2, fb2)


def reference_forward(x, params):
    """Pure-JAX reference with PyTorch semantics (NCHW, eval-mode dropout)."""
    w1, b1, w2, b2, fw1, fb1, fw2, fb2 = params
    hi = jax.lax.Precision.HIGHEST
    dn1 = jax.lax.conv_dimension_numbers(x.shape, w1.shape, ('NCHW', 'OIHW', 'NCHW'))
    h = jax.lax.conv_general_dilated(x, w1, (1, 1), 'VALID', dimension_numbers=dn1, precision=hi)
    h = jnp.maximum(h + b1[None, :, None, None], 0.0)
    h = jax.lax.reduce_window(h, -jnp.inf, jax.lax.max, (1, 1, 2, 2), (1, 1, 2, 2), 'VALID')
    dn2 = jax.lax.conv_dimension_numbers(h.shape, w2.shape, ('NCHW', 'OIHW', 'NCHW'))
    h = jax.lax.conv_general_dilated(h, w2, (1, 1), 'VALID', dimension_numbers=dn2, precision=hi)
    h = jnp.maximum(h + b2[None, :, None, None], 0.0)
    h = jax.lax.reduce_window(h, -jnp.inf, jax.lax.max, (1, 1, 2, 2), (1, 1, 2, 2), 'VALID')
    h = h.reshape(h.shape[0], -1)                                    # (B, 64*6*6), (c,h,w) order
    h = jnp.maximum(jnp.dot(h, fw1.T, precision=hi) + fb1, 0.0)
    return jnp.dot(h, fw2.T, precision=hi) + fb2


if __name__ == "__main__":
    key = jax.random.PRNGKey(0)
    kx, kp = jax.random.split(key)
    # CIFAR-style input implied by the module: 3x32x32 (so flatten == 64*6*6); batch=2.
    x = jax.random.normal(kx, (2, 3, 32, 32), jnp.float32)
    params = init_params(kp)

    kparams = prepare_params(params)          # hoisted one-time weight repack
    out = jax.block_until_ready(cifar100_forward(x, kparams))
    assert out.shape == (2, 100) and out.dtype == jnp.float32

    ref = jax.block_until_ready(reference_forward(x, params))
    max_err = float(jnp.max(jnp.abs(out - ref)))
    assert max_err < 5e-2, f"mismatch vs reference: max_err={max_err}"

    print("KERNEL_OK")
</pallas_src>

<mosaic_0001>
module attributes {stable_mosaic.version = 11 : i64} {
  func.func @cifar_kernel(%arg0: i32, %arg1: memref<32x16x96xbf16, #tpu.memory_space<vmem>>, %arg2: memref<2x3x96x480xbf16, #tpu.memory_space<vmem>>, %arg3: memref<1x480xf32, #tpu.memory_space<vmem>>, %arg4: memref<2x3x480x384xbf16, #tpu.memory_space<vmem>>, %arg5: memref<1x384xf32, #tpu.memory_space<vmem>>, %arg6: memref<6x384x128xbf16, #tpu.memory_space<vmem>>, %arg7: memref<1x128xf32, #tpu.memory_space<vmem>>, %arg8: memref<128x128xbf16, #tpu.memory_space<vmem>>, %arg9: memref<1x128xf32, #tpu.memory_space<vmem>>, %arg10: memref<16x128xf32, #tpu.memory_space<vmem>>, %arg11: memref<15x16x480xbf16, #tpu.memory_space<vmem>>) attributes {dimension_semantics = [#tpu.dimension_semantics<parallel>], iteration_bounds = array<i64: 1>, scalar_prefetch = 0 : i64, scratch_operands = 1 : i64, tpu.core_type = #tpu.core_type<tc>, window_params = [{transform_indices = @transform_0, window_bounds = array<i64: 32, 16, 96>}, {pipeline_mode = #tpu.pipeline_mode<synchronous>, transform_indices = @transform_1, window_bounds = array<i64: 2, 3, 96, 480>}, {pipeline_mode = #tpu.pipeline_mode<synchronous>, transform_indices = @transform_2, window_bounds = array<i64: 1, 480>}, {pipeline_mode = #tpu.pipeline_mode<synchronous>, transform_indices = @transform_3, window_bounds = array<i64: 2, 3, 480, 384>}, {pipeline_mode = #tpu.pipeline_mode<synchronous>, transform_indices = @transform_4, window_bounds = array<i64: 1, 384>}, {pipeline_mode = #tpu.pipeline_mode<synchronous>, transform_indices = @transform_5, window_bounds = array<i64: 6, 384, 128>}, {pipeline_mode = #tpu.pipeline_mode<synchronous>, transform_indices = @transform_6, window_bounds = array<i64: 1, 128>}, {pipeline_mode = #tpu.pipeline_mode<synchronous>, transform_indices = @transform_7, window_bounds = array<i64: 128, 128>}, {pipeline_mode = #tpu.pipeline_mode<synchronous>, transform_indices = @transform_8, window_bounds = array<i64: 1, 128>}, {transform_indices = @transform_9, window_bounds = array<i64: 16, 128>}]} {
    %c0 = arith.constant 0 : index
    %c0_0 = arith.constant 0 : index
    %c0_1 = arith.constant 0 : index
    %0 = vector.load %arg1[%c0, %c0_0, %c0_1] : memref<32x16x96xbf16, #tpu.memory_space<vmem>>, vector<30x16x96xbf16>
    %1 = vector.shape_cast %0 : vector<30x16x96xbf16> to vector<480x96xbf16>
    %c0_2 = arith.constant 0 : index
    %c0_3 = arith.constant 0 : index
    %c0_4 = arith.constant 0 : index
    %c0_5 = arith.constant 0 : index
    %2 = vector.load %arg2[%c0_2, %c0_3, %c0_4, %c0_5] : memref<2x3x96x480xbf16, #tpu.memory_space<vmem>>, vector<1x1x96x480xbf16>
    %3 = vector.shape_cast %2 : vector<1x1x96x480xbf16> to vector<96x480xbf16>
    %cst = arith.constant dense<0.000000e+00> : vector<480x480xf32>
    %4 = tpu.matmul %1, %3, %cst {dimension_numbers = #tpu.dot_dimension_numbers<[1], [0], [0], [1], [0, 0, 1, 1], [], []>} : vector<480x96xbf16>, vector<96x480xbf16>, vector<480x480xf32> -> vector<480x480xf32>
    %c1 = arith.constant 1 : index
    %c0_6 = arith.constant 0 : index
    %c0_7 = arith.constant 0 : index
    %c0_8 = arith.constant 0 : index
    %5 = vector.load %arg2[%c1, %c0_6, %c0_7, %c0_8] : memref<2x3x96x480xbf16, #tpu.memory_space<vmem>>, vector<1x1x96x480xbf16>
    %6 = vector.shape_cast %5 : vector<1x1x96x480xbf16> to vector<96x480xbf16>
    %cst_9 = arith.constant dense<0.000000e+00> : vector<480x480xf32>
    %7 = tpu.matmul %1, %6, %cst_9 {dimension_numbers = #tpu.dot_dimension_numbers<[1], [0], [0], [1], [0, 0, 1, 1], [], []>} : vector<480x96xbf16>, vector<96x480xbf16>, vector<480x480xf32> -> vector<480x480xf32>
    %c1_10 = arith.constant 1 : index
    %c0_11 = arith.constant 0 : index
    %c0_12 = arith.constant 0 : index
    %8 = vector.load %arg1[%c1_10, %c0_11, %c0_12] : memref<32x16x96xbf16, #tpu.memory_space<vmem>>, vector<30x16x96xbf16>
    %9 = vector.shape_cast %8 : vector<30x16x96xbf16> to vector<480x96xbf16>
    %c0_13 = arith.constant 0 : index
    %c1_14 = arith.constant 1 : index
    %c0_15 = arith.constant 0 : index
    %c0_16 = arith.constant 0 : index
    %10 = vector.load %arg2[%c0_13, %c1_14, %c0_15, %c0_16] : memref<2x3x96x480xbf16, #tpu.memory_space<vmem>>, vector<1x1x96x480xbf16>
    %11 = vector.shape_cast %10 : vector<1x1x96x480xbf16> to vector<96x480xbf16>
    %cst_17 = arith.constant dense<0.000000e+00> : vector<480x480xf32>
    %12 = tpu.matmul %9, %11, %cst_17 {dimension_numbers = #tpu.dot_dimension_numbers<[1], [0], [0], [1], [0, 0, 1, 1], [], []>} : vector<480x96xbf16>, vector<96x480xbf16>, vector<480x480xf32> -> vector<480x480xf32>
    %13 = arith.addf %4, %12 : vector<480x480xf32>
    %c1_18 = arith.constant 1 : index
    %c1_19 = arith.constant 1 : index
    %c0_20 = arith.constant 0 : index
    %c0_21 = arith.constant 0 : index
    %14 = vector.load %arg2[%c1_18, %c1_19, %c0_20, %c0_21] : memref<2x3x96x480xbf16, #tpu.memory_space<vmem>>, vector<1x1x96x480xbf16>
    %15 = vector.shape_cast %14 : vector<1x1x96x480xbf16> to vector<96x480xbf16>
    %cst_22 = arith.constant dense<0.000000e+00> : vector<480x480xf32>
    %16 = tpu.matmul %9, %15, %cst_22 {dimension_numbers = #tpu.dot_dimension_numbers<[1], [0], [0], [1], [0, 0, 1, 1], [], []>} : vector<480x96xbf16>, vector<96x480xbf16>, vector<480x480xf32> -> vector<480x480xf32>
    %17 = arith.addf %7, %16 : vector<480x480xf32>
    %c2 = arith.constant 2 : index
    %c0_23 = arith.constant 0 : index
    %c0_24 = arith.constant 0 : index
    %18 = vector.load %arg1[%c2, %c0_23, %c0_24] : memref<32x16x96xbf16, #tpu.memory_space<vmem>>, vector<30x16x96xbf16>
    %19 = vector.shape_cast %18 : vector<30x16x96xbf16> to vector<480x96xbf16>
    %c0_25 = arith.constant 0 : index
    %c2_26 = arith.constant 2 : index
    %c0_27 = arith.constant 0 : index
    %c0_28 = arith.constant 0 : index
    %20 = vector.load %arg2[%c0_25, %c2_26, %c0_27, %c0_28] : memref<2x3x96x480xbf16, #tpu.memory_space<vmem>>, vector<1x1x96x480xbf16>
    %21 = vector.shape_cast %20 : vector<1x1x96x480xbf16> to vector<96x480xbf16>
    %cst_29 = arith.constant dense<0.000000e+00> : vector<480x480xf32>
    %22 = tpu.matmul %19, %21, %cst_29 {dimension_numbers = #tpu.dot_dimension_numbers<[1], [0], [0], [1], [0, 0, 1, 1], [], []>} : vector<480x96xbf16>, vector<96x480xbf16>, vector<480x480xf32> -> vector<480x480xf32>
    %23 = arith.addf %13, %22 : vector<480x480xf32>
    %c1_30 = arith.constant 1 : index
    %c2_31 = arith.constant 2 : index
    %c0_32 = arith.constant 0 : index
    %c0_33 = arith.constant 0 : index
    %24 = vector.load %arg2[%c1_30, %c2_31, %c0_32, %c0_33] : memref<2x3x96x480xbf16, #tpu.memory_space<vmem>>, vector<1x1x96x480xbf16>
    %25 = vector.shape_cast %24 : vector<1x1x96x480xbf16> to vector<96x480xbf16>
    %cst_34 = arith.constant dense<0.000000e+00> : vector<480x480xf32>
    %26 = tpu.matmul %19, %25, %cst_34 {dimension_numbers = #tpu.dot_dimension_numbers<[1], [0], [0], [1], [0, 0, 1, 1], [], []>} : vector<480x96xbf16>, vector<96x480xbf16>, vector<480x480xf32> -> vector<480x480xf32>
    %27 = arith.addf %17, %26 : vector<480x480xf32>
    %28 = arith.maximumf %23, %27 : vector<480x480xf32>
    %29 = vector.shape_cast %28 : vector<480x480xf32> to vector<15x2x16x480xf32>
    %30 = vector.extract_strided_slice %29 {offsets = [0, 0, 0, 0], sizes = [15, 1, 16, 480], strides = [1, 1, 1, 1]} : vector<15x2x16x480xf32> to vector<15x1x16x480xf32>
    %31 = vector.shape_cast %30 : vector<15x1x16x480xf32> to vector<15x16x480xf32>
    %32 = vector.extract_strided_slice %29 {offsets = [0, 1, 0, 0], sizes = [15, 1, 16, 480], strides = [1, 1, 1, 1]} : vector<15x2x16x480xf32> to vector<15x1x16x480xf32>
    %33 = vector.shape_cast %32 : vector<15x1x16x480xf32> to vector<15x16x480xf32>
    %34 = arith.maximumf %31, %33 : vector<15x16x480xf32>
    %c0_35 = arith.constant 0 : index
    %c0_36 = arith.constant 0 : index
    %35 = vector.load %arg3[%c0_35, %c0_36] : memref<1x480xf32, #tpu.memory_space<vmem>>, vector<1x480xf32>
    %36 = vector.shape_cast %35 : vector<1x480xf32> to vector<1x1x480xf32>
    %37 = vector.broadcast %36 : vector<1x1x480xf32> to vector<15x16x480xf32>
    %38 = arith.addf %34, %37 : vector<15x16x480xf32>
    %cst_37 = arith.constant 0.000000e+00 : f32
    %39 = vector.broadcast %cst_37 : f32 to vector<15x16x480xf32>
    %40 = arith.maximumf %38, %39 : vector<15x16x480xf32>
    %41 = arith.truncf %40 : vector<15x16x480xf32> to vector<15x16x480xbf16>
    %c0_38 = arith.constant 0 : index
    %c0_39 = arith.constant 0 : index
    %c0_40 = arith.constant 0 : index
    %42 = vector.load %arg11[%c0_38, %c0_39, %c0_40] : memref<15x16x480xbf16, #tpu.memory_space<vmem>>, vector<15x16x480xbf16>
    tpu.vector_store %arg11[%c0_38, %c0_39, %c0_40], %41 {strides = array<i32>} : memref<15x16x480xbf16, #tpu.memory_space<vmem>>, vector<15x16x480xbf16>,
    %c0_41 = arith.constant 0 : index
    %c0_42 = arith.constant 0 : index
    %c0_43 = arith.constant 0 : index
    %43 = vector.load %arg11[%c0_41, %c0_42, %c0_43] : memref<15x16x480xbf16, #tpu.memory_space<vmem>>, vector<12x16x480xbf16>
    %44 = vector.shape_cast %43 : vector<12x16x480xbf16> to vector<192x480xbf16>
    %c0_44 = arith.constant 0 : index
    %c0_45 = arith.constant 0 : index
    %c0_46 = arith.constant 0 : index
    %c0_47 = arith.constant 0 : index
    %45 = vector.load %arg4[%c0_44, %c0_45, %c0_46, %c0_47] : memref<2x3x480x384xbf16, #tpu.memory_space<vmem>>, vector<1x1x480x384xbf16>
    %46 = vector.shape_cast %45 : vector<1x1x480x384xbf16> to vector<480x384xbf16>
    %cst_48 = arith.constant dense<0.000000e+00> : vector<192x384xf32>
    %47 = tpu.matmul %44, %46, %cst_48 {dimension_numbers = #tpu.dot_dimension_numbers<[1], [0], [0], [1], [0, 0, 1, 1], [], []>} : vector<192x480xbf16>, vector<480x384xbf16>, vector<192x384xf32> -> vector<192x384xf32>
    %c1_49 = arith.constant 1 : index
    %c0_50 = arith.constant 0 : index
    %c0_51 = arith.constant 0 : index
    %c0_52 = arith.constant 0 : index
    %48 = vector.load %arg4[%c1_49, %c0_50, %c0_51, %c0_52] : memref<2x3x480x384xbf16, #tpu.memory_space<vmem>>, vector<1x1x480x384xbf16>
    %49 = vector.shape_cast %48 : vector<1x1x480x384xbf16> to vector<480x384xbf16>
    %cst_53 = arith.constant dense<0.000000e+00> : vector<192x384xf32>
    %50 = tpu.matmul %44, %49, %cst_53 {dimension_numbers = #tpu.dot_dimension_numbers<[1], [0], [0], [1], [0, 0, 1, 1], [], []>} : vector<192x480xbf16>, vector<480x384xbf16>, vector<192x384xf32> -> vector<192x384xf32>
    %c1_54 = arith.constant 1 : index
    %c0_55 = arith.constant 0 : index
    %c0_56 = arith.constant 0 : index
    %51 = vector.load %arg11[%c1_54, %c0_55, %c0_56] : memref<15x16x480xbf16, #tpu.memory_space<vmem>>, vector<12x16x480xbf16>
    %52 = vector.shape_cast %51 : vector<12x16x480xbf16> to vector<192x480xbf16>
    %c0_57 = arith.constant 0 : index
    %c1_58 = arith.constant 1 : index
    %c0_59 = arith.constant 0 : index
    %c0_60 = arith.constant 0 : index
    %53 = vector.load %arg4[%c0_57, %c1_58, %c0_59, %c0_60] : memref<2x3x480x384xbf16, #tpu.memory_space<vmem>>, vector<1x1x480x384xbf16>
    %54 = vector.shape_cast %53 : vector<1x1x480x384xbf16> to vector<480x384xbf16>
    %cst_61 = arith.constant dense<0.000000e+00> : vector<192x384xf32>
    %55 = tpu.matmul %52, %54, %cst_61 {dimension_numbers = #tpu.dot_dimension_numbers<[1], [0], [0], [1], [0, 0, 1, 1], [], []>} : vector<192x480xbf16>, vector<480x384xbf16>, vector<192x384xf32> -> vector<192x384xf32>
    %56 = arith.addf %47, %55 : vector<192x384xf32>
    %c1_62 = arith.constant 1 : index
    %c1_63 = arith.constant 1 : index
    %c0_64 = arith.constant 0 : index
    %c0_65 = arith.constant 0 : index
    %57 = vector.load %arg4[%c1_62, %c1_63, %c0_64, %c0_65] : memref<2x3x480x384xbf16, #tpu.memory_space<vmem>>, vector<1x1x480x384xbf16>
    %58 = vector.shape_cast %57 : vector<1x1x480x384xbf16> to vector<480x384xbf16>
    %cst_66 = arith.constant dense<0.000000e+00> : vector<192x384xf32>
    %59 = tpu.matmul %52, %58, %cst_66 {dimension_numbers = #tpu.dot_dimension_numbers<[1], [0], [0], [1], [0, 0, 1, 1], [], []>} : vector<192x480xbf16>, vector<480x384xbf16>, vector<192x384xf32> -> vector<192x384xf32>
    %60 = arith.addf %50, %59 : vector<192x384xf32>
    %c2_67 = arith.constant 2 : index
    %c0_68 = arith.constant 0 : index
    %c0_69 = arith.constant 0 : index
    %61 = vector.load %arg11[%c2_67, %c0_68, %c0_69] : memref<15x16x480xbf16, #tpu.memory_space<vmem>>, vector<12x16x480xbf16>
    %62 = vector.shape_cast %61 : vector<12x16x480xbf16> to vector<192x480xbf16>
    %c0_70 = arith.constant 0 : index
    %c2_71 = arith.constant 2 : index
    %c0_72 = arith.constant 0 : index
    %c0_73 = arith.constant 0 : index
    %63 = vector.load %arg4[%c0_70, %c2_71, %c0_72, %c0_73] : memref<2x3x480x384xbf16, #tpu.memory_space<vmem>>, vector<1x1x480x384xbf16>
    %64 = vector.shape_cast %63 : vector<1x1x480x384xbf16> to vector<480x384xbf16>
    %cst_74 = arith.constant dense<0.000000e+00> : vector<192x384xf32>
    %65 = tpu.matmul %62, %64, %cst_74 {dimension_numbers = #tpu.dot_dimension_numbers<[1], [0], [0], [1], [0, 0, 1, 1], [], []>} : vector<192x480xbf16>, vector<480x384xbf16>, vector<192x384xf32> -> vector<192x384xf32>
    %66 = arith.addf %56, %65 : vector<192x384xf32>
    %c1_75 = arith.constant 1 : index
    %c2_76 = arith.constant 2 : index
    %c0_77 = arith.constant 0 : index
    %c0_78 = arith.constant 0 : index
    %67 = vector.load %arg4[%c1_75, %c2_76, %c0_77, %c0_78] : memref<2x3x480x384xbf16, #tpu.memory_space<vmem>>, vector<1x1x480x384xbf16>
    %68 = vector.shape_cast %67 : vector<1x1x480x384xbf16> to vector<480x384xbf16>
    %cst_79 = arith.constant dense<0.000000e+00> : vector<192x384xf32>
    %69 = tpu.matmul %62, %68, %cst_79 {dimension_numbers = #tpu.dot_dimension_numbers<[1], [0], [0], [1], [0, 0, 1, 1], [], []>} : vector<192x480xbf16>, vector<480x384xbf16>, vector<192x384xf32> -> vector<192x384xf32>
    %70 = arith.addf %60, %69 : vector<192x384xf32>
    %71 = arith.maximumf %66, %70 : vector<192x384xf32>
    %72 = vector.shape_cast %71 : vector<192x384xf32> to vector<6x2x16x384xf32>
    %73 = vector.extract_strided_slice %72 {offsets = [0, 0, 0, 0], sizes = [6, 1, 16, 384], strides = [1, 1, 1, 1]} : vector<6x2x16x384xf32> to vector<6x1x16x384xf32>
    %74 = vector.shape_cast %73 : vector<6x1x16x384xf32> to vector<6x16x384xf32>
    %75 = vector.extract_strided_slice %72 {offsets = [0, 1, 0, 0], sizes = [6, 1, 16, 384], strides = [1, 1, 1, 1]} : vector<6x2x16x384xf32> to vector<6x1x16x384xf32>
    %76 = vector.shape_cast %75 : vector<6x1x16x384xf32> to vector<6x16x384xf32>
    %77 = arith.maximumf %74, %76 : vector<6x16x384xf32>
    %c0_80 = arith.constant 0 : index
    %c0_81 = arith.constant 0 : index
    %78 = vector.load %arg5[%c0_80, %c0_81] : memref<1x384xf32, #tpu.memory_space<vmem>>, vector<1x384xf32>
    %79 = vector.shape_cast %78 : vector<1x384xf32> to vector<1x1x384xf32>
    %80 = vector.broadcast %79 : vector<1x1x384xf32> to vector<6x16x384xf32>
    %81 = arith.addf %77, %80 : vector<6x16x384xf32>
    %cst_82 = arith.constant 0.000000e+00 : f32
    %82 = vector.broadcast %cst_82 : f32 to vector<6x16x384xf32>
    %83 = arith.maximumf %81, %82 : vector<6x16x384xf32>
    %84 = arith.truncf %83 : vector<6x16x384xf32> to vector<6x16x384xbf16>
    %85 = vector.extract_strided_slice %84 {offsets = [0, 0, 0], sizes = [1, 16, 384], strides = [1, 1, 1]} : vector<6x16x384xbf16> to vector<1x16x384xbf16>
    %86 = vector.shape_cast %85 : vector<1x16x384xbf16> to vector<16x384xbf16>
    %c0_83 = arith.constant 0 : index
    %c0_84 = arith.constant 0 : index
    %c0_85 = arith.constant 0 : index
    %87 = vector.load %arg6[%c0_83, %c0_84, %c0_85] : memref<6x384x128xbf16, #tpu.memory_space<vmem>>, vector<1x384x128xbf16>
    %88 = vector.shape_cast %87 : vector<1x384x128xbf16> to vector<384x128xbf16>
    %cst_86 = arith.constant dense<0.000000e+00> : vector<16x128xf32>
    %89 = tpu.matmul %86, %88, %cst_86 {dimension_numbers = #tpu.dot_dimension_numbers<[1], [0], [0], [1], [0, 0, 1, 1], [], []>} : vector<16x384xbf16>, vector<384x128xbf16>, vector<16x128xf32> -> vector<16x128xf32>
    %90 = vector.extract_strided_slice %84 {offsets = [1, 0, 0], sizes = [1, 16, 384], strides = [1, 1, 1]} : vector<6x16x384xbf16> to vector<1x16x384xbf16>
    %91 = vector.shape_cast %90 : vector<1x16x384xbf16> to vector<16x384xbf16>
    %c1_87 = arith.constant 1 : index
    %c0_88 = arith.constant 0 : index
    %c0_89 = arith.constant 0 : index
    %92 = vector.load %arg6[%c1_87, %c0_88, %c0_89] : memref<6x384x128xbf16, #tpu.memory_space<vmem>>, vector<1x384x128xbf16>
    %93 = vector.shape_cast %92 : vector<1x384x128xbf16> to vector<384x128xbf16>
    %cst_90 = arith.constant dense<0.000000e+00> : vector<16x128xf32>
    %94 = tpu.matmul %91, %93, %cst_90 {dimension_numbers = #tpu.dot_dimension_numbers<[1], [0], [0], [1], [0, 0, 1, 1], [], []>} : vector<16x384xbf16>, vector<384x128xbf16>, vector<16x128xf32> -> vector<16x128xf32>
    %95 = arith.addf %89, %94 : vector<16x128xf32>
    %96 = vector.extract_strided_slice %84 {offsets = [2, 0, 0], sizes = [1, 16, 384], strides = [1, 1, 1]} : vector<6x16x384xbf16> to vector<1x16x384xbf16>
    %97 = vector.shape_cast %96 : vector<1x16x384xbf16> to vector<16x384xbf16>
    %c2_91 = arith.constant 2 : index
    %c0_92 = arith.constant 0 : index
    %c0_93 = arith.constant 0 : index
    %98 = vector.load %arg6[%c2_91, %c0_92, %c0_93] : memref<6x384x128xbf16, #tpu.memory_space<vmem>>, vector<1x384x128xbf16>
    %99 = vector.shape_cast %98 : vector<1x384x128xbf16> to vector<384x128xbf16>
    %cst_94 = arith.constant dense<0.000000e+00> : vector<16x128xf32>
    %100 = tpu.matmul %97, %99, %cst_94 {dimension_numbers = #tpu.dot_dimension_numbers<[1], [0], [0], [1], [0, 0, 1, 1], [], []>} : vector<16x384xbf16>, vector<384x128xbf16>, vector<16x128xf32> -> vector<16x128xf32>
    %101 = arith.addf %95, %100 : vector<16x128xf32>
    %102 = vector.extract_strided_slice %84 {offsets = [3, 0, 0], sizes = [1, 16, 384], strides = [1, 1, 1]} : vector<6x16x384xbf16> to vector<1x16x384xbf16>
    %103 = vector.shape_cast %102 : vector<1x16x384xbf16> to vector<16x384xbf16>
    %c3 = arith.constant 3 : index
    %c0_95 = arith.constant 0 : index
    %c0_96 = arith.constant 0 : index
    %104 = vector.load %arg6[%c3, %c0_95, %c0_96] : memref<6x384x128xbf16, #tpu.memory_space<vmem>>, vector<1x384x128xbf16>
    %105 = vector.shape_cast %104 : vector<1x384x128xbf16> to vector<384x128xbf16>
    %cst_97 = arith.constant dense<0.000000e+00> : vector<16x128xf32>
    %106 = tpu.matmul %103, %105, %cst_97 {dimension_numbers = #tpu.dot_dimension_numbers<[1], [0], [0], [1], [0, 0, 1, 1], [], []>} : vector<16x384xbf16>, vector<384x128xbf16>, vector<16x128xf32> -> vector<16x128xf32>
    %107 = arith.addf %101, %106 : vector<16x128xf32>
    %108 = vector.extract_strided_slice %84 {offsets = [4, 0, 0], sizes = [1, 16, 384], strides = [1, 1, 1]} : vector<6x16x384xbf16> to vector<1x16x384xbf16>
    %109 = vector.shape_cast %108 : vector<1x16x384xbf16> to vector<16x384xbf16>
    %c4 = arith.constant 4 : index
    %c0_98 = arith.constant 0 : index
    %c0_99 = arith.constant 0 : index
    %110 = vector.load %arg6[%c4, %c0_98, %c0_99] : memref<6x384x128xbf16, #tpu.memory_space<vmem>>, vector<1x384x128xbf16>
    %111 = vector.shape_cast %110 : vector<1x384x128xbf16> to vector<384x128xbf16>
    %cst_100 = arith.constant dense<0.000000e+00> : vector<16x128xf32>
    %112 = tpu.matmul %109, %111, %cst_100 {dimension_numbers = #tpu.dot_dimension_numbers<[1], [0], [0], [1], [0, 0, 1, 1], [], []>} : vector<16x384xbf16>, vector<384x128xbf16>, vector<16x128xf32> -> vector<16x128xf32>
    %113 = arith.addf %107, %112 : vector<16x128xf32>
    %114 = vector.extract_strided_slice %84 {offsets = [5, 0, 0], sizes = [1, 16, 384], strides = [1, 1, 1]} : vector<6x16x384xbf16> to vector<1x16x384xbf16>
    %115 = vector.shape_cast %114 : vector<1x16x384xbf16> to vector<16x384xbf16>
    %c5 = arith.constant 5 : index
    %c0_101 = arith.constant 0 : index
    %c0_102 = arith.constant 0 : index
    %116 = vector.load %arg6[%c5, %c0_101, %c0_102] : memref<6x384x128xbf16, #tpu.memory_space<vmem>>, vector<1x384x128xbf16>
    %117 = vector.shape_cast %116 : vector<1x384x128xbf16> to vector<384x128xbf16>
    %cst_103 = arith.constant dense<0.000000e+00> : vector<16x128xf32>
    %118 = tpu.matmul %115, %117, %cst_103 {dimension_numbers = #tpu.dot_dimension_numbers<[1], [0], [0], [1], [0, 0, 1, 1], [], []>} : vector<16x384xbf16>, vector<384x128xbf16>, vector<16x128xf32> -> vector<16x128xf32>
    %119 = arith.addf %113, %118 : vector<16x128xf32>
    %c0_104 = arith.constant 0 : index
    %c0_105 = arith.constant 0 : index
    %120 = vector.load %arg7[%c0_104, %c0_105] : memref<1x128xf32, #tpu.memory_space<vmem>>, vector<1x128xf32>
    %121 = vector.broadcast %120 : vector<1x128xf32> to vector<16x128xf32>
    %122 = arith.addf %119, %121 : vector<16x128xf32>
    %cst_106 = arith.constant 0.000000e+00 : f32
    %123 = vector.broadcast %cst_106 : f32 to vector<16x128xf32>
    %124 = arith.maximumf %122, %123 : vector<16x128xf32>
    %125 = arith.truncf %124 : vector<16x128xf32> to vector<16x128xbf16>
    %c0_107 = arith.constant 0 : index
    %c0_108 = arith.constant 0 : index
    %126 = vector.load %arg8[%c0_107, %c0_108] : memref<128x128xbf16, #tpu.memory_space<vmem>>, vector<128x128xbf16>
    %cst_109 = arith.constant dense<0.000000e+00> : vector<16x128xf32>
    %127 = tpu.matmul %125, %126, %cst_109 {dimension_numbers = #tpu.dot_dimension_numbers<[1], [0], [0], [1], [0, 0, 1, 1], [], []>} : vector<16x128xbf16>, vector<128x128xbf16>, vector<16x128xf32> -> vector<16x128xf32>
    %c0_110 = arith.constant 0 : index
    %c0_111 = arith.constant 0 : index
    %128 = vector.load %arg9[%c0_110, %c0_111] : memref<1x128xf32, #tpu.memory_space<vmem>>, vector<1x128xf32>
    %129 = vector.broadcast %128 : vector<1x128xf32> to vector<16x128xf32>
    %130 = arith.addf %127, %129 : vector<16x128xf32>
    %c0_112 = arith.constant 0 : index
    %c0_113 = arith.constant 0 : index
    %131 = vector.load %arg10[%c0_112, %c0_113] : memref<16x128xf32, #tpu.memory_space<vmem>>, vector<16x128xf32>
    tpu.vector_store %arg10[%c0_112, %c0_113], %130 {strides = array<i32>} : memref<16x128xf32, #tpu.memory_space<vmem>>, vector<16x128xf32>,
    return
  }
  func.func @transform_0(%arg0: i32) -> (i32, i32, i32) {
    %c0_i32 = arith.constant 0 : i32
    %c0_i32_0 = arith.constant 0 : i32
    %c0_i32_1 = arith.constant 0 : i32
    return %c0_i32, %arg0, %c0_i32_0 : i32, i32, i32
  }
  func.func @transform_1(%arg0: i32) -> (i32, i32, i32, i32) {
    %c0_i32 = arith.constant 0 : i32
    %c0_i32_0 = arith.constant 0 : i32
    %c0_i32_1 = arith.constant 0 : i32
    %c0_i32_2 = arith.constant 0 : i32
    %c0_i32_3 = arith.constant 0 : i32
    return %c0_i32, %c0_i32_0, %c0_i32_1, %c0_i32_2 : i32, i32, i32, i32
  }
  func.func @transform_2(%arg0: i32) -> (i32, i32) {
    %c0_i32 = arith.constant 0 : i32
    %c0_i32_0 = arith.constant 0 : i32
    %c0_i32_1 = arith.constant 0 : i32
    return %c0_i32, %c0_i32_0 : i32, i32
  }
  func.func @transform_3(%arg0: i32) -> (i32, i32, i32, i32) {
    %c0_i32 = arith.constant 0 : i32
    %c0_i32_0 = arith.constant 0 : i32
    %c0_i32_1 = arith.constant 0 : i32
    %c0_i32_2 = arith.constant 0 : i32
    %c0_i32_3 = arith.constant 0 : i32
    return %c0_i32, %c0_i32_0, %c0_i32_1, %c0_i32_2 : i32, i32, i32, i32
  }
  func.func @transform_4(%arg0: i32) -> (i32, i32) {
    %c0_i32 = arith.constant 0 : i32
    %c0_i32_0 = arith.constant 0 : i32
    %c0_i32_1 = arith.constant 0 : i32
    return %c0_i32, %c0_i32_0 : i32, i32
  }
  func.func @transform_5(%arg0: i32) -> (i32, i32, i32) {
    %c0_i32 = arith.constant 0 : i32
    %c0_i32_0 = arith.constant 0 : i32
    %c0_i32_1 = arith.constant 0 : i32
    %c0_i32_2 = arith.constant 0 : i32
    return %c0_i32, %c0_i32_0, %c0_i32_1 : i32, i32, i32
  }
  func.func @transform_6(%arg0: i32) -> (i32, i32) {
    %c0_i32 = arith.constant 0 : i32
    %c0_i32_0 = arith.constant 0 : i32
    %c0_i32_1 = arith.constant 0 : i32
    return %c0_i32, %c0_i32_0 : i32, i32
  }
  func.func @transform_7(%arg0: i32) -> (i32, i32) {
    %c0_i32 = arith.constant 0 : i32
    %c0_i32_0 = arith.constant 0 : i32
    %c0_i32_1 = arith.constant 0 : i32
    return %c0_i32, %c0_i32_0 : i32, i32
  }
  func.func @transform_8(%arg0: i32) -> (i32, i32) {
    %c0_i32 = arith.constant 0 : i32
    %c0_i32_0 = arith.constant 0 : i32
    %c0_i32_1 = arith.constant 0 : i32
    return %c0_i32, %c0_i32_0 : i32, i32
  }
  func.func @transform_9(%arg0: i32) -> (i32, i32) {
    %c0_i32 = arith.constant 0 : i32
    %c0_i32_0 = arith.constant 0 : i32
    return %arg0, %c0_i32 : i32, i32
  }
}

</mosaic_0001>

<bundles_post_ra>
// kernel: tpu_custom_call.1
= control target key start
LH: loop header
LB: loop body
LE: loop exit
PB: predicated region body
PF: predicated region fallthrough
CT: control target
= control target key end

     0   :  { %14 = vsyncpa [#allocation4], 0  ;;  %s25495_s0 = inlined_call_operand.hbm [shape: bf16[32,16,96], index: 0, kind: input, shape index: {}]   ;;  %s25496_s1 = inlined_call_operand.hbm [shape: bf16[2,3,96,480], index: 1, kind: input, shape index: {}]   ;;  %s25497_s2 = inlined_call_operand.hbm [shape: f32[1,480], index: 2, kind: input, shape index: {}]   ;;  %s25498_s3 = inlined_call_operand.hbm [shape: bf16[2,3,480,384], index: 3, kind: input, shape index: {}]   ;;  %s25499_s4 = inlined_call_operand.hbm [shape: f32[1,384], index: 4, kind: input, shape index: {}]   ;;  %s25500_s5 = inlined_call_operand.hbm [shape: bf16[6,384,128], index: 5, kind: input, shape index: {}]   ;;  %s25501_s6 = inlined_call_operand.hbm [shape: f32[1,128], index: 6, kind: input, shape index: {}]   ;;  %s25502_s7 = inlined_call_operand.hbm [shape: bf16[128,128], index: 7, kind: input, shape index: {}]   ;;  %s25503_s8 = inlined_call_operand.hbm [shape: f32[1,128], index: 8, kind: input, shape index: {}]   ;;  %s25504_s9 = inlined_call_operand.hbm [shape: f32[16,128], index: 9, kind: output, shape index: {}]  }
   0x1   :  { %15 = vsyncpa [#allocation7], 0 }
   0x2   :  { %16 = vsyncpa [#allocation10], 0 }
   0x3   :  { %17 = vsyncpa [#allocation13], 0 }
   0x4   :  { %18 = vsyncpa [#allocation16], 0 }
   0x5   :  { %19 = vsyncpa [#allocation5], 0  ;;  %s22196_s30 = smov [#allocation6]   ;;  %s21964_s13 = scalar_lea.hbm %s25496_s1, 18432 }
   0x6   :  { %s37_s10 = sshll.u32 %s22196_s30, 4  ;;  %p21965_p0 = scmp.ne.s32.totalorder %s25496_s1, %s21964_s13  ;;  %s38_s10 = int_to_ptr.vmem [resolvable:$true] %s37_s10 }
   0x7   :  { %p21968_p1 = scmp.lt.u32.totalorder %s21964_s13, %s25496_s1 }
   0x9   :  { %p21970_p2 = pnand %p21968_p1, %p21965_p0 }
   0xb   :  { %21973 = shalt.err (!%p21970_p2)
}
   0xc   :  { %s21974_s18 = scalar_lea.vmem %s38_s10, 18432  ;;  %p21979_p4 = scmp.lt.s32.totalorder %s38_s10, %s38_s10 }
   0xd   :  { %p21975_p3 = scmp.ne.s32.totalorder %s38_s10, %s21974_s18  ;;  %p21980_p5 = scmp.lt.s32.totalorder %s21974_s18, %s21974_s18 }
   0xf   :  { %p21981_p6 = por %p21980_p5, %p21979_p4 }
  0x11   :  { %p21982_p7 = pnand %p21981_p6, %p21975_p3 }
  0x13   :  { %21985 = shalt.err (!%p21982_p7)
}
  0x14   :  { %s22197_s19 = smov 256   ;;  %s22198_s20 = smov 16  }
  0x15   :  { %43 = dma.hbm_to_vmem [thread:$0]  %s25496_s1, 18432, %s38_s10, [#allocation7], %s22197_s19, %s22197_s19, %s22198_s20  }
  0x16   :  { %s22199_s23 = smov [#allocation9]   ;;  %s21986_s27 = scalar_lea.hbm %s25498_s3, 69120 }
  0x17   :  { %s59_s24 = sshll.u32 %s22199_s23, 4  ;;  %p21987_p8 = scmp.ne.s32.totalorder %s25498_s3, %s21986_s27  ;;  %s60_s24 = int_to_ptr.vmem [resolvable:$true] %s59_s24 }
  0x18   :  { %p21990_p9 = scmp.lt.u32.totalorder %s21986_s27, %s25498_s3 }
  0x1a   :  { %p21992_p10 = pnand %p21990_p9, %p21987_p8 }
  0x1c   :  { %21995 = shalt.err (!%p21992_p10)
}
  0x1d   :  { %s21996_s12 = scalar_lea.vmem %s60_s24, 69120  ;;  %p22001_p12 = scmp.lt.s32.totalorder %s60_s24, %s60_s24 }
  0x1e   :  { %p21997_p11 = scmp.ne.s32.totalorder %s60_s24, %s21996_s12  ;;  %p22002_p13 = scmp.lt.s32.totalorder %s21996_s12, %s21996_s12 }
  0x20   :  { %p22003_p0 = por %p22002_p13, %p22001_p12 }
  0x22   :  { %p22004_p1 = pnand %p22003_p0, %p21997_p11 }
  0x24   :  { %22007 = shalt.err (!%p22004_p1)
}
  0x25   :  { %s22200_s1 = smov 192   ;;  %s22201_s10 = smov 12  }
  0x26   :  { %65 = dma.hbm_to_vmem [thread:$0]  %s25498_s3, 69120, %s60_s24, [#allocation10], %s22200_s1, %s22200_s1, %s22201_s10  }
  0x27   :  { %s22202_s15 = smov [#allocation12]   ;;  %s22203_s17 = smov [#allocation15]  }
  0x28   :  { %s81_s16 = sshll.u32 %s22202_s15, 4  ;;  %s103_s18 = sshll.u32 %s22203_s17, 4  ;;  %s82_s16 = int_to_ptr.vmem [resolvable:$true] %s81_s16  ;;  %s22291_s18 = int_to_ptr.vmem [resolvable:$true] %s103_s18 }
  0x29   :  { %s22008_s21 = scalar_lea.hbm %s25500_s5, 18432 }
  0x2a   :  { %p22009_p2 = scmp.ne.s32.totalorder %s25500_s5, %s22008_s21  ;;  %p22012_p3 = scmp.lt.u32.totalorder %s22008_s21, %s25500_s5 }
  0x2c   :  { %p22014_p4 = pnand %p22012_p3, %p22009_p2 }
  0x2e   :  { %22017 = shalt.err (!%p22014_p4)
}
  0x2f   :  { %s22018_s3 = scalar_lea.vmem %s82_s16, 18432  ;;  %p22023_p6 = scmp.lt.s32.totalorder %s82_s16, %s82_s16 }
  0x30   :  { %p22019_p5 = scmp.ne.s32.totalorder %s82_s16, %s22018_s3  ;;  %p22024_p7 = scmp.lt.s32.totalorder %s22018_s3, %s22018_s3 }
  0x32   :  { %p22025_p8 = por %p22024_p7, %p22023_p6 }
  0x34   :  { %p22026_p9 = pnand %p22025_p8, %p22019_p5 }
  0x36   :  { %22029 = shalt.err (!%p22026_p9)
}
  0x37   :  { %s22204_s24 = smov 64   ;;  %s22205_s27 = smov 4  }
  0x38   :  { %87 = dma.hbm_to_vmem [thread:$0]  %s25500_s5, 18432, %s82_s16, [#allocation13], %s22204_s24, %s22204_s24, %s22205_s27  }
  0x39   :  { %s22030_s12 = scalar_lea.hbm %s25502_s7, 1024 }
  0x3a   :  { %p22031_p10 = scmp.ne.s32.totalorder %s25502_s7, %s22030_s12  ;;  %p22034_p11 = scmp.lt.u32.totalorder %s22030_s12, %s25502_s7 }
  0x3c   :  { %p22036_p12 = pnand %p22034_p11, %p22031_p10 }
  0x3e   :  { %22039 = shalt.err (!%p22036_p12)
}
  0x3f   :  { %s22040_s15 = scalar_lea.vmem %s22291_s18, 1024  ;;  %p22045_p0 = scmp.lt.s32.totalorder %s22291_s18, %s22291_s18 }
  0x40   :  { %p22041_p13 = scmp.ne.s32.totalorder %s22291_s18, %s22040_s15  ;;  %p22046_p1 = scmp.lt.s32.totalorder %s22040_s15, %s22040_s15 }
  0x42   :  { %p22047_p2 = por %p22046_p1, %p22045_p0 }
  0x44   :  { %p22048_p3 = pnand %p22047_p2, %p22041_p13 }
  0x46   :  { %22051 = shalt.err (!%p22048_p3)
}
  0x47   :  { %109 = dma.hbm_to_vmem [thread:$0]  %s25502_s7, 1024, %s22291_s18, [#allocation16], %s22204_s24, %s22204_s24, %s22205_s27  }
  0x48   :  { %s22206_s17 = smov [#allocation3]   ;;  %s22207_s20 = smov [#allocation8]  }
  0x49   :  { %s25_s19 = sshll.u32 %s22206_s17, 4  ;;  %s50_s21 = sshll.u32 %s22207_s20, 4  ;;  %s26_s19 = int_to_ptr.vmem [resolvable:$true] %s25_s19  ;;  %s51_s21 = int_to_ptr.vmem [resolvable:$true] %s50_s21 }
  0x4a   :  { %s22052_s25 = scalar_lea.hbm %s25495_s0, 4096 }
  0x4b   :  { %p22053_p4 = scmp.ne.s32.totalorder %s25495_s0, %s22052_s25  ;;  %p22056_p5 = scmp.lt.u32.totalorder %s22052_s25, %s25495_s0 }
  0x4d   :  { %p22058_p6 = pnand %p22056_p5, %p22053_p4 }
  0x4f   :  { %22061 = shalt.err (!%p22058_p6)
}
  0x50   :  { %s22062_s7 = scalar_lea.vmem %s26_s19, 4096  ;;  %p22067_p8 = scmp.lt.s32.totalorder %s26_s19, %s26_s19 }
  0x51   :  { %p22063_p7 = scmp.ne.s32.totalorder %s26_s19, %s22062_s7  ;;  %p22068_p9 = scmp.lt.s32.totalorder %s22062_s7, %s22062_s7 }
  0x53   :  { %p22069_p10 = por %p22068_p9, %p22067_p8 }
  0x55   :  { %p22070_p11 = pnand %p22069_p10, %p22063_p7 }
  0x57   :  { %22073 = shalt.err (!%p22070_p11)
}
  0x58   :  { %31 = dma.hbm_to_vmem [thread:$0]  %s25495_s0, 4096, %s26_s19, [#allocation4], %s22204_s24, %s22204_s24, %s22205_s27  }
  0x59   :  { %s22074_s1 = scalar_lea.hbm %s25497_s2, 64 }
  0x5a   :  { %p22075_p12 = scmp.ne.s32.totalorder %s25497_s2, %s22074_s1  ;;  %p22078_p13 = scmp.lt.u32.totalorder %s22074_s1, %s25497_s2 }
  0x5c   :  { %p22080_p0 = pnand %p22078_p13, %p22075_p12 }
  0x5e   :  { %22083 = shalt.err (!%p22080_p0)
}
  0x5f   :  { %s22084_s5 = scalar_lea.vmem %s51_s21, 64  ;;  %p22089_p2 = scmp.lt.s32.totalorder %s51_s21, %s51_s21 }
  0x60   :  { %p22085_p1 = scmp.ne.s32.totalorder %s51_s21, %s22084_s5  ;;  %p22090_p3 = scmp.lt.s32.totalorder %s22084_s5, %s22084_s5 }
  0x62   :  { %p22091_p4 = por %p22090_p3, %p22089_p2 }
  0x64   :  { %p22092_p5 = pnand %p22091_p4, %p22085_p1 }
  0x66   :  { %22095 = shalt.err (!%p22092_p5)
}
  0x67   :  { %53 = dma.hbm_to_vmem [thread:$0]  %s25497_s2, 64, %s51_s21, [#allocation7]  }
  0x68   :  { %s22208_s27 = smov [#allocation11]   ;;  %s22209_s17 = smov [#allocation14]  }
  0x69   :  { %s72_s16 = sshll.u32 %s22208_s27, 4  ;;  %s94_s19 = sshll.u32 %s22209_s17, 4  ;;  %s73_s16 = int_to_ptr.vmem [resolvable:$true] %s72_s16  ;;  %s95_s19 = int_to_ptr.vmem [resolvable:$true] %s94_s19 }
  0x6a   :  { %s22096_s23 = scalar_lea.hbm %s25499_s4, 48 }
  0x6b   :  { %p22097_p6 = scmp.ne.s32.totalorder %s25499_s4, %s22096_s23  ;;  %p22100_p7 = scmp.lt.u32.totalorder %s22096_s23, %s25499_s4 }
  0x6d   :  { %p22102_p8 = pnand %p22100_p7, %p22097_p6 }
  0x6f   :  { %22105 = shalt.err (!%p22102_p8)
}
  0x70   :  { %s22106_s2 = scalar_lea.vmem %s73_s16, 48  ;;  %s22110_s21 = scalar_lea.vmem %s73_s16, 64 }
  0x71   :  { %p22107_p9 = scmp.ne.s32.totalorder %s73_s16, %s22106_s2  ;;  %p22111_p10 = scmp.lt.s32.totalorder %s73_s16, %s73_s16 }
  0x72   :  { %p22112_p11 = scmp.lt.s32.totalorder %s22110_s21, %s22106_s2 }
  0x74   :  { %p22113_p12 = por %p22112_p11, %p22111_p10 }
  0x76   :  { %p22114_p13 = pnand %p22113_p12, %p22107_p9 }
  0x78   :  { %22117 = shalt.err (!%p22114_p13)
}
  0x79   :  { %75 = dma.hbm_to_vmem [thread:$0]  %s25499_s4, 48, %s73_s16, [#allocation10]  }
  0x7a   :  { %s22118_s11 = scalar_lea.hbm %s25501_s6, 16 }
  0x7b   :  { %p22119_p0 = scmp.ne.s32.totalorder %s25501_s6, %s22118_s11  ;;  %p22122_p1 = scmp.lt.u32.totalorder %s22118_s11, %s25501_s6 }
  0x7d   :  { %p22124_p2 = pnand %p22122_p1, %p22119_p0 }
  0x7f   :  { %22127 = shalt.err (!%p22124_p2)
}
  0x80   :  { %s22128_s14 = scalar_lea.vmem %s95_s19, 16  ;;  %s22132_s15 = scalar_lea.vmem %s95_s19, 32 }
  0x81   :  { %p22129_p3 = scmp.ne.s32.totalorder %s95_s19, %s22128_s14  ;;  %p22133_p4 = scmp.lt.s32.totalorder %s95_s19, %s95_s19 }
  0x82   :  { %p22134_p5 = scmp.lt.s32.totalorder %s22132_s15, %s22128_s14 }
  0x84   :  { %p22135_p6 = por %p22134_p5, %p22133_p4 }
  0x86   :  { %p22136_p7 = pnand %p22135_p6, %p22129_p3 }
  0x88   :  { %22139 = shalt.err (!%p22136_p7)
}
  0x89   :  { %97 = dma.hbm_to_vmem [thread:$0]  %s25501_s6, 16, %s95_s19, [#allocation13]  }
  0x8a   :  { %s22210_s0 = smov [#allocation17]   ;;  %s22140_s17 = scalar_lea.hbm %s25503_s8, 16 }
  0x8b   :  { %s116_s24 = sshll.u32 %s22210_s0, 4  ;;  %p22141_p8 = scmp.ne.s32.totalorder %s25503_s8, %s22140_s17  ;;  %s117_s24 = int_to_ptr.vmem [resolvable:$true] %s116_s24 }
  0x8c   :  { %p22144_p9 = scmp.lt.u32.totalorder %s22140_s17, %s25503_s8 }
  0x8e   :  { %p22146_p10 = pnand %p22144_p9, %p22141_p8 }
  0x90   :  { %22149 = shalt.err (!%p22146_p10)
}
  0x91   :  { %s22150_s26 = scalar_lea.vmem %s117_s24, 16  ;;  %s22154_s6 = scalar_lea.vmem %s117_s24, 32 }
  0x92   :  { %p22151_p11 = scmp.ne.s32.totalorder %s117_s24, %s22150_s26  ;;  %p22155_p12 = scmp.lt.s32.totalorder %s117_s24, %s117_s24 }
  0x93   :  { %p22156_p13 = scmp.lt.s32.totalorder %s22154_s6, %s22150_s26 }
  0x95   :  { %p22157_p0 = por %p22156_p13, %p22155_p12 }
  0x97   :  { %p22158_p1 = pnand %p22157_p0, %p22151_p11 }
  0x99   :  { %22161 = shalt.err (!%p22158_p1)
}
  0x9a   :  { %119 = dma.hbm_to_vmem [thread:$0]  %s25503_s8, 16, %s117_s24, [#allocation16]  }
  0x9b   :  { %22184 = dma.done.wait [#allocation4], 4096  }
  0x9c   :  { %22185 = vsyncadd [#allocation4], 4294963200 }
  0x9d   :  { %22186 = dma.done.wait [#allocation7], 18496  }
  0x9e   :  { %22187 = vsyncadd [#allocation7], 4294948800 }
  0x9f   :  { %22188 = dma.done.wait [#allocation10], 69168  }
  0xa0   :  { %22189 = vsyncadd [#allocation10], 4294898128 }
  0xa1   :  { %22190 = dma.done.wait [#allocation13], 18448  }
  0xa2   :  { %22191 = vsyncadd [#allocation13], 4294948848 }
  0xa3   :  { %22192 = dma.done.wait [#allocation16], 1040  }
  0xa4   :  { %22193 = vsyncadd [#allocation16], 4294966256  ;;  %v25505_v0 = vmov 0   ;;  %v20636_v1 = vld [vmem:[#allocation6 + $0xc4] ss:$16 sps:$4 sm:$0xff]   ;;  %v20672_v26 = vld [vmem:[#allocation3 + $0x8] sm:$0xff]  }
  0xa5   :  { %736 = vmatprep.mubr.bf16.mxu0 %v25505_v0  ;;  %1069 = vmatprep.mubr.bf16.mxu1 %v25505_v0  ;;  %v20638_v2 = vld [vmem:[#allocation6 + $0xcc] ss:$16 sps:$4 sm:$0xff]   ;;  %v20640_v3 = vld [vmem:[#allocation6 + $0xc0] ss:$16 sps:$4 sm:$0xff]   ;;  %v20641_v4 = vld [vmem:[#allocation6 + $0xc8] ss:$16 sps:$4 sm:$0xff]  }
  0xa6   :  { %704 = vmatprep.subr.bf16.mxu0 %v20636_v1  ;;  %1037 = vmatprep.subr.bf16.mxu1 %v20638_v2  ;;  %v20642_v5 = vld [vmem:[#allocation6 + $0xe4] ss:$16 sps:$4 sm:$0xff]   ;;  %v20644_v6 = vld [vmem:[#allocation6 + $0xec] ss:$16 sps:$4 sm:$0xff]   ;;  %v20646_v7 = vld [vmem:[#allocation6 + $0xe0] ss:$16 sps:$4 sm:$0xff]  }
  0xa7   :  { %705 = vmatpush1.bf16.msra.mxu0 %v20640_v3  ;;  %1038 = vmatpush1.bf16.msra.mxu1 %v20641_v4  ;;  %v20647_v8 = vld [vmem:[#allocation6 + $0xe8] ss:$16 sps:$4 sm:$0xff]   ;;  %v20648_v9 = vld [vmem:[#allocation6 + $0x104] ss:$16 sps:$4 sm:$0xff]   ;;  %v20650_v10 = vld [vmem:[#allocation6 + $0x10c] ss:$16 sps:$4 sm:$0xff]  }
  0xa8   :  { %706 = vmatprep.subr.bf16.mxu0 %v20642_v5  ;;  %1039 = vmatprep.subr.bf16.mxu1 %v20644_v6  ;;  %v20652_v11 = vld [vmem:[#allocation6 + $0x100] ss:$16 sps:$4 sm:$0xff]   ;;  %v20653_v12 = vld [vmem:[#allocation6 + $0x108] ss:$16 sps:$4 sm:$0xff]   ;;  %v20654_v13 = vld [vmem:[#allocation6 + $0x124] ss:$16 sps:$4 sm:$0xff]  }
  0xa9   :  { %v20656_v14 = vld [vmem:[#allocation6 + $0x12c] ss:$16 sps:$4 sm:$0xff]   ;;  %v20658_v15 = vld [vmem:[#allocation6 + $0x120] ss:$16 sps:$4 sm:$0xff]   ;;  %v20659_v16 = vld [vmem:[#allocation6 + $0x128] ss:$16 sps:$4 sm:$0xff]  }
  0xaa   :  { %v20660_v17 = vld [vmem:[#allocation6 + $0x144] ss:$16 sps:$4 sm:$0xff]   ;;  %v20662_v18 = vld [vmem:[#allocation6 + $0x14c] ss:$16 sps:$4 sm:$0xff]   ;;  %v20664_v19 = vld [vmem:[#allocation6 + $0x140] ss:$16 sps:$4 sm:$0xff]  }
  0xab   :  { %707 = vmatpush1.bf16.msra.mxu0 %v20646_v7  ;;  %1040 = vmatpush1.bf16.msra.mxu1 %v20647_v8  ;;  %v20665_v20 = vld [vmem:[#allocation6 + $0x148] ss:$16 sps:$4 sm:$0xff]   ;;  %v20666_v21 = vld [vmem:[#allocation6 + $0x164] ss:$16 sps:$4 sm:$0xff]   ;;  %v20668_v22 = vld [vmem:[#allocation6 + $0x16c] ss:$16 sps:$4 sm:$0xff]  }
  0xac   :  { %708 = vmatprep.subr.bf16.mxu0 %v20648_v9  ;;  %1041 = vmatprep.subr.bf16.mxu1 %v20650_v10  ;;  %v20670_v23 = vld [vmem:[#allocation6 + $0x160] ss:$16 sps:$4 sm:$0xff]   ;;  %v20671_v24 = vld [vmem:[#allocation6 + $0x168] ss:$16 sps:$4 sm:$0xff]   ;;  %v20675_v25 = vld [vmem:[#allocation6 + $0x4] ss:$16 sps:$4 sm:$0xff]  }
  0xad   :  { %vm613_vm0 = vcmask 785408   ;;  %v20673_v27 = vld [vmem:[#allocation6] ss:$16 sps:$4 sm:$0xff]   ;;  %v20683_v28 = vld [vmem:[#allocation6 + $0x24] ss:$16 sps:$4 sm:$0xff]   ;;  %v20677_v37 = vld [vmem:[#allocation3 + $0x18] sm:$0xff]  }
  0xae   :  { %v20681_v29 = vld [vmem:[#allocation6 + $0x20] ss:$16 sps:$4 sm:$0xff]   ;;  %v20691_v30 = vld [vmem:[#allocation6 + $0x44] ss:$16 sps:$4 sm:$0xff]   ;;  %v20694_v33 = vld [vmem:[#allocation6 + $0x8] ss:$16 sps:$4 sm:$0xff]  }
  0xaf   :  { %709 = vmatpush1.bf16.msra.mxu0 %v20652_v11  ;;  %1042 = vmatpush1.bf16.msra.mxu1 %v20653_v12  ;;  %v20676_v31 = vld [vmem:[#allocation3 + $0x10] sm:$0xff]   ;;  %v20696_v34 = vld [vmem:[#allocation6 + $0xc] ss:$16 sps:$4 sm:$0xff]   ;;  %v20705_v39 = vld [vmem:[#allocation6 + $0x28] ss:$16 sps:$4 sm:$0xff]   ;;  %vm22213_vm1 = vmmov 0  }
  0xb0   :  { %710 = vmatprep.subr.bf16.mxu0 %v20654_v13  ;;  %1043 = vmatprep.subr.bf16.mxu1 %v20656_v14  ;;  %v20689_v32 = vld [vmem:[#allocation6 + $0x40] ss:$16 sps:$4 sm:$0xff]   ;;  %v20702_v36 = vld [vmem:[#allocation6 + $0x64] ss:$16 sps:$4 sm:$0xff]   ;;  %v20707_v38 = vld [vmem:[#allocation6 + $0x2c] ss:$16 sps:$4 sm:$0xff]  }
  0xb1   :  { %v20700_v35 = vld [vmem:[#allocation6 + $0x60] ss:$16 sps:$4 sm:$0xff]   ;;  %v20679_v41 = vld [vmem:[#allocation3 + $0x28] sm:$0xff]   ;;  %v20713_v43 = vld [vmem:[#allocation6 + $0x84] ss:$16 sps:$4 sm:$0xff]   ;;  %s22214_s8 = smov [#allocation18]  }
  0xb2   :  { %v20678_v40 = vld [vmem:[#allocation3 + $0x20] sm:$0xff]   ;;  %v20680_v44 = vld [vmem:[#allocation3 + $0x30] sm:$0xff]   ;;  %v20684_v45 = vld [vmem:[#allocation3 + $0x38] sm:$0xff]   ;;  %s16528_s28 = sshll.u32 %s22214_s8, 4  ;;  %s16529_s28 = int_to_ptr.vmem [resolvable:$true] %s16528_s28 }
  0xb3   :  { %711 = vmatpush1.bf16.msra.mxu0 %v20658_v15  ;;  %1044 = vmatpush1.bf16.msra.mxu1 %v20659_v16  ;;  %v20711_v42 = vld [vmem:[#allocation6 + $0x80] ss:$16 sps:$4 sm:$0xff]   ;;  %v20716_v46 = vld [vmem:[#allocation6 + $0x48] ss:$16 sps:$4 sm:$0xff]   ;;  %v20718_v47 = vld [vmem:[#allocation6 + $0x4c] ss:$16 sps:$4 sm:$0xff]   ;;  %p22167_p3 = scmp.lt.s32.totalorder %s16529_s28, %s16529_s28 }
  0xb4   :  { %712 = vmatprep.subr.bf16.mxu0 %v20660_v17  ;;  %1045 = vmatprep.subr.bf16.mxu1 %v20662_v18  ;;  %v20685_v48 = vld [vmem:[#allocation3 + $0x40] sm:$0xff]   ;;  %v20686_v49 = vld [vmem:[#allocation3 + $0x48] sm:$0xff]   ;;  %v20687_v50 = vld [vmem:[#allocation3 + $0x50] sm:$0xff]   ;;  %s22162_s2 = scalar_lea.vmem %s16529_s28, 256 }
  0xb5   :  { %v20722_v51 = vld [vmem:[#allocation6 + $0xa0] ss:$16 sps:$4 sm:$0xff]   ;;  %v20724_v52 = vld [vmem:[#allocation6 + $0xa4] ss:$16 sps:$4 sm:$0xff]   ;;  %v20688_v53 = vld [vmem:[#allocation3 + $0x58] sm:$0xff]   ;;  %p22163_p2 = scmp.ne.s32.totalorder %s16529_s28, %s22162_s2  ;;  %p22168_p4 = scmp.lt.s32.totalorder %s22162_s2, %s22162_s2 }
  0xb6   :  { %v20692_v54 = vld [vmem:[#allocation3 + $0x60] sm:$0xff]   ;;  %v20727_v55 = vld [vmem:[#allocation6 + $0x68] ss:$16 sps:$4 sm:$0xff]   ;;  %v20729_v56 = vld [vmem:[#allocation6 + $0x6c] ss:$16 sps:$4 sm:$0xff]  }
  0xb7   :  { %713 = vmatpush1.bf16.msra.mxu0 %v20664_v19  ;;  %1046 = vmatpush1.bf16.msra.mxu1 %v20665_v20  ;;  %v20693_v57 = vld [vmem:[#allocation3 + $0x68] sm:$0xff]   ;;  %v20697_v58 = vld [vmem:[#allocation3 + $0x70] sm:$0xff]   ;;  %v20698_v63 = vld [vmem:[#allocation3 + $0x78] sm:$0xff]   ;;  %p22169_p5 = por %p22168_p4, %p22167_p3 }
  0xb8   :  { %714 = vmatprep.subr.bf16.mxu0 %v20666_v21  ;;  %1047 = vmatprep.subr.bf16.mxu1 %v20668_v22  ;;  %v20734_v59 = vld [vmem:[#allocation6 + $0x8c] ss:$16 sps:$4 sm:$0xff]   ;;  %v20732_v60 = vld [vmem:[#allocation6 + $0x88] ss:$16 sps:$4 sm:$0xff]   ;;  %v20741_v1 = vld [vmem:[#allocation6 + $0x304] ss:$16 sps:$4 sm:$0xff]  }
  0xb9   :  { %v20737_v61 = vld [vmem:[#allocation6 + $0xac] ss:$16 sps:$4 sm:$0xff]   ;;  %v20735_v62 = vld [vmem:[#allocation6 + $0xa8] ss:$16 sps:$4 sm:$0xff]   ;;  %v20699_v2 = vld [vmem:[#allocation3 + $0x80] sm:$0xff]   ;;  %p22170_p6 = pnand %p22169_p5, %p22163_p2 }
  0xba   :  { %v20703_v3 = vld [vmem:[#allocation3 + $0x88] sm:$0xff]   ;;  %v20704_v4 = vld [vmem:[#allocation3 + $0x90] sm:$0xff]   ;;  %v20708_v5 = vld [vmem:[#allocation3 + $0x98] sm:$0xff]  }
  0xbb   :  { %715 = vmatpush1.bf16.msra.mxu0 %v20670_v23  ;;  %1048 = vmatpush1.bf16.msra.mxu1 %v20671_v24  ;;  %v20709_v6 = vld [vmem:[#allocation3 + $0xa0] sm:$0xff]   ;;  %v20710_v7 = vld [vmem:[#allocation3 + $0xa8] sm:$0xff]   ;;  %v20714_v8 = vld [vmem:[#allocation3 + $0xb0] sm:$0xff]  }
  0xbc   :  { %1730 = vmatprep.subr.bf16.mxu0 %v20675_v25  ;;  %2063 = vmatprep.subr.bf16.mxu1 %v20696_v34  ;;  %v20715_v9 = vld [vmem:[#allocation3 + $0xb8] sm:$0xff]   ;;  %v20719_v10 = vld [vmem:[#allocation3 + $0xc0] sm:$0xff]   ;;  %v20720_v11 = vld [vmem:[#allocation3 + $0xc8] sm:$0xff]  }
  0xbd   :  { %v20721_v12 = vld [vmem:[#allocation3 + $0xd0] sm:$0xff]   ;;  %v20725_v13 = vld [vmem:[#allocation3 + $0xd8] sm:$0xff]   ;;  %v20726_v15 = vld [vmem:[#allocation3 + $0xe0] sm:$0xff]  }
  0xbe   :  { %16598 = vmatmul.mubr.msk.bf16.vlgmr.msra.gmra.mrb[0].mxu0 %vm613_vm0, %v20672_v26  ;;  %16628 = vmatmul.mubr.msk.bf16.vlgmr.msra.gmra.mrb[0].mxu1 %vm613_vm0, %v20672_v26  ;;  %v20762_v14 = vld [vmem:[#allocation6 + $0x30c] ss:$16 sps:$4 sm:$0xff]   ;;  %v20731_v17 = vld [vmem:[#allocation3 + $0xf0] sm:$0xff]   ;;  %v20738_v18 = vld [vmem:[#allocation3] sm:$0xff]  }
  0xbf   :  { %1731 = vmatpush1.bf16.msra.mxu0 %v20673_v27  ;;  %746 = vmatprep.mubr.bf16.mxu0 %v25505_v0  ;;  %v20730_v16 = vld [vmem:[#allocation3 + $0xe8] sm:$0xff]   ;;  %v20739_v19 = vld [vmem:[#allocation6 + $0x300] ss:$16 sps:$4 sm:$0xff]   ;;  %v20749_v20 = vld [vmem:[#allocation6 + $0x324] ss:$16 sps:$4 sm:$0xff]  }
  0xc0   :  { %1079 = vmatprep.mubr.bf16.mxu1 %v25505_v0  ;;  %1732 = vmatprep.subr.bf16.mxu0 %v20683_v28  ;;  %v20760_v21 = vld [vmem:[#allocation6 + $0x308] ss:$16 sps:$4 sm:$0xff]   ;;  %v20747_v22 = vld [vmem:[#allocation6 + $0x320] ss:$16 sps:$4 sm:$0xff]   ;;  %v20757_v23 = vld [vmem:[#allocation6 + $0x344] ss:$16 sps:$4 sm:$0xff]  }
  0xc1   :  { %2064 = vmatpush1.bf16.msra.mxu1 %v20694_v33  ;;  %v20742_v24 = vld [vmem:[#allocation3 + $0x8] sm:$0xff]   ;;  %v20755_v25 = vld [vmem:[#allocation6 + $0x340] ss:$16 sps:$4 sm:$0xff]   ;;  %v20768_v26 = vld [vmem:[#allocation6 + $0x364] ss:$16 sps:$4 sm:$0xff]  }
  0xc2   :  { %2065 = vmatprep.subr.bf16.mxu1 %v20707_v38  ;;  %v20771_v27 = vld [vmem:[#allocation6 + $0x328] ss:$16 sps:$4 sm:$0xff]   ;;  %v20773_v28 = vld [vmem:[#allocation6 + $0x32c] ss:$16 sps:$4 sm:$0xff]   ;;  %v20777_v33 = vld [vmem:[#allocation6 + $0x380] ss:$16 sps:$4 sm:$0xff]  }
  0xc3   :  { %1733 = vmatpush1.bf16.msra.mxu0 %v20681_v29  ;;  %v20766_v29 = vld [vmem:[#allocation6 + $0x360] ss:$16 sps:$4 sm:$0xff]   ;;  %v20779_v34 = vld [vmem:[#allocation6 + $0x384] ss:$16 sps:$4 sm:$0xff]   ;;  %v20784_v38 = vld [vmem:[#allocation6 + $0x34c] ss:$16 sps:$4 sm:$0xff]  }
  0xc4   :  { %1734 = vmatprep.subr.bf16.mxu0 %v20691_v30  ;;  %v20743_v30 = vld [vmem:[#allocation3 + $0x10] sm:$0xff]  }
  0xc5   :  { %2066 = vmatpush1.bf16.msra.mxu1 %v20705_v39  ;;  %v20751_v39 = vld [vmem:[#allocation3 + $0x38] sm:$0xff]  }
  0xc6   :  { %16599 = vmatmul.mubr.msk.bf16.gmra.mrb[4].mxu0 %vm613_vm0, %v20676_v31  ;;  %16629 = vmatmul.mubr.msk.bf16.gmra.mrb[4].mxu1 %vm613_vm0, %v20676_v31  ;;  %v20744_v31 = vld [vmem:[#allocation3 + $0x18] sm:$0xff]  }
  0xc7   :  { %756 = vmatprep.mubr.bf16.mxu0 %v25505_v0  ;;  %1089 = vmatprep.mubr.bf16.mxu1 %v25505_v0 }
  0xc8   :  { %1735 = vmatpush1.bf16.msra.mxu0 %v20689_v32  ;;  %2067 = vmatprep.subr.bf16.mxu1 %v20718_v47  ;;  %v20745_v32 = vld [vmem:[#allocation3 + $0x20] sm:$0xff]   ;;  %v20795_v47 = vld [vmem:[#allocation6 + $0x36c] ss:$16 sps:$4 sm:$0xff]  }
  0xc9   :  { %1736 = vmatprep.subr.bf16.mxu0 %v20702_v36  ;;  %2068 = vmatpush1.bf16.msra.mxu1 %v20716_v46  ;;  %v20750_v36 = vld [vmem:[#allocation3 + $0x30] sm:$0xff]   ;;  %v20793_v46 = vld [vmem:[#allocation6 + $0x368] ss:$16 sps:$4 sm:$0xff]  }
  0xca   :  { %2069 = vmatprep.subr.bf16.mxu1 %v20729_v56  ;;  %v20765_v56 = vld [vmem:[#allocation3 + $0x78] sm:$0xff]  }
  0xcc   :  { %1737 = vmatpush1.bf16.msra.mxu0 %v20700_v35  ;;  %v20746_v35 = vld [vmem:[#allocation3 + $0x28] sm:$0xff]  }
  0xcd   :  { %1738 = vmatprep.subr.bf16.mxu0 %v20713_v43  ;;  %2070 = vmatpush1.bf16.msra.mxu1 %v20727_v55  ;;  %v20790_v43 = vld [vmem:[#allocation6 + $0x3a4] ss:$16 sps:$4 sm:$0xff]  }
  0xce   :  { %16600 = vmatmul.mubr.msk.bf16.gmra.mrb[8].mxu0 %vm613_vm0, %v20677_v37  ;;  %16630 = vmatmul.mubr.msk.bf16.gmra.mrb[8].mxu1 %vm613_vm0, %v20677_v37  ;;  %v20782_v37 = vld [vmem:[#allocation6 + $0x348] ss:$16 sps:$4 sm:$0xff]   ;;  %v20806_v55 = vld [vmem:[#allocation6 + $0x244] ss:$16 sps:$4 sm:$0xff]  }
  0xcf   :  { %766 = vmatprep.mubr.bf16.mxu0 %v25505_v0  ;;  %1099 = vmatprep.mubr.bf16.mxu1 %v25505_v0 }
  0xd0   :  { %1739 = vmatpush1.bf16.msra.mxu0 %v20711_v42  ;;  %2071 = vmatprep.subr.bf16.mxu1 %v20734_v59  ;;  %v20788_v42 = vld [vmem:[#allocation6 + $0x3a0] ss:$16 sps:$4 sm:$0xff]  }
  0xd1   :  { %1740 = vmatprep.subr.bf16.mxu0 %v20724_v52  ;;  %2072 = vmatpush1.bf16.msra.mxu1 %v20732_v60  ;;  %v20803_v52 = vld [vmem:[#allocation6 + $0x3ac] ss:$16 sps:$4 sm:$0xff]   ;;  %v20774_v59 = vld [vmem:[#allocation3 + $0x90] sm:$0xff]  }
  0xd2   :  { %2073 = vmatprep.subr.bf16.mxu1 %v20737_v61  ;;  %v20775_v60 = vld [vmem:[#allocation3 + $0x98] sm:$0xff]   ;;  %v20776_v61 = vld [vmem:[#allocation3 + $0xa0] sm:$0xff]  }
  0xd4   :  { %1741 = vmatpush1.bf16.msra.mxu0 %v20722_v51  ;;  %v20798_v51 = vld [vmem:[#allocation6 + $0x388] ss:$16 sps:$4 sm:$0xff]  }
  0xd5   :  { %2074 = vmatpush1.bf16.msra.mxu1 %v20735_v62  ;;  %2541 = vmatprep.subr.bf16.mxu0 %v20741_v1  ;;  %v20780_v62 = vld [vmem:[#allocation3 + $0xa8] sm:$0xff]   ;;  %v22605_v1 = vld [vmem:[#allocation3 + $0xb8] sm:$0xff]  }
  0xd6   :  { %16601 = vmatmul.mubr.msk.bf16.gmra.mrb[12].mxu0 %vm613_vm0, %v20678_v40  ;;  %16631 = vmatmul.mubr.msk.bf16.gmra.mrb[12].mxu1 %vm613_vm0, %v20678_v40  ;;  %v20752_v40 = vld [vmem:[#allocation3 + $0x40] sm:$0xff]  }
  0xd7   :  { %776 = vmatprep.mubr.bf16.mxu0 %v25505_v0  ;;  %1109 = vmatprep.mubr.bf16.mxu1 %v25505_v0 }
  0xd8   :  { %2874 = vmatprep.subr.bf16.mxu1 %v20762_v14  ;;  %v20812_v14 = vld [vmem:[#allocation6 + $0x284] ss:$16 sps:$4 sm:$0xff]  }
  0xde   :  { %16602 = vmatmul.mubr.msk.bf16.gmra.mrb[16].mxu0 %vm613_vm0, %v20679_v41  ;;  %16632 = vmatmul.mubr.msk.bf16.gmra.mrb[16].mxu1 %vm613_vm0, %v20679_v41  ;;  %v20753_v41 = vld [vmem:[#allocation3 + $0x48] sm:$0xff]  }
  0xdf   :  { %786 = vmatprep.mubr.bf16.mxu0 %v25505_v0  ;;  %1119 = vmatprep.mubr.bf16.mxu1 %v25505_v0 }
  0xe6   :  { %16603 = vmatmul.mubr.msk.bf16.gmra.mrb[20].mxu0 %vm613_vm0, %v20680_v44  ;;  %16633 = vmatmul.mubr.msk.bf16.gmra.mrb[20].mxu1 %vm613_vm0, %v20680_v44  ;;  %v20754_v44 = vld [vmem:[#allocation3 + $0x50] sm:$0xff]  }
  0xe7   :  { %796 = vmatprep.mubr.bf16.mxu0 %v25505_v0  ;;  %1129 = vmatprep.mubr.bf16.mxu1 %v25505_v0 }
  0xee   :  { %16604 = vmatmul.mubr.msk.bf16.gmra.mrb[24].mxu0 %vm613_vm0, %v20684_v45  ;;  %16634 = vmatmul.mubr.msk.bf16.gmra.mrb[24].mxu1 %vm613_vm0, %v20684_v45  ;;  %v20758_v45 = vld [vmem:[#allocation3 + $0x58] sm:$0xff]  }
  0xef   :  { %806 = vmatprep.mubr.bf16.mxu0 %v25505_v0  ;;  %1139 = vmatprep.mubr.bf16.mxu1 %v25505_v0 }
  0xf6   :  { %16605 = vmatmul.mubr.msk.bf16.gmra.mrb[28].mxu0 %vm613_vm0, %v20685_v48  ;;  %16635 = vmatmul.mubr.msk.bf16.gmra.mrb[28].mxu1 %vm613_vm0, %v20685_v48  ;;  %v20759_v48 = vld [vmem:[#allocation3 + $0x60] sm:$0xff]  }
  0xf7   :  { %816 = vmatprep.mubr.bf16.mxu0 %v25505_v0  ;;  %1149 = vmatprep.mubr.bf16.mxu1 %v25505_v0 }
  0xfe   :  { %16606 = vmatmul.mubr.msk.bf16.gmra.mrb[32].mxu0 %vm613_vm0, %v20686_v49  ;;  %16636 = vmatmul.mubr.msk.bf16.gmra.mrb[32].mxu1 %vm613_vm0, %v20686_v49  ;;  %v20763_v49 = vld [vmem:[#allocation3 + $0x68] sm:$0xff]  }
  0xff   :  { %826 = vmatprep.mubr.bf16.mxu0 %v25505_v0  ;;  %1159 = vmatprep.mubr.bf16.mxu1 %v25505_v0 }
 0x106   :  { %16607 = vmatmul.mubr.msk.bf16.gmra.mrb[36].mxu0 %vm613_vm0, %v20687_v50  ;;  %16637 = vmatmul.mubr.msk.bf16.gmra.mrb[36].mxu1 %vm613_vm0, %v20687_v50  ;;  %v20800_v50 = vld [vmem:[#allocation6 + $0x38c] ss:$16 sps:$4 sm:$0xff]  }
 0x107   :  { %836 = vmatprep.mubr.bf16.mxu0 %v25505_v0  ;;  %1169 = vmatprep.mubr.bf16.mxu1 %v25505_v0 }
 0x10e   :  { %16608 = vmatmul.mubr.msk.bf16.gmra.mrb[40].mxu0 %vm613_vm0, %v20688_v53  ;;  %16638 = vmatmul.mubr.msk.bf16.gmra.mrb[40].mxu1 %vm613_vm0, %v20688_v53  ;;  %v20801_v53 = vld [vmem:[#allocation6 + $0x3a8] ss:$16 sps:$4 sm:$0xff]  }
 0x10f   :  { %846 = vmatprep.mubr.bf16.mxu0 %v25505_v0  ;;  %1179 = vmatprep.mubr.bf16.mxu1 %v25505_v0 }
 0x116   :  { %16609 = vmatmul.mubr.msk.bf16.gmra.mrb[44].mxu0 %vm613_vm0, %v20692_v54  ;;  %16639 = vmatmul.mubr.msk.bf16.gmra.mrb[44].mxu1 %vm613_vm0, %v20692_v54  ;;  %v20764_v54 = vld [vmem:[#allocation3 + $0x70] sm:$0xff]  }
 0x117   :  { %856 = vmatprep.mubr.bf16.mxu0 %v25505_v0  ;;  %1189 = vmatprep.mubr.bf16.mxu1 %v25505_v0 }
 0x11e   :  { %16610 = vmatmul.mubr.msk.bf16.gmra.mrb[48].mxu0 %vm613_vm0, %v20693_v57  ;;  %16640 = vmatmul.mubr.msk.bf16.gmra.mrb[48].mxu1 %vm613_vm0, %v20693_v57  ;;  %v20769_v57 = vld [vmem:[#allocation3 + $0x80] sm:$0xff]  }
 0x11f   :  { %866 = vmatprep.mubr.bf16.mxu0 %v25505_v0  ;;  %1199 = vmatprep.mubr.bf16.mxu1 %v25505_v0 }
 0x126   :  { %16611 = vmatmul.mubr.msk.bf16.gmra.mrb[52].mxu0 %vm613_vm0, %v20697_v58  ;;  %16641 = vmatmul.mubr.msk.bf16.gmra.mrb[52].mxu1 %vm613_vm0, %v20697_v58  ;;  %v20770_v58 = vld [vmem:[#allocation3 + $0x88] sm:$0xff]  }
 0x127   :  { %876 = vmatprep.mubr.bf16.mxu0 %v25505_v0  ;;  %1209 = vmatprep.mubr.bf16.mxu1 %v25505_v0 }
 0x12e   :  { %16612 = vmatmul.mubr.msk.bf16.gmra.mrb[56].mxu0 %vm613_vm0, %v20698_v63  ;;  %16642 = vmatmul.mubr.msk.bf16.gmra.mrb[56].mxu1 %vm613_vm0, %v20698_v63  ;;  %v20781_v63 = vld [vmem:[#allocation3 + $0xb0] sm:$0xff]  }
 0x12f   :  { %886 = vmatprep.mubr.bf16.mxu0 %v25505_v0  ;;  %1219 = vmatprep.mubr.bf16.mxu1 %v25505_v0 }
 0x136   :  { %16613 = vmatmul.mubr.msk.bf16.gmra.mrb[60].mxu0 %vm613_vm0, %v20699_v2  ;;  %16643 = vmatmul.mubr.msk.bf16.gmra.mrb[60].mxu1 %vm613_vm0, %v20699_v2  ;;  %v22613_v2 = vld [vmem:[#allocation3 + $0xc0] sm:$0xff]  }
 0x137   :  { %896 = vmatprep.mubr.bf16.mxu0 %v25505_v0  ;;  %1229 = vmatprep.mubr.bf16.mxu1 %v25505_v0 }
 0x13e   :  { %16614 = vmatmul.mubr.msk.bf16.gmra.mrb[64].mxu0 %vm613_vm0, %v20703_v3  ;;  %16644 = vmatmul.mubr.msk.bf16.gmra.mrb[64].mxu1 %vm613_vm0, %v20703_v3  ;;  %v22621_v3 = vld [vmem:[#allocation3 + $0xc8] sm:$0xff]  }
 0x13f   :  { %906 = vmatprep.mubr.bf16.mxu0 %v25505_v0  ;;  %1239 = vmatprep.mubr.bf16.mxu1 %v25505_v0 }
 0x146   :  { %16615 = vmatmul.mubr.msk.bf16.gmra.mrb[68].mxu0 %vm613_vm0, %v20704_v4  ;;  %16645 = vmatmul.mubr.msk.bf16.gmra.mrb[68].mxu1 %vm613_vm0, %v20704_v4  ;;  %v22629_v4 = vld [vmem:[#allocation3 + $0xd0] sm:$0xff]  }
 0x147   :  { %916 = vmatprep.mubr.bf16.mxu0 %v25505_v0  ;;  %1249 = vmatprep.mubr.bf16.mxu1 %v25505_v0 }
 0x14e   :  { %16616 = vmatmul.mubr.msk.bf16.gmra.mrb[72].mxu0 %vm613_vm0, %v20708_v5  ;;  %16646 = vmatmul.mubr.msk.bf16.gmra.mrb[72].mxu1 %vm613_vm0, %v20708_v5  ;;  %v20815_v5 = vld [vmem:[#allocation6 + $0x24c] ss:$16 sps:$4 sm:$0xff]  }
 0x14f   :  { %926 = vmatprep.mubr.bf16.mxu0 %v25505_v0  ;;  %1259 = vmatprep.mubr.bf16.mxu1 %v25505_v0 }
 0x156   :  { %16617 = vmatmul.mubr.msk.bf16.gmra.mrb[76].mxu0 %vm613_vm0, %v20709_v6  ;;  %16647 = vmatmul.mubr.msk.bf16.gmra.mrb[76].mxu1 %vm613_vm0, %v20709_v6  ;;  %v22637_v6 = vld [vmem:[#allocation3 + $0xd8] sm:$0xff]  }
 0x157   :  { %936 = vmatprep.mubr.bf16.mxu0 %v25505_v0  ;;  %1269 = vmatprep.mubr.bf16.mxu1 %v25505_v0 }
 0x15e   :  { %16618 = vmatmul.mubr.msk.bf16.gmra.mrb[80].mxu0 %vm613_vm0, %v20710_v7  ;;  %16648 = vmatmul.mubr.msk.bf16.gmra.mrb[80].mxu1 %vm613_vm0, %v20710_v7  ;;  %v22645_v7 = vld [vmem:[#allocation3 + $0xe0] sm:$0xff]  }
 0x15f   :  { %946 = vmatprep.mubr.bf16.mxu0 %v25505_v0  ;;  %1279 = vmatprep.mubr.bf16.mxu1 %v25505_v0 }
 0x166   :  { %16619 = vmatmul.mubr.msk.bf16.gmra.mrb[84].mxu0 %vm613_vm0, %v20714_v8  ;;  %16649 = vmatmul.mubr.msk.bf16.gmra.mrb[84].mxu1 %vm613_vm0, %v20714_v8  ;;  %v22653_v8 = vld [vmem:[#allocation3 + $0xe8] sm:$0xff]  }
 0x167   :  { %956 = vmatprep.mubr.bf16.mxu0 %v25505_v0  ;;  %1289 = vmatprep.mubr.bf16.mxu1 %v25505_v0 }
 0x16e   :  { %16620 = vmatmul.mubr.msk.bf16.gmra.mrb[88].mxu0 %vm613_vm0, %v20715_v9  ;;  %16650 = vmatmul.mubr.msk.bf16.gmra.mrb[88].mxu1 %vm613_vm0, %v20715_v9  ;;  %v20804_v9 = vld [vmem:[#allocation6 + $0x240] ss:$16 sps:$4 sm:$0xff]  }
 0x16f   :  { %966 = vmatprep.mubr.bf16.mxu0 %v25505_v0  ;;  %1299 = vmatprep.mubr.bf16.mxu1 %v25505_v0 }
 0x176   :  { %16621 = vmatmul.mubr.msk.bf16.gmra.mrb[92].mxu0 %vm613_vm0, %v20719_v10  ;;  %16651 = vmatmul.mubr.msk.bf16.gmra.mrb[92].mxu1 %vm613_vm0, %v20719_v10  ;;  %v20809_v10 = vld [vmem:[#allocation6 + $0x264] ss:$16 sps:$4 sm:$0xff]  }
 0x177   :  { %976 = vmatprep.mubr.bf16.mxu0 %v25505_v0  ;;  %1309 = vmatprep.mubr.bf16.mxu1 %v25505_v0 }
 0x17e   :  { %16622 = vmatmul.mubr.msk.bf16.gmra.mrb[96].mxu0 %vm613_vm0, %v20720_v11  ;;  %16652 = vmatmul.mubr.msk.bf16.gmra.mrb[96].mxu1 %vm613_vm0, %v20720_v11  ;;  %v20813_v11 = vld [vmem:[#allocation6 + $0x248] ss:$16 sps:$4 sm:$0xff]  }
 0x17f   :  { %986 = vmatprep.mubr.bf16.mxu0 %v25505_v0  ;;  %1319 = vmatprep.mubr.bf16.mxu1 %v25505_v0 }
 0x186   :  { %16623 = vmatmul.mubr.msk.bf16.gmra.mrb[100].mxu0 %vm613_vm0, %v20721_v12  ;;  %16653 = vmatmul.mubr.msk.bf16.gmra.mrb[100].mxu1 %vm613_vm0, %v20721_v12  ;;  %v21814_v12 = vld [vmem:[#allocation3 + $0x8] sm:$0xff]  }
 0x187   :  { %996 = vmatprep.mubr.bf16.mxu0 %v25505_v0  ;;  %1329 = vmatprep.mubr.bf16.mxu1 %v25505_v0 }
 0x18e   :  { %16624 = vmatmul.mubr.msk.bf16.gmra.mrb[104].mxu0 %vm613_vm0, %v20725_v13  ;;  %16654 = vmatmul.mubr.msk.bf16.gmra.mrb[104].mxu1 %vm613_vm0, %v20725_v13  ;;  %v20807_v13 = vld [vmem:[#allocation6 + $0x260] ss:$16 sps:$4 sm:$0xff]  }
 0x18f   :  { %1006 = vmatprep.mubr.bf16.mxu0 %v25505_v0  ;;  %1339 = vmatprep.mubr.bf16.mxu1 %v25505_v0 }
 0x196   :  { %16625 = vmatmul.mubr.msk.bf16.gmra.mrb[108].mxu0 %vm613_vm0, %v20726_v15  ;;  %16655 = vmatmul.mubr.msk.bf16.gmra.mrb[108].mxu1 %vm613_vm0, %v20726_v15  ;;  %v20810_v15 = vld [vmem:[#allocation6 + $0x280] ss:$16 sps:$4 sm:$0xff]  }
 0x197   :  { %1016 = vmatprep.mubr.bf16.mxu0 %v25505_v0  ;;  %1349 = vmatprep.mubr.bf16.mxu1 %v25505_v0 }
 0x19e   :  { %16626 = vmatmul.mubr.msk.bf16.gmra.mrb[112].mxu0 %vm613_vm0, %v20730_v16  ;;  %16656 = vmatmul.mubr.msk.bf16.gmra.mrb[112].mxu1 %vm613_vm0, %v20730_v16  ;;  %v20818_v16 = vld [vmem:[#allocation6 + $0x2a4] ss:$16 sps:$4 sm:$0xff]  }
 0x19f   :  { %1026 = vmatprep.mubr.bf16.mxu0 %v25505_v0  ;;  %1359 = vmatprep.mubr.bf16.mxu1 %v25505_v0 }
 0x1a6   :  { %16627 = vmatmul.mubr.msk.bf16.gmra.mrb[116].mxu0 %vm613_vm0, %v20731_v17  ;;  %16657 = vmatmul.mubr.msk.bf16.gmra.mrb[116].mxu1 %vm613_vm0, %v20731_v17  ;;  %v21815_v17 = vld [vmem:[#allocation3 + $0x10] sm:$0xff]  }
 0x1a7   :  { %1762 = vmatprep.mubr.bf16.mxu0 %v25505_v0  ;;  %2095 = vmatprep.mubr.bf16.mxu1 %v25505_v0 }
 0x1ae   :  { %16712 = vmatmul.mubr.msk.bf16.vlgmr.msra.gmra.mrb[0].mxu0 %vm613_vm0, %v20738_v18  ;;  %16742 = vmatmul.mubr.msk.bf16.vlgmr.msra.gmra.mrb[0].mxu1 %vm613_vm0, %v20738_v18  ;;  %v20819_v18 = vld [vmem:[#allocation6 + $0x268] ss:$16 sps:$4 sm:$0xff]  }
 0x1af   :  { %2542 = vmatpush1.bf16.msra.mxu0 %v20739_v19  ;;  %1772 = vmatprep.mubr.bf16.mxu0 %v25505_v0  ;;  %v20821_v19 = vld [vmem:[#allocation6 + $0x26c] ss:$16 sps:$4 sm:$0xff]  }
 0x1b0   :  { %2105 = vmatprep.mubr.bf16.mxu1 %v25505_v0  ;;  %2543 = vmatprep.subr.bf16.mxu0 %v20749_v20  ;;  %v20816_v20 = vld [vmem:[#allocation6 + $0x2a0] ss:$16 sps:$4 sm:$0xff]  }
 0x1b1   :  { %2875 = vmatpush1.bf16.msra.mxu1 %v20760_v21  ;;  %v21816_v21 = vld [vmem:[#allocation3 + $0x18] sm:$0xff]  }
 0x1b2   :  { %2876 = vmatprep.subr.bf16.mxu1 %v20773_v28  ;;  %v20825_v28 = vld [vmem:[#allocation6 + $0x288] ss:$16 sps:$4 sm:$0xff]  }
 0x1b3   :  { %2544 = vmatpush1.bf16.msra.mxu0 %v20747_v22  ;;  %v21817_v22 = vld [vmem:[#allocation3 + $0x20] sm:$0xff]  }
 0x1b4   :  { %2545 = vmatprep.subr.bf16.mxu0 %v20757_v23  ;;  %v21818_v23 = vld [vmem:[#allocation3 + $0x28] sm:$0xff]  }
 0x1b5   :  { %2877 = vmatpush1.bf16.msra.mxu1 %v20771_v27  ;;  %v21820_v27 = vld [vmem:[#allocation3 + $0x38] sm:$0xff]  }
 0x1b6   :  { %16713 = vmatmul.mubr.msk.bf16.gmra.mrb[4].mxu0 %vm613_vm0, %v20742_v24  ;;  %16743 = vmatmul.mubr.msk.bf16.gmra.mrb[4].mxu1 %vm613_vm0, %v20742_v24  ;;  %v20822_v24 = vld [vmem:[#allocation6 + $0x2c0] ss:$16 sps:$4 sm:$0xff]  }
 0x1b7   :  { %1782 = vmatprep.mubr.bf16.mxu0 %v25505_v0  ;;  %2115 = vmatprep.mubr.bf16.mxu1 %v25505_v0 }
 0x1b8   :  { %2546 = vmatpush1.bf16.msra.mxu0 %v20755_v25  ;;  %2878 = vmatprep.subr.bf16.mxu1 %v20784_v38  ;;  %v20824_v25 = vld [vmem:[#allocation6 + $0x2c4] ss:$16 sps:$4 sm:$0xff]   ;;  %v20833_v38 = vld [vmem:[#allocation6 + $0x2ac] ss:$16 sps:$4 sm:$0xff]  }
 0x1b9   :  { %2547 = vmatprep.subr.bf16.mxu0 %v20768_v26  ;;  %2879 = vmatpush1.bf16.msra.mxu1 %v20782_v37  ;;  %v21819_v26 = vld [vmem:[#allocation3 + $0x30] sm:$0xff]   ;;  %v20831_v37 = vld [vmem:[#allocation6 + $0x2a8] ss:$16 sps:$4 sm:$0xff]  }
 0x1ba   :  { %2880 = vmatprep.subr.bf16.mxu1 %v20795_v47  ;;  %v21829_v47 = vld [vmem:[#allocation3 + $0x80] sm:$0xff]  }
 0x1bc   :  { %2548 = vmatpush1.bf16.msra.mxu0 %v20766_v29  ;;  %v20827_v29 = vld [vmem:[#allocation6 + $0x28c] ss:$16 sps:$4 sm:$0xff]  }
 0x1bd   :  { %2549 = vmatprep.subr.bf16.mxu0 %v20779_v34  ;;  %2881 = vmatpush1.bf16.msra.mxu1 %v20793_v46  ;;  %v20830_v34 = vld [vmem:[#allocation6 + $0x2e4] ss:$16 sps:$4 sm:$0xff]  }
 0x1be   :  { %16714 = vmatmul.mubr.msk.bf16.gmra.mrb[8].mxu0 %vm613_vm0, %v20743_v30  ;;  %16744 = vmatmul.mubr.msk.bf16.gmra.mrb[8].mxu1 %vm613_vm0, %v20743_v30  ;;  %v21821_v30 = vld [vmem:[#allocation3 + $0x40] sm:$0xff]  }
 0x1bf   :  { %1792 = vmatprep.mubr.bf16.mxu0 %v25505_v0  ;;  %2125 = vmatprep.mubr.bf16.mxu1 %v25505_v0  ;;  %v20842_v46 = vld [vmem:[#allocation6 + $0x184] ss:$16 sps:$4 sm:$0xff]  }
 0x1c0   :  { %2550 = vmatpush1.bf16.msra.mxu0 %v20777_v33  ;;  %2882 = vmatprep.subr.bf16.mxu1 %v20800_v50  ;;  %v20828_v33 = vld [vmem:[#allocation6 + $0x2e0] ss:$16 sps:$4 sm:$0xff]   ;;  %v21832_v50 = vld [vmem:[#allocation3 + $0x98] sm:$0xff]  }
 0x1c1   :  { %2551 = vmatprep.subr.bf16.mxu0 %v20790_v43  ;;  %2883 = vmatpush1.bf16.msra.mxu1 %v20798_v51  ;;  %v20839_v43 = vld [vmem:[#allocation6 + $0x2ec] ss:$16 sps:$4 sm:$0xff]   ;;  %v21833_v51 = vld [vmem:[#allocation3 + $0xa0] sm:$0xff]  }
 0x1c2   :  { %2884 = vmatprep.subr.bf16.mxu1 %v20803_v52  ;;  %v21834_v52 = vld [vmem:[#allocation3 + $0xa8] sm:$0xff]  }
 0x1c4   :  { %2552 = vmatpush1.bf16.msra.mxu0 %v20788_v42  ;;  %v21827_v42 = vld [vmem:[#allocation3 + $0x70] sm:$0xff]  }
 0x1c5   :  { %2885 = vmatpush1.bf16.msra.mxu1 %v20801_v53  ;;  %3327 = vmatprep.subr.bf16.mxu0 %v20806_v55  ;;  %v21835_v53 = vld [vmem:[#allocation3 + $0xb0] sm:$0xff]   ;;  %v21837_v55 = vld [vmem:[#allocation3 + $0xc0] sm:$0xff]  }
 0x1c6   :  { %16715 = vmatmul.mubr.msk.bf16.gmra.mrb[12].mxu0 %vm613_vm0, %v20744_v31  ;;  %16745 = vmatmul.mubr.msk.bf16.gmra.mrb[12].mxu1 %vm613_vm0, %v20744_v31  ;;  %v21822_v31 = vld [vmem:[#allocation3 + $0x48] sm:$0xff]  }
 0x1c7   :  { %1802 = vmatprep.mubr.bf16.mxu0 %v25505_v0  ;;  %2135 = vmatprep.mubr.bf16.mxu1 %v25505_v0 }
 0x1c8   :  { %3660 = vmatprep.subr.bf16.mxu1 %v20815_v5  ;;  %v20845_v5 = vld [vmem:[#allocation6 + $0x1a4] ss:$16 sps:$4 sm:$0xff]  }
 0x1ce   :  { %16716 = vmatmul.mubr.msk.bf16.gmra.mrb[16].mxu0 %vm613_vm0, %v20745_v32  ;;  %16746 = vmatmul.mubr.msk.bf16.gmra.mrb[16].mxu1 %vm613_vm0, %v20745_v32  ;;  %v21823_v32 = vld [vmem:[#allocation3 + $0x50] sm:$0xff]  }
 0x1cf   :  { %1812 = vmatprep.mubr.bf16.mxu0 %v25505_v0  ;;  %2145 = vmatprep.mubr.bf16.mxu1 %v25505_v0 }
 0x1d6   :  { %16717 = vmatmul.mubr.msk.bf16.gmra.mrb[20].mxu0 %vm613_vm0, %v20746_v35  ;;  %16747 = vmatmul.mubr.msk.bf16.gmra.mrb[20].mxu1 %vm613_vm0, %v20746_v35  ;;  %v21824_v35 = vld [vmem:[#allocation3 + $0x58] sm:$0xff]  }
 0x1d7   :  { %1822 = vmatprep.mubr.bf16.mxu0 %v25505_v0  ;;  %2155 = vmatprep.mubr.bf16.mxu1 %v25505_v0 }
 0x1de   :  { %16718 = vmatmul.mubr.msk.bf16.gmra.mrb[24].mxu0 %vm613_vm0, %v20750_v36  ;;  %16748 = vmatmul.mubr.msk.bf16.gmra.mrb[24].mxu1 %vm613_vm0, %v20750_v36  ;;  %v21825_v36 = vld [vmem:[#allocation3 + $0x60] sm:$0xff]  }
 0x1df   :  { %1832 = vmatprep.mubr.bf16.mxu0 %v25505_v0  ;;  %2165 = vmatprep.mubr.bf16.mxu1 %v25505_v0 }
 0x1e6   :  { %16719 = vmatmul.mubr.msk.bf16.gmra.mrb[28].mxu0 %vm613_vm0, %v20751_v39  ;;  %16749 = vmatmul.mubr.msk.bf16.gmra.mrb[28].mxu1 %vm613_vm0, %v20751_v39  ;;  %v21826_v39 = vld [vmem:[#allocation3 + $0x68] sm:$0xff]  }
 0x1e7   :  { %1842 = vmatprep.mubr.bf16.mxu0 %v25505_v0  ;;  %2175 = vmatprep.mubr.bf16.mxu1 %v25505_v0 }
 0x1ee   :  { %16720 = vmatmul.mubr.msk.bf16.gmra.mrb[32].mxu0 %vm613_vm0, %v20752_v40  ;;  %16750 = vmatmul.mubr.msk.bf16.gmra.mrb[32].mxu1 %vm613_vm0, %v20752_v40  ;;  %v20836_v40 = vld [vmem:[#allocation6 + $0x2cc] ss:$16 sps:$4 sm:$0xff]  }
 0x1ef   :  { %1852 = vmatprep.mubr.bf16.mxu0 %v25505_v0  ;;  %2185 = vmatprep.mubr.bf16.mxu1 %v25505_v0 }
 0x1f6   :  { %16721 = vmatmul.mubr.msk.bf16.gmra.mrb[36].mxu0 %vm613_vm0, %v20753_v41  ;;  %16751 = vmatmul.mubr.msk.bf16.gmra.mrb[36].mxu1 %vm613_vm0, %v20753_v41  ;;  %v20834_v41 = vld [vmem:[#allocation6 + $0x2c8] ss:$16 sps:$4 sm:$0xff]  }
 0x1f7   :  { %1862 = vmatprep.mubr.bf16.mxu0 %v25505_v0  ;;  %2195 = vmatprep.mubr.bf16.mxu1 %v25505_v0 }
 0x1fe   :  { %16722 = vmatmul.mubr.msk.bf16.gmra.mrb[40].mxu0 %vm613_vm0, %v20754_v44  ;;  %16752 = vmatmul.mubr.msk.bf16.gmra.mrb[40].mxu1 %vm613_vm0, %v20754_v44  ;;  %v20837_v44 = vld [vmem:[#allocation6 + $0x2e8] ss:$16 sps:$4 sm:$0xff]  }
 0x1ff   :  { %1872 = vmatprep.mubr.bf16.mxu0 %v25505_v0  ;;  %2205 = vmatprep.mubr.bf16.mxu1 %v25505_v0 }
 0x206   :  { %16723 = vmatmul.mubr.msk.bf16.gmra.mrb[44].mxu0 %vm613_vm0, %v20758_v45  ;;  %16753 = vmatmul.mubr.msk.bf16.gmra.mrb[44].mxu1 %vm613_vm0, %v20758_v45  ;;  %v21828_v45 = vld [vmem:[#allocation3 + $0x78] sm:$0xff]  }
 0x207   :  { %1882 = vmatprep.mubr.bf16.mxu0 %v25505_v0  ;;  %2215 = vmatprep.mubr.bf16.mxu1 %v25505_v0 }
 0x20e   :  { %16724 = vmatmul.mubr.msk.bf16.gmra.mrb[48].mxu0 %vm613_vm0, %v20759_v48  ;;  %16754 = vmatmul.mubr.msk.bf16.gmra.mrb[48].mxu1 %vm613_vm0, %v20759_v48  ;;  %v21830_v48 = vld [vmem:[#allocation3 + $0x88] sm:$0xff]  }
 0x20f   :  { %1892 = vmatprep.mubr.bf16.mxu0 %v25505_v0  ;;  %2225 = vmatprep.mubr.bf16.mxu1 %v25505_v0 }
 0x216   :  { %16725 = vmatmul.mubr.msk.bf16.gmra.mrb[52].mxu0 %vm613_vm0, %v20763_v49  ;;  %16755 = vmatmul.mubr.msk.bf16.gmra.mrb[52].mxu1 %vm613_vm0, %v20763_v49  ;;  %v21831_v49 = vld [vmem:[#allocation3 + $0x90] sm:$0xff]  }
 0x217   :  { %1902 = vmatprep.mubr.bf16.mxu0 %v25505_v0  ;;  %2235 = vmatprep.mubr.bf16.mxu1 %v25505_v0 }
 0x21e   :  { %16726 = vmatmul.mubr.msk.bf16.gmra.mrb[56].mxu0 %vm613_vm0, %v20764_v54  ;;  %16756 = vmatmul.mubr.msk.bf16.gmra.mrb[56].mxu1 %vm613_vm0, %v20764_v54  ;;  %v21836_v54 = vld [vmem:[#allocation3 + $0xb8] sm:$0xff]  }
 0x21f   :  { %1912 = vmatprep.mubr.bf16.mxu0 %v25505_v0  ;;  %2245 = vmatprep.mubr.bf16.mxu1 %v25505_v0 }
 0x226   :  { %16727 = vmatmul.mubr.msk.bf16.gmra.mrb[60].mxu0 %vm613_vm0, %v20765_v56  ;;  %16757 = vmatmul.mubr.msk.bf16.gmra.mrb[60].mxu1 %vm613_vm0, %v20765_v56  ;;  %v21838_v56 = vld [vmem:[#allocation3 + $0xc8] sm:$0xff]  }
 0x227   :  { %1922 = vmatprep.mubr.bf16.mxu0 %v25505_v0  ;;  %2255 = vmatprep.mubr.bf16.mxu1 %v25505_v0 }
 0x22e   :  { %16728 = vmatmul.mubr.msk.bf16.gmra.mrb[64].mxu0 %vm613_vm0, %v20769_v57  ;;  %16758 = vmatmul.mubr.msk.bf16.gmra.mrb[64].mxu1 %vm613_vm0, %v20769_v57  ;;  %v21839_v57 = vld [vmem:[#allocation3 + $0xd0] sm:$0xff]  }
 0x22f   :  { %1932 = vmatprep.mubr.bf16.mxu0 %v25505_v0  ;;  %2265 = vmatprep.mubr.bf16.mxu1 %v25505_v0 }
 0x236   :  { %16729 = vmatmul.mubr.msk.bf16.gmra.mrb[68].mxu0 %vm613_vm0, %v20770_v58  ;;  %16759 = vmatmul.mubr.msk.bf16.gmra.mrb[68].mxu1 %vm613_vm0, %v20770_v58  ;;  %v21840_v58 = vld [vmem:[#allocation3 + $0xd8] sm:$0xff]  }
 0x237   :  { %1942 = vmatprep.mubr.bf16.mxu0 %v25505_v0  ;;  %2275 = vmatprep.mubr.bf16.mxu1 %v25505_v0 }
 0x23e   :  { %16730 = vmatmul.mubr.msk.bf16.gmra.mrb[72].mxu0 %vm613_vm0, %v20774_v59  ;;  %16760 = vmatmul.mubr.msk.bf16.gmra.mrb[72].mxu1 %vm613_vm0, %v20774_v59  ;;  %v20851_v59 = vld [vmem:[#allocation6 + $0x18c] ss:$16 sps:$4 sm:$0xff]  }
 0x23f   :  { %1952 = vmatprep.mubr.bf16.mxu0 %v25505_v0  ;;  %2285 = vmatprep.mubr.bf16.mxu1 %v25505_v0 }
 0x246   :  { %16731 = vmatmul.mubr.msk.bf16.gmra.mrb[76].mxu0 %vm613_vm0, %v20775_v60  ;;  %16761 = vmatmul.mubr.msk.bf16.gmra.mrb[76].mxu1 %vm613_vm0, %v20775_v60  ;;  %v21841_v60 = vld [vmem:[#allocation3 + $0xe0] sm:$0xff]  }
 0x247   :  { %1962 = vmatprep.mubr.bf16.mxu0 %v25505_v0  ;;  %2295 = vmatprep.mubr.bf16.mxu1 %v25505_v0 }
 0x24e   :  { %16732 = vmatmul.mubr.msk.bf16.gmra.mrb[80].mxu0 %vm613_vm0, %v20776_v61  ;;  %16762 = vmatmul.mubr.msk.bf16.gmra.mrb[80].mxu1 %vm613_vm0, %v20776_v61  ;;  %v21842_v61 = vld [vmem:[#allocation3 + $0xe8] sm:$0xff]  }
 0x24f   :  { %1972 = vmatprep.mubr.bf16.mxu0 %v25505_v0  ;;  %2305 = vmatprep.mubr.bf16.mxu1 %v25505_v0 }
 0x256   :  { %16733 = vmatmul.mubr.msk.bf16.gmra.mrb[84].mxu0 %vm613_vm0, %v20780_v62  ;;  %16763 = vmatmul.mubr.msk.bf16.gmra.mrb[84].mxu1 %vm613_vm0, %v20780_v62  ;;  %v21843_v62 = vld [vmem:[#allocation3 + $0xf0] sm:$0xff]  }
 0x257   :  { %1982 = vmatprep.mubr.bf16.mxu0 %v25505_v0  ;;  %2315 = vmatprep.mubr.bf16.mxu1 %v25505_v0 }
 0x25e   :  { %16734 = vmatmul.mubr.msk.bf16.gmra.mrb[88].mxu0 %vm613_vm0, %v20781_v63  ;;  %16764 = vmatmul.mubr.msk.bf16.gmra.mrb[88].mxu1 %vm613_vm0, %v20781_v63  ;;  %v20840_v63 = vld [vmem:[#allocation6 + $0x180] ss:$16 sps:$4 sm:$0xff]  }
 0x25f   :  { %1992 = vmatprep.mubr.bf16.mxu0 %v25505_v0  ;;  %2325 = vmatprep.mubr.bf16.mxu1 %v25505_v0 }
 0x266   :  { %16735 = vmatmul.mubr.msk.bf16.gmra.mrb[92].mxu0 %vm613_vm0, %v22605_v1  ;;  %16765 = vmatmul.mubr.msk.bf16.gmra.mrb[92].mxu1 %vm613_vm0, %v22605_v1 }
 0x267   :  { %2002 = vmatprep.mubr.bf16.mxu0 %v25505_v0  ;;  %2335 = vmatprep.mubr.bf16.mxu1 %v25505_v0 }
 0x26e   :  { %16736 = vmatmul.mubr.msk.bf16.gmra.mrb[96].mxu0 %vm613_vm0, %v22613_v2  ;;  %16766 = vmatmul.mubr.msk.bf16.gmra.mrb[96].mxu1 %vm613_vm0, %v22613_v2 }
 0x26f   :  { %2012 = vmatprep.mubr.bf16.mxu0 %v25505_v0  ;;  %2345 = vmatprep.mubr.bf16.mxu1 %v25505_v0 }
 0x276   :  { %16737 = vmatmul.mubr.msk.bf16.gmra.mrb[100].mxu0 %vm613_vm0, %v22621_v3  ;;  %16767 = vmatmul.mubr.msk.bf16.gmra.mrb[100].mxu1 %vm613_vm0, %v22621_v3 }
 0x277   :  { %2022 = vmatprep.mubr.bf16.mxu0 %v25505_v0  ;;  %2355 = vmatprep.mubr.bf16.mxu1 %v25505_v0 }
 0x27e   :  { %16738 = vmatmul.mubr.msk.bf16.gmra.mrb[104].mxu0 %vm613_vm0, %v22629_v4  ;;  %16768 = vmatmul.mubr.msk.bf16.gmra.mrb[104].mxu1 %vm613_vm0, %v22629_v4 }
 0x27f   :  { %2032 = vmatprep.mubr.bf16.mxu0 %v25505_v0  ;;  %2365 = vmatprep.mubr.bf16.mxu1 %v25505_v0 }
 0x286   :  { %16739 = vmatmul.mubr.msk.bf16.gmra.mrb[108].mxu0 %vm613_vm0, %v22637_v6  ;;  %16769 = vmatmul.mubr.msk.bf16.gmra.mrb[108].mxu1 %vm613_vm0, %v22637_v6 }
 0x287   :  { %2042 = vmatprep.mubr.bf16.mxu0 %v25505_v0  ;;  %2375 = vmatprep.mubr.bf16.mxu1 %v25505_v0 }
 0x28e   :  { %16740 = vmatmul.mubr.msk.bf16.gmra.mrb[112].mxu0 %vm613_vm0, %v22645_v7  ;;  %16770 = vmatmul.mubr.msk.bf16.gmra.mrb[112].mxu1 %vm613_vm0, %v22645_v7 }
 0x28f   :  { %2052 = vmatprep.mubr.bf16.mxu0 %v25505_v0  ;;  %2385 = vmatprep.mubr.bf16.mxu1 %v25505_v0 }
 0x296   :  { %16741 = vmatmul.mubr.msk.bf16.gmra.mrb[116].mxu0 %vm613_vm0, %v22653_v8  ;;  %16771 = vmatmul.mubr.msk.bf16.gmra.mrb[116].mxu1 %vm613_vm0, %v22653_v8 }
 0x297   :  { %2573 = vmatprep.mubr.bf16.mxu0 %v25505_v0  ;;  %2906 = vmatprep.mubr.bf16.mxu1 %v25505_v0 }
 0x29e   :  { %16796 = vmatmul.mubr.msk.bf16.vlgmr.msra.gmra.mrb[120].mxu0 %vm613_vm0, %v21814_v12  ;;  %16826 = vmatmul.mubr.msk.bf16.vlgmr.msra.gmra.mrb[120].mxu1 %vm613_vm0, %v21814_v12  ;;  %v20848_v12 = vld [vmem:[#allocation6 + $0x1c4] ss:$16 sps:$4 sm:$0xff]  }
 0x29f   :  { %3328 = vmatpush1.bf16.msra.mxu0 %v20804_v9  ;;  %2583 = vmatprep.mubr.bf16.mxu0 %v25505_v0  ;;  %v20849_v9 = vld [vmem:[#allocation6 + $0x188] ss:$16 sps:$4 sm:$0xff]  }
 0x2a0   :  { %2916 = vmatprep.mubr.bf16.mxu1 %v25505_v0  ;;  %3329 = vmatprep.subr.bf16.mxu0 %v20809_v10  ;;  %v21844_v10 = vld [vmem:[#allocation3] sm:$0xff]  }
 0x2a1   :  { %3661 = vmatpush1.bf16.msra.mxu1 %v20813_v11  ;;  %v20843_v11 = vld [vmem:[#allocation6 + $0x1a0] ss:$16 sps:$4 sm:$0xff]  }
 0x2a2   :  { %3662 = vmatprep.subr.bf16.mxu1 %v20821_v19  ;;  %v21846_v19 = vld [vmem:[#allocation3 + $0x10] sm:$0xff]  }
 0x2a3   :  { %3330 = vmatpush1.bf16.msra.mxu0 %v20807_v13  ;;  %v20846_v13 = vld [vmem:[#allocation6 + $0x1c0] ss:$16 sps:$4 sm:$0xff]  }
 0x2a4   :  { %3331 = vmatprep.subr.bf16.mxu0 %v20812_v14  ;;  %v20854_v14 = vld [vmem:[#allocation6 + $0x1e4] ss:$16 sps:$4 sm:$0xff]  }
 0x2a5   :  { %3663 = vmatpush1.bf16.msra.mxu1 %v20819_v18  ;;  %v20852_v18 = vld [vmem:[#allocation6 + $0x1e0] ss:$16 sps:$4 sm:$0xff]  }
 0x2a6   :  { %16797 = vmatmul.mubr.msk.bf16.gmra.mrb[124].mxu0 %vm613_vm0, %v21815_v17  ;;  %16827 = vmatmul.mubr.msk.bf16.gmra.mrb[124].mxu1 %vm613_vm0, %v21815_v17  ;;  %v20857_v17 = vld [vmem:[#allocation6 + $0x1ac] ss:$16 sps:$4 sm:$0xff]  }
 0x2a7   :  { %2593 = vmatprep.mubr.bf16.mxu0 %v25505_v0  ;;  %2926 = vmatprep.mubr.bf16.mxu1 %v25505_v0 }
 0x2a8   :  { %3332 = vmatpush1.bf16.msra.mxu0 %v20810_v15  ;;  %3664 = vmatprep.subr.bf16.mxu1 %v20827_v29  ;;  %v21845_v15 = vld [vmem:[#allocation3 + $0x8] sm:$0xff]   ;;  %v21852_v29 = vld [vmem:[#allocation3 + $0x40] sm:$0xff]  }
 0x2a9   :  { %3333 = vmatprep.subr.bf16.mxu0 %v20818_v16  ;;  %3665 = vmatpush1.bf16.msra.mxu1 %v20825_v28  ;;  %v20855_v16 = vld [vmem:[#allocation6 + $0x1a8] ss:$16 sps:$4 sm:$0xff]  }
 0x2aa   :  { %3666 = vmatprep.subr.bf16.mxu1 %v20833_v38  ;;  %v21851_v28 = vld [vmem:[#allocation3 + $0x38] sm:$0xff]  }
 0x2ab   :  { %v20872_v38 = vld [vmem:[#allocation6 + $0x20c] ss:$16 sps:$4 sm:$0xff]  }
 0x2ac   :  { %3334 = vmatpush1.bf16.msra.mxu0 %v20816_v20  ;;  %v21847_v20 = vld [vmem:[#allocation3 + $0x18] sm:$0xff]  }
 0x2ad   :  { %3335 = vmatprep.subr.bf16.mxu0 %v20824_v25  ;;  %3667 = vmatpush1.bf16.msra.mxu1 %v20831_v37  ;;  %v21850_v25 = vld [vmem:[#allocation3 + $0x30] sm:$0xff]   ;;  %v21856_v37 = vld [vmem:[#allocation3 + $0x60] sm:$0xff]  }
 0x2ae   :  { %16798 = vmatmul.mubr.msk.bf16.gmra.mrb[128].mxu0 %vm613_vm0, %v21816_v21  ;;  %16828 = vmatmul.mubr.msk.bf16.gmra.mrb[128].mxu1 %vm613_vm0, %v21816_v21  ;;  %v21848_v21 = vld [vmem:[#allocation3 + $0x20] sm:$0xff]  }
 0x2af   :  { %2603 = vmatprep.mubr.bf16.mxu0 %v25505_v0  ;;  %2936 = vmatprep.mubr.bf16.mxu1 %v25505_v0 }
 0x2b0   :  { %3336 = vmatpush1.bf16.msra.mxu0 %v20822_v24  ;;  %3668 = vmatprep.subr.bf16.mxu1 %v20836_v40  ;;  %v21849_v24 = vld [vmem:[#allocation3 + $0x28] sm:$0xff]  }
 0x2b1   :  { %3337 = vmatprep.subr.bf16.mxu0 %v20830_v34  ;;  %3669 = vmatpush1.bf16.msra.mxu1 %v20834_v41  ;;  %v21855_v34 = vld [vmem:[#allocation3 + $0x58] sm:$0xff]   ;;  %v21857_v40 = vld [vmem:[#allocation3 + $0x68] sm:$0xff]  }
 0x2b2   :  { %3670 = vmatprep.subr.bf16.mxu1 %v20839_v43  ;;  %v20875_v41 = vld [vmem:[#allocation6 + $0x22c] ss:$16 sps:$4 sm:$0xff]   ;;  %v21858_v43 = vld [vmem:[#allocation3 + $0x70] sm:$0xff]  }
 0x2b4   :  { %3338 = vmatpush1.bf16.msra.mxu0 %v20828_v33  ;;  %v21854_v33 = vld [vmem:[#allocation3 + $0x50] sm:$0xff]  }
 0x2b5   :  { %3671 = vmatpush1.bf16.msra.mxu1 %v20837_v44  ;;  %4439 = vmatprep.subr.bf16.mxu0 %v20842_v46  ;;  %v20879_v44 = vld [vmem:[#allocation6 + $0x3c4] ss:$16 sps:$4 sm:$0xff]  }
 0x2b6   :  { %16799 = vmatmul.mubr.msk.bf16.gmra.mrb[132].mxu0 %vm613_vm0, %v21817_v22  ;;  %16829 = vmatmul.mubr.msk.bf16.gmra.mrb[132].mxu1 %vm613_vm0, %v21817_v22  ;;  %v20858_v22 = vld [vmem:[#allocation6 + $0x200] ss:$16 sps:$4 sm:$0xff]  }
 0x2b7   :  { %2613 = vmatprep.mubr.bf16.mxu0 %v25505_v0  ;;  %2946 = vmatprep.mubr.bf16.mxu1 %v25505_v0  ;;  %v21860_v46 = vld [vmem:[#allocation3 + $0x80] sm:$0xff]  }
 0x2b8   :  { %4772 = vmatprep.subr.bf16.mxu1 %v20851_v59  ;;  %v22931_v59 = vld [vmem:[#allocation3 + $0x20] sm:$0xff]  }
 0x2be   :  { %16800 = vmatmul.mubr.msk.bf16.gmra.mrb[136].mxu0 %vm613_vm0, %v21818_v23  ;;  %16830 = vmatmul.mubr.msk.bf16.gmra.mrb[136].mxu1 %vm613_vm0, %v21818_v23  ;;  %v20860_v23 = vld [vmem:[#allocation6 + $0x204] ss:$16 sps:$4 sm:$0xff]  }
 0x2bf   :  { %2623 = vmatprep.mubr.bf16.mxu0 %v25505_v0  ;;  %2956 = vmatprep.mubr.bf16.mxu1 %v25505_v0 }
 0x2c6   :  { %16801 = vmatmul.mubr.msk.bf16.gmra.mrb[140].mxu0 %vm613_vm0, %v21819_v26  ;;  %16831 = vmatmul.mubr.msk.bf16.gmra.mrb[140].mxu1 %vm613_vm0, %v21819_v26  ;;  %v20861_v26 = vld [vmem:[#allocation6 + $0x1c8] ss:$16 sps:$4 sm:$0xff]  }
 0x2c7   :  { %2633 = vmatprep.mubr.bf16.mxu0 %v25505_v0  ;;  %2966 = vmatprep.mubr.bf16.mxu1 %v25505_v0 }
 0x2ce   :  { %16802 = vmatmul.mubr.msk.bf16.gmra.mrb[144].mxu0 %vm613_vm0, %v21820_v27  ;;  %16832 = vmatmul.mubr.msk.bf16.gmra.mrb[144].mxu1 %vm613_vm0, %v21820_v27  ;;  %v20863_v27 = vld [vmem:[#allocation6 + $0x1cc] ss:$16 sps:$4 sm:$0xff]  }
 0x2cf   :  { %2643 = vmatprep.mubr.bf16.mxu0 %v25505_v0  ;;  %2976 = vmatprep.mubr.bf16.mxu1 %v25505_v0 }
 0x2d6   :  { %16803 = vmatmul.mubr.msk.bf16.gmra.mrb[148].mxu0 %vm613_vm0, %v21821_v30  ;;  %16833 = vmatmul.mubr.msk.bf16.gmra.mrb[148].mxu1 %vm613_vm0, %v21821_v30  ;;  %v21853_v30 = vld [vmem:[#allocation3 + $0x48] sm:$0xff]  }
 0x2d7   :  { %2653 = vmatprep.mubr.bf16.mxu0 %v25505_v0  ;;  %2986 = vmatprep.mubr.bf16.mxu1 %v25505_v0 }
 0x2de   :  { %16804 = vmatmul.mubr.msk.bf16.gmra.mrb[152].mxu0 %vm613_vm0, %v21822_v31  ;;  %16834 = vmatmul.mubr.msk.bf16.gmra.mrb[152].mxu1 %vm613_vm0, %v21822_v31  ;;  %v20864_v31 = vld [vmem:[#allocation6 + $0x220] ss:$16 sps:$4 sm:$0xff]  }
 0x2df   :  { %2663 = vmatprep.mubr.bf16.mxu0 %v25505_v0  ;;  %2996 = vmatprep.mubr.bf16.mxu1 %v25505_v0 }
 0x2e6   :  { %16805 = vmatmul.mubr.msk.bf16.gmra.mrb[156].mxu0 %vm613_vm0, %v21823_v32  ;;  %16835 = vmatmul.mubr.msk.bf16.gmra.mrb[156].mxu1 %vm613_vm0, %v21823_v32  ;;  %v20866_v32 = vld [vmem:[#allocation6 + $0x224] ss:$16 sps:$4 sm:$0xff]  }
 0x2e7   :  { %2673 = vmatprep.mubr.bf16.mxu0 %v25505_v0  ;;  %3006 = vmatprep.mubr.bf16.mxu1 %v25505_v0 }
 0x2ee   :  { %16806 = vmatmul.mubr.msk.bf16.gmra.mrb[160].mxu0 %vm613_vm0, %v21824_v35  ;;  %16836 = vmatmul.mubr.msk.bf16.gmra.mrb[160].mxu1 %vm613_vm0, %v21824_v35  ;;  %v20867_v35 = vld [vmem:[#allocation6 + $0x1e8] ss:$16 sps:$4 sm:$0xff]  }
 0x2ef   :  { %2683 = vmatprep.mubr.bf16.mxu0 %v25505_v0  ;;  %3016 = vmatprep.mubr.bf16.mxu1 %v25505_v0 }
 0x2f6   :  { %16807 = vmatmul.mubr.msk.bf16.gmra.mrb[164].mxu0 %vm613_vm0, %v21825_v36  ;;  %16837 = vmatmul.mubr.msk.bf16.gmra.mrb[164].mxu1 %vm613_vm0, %v21825_v36  ;;  %v20869_v36 = vld [vmem:[#allocation6 + $0x1ec] ss:$16 sps:$4 sm:$0xff]  }
 0x2f7   :  { %2693 = vmatprep.mubr.bf16.mxu0 %v25505_v0  ;;  %3026 = vmatprep.mubr.bf16.mxu1 %v25505_v0 }
 0x2fe   :  { %16808 = vmatmul.mubr.msk.bf16.gmra.mrb[168].mxu0 %vm613_vm0, %v21826_v39  ;;  %16838 = vmatmul.mubr.msk.bf16.gmra.mrb[168].mxu1 %vm613_vm0, %v21826_v39  ;;  %v20870_v39 = vld [vmem:[#allocation6 + $0x208] ss:$16 sps:$4 sm:$0xff]  }
 0x2ff   :  { %2703 = vmatprep.mubr.bf16.mxu0 %v25505_v0  ;;  %3036 = vmatprep.mubr.bf16.mxu1 %v25505_v0 }
 0x306   :  { %16809 = vmatmul.mubr.msk.bf16.gmra.mrb[172].mxu0 %vm613_vm0, %v21827_v42  ;;  %16839 = vmatmul.mubr.msk.bf16.gmra.mrb[172].mxu1 %vm613_vm0, %v21827_v42  ;;  %v20873_v42 = vld [vmem:[#allocation6 + $0x228] ss:$16 sps:$4 sm:$0xff]  }
 0x307   :  { %2713 = vmatprep.mubr.bf16.mxu0 %v25505_v0  ;;  %3046 = vmatprep.mubr.bf16.mxu1 %v25505_v0 }
 0x30e   :  { %16810 = vmatmul.mubr.msk.bf16.gmra.mrb[176].mxu0 %vm613_vm0, %v21828_v45  ;;  %16840 = vmatmul.mubr.msk.bf16.gmra.mrb[176].mxu1 %vm613_vm0, %v21828_v45  ;;  %v21859_v45 = vld [vmem:[#allocation3 + $0x78] sm:$0xff]  }
 0x30f   :  { %2723 = vmatprep.mubr.bf16.mxu0 %v25505_v0  ;;  %3056 = vmatprep.mubr.bf16.mxu1 %v25505_v0 }
 0x316   :  { %16811 = vmatmul.mubr.msk.bf16.gmra.mrb[180].mxu0 %vm613_vm0, %v21829_v47  ;;  %16841 = vmatmul.mubr.msk.bf16.gmra.mrb[180].mxu1 %vm613_vm0, %v21829_v47  ;;  %v21861_v47 = vld [vmem:[#allocation3 + $0x88] sm:$0xff]  }
 0x317   :  { %2733 = vmatprep.mubr.bf16.mxu0 %v25505_v0  ;;  %3066 = vmatprep.mubr.bf16.mxu1 %v25505_v0 }
 0x31e   :  { %16812 = vmatmul.mubr.msk.bf16.gmra.mrb[184].mxu0 %vm613_vm0, %v21830_v48  ;;  %16842 = vmatmul.mubr.msk.bf16.gmra.mrb[184].mxu1 %vm613_vm0, %v21830_v48  ;;  %v21862_v48 = vld [vmem:[#allocation3 + $0x90] sm:$0xff]  }
 0x31f   :  { %2743 = vmatprep.mubr.bf16.mxu0 %v25505_v0  ;;  %3076 = vmatprep.mubr.bf16.mxu1 %v25505_v0 }
 0x326   :  { %16813 = vmatmul.mubr.msk.bf16.gmra.mrb[188].mxu0 %vm613_vm0, %v21831_v49  ;;  %16843 = vmatmul.mubr.msk.bf16.gmra.mrb[188].mxu1 %vm613_vm0, %v21831_v49  ;;  %v21863_v49 = vld [vmem:[#allocation3 + $0x98] sm:$0xff]  }
 0x327   :  { %2753 = vmatprep.mubr.bf16.mxu0 %v25505_v0  ;;  %3086 = vmatprep.mubr.bf16.mxu1 %v25505_v0 }
 0x32e   :  { %16814 = vmatmul.mubr.msk.bf16.gmra.mrb[192].mxu0 %vm613_vm0, %v21832_v50  ;;  %16844 = vmatmul.mubr.msk.bf16.gmra.mrb[192].mxu1 %vm613_vm0, %v21832_v50  ;;  %v21864_v50 = vld [vmem:[#allocation3 + $0xa0] sm:$0xff]  }
 0x32f   :  { %2763 = vmatprep.mubr.bf16.mxu0 %v25505_v0  ;;  %3096 = vmatprep.mubr.bf16.mxu1 %v25505_v0 }
 0x336   :  { %16815 = vmatmul.mubr.msk.bf16.gmra.mrb[196].mxu0 %vm613_vm0, %v21833_v51  ;;  %16845 = vmatmul.mubr.msk.bf16.gmra.mrb[196].mxu1 %vm613_vm0, %v21833_v51  ;;  %v21865_v51 = vld [vmem:[#allocation3 + $0xa8] sm:$0xff]  }
 0x337   :  { %2773 = vmatprep.mubr.bf16.mxu0 %v25505_v0  ;;  %3106 = vmatprep.mubr.bf16.mxu1 %v25505_v0 }
 0x33e   :  { %16816 = vmatmul.mubr.msk.bf16.gmra.mrb[200].mxu0 %vm613_vm0, %v21834_v52  ;;  %16846 = vmatmul.mubr.msk.bf16.gmra.mrb[200].mxu1 %vm613_vm0, %v21834_v52  ;;  %v21866_v52 = vld [vmem:[#allocation3 + $0xb0] sm:$0xff]  }
 0x33f   :  { %2783 = vmatprep.mubr.bf16.mxu0 %v25505_v0  ;;  %3116 = vmatprep.mubr.bf16.mxu1 %v25505_v0 }
 0x346   :  { %16817 = vmatmul.mubr.msk.bf16.gmra.mrb[204].mxu0 %vm613_vm0, %v21835_v53  ;;  %16847 = vmatmul.mubr.msk.bf16.gmra.mrb[204].mxu1 %vm613_vm0, %v21835_v53  ;;  %v22923_v53 = vld [vmem:[#allocation3 + $0x18] sm:$0xff]  }
 0x347   :  { %2793 = vmatprep.mubr.bf16.mxu0 %v25505_v0  ;;  %3126 = vmatprep.mubr.bf16.mxu1 %v25505_v0 }
 0x34e   :  { %16818 = vmatmul.mubr.msk.bf16.gmra.mrb[208].mxu0 %vm613_vm0, %v21836_v54  ;;  %16848 = vmatmul.mubr.msk.bf16.gmra.mrb[208].mxu1 %vm613_vm0, %v21836_v54  ;;  %v20893_v54 = vld [vmem:[#allocation6 + $0x400] ss:$16 sps:$4 sm:$0xff]  }
 0x34f   :  { %2803 = vmatprep.mubr.bf16.mxu0 %v25505_v0  ;;  %3136 = vmatprep.mubr.bf16.mxu1 %v25505_v0 }
 0x356   :  { %16819 = vmatmul.mubr.msk.bf16.gmra.mrb[212].mxu0 %vm613_vm0, %v21837_v55  ;;  %16849 = vmatmul.mubr.msk.bf16.gmra.mrb[212].mxu1 %vm613_vm0, %v21837_v55  ;;  %v20906_v55 = vld [vmem:[#allocation6 + $0x424] ss:$16 sps:$4 sm:$0xff]  }
 0x357   :  { %2813 = vmatprep.mubr.bf16.mxu0 %v25505_v0  ;;  %3146 = vmatprep.mubr.bf16.mxu1 %v25505_v0 }
 0x35e   :  { %16820 = vmatmul.mubr.msk.bf16.gmra.mrb[216].mxu0 %vm613_vm0, %v21838_v56  ;;  %16850 = vmatmul.mubr.msk.bf16.gmra.mrb[216].mxu1 %vm613_vm0, %v21838_v56  ;;  %v20909_v56 = vld [vmem:[#allocation6 + $0x3e8] ss:$16 sps:$4 sm:$0xff]  }
 0x35f   :  { %2823 = vmatprep.mubr.bf16.mxu0 %v25505_v0  ;;  %3156 = vmatprep.mubr.bf16.mxu1 %v25505_v0 }
 0x366   :  { %16821 = vmatmul.mubr.msk.bf16.gmra.mrb[220].mxu0 %vm613_vm0, %v21839_v57  ;;  %16851 = vmatmul.mubr.msk.bf16.gmra.mrb[220].mxu1 %vm613_vm0, %v21839_v57  ;;  %v20911_v57 = vld [vmem:[#allocation6 + $0x3ec] ss:$16 sps:$4 sm:$0xff]  }
 0x367   :  { %2833 = vmatprep.mubr.bf16.mxu0 %v25505_v0  ;;  %3166 = vmatprep.mubr.bf16.mxu1 %v25505_v0 }
 0x36e   :  { %16822 = vmatmul.mubr.msk.bf16.gmra.mrb[224].mxu0 %vm613_vm0, %v21840_v58  ;;  %16852 = vmatmul.mubr.msk.bf16.gmra.mrb[224].mxu1 %vm613_vm0, %v21840_v58  ;;  %v20904_v58 = vld [vmem:[#allocation6 + $0x420] ss:$16 sps:$4 sm:$0xff]  }
 0x36f   :  { %2843 = vmatprep.mubr.bf16.mxu0 %v25505_v0  ;;  %3176 = vmatprep.mubr.bf16.mxu1 %v25505_v0 }
 0x376   :  { %16823 = vmatmul.mubr.msk.bf16.gmra.mrb[228].mxu0 %vm613_vm0, %v21841_v60  ;;  %16853 = vmatmul.mubr.msk.bf16.gmra.mrb[228].mxu1 %vm613_vm0, %v21841_v60  ;;  %v22939_v60 = vld [vmem:[#allocation3 + $0x28] sm:$0xff]  }
 0x377   :  { %2853 = vmatprep.mubr.bf16.mxu0 %v25505_v0  ;;  %3186 = vmatprep.mubr.bf16.mxu1 %v25505_v0 }
 0x37e   :  { %16824 = vmatmul.mubr.msk.bf16.gmra.mrb[232].mxu0 %vm613_vm0, %v21842_v61  ;;  %16854 = vmatmul.mubr.msk.bf16.gmra.mrb[232].mxu1 %vm613_vm0, %v21842_v61  ;;  %v22947_v61 = vld [vmem:[#allocation3 + $0x30] sm:$0xff]  }
 0x37f   :  { %2863 = vmatprep.mubr.bf16.mxu0 %v25505_v0  ;;  %3196 = vmatprep.mubr.bf16.mxu1 %v25505_v0 }
 0x386   :  { %16825 = vmatmul.mubr.msk.bf16.gmra.mrb[236].mxu0 %vm613_vm0, %v21843_v62  ;;  %16855 = vmatmul.mubr.msk.bf16.gmra.mrb[236].mxu1 %vm613_vm0, %v21843_v62  ;;  %v20915_v62 = vld [vmem:[#allocation6 + $0x440] ss:$16 sps:$4 sm:$0xff]  }
 0x387   :  { %3359 = vmatprep.mubr.bf16.mxu0 %v25505_v0  ;;  %3692 = vmatprep.mubr.bf16.mxu1 %v25505_v0 }
 0x38e   :  { %16880 = vmatmul.mubr.msk.bf16.vlgmr.msra.gmra.mrb[120].mxu0 %vm613_vm0, %v21844_v10  ;;  %16910 = vmatmul.mubr.msk.bf16.vlgmr.msra.gmra.mrb[120].mxu1 %vm613_vm0, %v21844_v10  ;;  %v20920_v10 = vld [vmem:[#allocation6 + $0x408] ss:$16 sps:$4 sm:$0xff]  }
 0x38f   :  { %4440 = vmatpush1.bf16.msra.mxu0 %v20840_v63  ;;  %3369 = vmatprep.mubr.bf16.mxu0 %v25505_v0  ;;  %v20917_v63 = vld [vmem:[#allocation6 + $0x444] ss:$16 sps:$4 sm:$0xff]  }
 0x390   :  { %3702 = vmatprep.mubr.bf16.mxu1 %v25505_v0  ;;  %4441 = vmatprep.subr.bf16.mxu0 %v20845_v5  ;;  %v22955_v5 = vld [vmem:[#allocation3 + $0x38] sm:$0xff]  }
 0x391   :  { %4773 = vmatpush1.bf16.msra.mxu1 %v20849_v9  ;;  %v22963_v9 = vld [vmem:[#allocation3 + $0x40] sm:$0xff]  }
 0x392   :  { %4774 = vmatprep.subr.bf16.mxu1 %v20857_v17  ;;  %v22995_v17 = vld [vmem:[#allocation3 + $0x60] sm:$0xff]  }
 0x393   :  { %4442 = vmatpush1.bf16.msra.mxu0 %v20843_v11  ;;  %v20922_v11 = vld [vmem:[#allocation6 + $0x40c] ss:$16 sps:$4 sm:$0xff]  }
 0x394   :  { %4443 = vmatprep.subr.bf16.mxu0 %v20848_v12  ;;  %v22971_v12 = vld [vmem:[#allocation3 + $0x48] sm:$0xff]  }
 0x395   :  { %4775 = vmatpush1.bf16.msra.mxu1 %v20855_v16  ;;  %v20928_v16 = vld [vmem:[#allocation6 + $0x464] ss:$16 sps:$4 sm:$0xff]  }
 0x396   :  { %16881 = vmatmul.mubr.msk.bf16.gmra.mrb[124].mxu0 %vm613_vm0, %v21845_v15  ;;  %16911 = vmatmul.mubr.msk.bf16.gmra.mrb[124].mxu1 %vm613_vm0, %v21845_v15  ;;  %v20926_v15 = vld [vmem:[#allocation6 + $0x460] ss:$16 sps:$4 sm:$0xff]  }
 0x397   :  { %3379 = vmatprep.mubr.bf16.mxu0 %v25505_v0  ;;  %3712 = vmatprep.mubr.bf16.mxu1 %v25505_v0 }
 0x398   :  { %4444 = vmatpush1.bf16.msra.mxu0 %v20846_v13  ;;  %4776 = vmatprep.subr.bf16.mxu1 %v20863_v27  ;;  %v22979_v13 = vld [vmem:[#allocation3 + $0x50] sm:$0xff]   ;;  %v23027_v27 = vld [vmem:[#allocation3 + $0x80] sm:$0xff]  }
 0x399   :  { %4445 = vmatprep.subr.bf16.mxu0 %v20854_v14  ;;  %4777 = vmatpush1.bf16.msra.mxu1 %v20861_v26  ;;  %v22987_v14 = vld [vmem:[#allocation3 + $0x58] sm:$0xff]  }
 0x39a   :  { %4778 = vmatprep.subr.bf16.mxu1 %v20869_v36  ;;  %v20939_v26 = vld [vmem:[#allocation6 + $0x468] ss:$16 sps:$4 sm:$0xff]  }
 0x39b   :  { %v23099_v36 = vld [vmem:[#allocation3 + $0xc8] sm:$0xff]  }
 0x39c   :  { %4446 = vmatpush1.bf16.msra.mxu0 %v20852_v18  ;;  %v23003_v18 = vld [vmem:[#allocation3 + $0x68] sm:$0xff]  }
 0x39d   :  { %4447 = vmatprep.subr.bf16.mxu0 %v20860_v23  ;;  %4779 = vmatpush1.bf16.msra.mxu1 %v20867_v35  ;;  %v20938_v23 = vld [vmem:[#allocation6 + $0x44c] ss:$16 sps:$4 sm:$0xff]   ;;  %v23091_v35 = vld [vmem:[#allocation3 + $0xc0] sm:$0xff]  }
 0x39e   :  { %16882 = vmatmul.mubr.msk.bf16.gmra.mrb[128].mxu0 %vm613_vm0, %v21846_v19  ;;  %16912 = vmatmul.mubr.msk.bf16.gmra.mrb[128].mxu1 %vm613_vm0, %v21846_v19  ;;  %v20931_v19 = vld [vmem:[#allocation6 + $0x428] ss:$16 sps:$4 sm:$0xff]  }
 0x39f   :  { %3389 = vmatprep.mubr.bf16.mxu0 %v25505_v0  ;;  %3722 = vmatprep.mubr.bf16.mxu1 %v25505_v0 }
 0x3a0   :  { %4448 = vmatpush1.bf16.msra.mxu0 %v20858_v22  ;;  %4780 = vmatprep.subr.bf16.mxu1 %v20872_v38  ;;  %v23019_v22 = vld [vmem:[#allocation3 + $0x78] sm:$0xff]  }
 0x3a1   :  { %4449 = vmatprep.subr.bf16.mxu0 %v20866_v32  ;;  %4781 = vmatpush1.bf16.msra.mxu1 %v20870_v39  ;;  %v23067_v32 = vld [vmem:[#allocation3 + $0xa8] sm:$0xff]   ;;  %v23115_v38 = vld [vmem:[#allocation3 + $0xd8] sm:$0xff]   ;;  %v23123_v39 = vld [vmem:[#allocation3 + $0xe0] sm:$0xff]  }
 0x3a2   :  { %4782 = vmatprep.subr.bf16.mxu1 %v20875_v41 }
 0x3a4   :  { %4450 = vmatpush1.bf16.msra.mxu0 %v20864_v31  ;;  %v23059_v31 = vld [vmem:[#allocation3 + $0xa0] sm:$0xff]  }
 0x3a5   :  { %4783 = vmatpush1.bf16.msra.mxu1 %v20873_v42  ;;  %5490 = vmatprep.subr.bf16.mxu0 %v20879_v44  ;;  %v23139_v44 = vld [vmem:[#allocation3 + $0xe8] sm:$0xff]  }
 0x3a6   :  { %16883 = vmatmul.mubr.msk.bf16.gmra.mrb[132].mxu0 %vm613_vm0, %v21847_v20  ;;  %16913 = vmatmul.mubr.msk.bf16.gmra.mrb[132].mxu1 %vm613_vm0, %v21847_v20  ;;  %v20933_v20 = vld [vmem:[#allocation6 + $0x42c] ss:$16 sps:$4 sm:$0xff]  }
 0x3a7   :  { %3399 = vmatprep.mubr.bf16.mxu0 %v25505_v0  ;;  %3732 = vmatprep.mubr.bf16.mxu1 %v25505_v0 }
 0x3ae   :  { %16884 = vmatmul.mubr.msk.bf16.gmra.mrb[136].mxu0 %vm613_vm0, %v21848_v21  ;;  %16914 = vmatmul.mubr.msk.bf16.gmra.mrb[136].mxu1 %vm613_vm0, %v21848_v21  ;;  %v23011_v21 = vld [vmem:[#allocation3 + $0x70] sm:$0xff]  }
 0x3af   :  { %3409 = vmatprep.mubr.bf16.mxu0 %v25505_v0  ;;  %3742 = vmatprep.mubr.bf16.mxu1 %v25505_v0 }
 0x3b6   :  { %16885 = vmatmul.mubr.msk.bf16.gmra.mrb[140].mxu0 %vm613_vm0, %v21849_v24  ;;  %16915 = vmatmul.mubr.msk.bf16.gmra.mrb[140].mxu1 %vm613_vm0, %v21849_v24  ;;  %v20936_v24 = vld [vmem:[#allocation6 + $0x448] ss:$16 sps:$4 sm:$0xff]  }
 0x3b7   :  { %3419 = vmatprep.mubr.bf16.mxu0 %v25505_v0  ;;  %3752 = vmatprep.mubr.bf16.mxu1 %v25505_v0 }
 0x3be   :  { %16886 = vmatmul.mubr.msk.bf16.gmra.mrb[144].mxu0 %vm613_vm0, %v21850_v25  ;;  %16916 = vmatmul.mubr.msk.bf16.gmra.mrb[144].mxu1 %vm613_vm0, %v21850_v25  ;;  %v20941_v25 = vld [vmem:[#allocation6 + $0x46c] ss:$16 sps:$4 sm:$0xff]  }
 0x3bf   :  { %3429 = vmatprep.mubr.bf16.mxu0 %v25505_v0  ;;  %3762 = vmatprep.mubr.bf16.mxu1 %v25505_v0 }
 0x3c6   :  { %16887 = vmatmul.mubr.msk.bf16.gmra.mrb[148].mxu0 %vm613_vm0, %v21851_v28  ;;  %16917 = vmatmul.mubr.msk.bf16.gmra.mrb[148].mxu1 %vm613_vm0, %v21851_v28  ;;  %v23035_v28 = vld [vmem:[#allocation3 + $0x88] sm:$0xff]  }
 0x3c7   :  { %3439 = vmatprep.mubr.bf16.mxu0 %v25505_v0  ;;  %3772 = vmatprep.mubr.bf16.mxu1 %v25505_v0 }
 0x3ce   :  { %16888 = vmatmul.mubr.msk.bf16.gmra.mrb[152].mxu0 %vm613_vm0, %v21852_v29  ;;  %16918 = vmatmul.mubr.msk.bf16.gmra.mrb[152].mxu1 %vm613_vm0, %v21852_v29  ;;  %v23043_v29 = vld [vmem:[#allocation3 + $0x90] sm:$0xff]  }
 0x3cf   :  { %3449 = vmatprep.mubr.bf16.mxu0 %v25505_v0  ;;  %3782 = vmatprep.mubr.bf16.mxu1 %v25505_v0 }
 0x3d6   :  { %16889 = vmatmul.mubr.msk.bf16.gmra.mrb[156].mxu0 %vm613_vm0, %v21853_v30  ;;  %16919 = vmatmul.mubr.msk.bf16.gmra.mrb[156].mxu1 %vm613_vm0, %v21853_v30  ;;  %v23051_v30 = vld [vmem:[#allocation3 + $0x98] sm:$0xff]  }
 0x3d7   :  { %3459 = vmatprep.mubr.bf16.mxu0 %v25505_v0  ;;  %3792 = vmatprep.mubr.bf16.mxu1 %v25505_v0 }
 0x3de   :  { %16890 = vmatmul.mubr.msk.bf16.gmra.mrb[160].mxu0 %vm613_vm0, %v21854_v33  ;;  %16920 = vmatmul.mubr.msk.bf16.gmra.mrb[160].mxu1 %vm613_vm0, %v21854_v33  ;;  %v23075_v33 = vld [vmem:[#allocation3 + $0xb0] sm:$0xff]  }
 0x3df   :  { %3469 = vmatprep.mubr.bf16.mxu0 %v25505_v0  ;;  %3802 = vmatprep.mubr.bf16.mxu1 %v25505_v0 }
 0x3e6   :  { %16891 = vmatmul.mubr.msk.bf16.gmra.mrb[164].mxu0 %vm613_vm0, %v21855_v34  ;;  %16921 = vmatmul.mubr.msk.bf16.gmra.mrb[164].mxu1 %vm613_vm0, %v21855_v34  ;;  %v23083_v34 = vld [vmem:[#allocation3 + $0xb8] sm:$0xff]  }
 0x3e7   :  { %3479 = vmatprep.mubr.bf16.mxu0 %v25505_v0  ;;  %3812 = vmatprep.mubr.bf16.mxu1 %v25505_v0 }
 0x3ee   :  { %16892 = vmatmul.mubr.msk.bf16.gmra.mrb[168].mxu0 %vm613_vm0, %v21856_v37  ;;  %16922 = vmatmul.mubr.msk.bf16.gmra.mrb[168].mxu1 %vm613_vm0, %v21856_v37  ;;  %v23107_v37 = vld [vmem:[#allocation3 + $0xd0] sm:$0xff]  }
 0x3ef   :  { %3489 = vmatprep.mubr.bf16.mxu0 %v25505_v0  ;;  %3822 = vmatprep.mubr.bf16.mxu1 %v25505_v0 }
 0x3f6   :  { %16893 = vmatmul.mubr.msk.bf16.gmra.mrb[172].mxu0 %vm613_vm0, %v21857_v40  ;;  %16923 = vmatmul.mubr.msk.bf16.gmra.mrb[172].mxu1 %vm613_vm0, %v21857_v40 }
 0x3f7   :  { %3499 = vmatprep.mubr.bf16.mxu0 %v25505_v0  ;;  %3832 = vmatprep.mubr.bf16.mxu1 %v25505_v0 }
 0x3fe   :  { %16894 = vmatmul.mubr.msk.bf16.gmra.mrb[176].mxu0 %vm613_vm0, %v21858_v43  ;;  %16924 = vmatmul.mubr.msk.bf16.gmra.mrb[176].mxu1 %vm613_vm0, %v21858_v43 }
 0x3ff   :  { %3509 = vmatprep.mubr.bf16.mxu0 %v25505_v0  ;;  %3842 = vmatprep.mubr.bf16.mxu1 %v25505_v0 }
 0x406   :  { %16895 = vmatmul.mubr.msk.bf16.gmra.mrb[180].mxu0 %vm613_vm0, %v21859_v45  ;;  %16925 = vmatmul.mubr.msk.bf16.gmra.mrb[180].mxu1 %vm613_vm0, %v21859_v45 }
 0x407   :  { %3519 = vmatprep.mubr.bf16.mxu0 %v25505_v0  ;;  %3852 = vmatprep.mubr.bf16.mxu1 %v25505_v0 }
 0x40e   :  { %16896 = vmatmul.mubr.msk.bf16.gmra.mrb[184].mxu0 %vm613_vm0, %v21860_v46  ;;  %16926 = vmatmul.mubr.msk.bf16.gmra.mrb[184].mxu1 %vm613_vm0, %v21860_v46 }
 0x40f   :  { %3529 = vmatprep.mubr.bf16.mxu0 %v25505_v0  ;;  %3862 = vmatprep.mubr.bf16.mxu1 %v25505_v0 }
 0x416   :  { %16897 = vmatmul.mubr.msk.bf16.gmra.mrb[188].mxu0 %vm613_vm0, %v21861_v47  ;;  %16927 = vmatmul.mubr.msk.bf16.gmra.mrb[188].mxu1 %vm613_vm0, %v21861_v47 }
 0x417   :  { %3539 = vmatprep.mubr.bf16.mxu0 %v25505_v0  ;;  %3872 = vmatprep.mubr.bf16.mxu1 %v25505_v0 }
 0x41e   :  { %16898 = vmatmul.mubr.msk.bf16.gmra.mrb[192].mxu0 %vm613_vm0, %v21862_v48  ;;  %16928 = vmatmul.mubr.msk.bf16.gmra.mrb[192].mxu1 %vm613_vm0, %v21862_v48 }
 0x41f   :  { %3549 = vmatprep.mubr.bf16.mxu0 %v25505_v0  ;;  %3882 = vmatprep.mubr.bf16.mxu1 %v25505_v0 }
 0x426   :  { %16899 = vmatmul.mubr.msk.bf16.gmra.mrb[196].mxu0 %vm613_vm0, %v21863_v49  ;;  %16929 = vmatmul.mubr.msk.bf16.gmra.mrb[196].mxu1 %vm613_vm0, %v21863_v49  ;;  %v20944_v49 = vld [vmem:[#allocation9 + $0x2d4] ss:$12 sps:$4 sm:$0xff]  }
 0x427   :  { %3559 = vmatprep.mubr.bf16.mxu0 %v25505_v0  ;;  %3892 = vmatprep.mubr.bf16.mxu1 %v25505_v0 }
 0x42e   :  { %16900 = vmatmul.mubr.msk.bf16.gmra.mrb[200].mxu0 %vm613_vm0, %v21864_v50  ;;  %16930 = vmatmul.mubr.msk.bf16.gmra.mrb[200].mxu1 %vm613_vm0, %v21864_v50 }
 0x42f   :  { %3569 = vmatprep.mubr.bf16.mxu0 %v25505_v0  ;;  %3902 = vmatprep.mubr.bf16.mxu1 %v25505_v0 }
 0x436   :  { %16901 = vmatmul.mubr.msk.bf16.gmra.mrb[204].mxu0 %vm613_vm0, %v21865_v51  ;;  %16931 = vmatmul.mubr.msk.bf16.gmra.mrb[204].mxu1 %vm613_vm0, %v21865_v51 }
 0x437   :  { %3579 = vmatprep.mubr.bf16.mxu0 %v25505_v0  ;;  %3912 = vmatprep.mubr.bf16.mxu1 %v25505_v0 }
 0x43e   :  { %16902 = vmatmul.mubr.msk.bf16.gmra.mrb[208].mxu0 %vm613_vm0, %v21866_v52  ;;  %16932 = vmatmul.mubr.msk.bf16.gmra.mrb[208].mxu1 %vm613_vm0, %v21866_v52 }
 0x43f   :  { %3589 = vmatprep.mubr.bf16.mxu0 %v25505_v0  ;;  %3922 = vmatprep.mubr.bf16.mxu1 %v25505_v0 }
 0x446   :  { %16903 = vmatmul.mubr.msk.bf16.gmra.mrb[212].mxu0 %vm613_vm0, %v22605_v1  ;;  %16933 = vmatmul.mubr.msk.bf16.gmra.mrb[212].mxu1 %vm613_vm0, %v22605_v1  ;;  %v20900_v1 = vld [vmem:[#allocation6 + $0x3cc] ss:$16 sps:$4 sm:$0xff]  }
 0x447   :  { %3599 = vmatprep.mubr.bf16.mxu0 %v25505_v0  ;;  %3932 = vmatprep.mubr.bf16.mxu1 %v25505_v0 }
 0x448   :  { %5823 = vmatprep.subr.bf16.mxu1 %v20900_v1 }
 0x44e   :  { %16904 = vmatmul.mubr.msk.bf16.gmra.mrb[216].mxu0 %vm613_vm0, %v22613_v2  ;;  %16934 = vmatmul.mubr.msk.bf16.gmra.mrb[216].mxu1 %vm613_vm0, %v22613_v2  ;;  %v22915_v2 = vld [vmem:[#allocation3 + $0x10] sm:$0xff]  }
 0x44f   :  { %3609 = vmatprep.mubr.bf16.mxu0 %v25505_v0  ;;  %3942 = vmatprep.mubr.bf16.mxu1 %v25505_v0 }
 0x456   :  { %16905 = vmatmul.mubr.msk.bf16.gmra.mrb[220].mxu0 %vm613_vm0, %v22621_v3  ;;  %16935 = vmatmul.mubr.msk.bf16.gmra.mrb[220].mxu1 %vm613_vm0, %v22621_v3  ;;  %v20877_v3 = vld [vmem:[#allocation6 + $0x3c0] ss:$16 sps:$4 sm:$0xff]  }
 0x457   :  { %3619 = vmatprep.mubr.bf16.mxu0 %v25505_v0  ;;  %3952 = vmatprep.mubr.bf16.mxu1 %v25505_v0 }
 0x45e   :  { %16906 = vmatmul.mubr.msk.bf16.gmra.mrb[224].mxu0 %vm613_vm0, %v22629_v4  ;;  %16936 = vmatmul.mubr.msk.bf16.gmra.mrb[224].mxu1 %vm613_vm0, %v22629_v4  ;;  %v20887_v4 = vld [vmem:[#allocation6 + $0x3e4] ss:$16 sps:$4 sm:$0xff]  }
 0x45f   :  { %3629 = vmatprep.mubr.bf16.mxu0 %v25505_v0  ;;  %3962 = vmatprep.mubr.bf16.mxu1 %v25505_v0 }
 0x466   :  { %16907 = vmatmul.mubr.msk.bf16.gmra.mrb[228].mxu0 %vm613_vm0, %v22637_v6  ;;  %16937 = vmatmul.mubr.msk.bf16.gmra.mrb[228].mxu1 %vm613_vm0, %v22637_v6  ;;  %v20898_v6 = vld [vmem:[#allocation6 + $0x3c8] ss:$16 sps:$4 sm:$0xff]  }
 0x467   :  { %3639 = vmatprep.mubr.bf16.mxu0 %v25505_v0  ;;  %3972 = vmatprep.mubr.bf16.mxu1 %v25505_v0 }
 0x46e   :  { %16908 = vmatmul.mubr.msk.bf16.gmra.mrb[232].mxu0 %vm613_vm0, %v22645_v7  ;;  %16938 = vmatmul.mubr.msk.bf16.gmra.mrb[232].mxu1 %vm613_vm0, %v22645_v7  ;;  %v20885_v7 = vld [vmem:[#allocation6 + $0x3e0] ss:$16 sps:$4 sm:$0xff]  }
 0x46f   :  { %3649 = vmatprep.mubr.bf16.mxu0 %v25505_v0  ;;  %3982 = vmatprep.mubr.bf16.mxu1 %v25505_v0 }
 0x476   :  { %16909 = vmatmul.mubr.msk.bf16.gmra.mrb[236].mxu0 %vm613_vm0, %v22653_v8  ;;  %16939 = vmatmul.mubr.msk.bf16.gmra.mrb[236].mxu1 %vm613_vm0, %v22653_v8  ;;  %v20895_v8 = vld [vmem:[#allocation6 + $0x404] ss:$16 sps:$4 sm:$0xff]  }
 0x477   :  { %4471 = vmatprep.mubr.bf16.mxu0 %v25505_v0  ;;  %4804 = vmatprep.mubr.bf16.mxu1 %v25505_v0 }
 0x47e   :  { %16994 = vmatmul.mubr.msk.bf16.vlgmr.msra.gmra.mrb[0].mxu0 %vm613_vm0, %v22915_v2  ;;  %17024 = vmatmul.mubr.msk.bf16.vlgmr.msra.gmra.mrb[0].mxu1 %vm613_vm0, %v22915_v2 }
 0x47f   :  { %5491 = vmatpush1.bf16.msra.mxu0 %v20877_v3  ;;  %4481 = vmatprep.mubr.bf16.mxu0 %v25505_v0  ;;  %v23163_v3 = vld [vmem:[#allocation3 + $0xf0] sm:$0xff]  }
 0x480   :  { %4814 = vmatprep.mubr.bf16.mxu1 %v25505_v0  ;;  %5492 = vmatprep.subr.bf16.mxu0 %v20887_v4 }
 0x481   :  { %5824 = vmatpush1.bf16.msra.mxu1 %v20898_v6 }
 0x482   :  { %5825 = vmatprep.subr.bf16.mxu1 %v20911_v57 }
 0x483   :  { %5493 = vmatpush1.bf16.msra.mxu0 %v20885_v7  ;;  %v20945_v7 = vld [vmem:[#allocation9 + $0x398] ss:$12 sps:$4 sm:$0xff]  }
 0x484   :  { %5494 = vmatprep.subr.bf16.mxu0 %v20895_v8 }
 0x485   :  { %5826 = vmatpush1.bf16.msra.mxu1 %v20909_v56 }
 0x486   :  { %16995 = vmatmul.mubr.msk.bf16.gmra.mrb[4].mxu0 %vm613_vm0, %v22923_v53  ;;  %17025 = vmatmul.mubr.msk.bf16.gmra.mrb[4].mxu1 %vm613_vm0, %v22923_v53 }
 0x487   :  { %4491 = vmatprep.mubr.bf16.mxu0 %v25505_v0  ;;  %4824 = vmatprep.mubr.bf16.mxu1 %v25505_v0 }
 0x488   :  { %5495 = vmatpush1.bf16.msra.mxu0 %v20893_v54  ;;  %5827 = vmatprep.subr.bf16.mxu1 %v20922_v11 }
 0x489   :  { %5496 = vmatprep.subr.bf16.mxu0 %v20906_v55  ;;  %5828 = vmatpush1.bf16.msra.mxu1 %v20920_v10 }
 0x48a   :  { %5829 = vmatprep.subr.bf16.mxu1 %v20933_v20 }
 0x48c   :  { %5497 = vmatpush1.bf16.msra.mxu0 %v20904_v58 }
 0x48d   :  { %5498 = vmatprep.subr.bf16.mxu0 %v20917_v63  ;;  %5830 = vmatpush1.bf16.msra.mxu1 %v20931_v19 }
 0x48e   :  { %16996 = vmatmul.mubr.msk.bf16.gmra.mrb[8].mxu0 %vm613_vm0, %v22931_v59  ;;  %17026 = vmatmul.mubr.msk.bf16.gmra.mrb[8].mxu1 %vm613_vm0, %v22931_v59 }
 0x48f   :  { %4501 = vmatprep.mubr.bf16.mxu0 %v25505_v0  ;;  %4834 = vmatprep.mubr.bf16.mxu1 %v25505_v0 }
 0x490   :  { %5499 = vmatpush1.bf16.msra.mxu0 %v20915_v62  ;;  %5831 = vmatprep.subr.bf16.mxu1 %v20938_v23  ;;  %v20935_v62 = vld [vmem:[#allocation3 + $0xf8] sm:$0xff]  }
 0x491   :  { %5500 = vmatprep.subr.bf16.mxu0 %v20928_v16  ;;  %5832 = vmatpush1.bf16.msra.mxu1 %v20936_v24 }
 0x492   :  { %5833 = vmatprep.subr.bf16.mxu1 %v20941_v25 }
 0x494   :  { %5501 = vmatpush1.bf16.msra.mxu0 %v20926_v15 }
 0x495   :  { %5834 = vmatpush1.bf16.msra.mxu1 %v20939_v26  ;;  %8113 = vmatprep.subr.bf16.mxu0 %v20944_v49 }
 0x496   :  { %16997 = vmatmul.mubr.msk.bf16.gmra.mrb[12].mxu0 %vm613_vm0, %v22939_v60  ;;  %17027 = vmatmul.mubr.msk.bf16.gmra.mrb[12].mxu1 %vm613_vm0, %v22939_v60 }
 0x497   :  { %4511 = vmatprep.mubr.bf16.mxu0 %v25505_v0  ;;  %4844 = vmatprep.mubr.bf16.mxu1 %v25505_v0 }
 0x498   :  { %17976 = vmatprep.subr.bf16.mxu1 %v20945_v7  ;;  %v20942_v7 = vld [vmem:[#allocation9 + $0x2d0] ss:$12 sps:$4 sm:$0xff]  }
 0x49e   :  { %16998 = vmatmul.mubr.msk.bf16.gmra.mrb[16].mxu0 %vm613_vm0, %v22947_v61  ;;  %17028 = vmatmul.mubr.msk.bf16.gmra.mrb[16].mxu1 %vm613_vm0, %v22947_v61 }
 0x49f   :  { %4521 = vmatprep.mubr.bf16.mxu0 %v25505_v0  ;;  %4854 = vmatprep.mubr.bf16.mxu1 %v25505_v0 }
 0x4a6   :  { %16999 = vmatmul.mubr.msk.bf16.gmra.mrb[20].mxu0 %vm613_vm0, %v22955_v5  ;;  %17029 = vmatmul.mubr.msk.bf16.gmra.mrb[20].mxu1 %vm613_vm0, %v22955_v5 }
 0x4a7   :  { %4531 = vmatprep.mubr.bf16.mxu0 %v25505_v0  ;;  %4864 = vmatprep.mubr.bf16.mxu1 %v25505_v0 }
 0x4ae   :  { %17000 = vmatmul.mubr.msk.bf16.gmra.mrb[24].mxu0 %vm613_vm0, %v22963_v9  ;;  %17030 = vmatmul.mubr.msk.bf16.gmra.mrb[24].mxu1 %vm613_vm0, %v22963_v9 }
 0x4af   :  { %4541 = vmatprep.mubr.bf16.mxu0 %v25505_v0  ;;  %4874 = vmatprep.mubr.bf16.mxu1 %v25505_v0 }
 0x4b6   :  { %17001 = vmatmul.mubr.msk.bf16.gmra.mrb[28].mxu0 %vm613_vm0, %v22971_v12  ;;  %17031 = vmatmul.mubr.msk.bf16.gmra.mrb[28].mxu1 %vm613_vm0, %v22971_v12 }
 0x4b7   :  { %4551 = vmatprep.mubr.bf16.mxu0 %v25505_v0  ;;  %4884 = vmatprep.mubr.bf16.mxu1 %v25505_v0 }
 0x4be   :  { %17002 = vmatmul.mubr.msk.bf16.gmra.mrb[32].mxu0 %vm613_vm0, %v22979_v13  ;;  %17032 = vmatmul.mubr.msk.bf16.gmra.mrb[32].mxu1 %vm613_vm0, %v22979_v13 }
 0x4bf   :  { %4561 = vmatprep.mubr.bf16.mxu0 %v25505_v0  ;;  %4894 = vmatprep.mubr.bf16.mxu1 %v25505_v0 }
 0x4c6   :  { %17003 = vmatmul.mubr.msk.bf16.gmra.mrb[36].mxu0 %vm613_vm0, %v22987_v14  ;;  %17033 = vmatmul.mubr.msk.bf16.gmra.mrb[36].mxu1 %vm613_vm0, %v22987_v14 }
 0x4c7   :  { %4571 = vmatprep.mubr.bf16.mxu0 %v25505_v0  ;;  %4904 = vmatprep.mubr.bf16.mxu1 %v25505_v0 }
 0x4ce   :  { %17004 = vmatmul.mubr.msk.bf16.gmra.mrb[40].mxu0 %vm613_vm0, %v22995_v17  ;;  %17034 = vmatmul.mubr.msk.bf16.gmra.mrb[40].mxu1 %vm613_vm0, %v22995_v17 }
 0x4cf   :  { %4581 = vmatprep.mubr.bf16.mxu0 %v25505_v0  ;;  %4914 = vmatprep.mubr.bf16.mxu1 %v25505_v0 }
 0x4d6   :  { %17005 = vmatmul.mubr.msk.bf16.gmra.mrb[44].mxu0 %vm613_vm0, %v23003_v18  ;;  %17035 = vmatmul.mubr.msk.bf16.gmra.mrb[44].mxu1 %vm613_vm0, %v23003_v18 }
 0x4d7   :  { %4591 = vmatprep.mubr.bf16.mxu0 %v25505_v0  ;;  %4924 = vmatprep.mubr.bf16.mxu1 %v25505_v0 }
 0x4de   :  { %17006 = vmatmul.mubr.msk.bf16.gmra.mrb[48].mxu0 %vm613_vm0, %v23011_v21  ;;  %17036 = vmatmul.mubr.msk.bf16.gmra.mrb[48].mxu1 %vm613_vm0, %v23011_v21 }
 0x4df   :  { %4601 = vmatprep.mubr.bf16.mxu0 %v25505_v0  ;;  %4934 = vmatprep.mubr.bf16.mxu1 %v25505_v0 }
 0x4e6   :  { %17007 = vmatmul.mubr.msk.bf16.gmra.mrb[52].mxu0 %vm613_vm0, %v23019_v22  ;;  %17037 = vmatmul.mubr.msk.bf16.gmra.mrb[52].mxu1 %vm613_vm0, %v23019_v22 }
 0x4e7   :  { %4611 = vmatprep.mubr.bf16.mxu0 %v25505_v0  ;;  %4944 = vmatprep.mubr.bf16.mxu1 %v25505_v0 }
 0x4ee   :  { %17008 = vmatmul.mubr.msk.bf16.gmra.mrb[56].mxu0 %vm613_vm0, %v23027_v27  ;;  %17038 = vmatmul.mubr.msk.bf16.gmra.mrb[56].mxu1 %vm613_vm0, %v23027_v27 }
 0x4ef   :  { %4621 = vmatprep.mubr.bf16.mxu0 %v25505_v0  ;;  %4954 = vmatprep.mubr.bf16.mxu1 %v25505_v0 }
 0x4f6   :  { %17009 = vmatmul.mubr.msk.bf16.gmra.mrb[60].mxu0 %vm613_vm0, %v23035_v28  ;;  %17039 = vmatmul.mubr.msk.bf16.gmra.mrb[60].mxu1 %vm613_vm0, %v23035_v28 }
 0x4f7   :  { %4631 = vmatprep.mubr.bf16.mxu0 %v25505_v0  ;;  %4964 = vmatprep.mubr.bf16.mxu1 %v25505_v0 }
 0x4fe   :  { %17010 = vmatmul.mubr.msk.bf16.gmra.mrb[64].mxu0 %vm613_vm0, %v23043_v29  ;;  %17040 = vmatmul.mubr.msk.bf16.gmra.mrb[64].mxu1 %vm613_vm0, %v23043_v29 }
 0x4ff   :  { %4641 = vmatprep.mubr.bf16.mxu0 %v25505_v0  ;;  %4974 = vmatprep.mubr.bf16.mxu1 %v25505_v0 }
 0x506   :  { %17011 = vmatmul.mubr.msk.bf16.gmra.mrb[68].mxu0 %vm613_vm0, %v23051_v30  ;;  %17041 = vmatmul.mubr.msk.bf16.gmra.mrb[68].mxu1 %vm613_vm0, %v23051_v30 }
 0x507   :  { %4651 = vmatprep.mubr.bf16.mxu0 %v25505_v0  ;;  %4984 = vmatprep.mubr.bf16.mxu1 %v25505_v0 }
 0x50e   :  { %17012 = vmatmul.mubr.msk.bf16.gmra.mrb[72].mxu0 %vm613_vm0, %v23059_v31  ;;  %17042 = vmatmul.mubr.msk.bf16.gmra.mrb[72].mxu1 %vm613_vm0, %v23059_v31 }
 0x50f   :  { %4661 = vmatprep.mubr.bf16.mxu0 %v25505_v0  ;;  %4994 = vmatprep.mubr.bf16.mxu1 %v25505_v0 }
 0x516   :  { %17013 = vmatmul.mubr.msk.bf16.gmra.mrb[76].mxu0 %vm613_vm0, %v23067_v32  ;;  %17043 = vmatmul.mubr.msk.bf16.gmra.mrb[76].mxu1 %vm613_vm0, %v23067_v32 }
 0x517   :  { %4671 = vmatprep.mubr.bf16.mxu0 %v25505_v0  ;;  %5004 = vmatprep.mubr.bf16.mxu1 %v25505_v0 }
 0x51e   :  { %17014 = vmatmul.mubr.msk.bf16.gmra.mrb[80].mxu0 %vm613_vm0, %v23075_v33  ;;  %17044 = vmatmul.mubr.msk.bf16.gmra.mrb[80].mxu1 %vm613_vm0, %v23075_v33 }
 0x51f   :  { %4681 = vmatprep.mubr.bf16.mxu0 %v25505_v0  ;;  %5014 = vmatprep.mubr.bf16.mxu1 %v25505_v0 }
 0x526   :  { %17015 = vmatmul.mubr.msk.bf16.gmra.mrb[84].mxu0 %vm613_vm0, %v23083_v34  ;;  %17045 = vmatmul.mubr.msk.bf16.gmra.mrb[84].mxu1 %vm613_vm0, %v23083_v34 }
 0x527   :  { %4691 = vmatprep.mubr.bf16.mxu0 %v25505_v0  ;;  %5024 = vmatprep.mubr.bf16.mxu1 %v25505_v0 }
 0x52e   :  { %17016 = vmatmul.mubr.msk.bf16.gmra.mrb[88].mxu0 %vm613_vm0, %v23091_v35  ;;  %17046 = vmatmul.mubr.msk.bf16.gmra.mrb[88].mxu1 %vm613_vm0, %v23091_v35 }
 0x52f   :  { %4701 = vmatprep.mubr.bf16.mxu0 %v25505_v0  ;;  %5034 = vmatprep.mubr.bf16.mxu1 %v25505_v0 }
 0x536   :  { %17017 = vmatmul.mubr.msk.bf16.gmra.mrb[92].mxu0 %vm613_vm0, %v23099_v36  ;;  %17047 = vmatmul.mubr.msk.bf16.gmra.mrb[92].mxu1 %vm613_vm0, %v23099_v36 }
 0x537   :  { %4711 = vmatprep.mubr.bf16.mxu0 %v25505_v0  ;;  %5044 = vmatprep.mubr.bf16.mxu1 %v25505_v0 }
 0x53e   :  { %17018 = vmatmul.mubr.msk.bf16.gmra.mrb[96].mxu0 %vm613_vm0, %v23107_v37  ;;  %17048 = vmatmul.mubr.msk.bf16.gmra.mrb[96].mxu1 %vm613_vm0, %v23107_v37 }
 0x53f   :  { %4721 = vmatprep.mubr.bf16.mxu0 %v25505_v0  ;;  %5054 = vmatprep.mubr.bf16.mxu1 %v25505_v0 }
 0x546   :  { %17019 = vmatmul.mubr.msk.bf16.gmra.mrb[100].mxu0 %vm613_vm0, %v23115_v38  ;;  %17049 = vmatmul.mubr.msk.bf16.gmra.mrb[100].mxu1 %vm613_vm0, %v23115_v38 }
 0x547   :  { %4731 = vmatprep.mubr.bf16.mxu0 %v25505_v0  ;;  %5064 = vmatprep.mubr.bf16.mxu1 %v25505_v0 }
 0x54e   :  { %17020 = vmatmul.mubr.msk.bf16.gmra.mrb[104].mxu0 %vm613_vm0, %v23123_v39  ;;  %17050 = vmatmul.mubr.msk.bf16.gmra.mrb[104].mxu1 %vm613_vm0, %v23123_v39 }
 0x54f   :  { %4741 = vmatprep.mubr.bf16.mxu0 %v25505_v0  ;;  %5074 = vmatprep.mubr.bf16.mxu1 %v25505_v0 }
 0x551   :  { %v23131_v40 = vpop.f32.mrb[0].mxu0  ;;  %v23133_v41 = vpop.f32.mrb[0].mxu1 }
 0x552   :  { %v23135_v42 = vpop.f32.mrb[1].mxu0  ;;  %v23137_v43 = vpop.f32.mrb[1].mxu1 }
 0x553   :  { %v23141_v45 = vpop.f32.mrb[2].mxu0  ;;  %v23143_v46 = vpop.f32.mrb[2].mxu1 }
 0x554   :  { %v23145_v47 = vpop.f32.mrb[3].mxu0  ;;  %v23147_v48 = vpop.f32.mrb[3].mxu1 }
 0x556   :  { %17021 = vmatmul.mubr.msk.bf16.gmra.mrb[108].mxu0 %vm613_vm0, %v23139_v44  ;;  %17051 = vmatmul.mubr.msk.bf16.gmra.mrb[108].mxu1 %vm613_vm0, %v23139_v44 }
 0x557   :  { %4751 = vmatprep.mubr.bf16.mxu0 %v25505_v0  ;;  %5084 = vmatprep.mubr.bf16.mxu1 %v25505_v0 }
 0x559   :  { %v23155_v50 = vpop.f32.mrb[4].mxu0  ;;  %v23157_v51 = vpop.f32.mrb[4].mxu1 }
 0x55a   :  { %v23159_v52 = vpop.f32.mrb[5].mxu0  ;;  %v23161_v1 = vpop.f32.mrb[5].mxu1 }
 0x55b   :  { %v23165_v4 = vpop.f32.mrb[6].mxu0  ;;  %v23167_v6 = vpop.f32.mrb[6].mxu1 }
 0x55c   :  { %v23169_v8 = vpop.f32.mrb[7].mxu0  ;;  %v23171_v54 = vpop.f32.mrb[7].mxu1 }
 0x55e   :  { %17022 = vmatmul.mubr.msk.bf16.gmra.mrb[112].mxu0 %vm613_vm0, %v23163_v3  ;;  %17052 = vmatmul.mubr.msk.bf16.gmra.mrb[112].mxu1 %vm613_vm0, %v23163_v3 }
 0x55f   :  { %4761 = vmatprep.mubr.bf16.mxu0 %v25505_v0  ;;  %5094 = vmatprep.mubr.bf16.mxu1 %v25505_v0 }
 0x561   :  { %v23179_v55 = vpop.f32.mrb[8].mxu0  ;;  %v23181_v56 = vpop.f32.mrb[8].mxu1 }
 0x562   :  { %v23183_v57 = vpop.f32.mrb[9].mxu0  ;;  %v23185_v58 = vpop.f32.mrb[9].mxu1 }
 0x563   :  { %v23187_v63 = vpop.f32.mrb[10].mxu0  ;;  %v23189_v10 = vpop.f32.mrb[10].mxu1 }
 0x564   :  { %v23191_v11 = vpop.f32.mrb[11].mxu0  ;;  %v23193_v15 = vpop.f32.mrb[11].mxu1 }
 0x565   :  { %25530 = vst [vmem:[#allocation25_spill] sm:$0xff] %v23193_v15  ;;  %v20949_v15 = vld [vmem:[#allocation9 + $0x2ec] ss:$12 sps:$4 sm:$0xff]  }
 0x566   :  { %17023 = vmatmul.mubr.msk.bf16.gmra.mrb[116].mxu0 %vm613_vm0, %v20935_v62  ;;  %17053 = vmatmul.mubr.msk.bf16.gmra.mrb[116].mxu1 %vm613_vm0, %v20935_v62  ;;  %v20946_v62 = vld [vmem:[#allocation9 + $0x2d8] ss:$12 sps:$4 sm:$0xff]  }
 0x567   :  { %5522 = vmatprep.mubr.bf16.mxu0 %v25505_v0  ;;  %5855 = vmatprep.mubr.bf16.mxu1 %v25505_v0 }
 0x569   :  { %v23199_v16 = vpop.f32.mrb[12].mxu0  ;;  %v23201_v19 = vpop.f32.mrb[12].mxu1 }
 0x56a   :  { %25531 = vst [vmem:[#allocation26_spill] sm:$0xff] %v23199_v16  ;;  %25532 = vst [vmem:[#allocation27_spill] sm:$0xff] %v23201_v19  ;;  %v23203_v20 = vpop.f32.mrb[13].mxu0  ;;  %v23205_v23 = vpop.f32.mrb[13].mxu1 }
 0x56b   :  { %25533 = vst [vmem:[#allocation28_spill] sm:$0xff] %v23203_v20  ;;  %25534 = vst [vmem:[#allocation29_spill] sm:$0xff] %v23205_v23  ;;  %v23207_v24 = vpop.f32.mrb[14].mxu0  ;;  %v23209_v25 = vpop.f32.mrb[14].mxu1 }
 0x56c   :  { %25535 = vst [vmem:[#allocation30_spill] sm:$0xff] %v23207_v24  ;;  %25536 = vst [vmem:[#allocation31_spill] sm:$0xff] %v23209_v25  ;;  %v23211_v26 = vpop.f32.mrb[15].mxu0  ;;  %v23213_v49 = vpop.f32.mrb[15].mxu1  ;;  %v20947_v25 = vld [vmem:[#allocation9 + $0x2e8] ss:$12 sps:$4 sm:$0xff]  }
 0x56d   :  { %25537 = vst [vmem:[#allocation32_spill] sm:$0xff] %v23211_v26  ;;  %25538 = vst [vmem:[#allocation33_spill] sm:$0xff] %v23213_v49 }
 0x56e   :  { %17078 = vmatmul.mubr.msk.bf16.vlgmr.msra.gmra.mrb[120].mxu0 %vm613_vm0, %v22915_v2  ;;  %17108 = vmatmul.mubr.msk.bf16.vlgmr.msra.gmra.mrb[120].mxu1 %vm613_vm0, %v22915_v2 }
 0x56f   :  { %5532 = vmatprep.mubr.bf16.mxu0 %v25505_v0  ;;  %5865 = vmatprep.mubr.bf16.mxu1 %v25505_v0 }
 0x570   :  { %8114 = vmatpush1.bf16.msra.mxu0 %v20942_v7  ;;  %17977 = vmatpush3.bf16.msra.mxu1 %v20946_v62  ;;  %v20952_v7 = vld [vmem:[#allocation9 + $0x304] ss:$12 sps:$4 sm:$0xff]  }
 0x571   :  { %v23221_v24 = vpop.f32.mrb[16].mxu0  ;;  %v23223_v26 = vpop.f32.mrb[16].mxu1  ;;  %8115 = vmatprep.subr.bf16.mxu0 %v20949_v15  ;;  %v20950_v15 = vld [vmem:[#allocation9 + $0x300] ss:$12 sps:$4 sm:$0xff]  }
 0x572   :  { %v23225_v49 = vpop.f32.mrb[17].mxu0  ;;  %v23227_v23 = vpop.f32.mrb[17].mxu1 }
 0x573   :  { %25539 = vst [vmem:[#allocation34_spill] sm:$0xff] %v23225_v49  ;;  %25540 = vst [vmem:[#allocation35_spill] sm:$0xff] %v23227_v23  ;;  %v23229_v20 = vpop.f32.mrb[18].mxu0  ;;  %v23231_v19 = vpop.f32.mrb[18].mxu1 }
 0x574   :  { %25541 = vst [vmem:[#allocation36_spill] sm:$0xff] %v23229_v20  ;;  %25542 = vst [vmem:[#allocation37_spill] sm:$0xff] %v23231_v19  ;;  %v23233_v2 = vpop.f32.mrb[19].mxu0  ;;  %v23235_v16 = vpop.f32.mrb[19].mxu1  ;;  %8116 = vmatpush1.bf16.msra.mxu0 %v20947_v25  ;;  %v20954_v20 = vld [vmem:[#allocation9 + $0x2f0] ss:$12 sps:$4 sm:$0xff]  }
 0x575   :  { %25543 = vst [vmem:[#allocation38_spill] sm:$0xff] %v23233_v2  ;;  %25544 = vst [vmem:[#allocation39_spill] sm:$0xff] %v23235_v16  ;;  %8117 = vmatprep.subr.bf16.mxu0 %v20952_v7  ;;  %v20953_v16 = vld [vmem:[#allocation9 + $0x3b0] ss:$12 sps:$4 sm:$0xff]  }
 0x576   :  { %17079 = vmatmul.mubr.msk.bf16.gmra.mrb[124].mxu0 %vm613_vm0, %v22923_v53  ;;  %17109 = vmatmul.mubr.msk.bf16.gmra.mrb[124].mxu1 %vm613_vm0, %v22923_v53 }
 0x577   :  { %5542 = vmatprep.mubr.bf16.mxu0 %v25505_v0  ;;  %5875 = vmatprep.mubr.bf16.mxu1 %v25505_v0 }
 0x578   :  { %8118 = vmatpush1.bf16.msra.mxu0 %v20950_v15  ;;  %17978 = vmatprep.subr.bf16.mxu1 %v20953_v16  ;;  %v25551_v15 = vmov 0  }
 0x579   :  { %v23243_v62 = vpop.f32.mrb[20].mxu0  ;;  %v23245_v19 = vpop.f32.mrb[20].mxu1  ;;  %17979 = vmatpush3.bf16.msra.mxu1 %v20954_v20 }
 0x57a   :  { %v23247_v25 = vpop.f32.mrb[21].mxu0  ;;  %v23249_v2 = vpop.f32.mrb[21].mxu1 }
 0x57b   :  { %25545 = vst [vmem:[#allocation40_spill] sm:$0xff] %v23247_v25  ;;  %25546 = vst [vmem:[#allocation41_spill] sm:$0xff] %v23249_v2  ;;  %v23251_v23 = vpop.f32.mrb[22].mxu0  ;;  %v23253_v53 = vpop.f32.mrb[22].mxu1  ;;  %v20955_v25 = vld [vmem:[#allocation9 + $0x318] ss:$12 sps:$4 sm:$0xff]  }
 0x57c   :  { %25547 = vst [vmem:[#allocation42_spill] sm:$0xff] %v23251_v23  ;;  %25548 = vst [vmem:[#allocation43_spill] sm:$0xff] %v23253_v53  ;;  %v23255_v49 = vpop.f32.mrb[23].mxu0  ;;  %v23257_v0 = vpop.f32.mrb[23].mxu1 }
 0x57d   :  { %25549 = vst [vmem:[#allocation44_spill] sm:$0xff] %v23255_v49  ;;  %25550 = vst [vmem:[#allocation45_spill] sm:$0xff] %v23257_v0 }
 0x57e   :  { %17080 = vmatmul.mubr.msk.bf16.gmra.mrb[128].mxu0 %vm613_vm0, %v22931_v59  ;;  %17110 = vmatmul.mubr.msk.bf16.gmra.mrb[128].mxu1 %vm613_vm0, %v22931_v59  ;;  %v20957_v59 = vld [vmem:[#allocation9 + $0x31c] ss:$12 sps:$4 sm:$0xff]  }
 0x57f   :  { %5552 = vmatprep.mubr.bf16.mxu0 %v25551_v15  ;;  %5885 = vmatprep.mubr.bf16.mxu1 %v25551_v15 }
 0x580   :  { %8119 = vmatprep.subr.bf16.mxu0 %v20957_v59 }
 0x581   :  { %v23265_v7 = vpop.f32.mrb[24].mxu0  ;;  %v23267_v23 = vpop.f32.mrb[24].mxu1  ;;  %8120 = vmatpush1.bf16.msra.mxu0 %v20955_v25 }
 0x582   :  { %25552 = vst [vmem:[#allocation46_spill] sm:$0xff] %v23267_v23  ;;  %v23269_v16 = vpop.f32.mrb[25].mxu0  ;;  %v23271_v49 = vpop.f32.mrb[25].mxu1 }
 0x583   :  { %25553 = vst [vmem:[#allocation47_spill] sm:$0xff] %v23269_v16  ;;  %25554 = vst [vmem:[#allocation48_spill] sm:$0xff] %v23271_v49  ;;  %v23273_v0 = vpop.f32.mrb[26].mxu0  ;;  %v23275_v20 = vpop.f32.mrb[26].mxu1 }
 0x584   :  { %25555 = vst [vmem:[#allocation49_spill] sm:$0xff] %v23273_v0  ;;  %25556 = vst [vmem:[#allocation50_spill] sm:$0xff] %v23275_v20  ;;  %v23277_v53 = vpop.f32.mrb[27].mxu0  ;;  %v23279_v2 = vpop.f32.mrb[27].mxu1 }
 0x585   :  { %25557 = vst [vmem:[#allocation51_spill] sm:$0xff] %v23277_v53  ;;  %25558 = vst [vmem:[#allocation52_spill] sm:$0xff] %v23279_v2 }
 0x586   :  { %17081 = vmatmul.mubr.msk.bf16.gmra.mrb[132].mxu0 %vm613_vm0, %v22939_v60  ;;  %17111 = vmatmul.mubr.msk.bf16.gmra.mrb[132].mxu1 %vm613_vm0, %v22939_v60 }
 0x587   :  { %5562 = vmatprep.mubr.bf16.mxu0 %v25551_v15  ;;  %5895 = vmatprep.mubr.bf16.mxu1 %v25551_v15 }
 0x589   :  { %v23287_v0 = vpop.f32.mrb[28].mxu0  ;;  %v23289_v20 = vpop.f32.mrb[28].mxu1 }
 0x58a   :  { %25559 = vst [vmem:[#allocation53_spill] sm:$0xff] %v23287_v0  ;;  %25560 = vst [vmem:[#allocation54_spill] sm:$0xff] %v23289_v20  ;;  %v23291_v53 = vpop.f32.mrb[29].mxu0  ;;  %v23293_v2 = vpop.f32.mrb[29].mxu1  ;;  %v20958_v20 = vld [vmem:[#allocation9 + $0x330] ss:$12 sps:$4 sm:$0xff]  }
 0x58b   :  { %25561 = vst [vmem:[#allocation55_spill] sm:$0xff] %v23291_v53  ;;  %25562 = vst [vmem:[#allocation56_spill] sm:$0xff] %v23293_v2  ;;  %v23295_v49 = vpop.f32.mrb[30].mxu0  ;;  %v23297_v16 = vpop.f32.mrb[30].mxu1 }
 0x58c   :  { %25563 = vst [vmem:[#allocation57_spill] sm:$0xff] %v23295_v49  ;;  %25564 = vst [vmem:[#allocation58_spill] sm:$0xff] %v23297_v16  ;;  %v23299_v23 = vpop.f32.mrb[31].mxu0  ;;  %v23301_v60 = vpop.f32.mrb[31].mxu1 }
 0x58d   :  { %25565 = vst [vmem:[#allocation59_spill] sm:$0xff] %v23299_v23  ;;  %25566 = vst [vmem:[#allocation60_spill] sm:$0xff] %v23301_v60 }
 0x58e   :  { %17082 = vmatmul.mubr.msk.bf16.gmra.mrb[136].mxu0 %vm613_vm0, %v22947_v61  ;;  %17112 = vmatmul.mubr.msk.bf16.gmra.mrb[136].mxu1 %vm613_vm0, %v22947_v61  ;;  %v20960_v61 = vld [vmem:[#allocation9 + $0x334] ss:$12 sps:$4 sm:$0xff]  }
 0x58f   :  { %5572 = vmatprep.mubr.bf16.mxu0 %v25551_v15  ;;  %5905 = vmatprep.mubr.bf16.mxu1 %v25551_v15 }
 0x590   :  { %8121 = vmatprep.subr.bf16.mxu0 %v20960_v61 }
 0x591   :  { %v23309_v25 = vpop.f32.mrb[32].mxu0  ;;  %v23311_v59 = vpop.f32.mrb[32].mxu1  ;;  %8122 = vmatpush1.bf16.msra.mxu0 %v20958_v20 }
 0x592   :  { %25567 = vst [vmem:[#allocation61_spill] sm:$0xff] %v23309_v25  ;;  %25568 = vst [vmem:[#allocation62_spill] sm:$0xff] %v23311_v59  ;;  %v23313_v49 = vpop.f32.mrb[33].mxu0  ;;  %v23315_v16 = vpop.f32.mrb[33].mxu1  ;;  %v20961_v59 = vld [vmem:[#allocation9 + $0x3c8] ss:$12 sps:$4 sm:$0xff]  }
 0x593   :  { %25569 = vst [vmem:[#allocation63_spill] sm:$0xff] %v23313_v49  ;;  %25570 = vst [vmem:[#allocation64_spill] sm:$0xff] %v23315_v16  ;;  %v23317_v23 = vpop.f32.mrb[34].mxu0  ;;  %v23319_v60 = vpop.f32.mrb[34].mxu1  ;;  %v20962_v49 = vld [vmem:[#allocation9 + $0x308] ss:$12 sps:$4 sm:$0xff]   ;;  %17980 = vmatprep.subr.bf16.mxu1 %v20961_v59 }
 0x594   :  { %25571 = vst [vmem:[#allocation65_spill] sm:$0xff] %v23317_v23  ;;  %25572 = vst [vmem:[#allocation66_spill] sm:$0xff] %v23319_v60  ;;  %v23321_v2 = vpop.f32.mrb[35].mxu0  ;;  %v23323_v53 = vpop.f32.mrb[35].mxu1  ;;  %17981 = vmatpush3.bf16.msra.mxu1 %v20962_v49 }
 0x595   :  { %25573 = vst [vmem:[#allocation67_spill] sm:$0xff] %v23321_v2  ;;  %25574 = vst [vmem:[#allocation68_spill] sm:$0xff] %v23323_v53 }
 0x596   :  { %17083 = vmatmul.mubr.msk.bf16.gmra.mrb[140].mxu0 %vm613_vm0, %v22955_v5  ;;  %17113 = vmatmul.mubr.msk.bf16.gmra.mrb[140].mxu1 %vm613_vm0, %v22955_v5 }
 0x597   :  { %5582 = vmatprep.mubr.bf16.mxu0 %v25551_v15  ;;  %5915 = vmatprep.mubr.bf16.mxu1 %v25551_v15 }
 0x599   :  { %v23331_v60 = vpop.f32.mrb[36].mxu0  ;;  %v23333_v2 = vpop.f32.mrb[36].mxu1 }
 0x59a   :  { %v23335_v53 = vpop.f32.mrb[37].mxu0  ;;  %v23337_v23 = vpop.f32.mrb[37].mxu1 }
 0x59b   :  { %25575 = vst [vmem:[#allocation69_spill] sm:$0xff] %v23337_v23  ;;  %v23339_v16 = vpop.f32.mrb[38].mxu0  ;;  %v23341_v5 = vpop.f32.mrb[38].mxu1  ;;  %v20963_v23 = vld [vmem:[#allocation9 + $0x348] ss:$12 sps:$4 sm:$0xff]  }
 0x59c   :  { %25576 = vst [vmem:[#allocation70_spill] sm:$0xff] %v23339_v16  ;;  %25577 = vst [vmem:[#allocation71_spill] sm:$0xff] %v23341_v5  ;;  %v23343_v25 = vpop.f32.mrb[39].mxu0  ;;  %v23345_v0 = vpop.f32.mrb[39].mxu1  ;;  %v20965_v5 = vld [vmem:[#allocation9 + $0x34c] ss:$12 sps:$4 sm:$0xff]  }
 0x59d   :  { %25578 = vst [vmem:[#allocation72_spill] sm:$0xff] %v23343_v25  ;;  %25579 = vst [vmem:[#allocation73_spill] sm:$0xff] %v23345_v0  ;;  %8123 = vmatprep.subr.bf16.mxu0 %v20965_v5 }
 0x59e   :  { %17084 = vmatmul.mubr.msk.bf16.gmra.mrb[144].mxu0 %vm613_vm0, %v22963_v9  ;;  %17114 = vmatmul.mubr.msk.bf16.gmra.mrb[144].mxu1 %vm613_vm0, %v22963_v9 }
 0x59f   :  { %5592 = vmatprep.mubr.bf16.mxu0 %v25551_v15  ;;  %5925 = vmatprep.mubr.bf16.mxu1 %v25551_v15 }
 0x5a0   :  { %8124 = vmatpush1.bf16.msra.mxu0 %v20963_v23 }
 0x5a1   :  { %v23353_v49 = vpop.f32.mrb[40].mxu0  ;;  %v23355_v20 = vpop.f32.mrb[40].mxu1 }
 0x5a2   :  { %25580 = vst [vmem:[#allocation74_spill] sm:$0xff] %v23355_v20  ;;  %v23357_v59 = vpop.f32.mrb[41].mxu0  ;;  %v23359_v61 = vpop.f32.mrb[41].mxu1  ;;  %v20969_v20 = vld [vmem:[#allocation9 + $0x3e0] ss:$12 sps:$4 sm:$0xff]  }
 0x5a3   :  { %25581 = vst [vmem:[#allocation75_spill] sm:$0xff] %v23357_v59  ;;  %25582 = vst [vmem:[#allocation76_spill] sm:$0xff] %v23359_v61  ;;  %v23361_v25 = vpop.f32.mrb[42].mxu0  ;;  %v23363_v0 = vpop.f32.mrb[42].mxu1  ;;  %17982 = vmatprep.subr.bf16.mxu1 %v20969_v20 }
 0x5a4   :  { %25583 = vst [vmem:[#allocation77_spill] sm:$0xff] %v23361_v25  ;;  %25584 = vst [vmem:[#allocation78_spill] sm:$0xff] %v23363_v0  ;;  %v23365_v16 = vpop.f32.mrb[43].mxu0  ;;  %v23367_v9 = vpop.f32.mrb[43].mxu1 }
 0x5a5   :  { %25585 = vst [vmem:[#allocation79_spill] sm:$0xff] %v23365_v16  ;;  %25586 = vst [vmem:[#allocation80_spill] sm:$0xff] %v23367_v9 }
 0x5a6   :  { %17085 = vmatmul.mubr.msk.bf16.gmra.mrb[148].mxu0 %vm613_vm0, %v22971_v12  ;;  %17115 = vmatmul.mubr.msk.bf16.gmra.mrb[148].mxu1 %vm613_vm0, %v22971_v12 }
 0x5a7   :  { %5602 = vmatprep.mubr.bf16.mxu0 %v25551_v15  ;;  %5935 = vmatprep.mubr.bf16.mxu1 %v25551_v15 }
 0x5a9   :  { %v23375_v25 = vpop.f32.mrb[44].mxu0  ;;  %v23377_v0 = vpop.f32.mrb[44].mxu1 }
 0x5aa   :  { %25587 = vst [vmem:[#allocation81_spill] sm:$0xff] %v23375_v25  ;;  %25588 = vst [vmem:[#allocation82_spill] sm:$0xff] %v23377_v0  ;;  %v23379_v16 = vpop.f32.mrb[45].mxu0  ;;  %v23381_v9 = vpop.f32.mrb[45].mxu1 }
 0x5ab   :  { %25589 = vst [vmem:[#allocation83_spill] sm:$0xff] %v23379_v16  ;;  %25590 = vst [vmem:[#allocation84_spill] sm:$0xff] %v23381_v9  ;;  %v23383_v5 = vpop.f32.mrb[46].mxu0  ;;  %v23385_v61 = vpop.f32.mrb[46].mxu1 }
 0x5ac   :  { %25591 = vst [vmem:[#allocation85_spill] sm:$0xff] %v23383_v5  ;;  %25592 = vst [vmem:[#allocation86_spill] sm:$0xff] %v23385_v61  ;;  %v23387_v59 = vpop.f32.mrb[47].mxu0  ;;  %v23389_v12 = vpop.f32.mrb[47].mxu1 }
 0x5ad   :  { %25593 = vst [vmem:[#allocation87_spill] sm:$0xff] %v23387_v59  ;;  %25594 = vst [vmem:[#allocation88_spill] sm:$0xff] %v23389_v12  ;;  %v20966_v59 = vld [vmem:[#allocation9 + $0x360] ss:$12 sps:$4 sm:$0xff]   ;;  %v20968_v12 = vld [vmem:[#allocation9 + $0x364] ss:$12 sps:$4 sm:$0xff]  }
 0x5ae   :  { %17086 = vmatmul.mubr.msk.bf16.gmra.mrb[152].mxu0 %vm613_vm0, %v22979_v13  ;;  %17116 = vmatmul.mubr.msk.bf16.gmra.mrb[152].mxu1 %vm613_vm0, %v22979_v13 }
 0x5af   :  { %5612 = vmatprep.mubr.bf16.mxu0 %v25551_v15  ;;  %5945 = vmatprep.mubr.bf16.mxu1 %v25551_v15 }
 0x5b0   :  { %8125 = vmatprep.subr.bf16.mxu0 %v20968_v12 }
 0x5b1   :  { %v23397_v23 = vpop.f32.mrb[48].mxu0  ;;  %v23399_v9 = vpop.f32.mrb[48].mxu1  ;;  %8126 = vmatpush1.bf16.msra.mxu0 %v20966_v59 }
 0x5b2   :  { %v23401_v5 = vpop.f32.mrb[49].mxu0  ;;  %v23403_v61 = vpop.f32.mrb[49].mxu1 }
 0x5b3   :  { %25595 = vst [vmem:[#allocation89_spill] sm:$0xff] %v23401_v5  ;;  %25596 = vst [vmem:[#allocation90_spill] sm:$0xff] %v23403_v61  ;;  %v23405_v16 = vpop.f32.mrb[50].mxu0  ;;  %v23407_v0 = vpop.f32.mrb[50].mxu1  ;;  %v20970_v61 = vld [vmem:[#allocation9 + $0x320] ss:$12 sps:$4 sm:$0xff]  }
 0x5b4   :  { %25597 = vst [vmem:[#allocation91_spill] sm:$0xff] %v23405_v16  ;;  %25598 = vst [vmem:[#allocation92_spill] sm:$0xff] %v23407_v0  ;;  %v23409_v25 = vpop.f32.mrb[51].mxu0  ;;  %v23411_v13 = vpop.f32.mrb[51].mxu1  ;;  %17983 = vmatpush3.bf16.msra.mxu1 %v20970_v61 }
 0x5b5   :  { %25599 = vst [vmem:[#allocation93_spill] sm:$0xff] %v23409_v25  ;;  %25600 = vst [vmem:[#allocation94_spill] sm:$0xff] %v23411_v13 }
 0x5b6   :  { %17087 = vmatmul.mubr.msk.bf16.gmra.mrb[156].mxu0 %vm613_vm0, %v22987_v14  ;;  %17117 = vmatmul.mubr.msk.bf16.gmra.mrb[156].mxu1 %vm613_vm0, %v22987_v14 }
 0x5b7   :  { %5622 = vmatprep.mubr.bf16.mxu0 %v25551_v15  ;;  %5955 = vmatprep.mubr.bf16.mxu1 %v25551_v15 }
 0x5b9   :  { %v23419_v0 = vpop.f32.mrb[52].mxu0  ;;  %v23421_v25 = vpop.f32.mrb[52].mxu1 }
 0x5ba   :  { %25601 = vst [vmem:[#allocation95_spill] sm:$0xff] %v23419_v0  ;;  %25602 = vst [vmem:[#allocation96_spill] sm:$0xff] %v23421_v25  ;;  %v23423_v12 = vpop.f32.mrb[53].mxu0  ;;  %v23425_v59 = vpop.f32.mrb[53].mxu1  ;;  %v20978_v0 = vld [vmem:[#allocation9 + $0x3a8] ss:$12 sps:$4 sm:$0xff]  }
 0x5bb   :  { %25603 = vst [vmem:[#allocation97_spill] sm:$0xff] %v23423_v12  ;;  %25604 = vst [vmem:[#allocation98_spill] sm:$0xff] %v23425_v59  ;;  %v23427_v13 = vpop.f32.mrb[54].mxu0  ;;  %v23429_v16 = vpop.f32.mrb[54].mxu1 }
 0x5bc   :  { %25605 = vst [vmem:[#allocation99_spill] sm:$0xff] %v23427_v13  ;;  %25606 = vst [vmem:[#allocation100_spill] sm:$0xff] %v23429_v16  ;;  %v23431_v14 = vpop.f32.mrb[55].mxu0  ;;  %v23433_v5 = vpop.f32.mrb[55].mxu1 }
 0x5bd   :  { %25607 = vst [vmem:[#allocation101_spill] sm:$0xff] %v23431_v14  ;;  %25608 = vst [vmem:[#allocation102_spill] sm:$0xff] %v23433_v5  ;;  %v20971_v14 = vld [vmem:[#allocation9 + $0x378] ss:$12 sps:$4 sm:$0xff]   ;;  %v20973_v5 = vld [vmem:[#allocation9 + $0x37c] ss:$12 sps:$4 sm:$0xff]  }
 0x5be   :  { %17088 = vmatmul.mubr.msk.bf16.gmra.mrb[160].mxu0 %vm613_vm0, %v22995_v17  ;;  %17118 = vmatmul.mubr.msk.bf16.gmra.mrb[160].mxu1 %vm613_vm0, %v22995_v17 }
 0x5bf   :  { %5632 = vmatprep.mubr.bf16.mxu0 %v25551_v15  ;;  %5965 = vmatprep.mubr.bf16.mxu1 %v25551_v15 }
 0x5c0   :  { %8127 = vmatprep.subr.bf16.mxu0 %v20973_v5 }
 0x5c1   :  { %v23441_v20 = vpop.f32.mrb[56].mxu0  ;;  %v23443_v61 = vpop.f32.mrb[56].mxu1  ;;  %8128 = vmatpush1.bf16.msra.mxu0 %v20971_v14 }
 0x5c2   :  { %25609 = vst [vmem:[#allocation103_spill] sm:$0xff] %v23441_v20  ;;  %25610 = vst [vmem:[#allocation104_spill] sm:$0xff] %v23443_v61  ;;  %v23445_v13 = vpop.f32.mrb[57].mxu0  ;;  %v23447_v16 = vpop.f32.mrb[57].mxu1  ;;  %v20980_v20 = vld [vmem:[#allocation9 + $0x3ac] ss:$12 sps:$4 sm:$0xff]  }
 0x5c3   :  { %25611 = vst [vmem:[#allocation105_spill] sm:$0xff] %v23445_v13  ;;  %25612 = vst [vmem:[#allocation106_spill] sm:$0xff] %v23447_v16  ;;  %v23449_v59 = vpop.f32.mrb[58].mxu0  ;;  %v23451_v12 = vpop.f32.mrb[58].mxu1  ;;  %v20976_v16 = vld [vmem:[#allocation9 + $0x394] ss:$12 sps:$4 sm:$0xff]  }
 0x5c4   :  { %25613 = vst [vmem:[#allocation107_spill] sm:$0xff] %v23449_v59  ;;  %25614 = vst [vmem:[#allocation108_spill] sm:$0xff] %v23451_v12  ;;  %v23453_v25 = vpop.f32.mrb[59].mxu0  ;;  %v23455_v17 = vpop.f32.mrb[59].mxu1  ;;  %v20974_v59 = vld [vmem:[#allocation9 + $0x390] ss:$12 sps:$4 sm:$0xff]   ;;  %8129 = vmatprep.subr.bf16.mxu0 %v20976_v16 }
 0x5c5   :  { %25615 = vst [vmem:[#allocation109_spill] sm:$0xff] %v23453_v25  ;;  %25616 = vst [vmem:[#allocation110_spill] sm:$0xff] %v23455_v17  ;;  %8130 = vmatpush1.bf16.msra.mxu0 %v20974_v59  ;;  %v20984_v16 = vld [vmem:[#allocation9 + $0x3c4] ss:$12 sps:$4 sm:$0xff]  }
 0x5c6   :  { %17089 = vmatmul.mubr.msk.bf16.gmra.mrb[164].mxu0 %vm613_vm0, %v23003_v18  ;;  %17119 = vmatmul.mubr.msk.bf16.gmra.mrb[164].mxu1 %vm613_vm0, %v23003_v18 }
 0x5c7   :  { %5642 = vmatprep.mubr.bf16.mxu0 %v25551_v15  ;;  %5975 = vmatprep.mubr.bf16.mxu1 %v25551_v15 }
 0x5c8   :  { %8131 = vmatprep.subr.bf16.mxu0 %v20980_v20  ;;  %v20987_v20 = vld [vmem:[#allocation9 + $0x3dc] ss:$12 sps:$4 sm:$0xff]  }
 0x5c9   :  { %v23463_v13 = vpop.f32.mrb[60].mxu0  ;;  %v23465_v12 = vpop.f32.mrb[60].mxu1  ;;  %8132 = vmatpush1.bf16.msra.mxu0 %v20978_v0  ;;  %v20977_v0 = vld [vmem:[#allocation9 + $0x3f8] ss:$12 sps:$4 sm:$0xff]  }
 0x5ca   :  { %25617 = vst [vmem:[#allocation111_spill] sm:$0xff] %v23463_v13  ;;  %25618 = vst [vmem:[#allocation112_spill] sm:$0xff] %v23465_v12  ;;  %v23467_v17 = vpop.f32.mrb[61].mxu0  ;;  %v23469_v5 = vpop.f32.mrb[61].mxu1  ;;  %8133 = vmatprep.subr.bf16.mxu0 %v20984_v16  ;;  %v20981_v16 = vld [vmem:[#allocation9 + $0x338] ss:$12 sps:$4 sm:$0xff]   ;;  %17984 = vmatprep.subr.bf16.mxu1 %v20977_v0 }
 0x5cb   :  { %25619 = vst [vmem:[#allocation113_spill] sm:$0xff] %v23467_v17  ;;  %25620 = vst [vmem:[#allocation114_spill] sm:$0xff] %v23469_v5  ;;  %v23471_v14 = vpop.f32.mrb[62].mxu0  ;;  %v23473_v25 = vpop.f32.mrb[62].mxu1  ;;  %17985 = vmatpush3.bf16.msra.mxu1 %v20981_v16  ;;  %v20999_v0 = vld [vmem:[#allocation9 + $0x428] ss:$12 sps:$4 sm:$0xff]  }
 0x5cc   :  { %25621 = vst [vmem:[#allocation115_spill] sm:$0xff] %v23471_v14  ;;  %25622 = vst [vmem:[#allocation116_spill] sm:$0xff] %v23473_v25  ;;  %v23475_v18 = vpop.f32.mrb[63].mxu0  ;;  %v23477_v61 = vpop.f32.mrb[63].mxu1  ;;  %v21000_v16 = vld [vmem:[#allocation9 + $0x368] ss:$12 sps:$4 sm:$0xff]  }
 0x5cd   :  { %25623 = vst [vmem:[#allocation117_spill] sm:$0xff] %v23475_v18  ;;  %25624 = vst [vmem:[#allocation118_spill] sm:$0xff] %v23477_v61  ;;  %v20982_v61 = vld [vmem:[#allocation9 + $0x3c0] ss:$12 sps:$4 sm:$0xff]  }
 0x5ce   :  { %17090 = vmatmul.mubr.msk.bf16.gmra.mrb[168].mxu0 %vm613_vm0, %v23011_v21  ;;  %17120 = vmatmul.mubr.msk.bf16.gmra.mrb[168].mxu1 %vm613_vm0, %v23011_v21 }
 0x5cf   :  { %5652 = vmatprep.mubr.bf16.mxu0 %v25551_v15  ;;  %5985 = vmatprep.mubr.bf16.mxu1 %v25551_v15 }
 0x5d0   :  { %8134 = vmatpush1.bf16.msra.mxu0 %v20982_v61  ;;  %v20988_v61 = vld [vmem:[#allocation9 + $0x3f0] ss:$12 sps:$4 sm:$0xff]  }
 0x5d1   :  { %v23485_v59 = vpop.f32.mrb[64].mxu0  ;;  %v23487_v25 = vpop.f32.mrb[64].mxu1  ;;  %8135 = vmatprep.subr.bf16.mxu0 %v20987_v20 }
 0x5d2   :  { %25625 = vst [vmem:[#allocation119_spill] sm:$0xff] %v23485_v59  ;;  %25626 = vst [vmem:[#allocation120_spill] sm:$0xff] %v23487_v25  ;;  %v23489_v18 = vpop.f32.mrb[65].mxu0  ;;  %v23491_v14 = vpop.f32.mrb[65].mxu1  ;;  %v20985_v59 = vld [vmem:[#allocation9 + $0x3d8] ss:$12 sps:$4 sm:$0xff]  }
 0x5d3   :  { %25627 = vst [vmem:[#allocation121_spill] sm:$0xff] %v23489_v18  ;;  %25628 = vst [vmem:[#allocation122_spill] sm:$0xff] %v23491_v14  ;;  %v23493_v5 = vpop.f32.mrb[66].mxu0  ;;  %v23495_v21 = vpop.f32.mrb[66].mxu1  ;;  %v20994_v25 = vld [vmem:[#allocation9 + $0x410] ss:$12 sps:$4 sm:$0xff]  }
 0x5d4   :  { %25629 = vst [vmem:[#allocation123_spill] sm:$0xff] %v23493_v5  ;;  %25630 = vst [vmem:[#allocation124_spill] sm:$0xff] %v23495_v21  ;;  %v23497_v17 = vpop.f32.mrb[67].mxu0  ;;  %v23499_v12 = vpop.f32.mrb[67].mxu1  ;;  %v20990_v21 = vld [vmem:[#allocation9 + $0x3f4] ss:$12 sps:$4 sm:$0xff]   ;;  %8136 = vmatpush1.bf16.msra.mxu0 %v20985_v59  ;;  %17986 = vmatprep.subr.bf16.mxu1 %v20994_v25 }
 0x5d5   :  { %25631 = vst [vmem:[#allocation125_spill] sm:$0xff] %v23497_v17  ;;  %25632 = vst [vmem:[#allocation126_spill] sm:$0xff] %v23499_v12  ;;  %8137 = vmatprep.subr.bf16.mxu0 %v20990_v21  ;;  %v20991_v59 = vld [vmem:[#allocation9 + $0x408] ss:$12 sps:$4 sm:$0xff]   ;;  %v20998_v21 = vld [vmem:[#allocation9 + $0x424] ss:$12 sps:$4 sm:$0xff]  }
 0x5d6   :  { %17091 = vmatmul.mubr.msk.bf16.gmra.mrb[172].mxu0 %vm613_vm0, %v23019_v22  ;;  %17121 = vmatmul.mubr.msk.bf16.gmra.mrb[172].mxu1 %vm613_vm0, %v23019_v22  ;;  %v20996_v25 = vld [vmem:[#allocation9 + $0x420] ss:$12 sps:$4 sm:$0xff]  }
 0x5d7   :  { %5662 = vmatprep.mubr.bf16.mxu0 %v25551_v15  ;;  %5995 = vmatprep.mubr.bf16.mxu1 %v25551_v15 }
 0x5d8   :  { %8138 = vmatpush1.bf16.msra.mxu0 %v20988_v61 }
 0x5d9   :  { %v23507_v17 = vpop.f32.mrb[68].mxu0  ;;  %v23509_v12 = vpop.f32.mrb[68].mxu1 }
 0x5da   :  { %25633 = vst [vmem:[#allocation127_spill] sm:$0xff] %v23507_v17  ;;  %25634 = vst [vmem:[#allocation128_spill] sm:$0xff] %v23509_v12  ;;  %v23511_v5 = vpop.f32.mrb[69].mxu0  ;;  %v23513_v14 = vpop.f32.mrb[69].mxu1  ;;  %v20993_v17 = vld [vmem:[#allocation9 + $0x40c] ss:$12 sps:$4 sm:$0xff]  }
 0x5db   :  { %25635 = vst [vmem:[#allocation129_spill] sm:$0xff] %v23513_v14  ;;  %v23515_v22 = vpop.f32.mrb[70].mxu0  ;;  %v23517_v18 = vpop.f32.mrb[70].mxu1  ;;  %v20995_v12 = vld [vmem:[#allocation9 + $0x350] ss:$12 sps:$4 sm:$0xff]   ;;  %8139 = vmatprep.subr.bf16.mxu0 %v20993_v17 }
 0x5dc   :  { %25636 = vst [vmem:[#allocation130_spill] sm:$0xff] %v23515_v22  ;;  %25637 = vst [vmem:[#allocation131_spill] sm:$0xff] %v23517_v18  ;;  %v23519_v13 = vpop.f32.mrb[71].mxu0  ;;  %v23521_v20 = vpop.f32.mrb[71].mxu1  ;;  %17987 = vmatpush3.bf16.msra.mxu1 %v20995_v12  ;;  %8140 = vmatpush1.bf16.msra.mxu0 %v20991_v59  ;;  %v21004_v14 = vld [vmem:[#allocation9 + $0x440] ss:$12 sps:$4 sm:$0xff]  }
 0x5dd   :  { %25638 = vst [vmem:[#allocation132_spill] sm:$0xff] %v23519_v13  ;;  %25639 = vst [vmem:[#allocation133_spill] sm:$0xff] %v23521_v20  ;;  %17988 = vmatprep.subr.bf16.mxu1 %v20999_v0  ;;  %8141 = vmatprep.subr.bf16.mxu0 %v20998_v21  ;;  %v21001_v59 = vld [vmem:[#allocation9 + $0x438] ss:$12 sps:$4 sm:$0xff]  }
 0x5de   :  { %17092 = vmatmul.mubr.msk.bf16.gmra.mrb[176].mxu0 %vm613_vm0, %v23027_v27  ;;  %17122 = vmatmul.mubr.msk.bf16.gmra.mrb[176].mxu1 %vm613_vm0, %v23027_v27 }
 0x5df   :  { %5672 = vmatprep.mubr.bf16.mxu0 %v25551_v15  ;;  %6005 = vmatprep.mubr.bf16.mxu1 %v25551_v15 }
 0x5e0   :  { %17989 = vmatpush3.bf16.msra.mxu1 %v21000_v16  ;;  %8142 = vmatpush1.bf16.msra.mxu0 %v20996_v25 }
 0x5e1   :  { %v23529_v20 = vpop.f32.mrb[72].mxu0  ;;  %v23531_v61 = vpop.f32.mrb[72].mxu1  ;;  %17990 = vmatprep.subr.bf16.mxu1 %v21004_v14 }
 0x5e2   :  { %25640 = vst [vmem:[#allocation134_spill] sm:$0xff] %v23529_v20  ;;  %25641 = vst [vmem:[#allocation135_spill] sm:$0xff] %v23531_v61  ;;  %v23533_v13 = vpop.f32.mrb[73].mxu0  ;;  %v23535_v18 = vpop.f32.mrb[73].mxu1  ;;  %v21003_v20 = vld [vmem:[#allocation9 + $0x43c] ss:$12 sps:$4 sm:$0xff]  }
 0x5e3   :  { %v23537_v27 = vpop.f32.mrb[74].mxu0  ;;  %v23539_v22 = vpop.f32.mrb[74].mxu1  ;;  %v21005_v61 = vld [vmem:[#allocation9 + $0x380] ss:$12 sps:$4 sm:$0xff]   ;;  %8143 = vmatprep.subr.bf16.mxu0 %v21003_v20 }
 0x5e4   :  { %v23541_v17 = vpop.f32.mrb[75].mxu0  ;;  %v23543_v12 = vpop.f32.mrb[75].mxu1  ;;  %17991 = vmatpush3.bf16.msra.mxu1 %v21005_v61  ;;  %8144 = vmatpush1.bf16.msra.mxu0 %v21001_v59 }
 0x5e5   :  { %25642 = vst [vmem:[#allocation136_spill] sm:$0xff] %v23541_v17  ;;  %25643 = vst [vmem:[#allocation137_spill] sm:$0xff] %v23543_v12  ;;  %8548 = vmatprep.subr.bf16.mxu1 %v25551_v15 }
 0x5e6   :  { %17093 = vmatmul.mubr.msk.bf16.gmra.mrb[180].mxu0 %vm613_vm0, %v23035_v28  ;;  %17123 = vmatmul.mubr.msk.bf16.gmra.mrb[180].mxu1 %vm613_vm0, %v23035_v28 }
 0x5e7   :  { %5682 = vmatprep.mubr.bf16.mxu0 %v25551_v15  ;;  %6015 = vmatprep.mubr.bf16.mxu1 %v25551_v15 }
 0x5e9   :  { %v23551_v21 = vpop.f32.mrb[76].mxu0  ;;  %v23553_v0 = vpop.f32.mrb[76].mxu1 }
 0x5ea   :  { %v23556_v14 = vpop.f32.mrb[77].mxu0  ;;  %v23558_v16 = vpop.f32.mrb[77].mxu1 }
 0x5eb   :  { %25644 = vst [vmem:[#allocation138_spill] sm:$0xff] %v23556_v14  ;;  %25645 = vst [vmem:[#allocation139_spill] sm:$0xff] %v23558_v16  ;;  %v23560_v25 = vpop.f32.mrb[78].mxu0  ;;  %v23562_v28 = vpop.f32.mrb[78].mxu1 }
 0x5ec   :  { %25646 = vst [vmem:[#allocation140_spill] sm:$0xff] %v23560_v25  ;;  %25647 = vst [vmem:[#allocation141_spill] sm:$0xff] %v23562_v28  ;;  %v23564_v12 = vpop.f32.mrb[79].mxu0  ;;  %v23566_v17 = vpop.f32.mrb[79].mxu1 }
 0x5ed   :  { %25648 = vst [vmem:[#allocation142_spill] sm:$0xff] %v23564_v12  ;;  %25649 = vst [vmem:[#allocation143_spill] sm:$0xff] %v23566_v17 }
 0x5ee   :  { %17094 = vmatmul.mubr.msk.bf16.gmra.mrb[184].mxu0 %vm613_vm0, %v23043_v29  ;;  %17124 = vmatmul.mubr.msk.bf16.gmra.mrb[184].mxu1 %vm613_vm0, %v23043_v29 }
 0x5ef   :  { %5692 = vmatprep.mubr.bf16.mxu0 %v25551_v15  ;;  %6025 = vmatprep.mubr.bf16.mxu1 %v25551_v15 }
 0x5f1   :  { %v23574_v20 = vpop.f32.mrb[80].mxu0  ;;  %v23576_v61 = vpop.f32.mrb[80].mxu1 }
 0x5f2   :  { %25650 = vst [vmem:[#allocation144_spill] sm:$0xff] %v23574_v20  ;;  %25651 = vst [vmem:[#allocation145_spill] sm:$0xff] %v23576_v61  ;;  %v23578_v59 = vpop.f32.mrb[81].mxu0  ;;  %v23580_v28 = vpop.f32.mrb[81].mxu1 }
 0x5f3   :  { %25652 = vst [vmem:[#allocation146_spill] sm:$0xff] %v23578_v59  ;;  %25653 = vst [vmem:[#allocation147_spill] sm:$0xff] %v23580_v28  ;;  %v23582_v12 = vpop.f32.mrb[82].mxu0  ;;  %v23584_v17 = vpop.f32.mrb[82].mxu1 }
 0x5f4   :  { %25654 = vst [vmem:[#allocation148_spill] sm:$0xff] %v23582_v12  ;;  %25655 = vst [vmem:[#allocation149_spill] sm:$0xff] %v23584_v17  ;;  %v23586_v25 = vpop.f32.mrb[83].mxu0  ;;  %v23588_v16 = vpop.f32.mrb[83].mxu1 }
 0x5f5   :  { %25656 = vst [vmem:[#allocation150_spill] sm:$0xff] %v23586_v25  ;;  %25657 = vst [vmem:[#allocation151_spill] sm:$0xff] %v23588_v16 }
 0x5f6   :  { %17095 = vmatmul.mubr.msk.bf16.gmra.mrb[188].mxu0 %vm613_vm0, %v23051_v30  ;;  %17125 = vmatmul.mubr.msk.bf16.gmra.mrb[188].mxu1 %vm613_vm0, %v23051_v30 }
 0x5f7   :  { %5702 = vmatprep.mubr.bf16.mxu0 %v25551_v15  ;;  %6035 = vmatprep.mubr.bf16.mxu1 %v25551_v15 }
 0x5f9   :  { %v23596_v29 = vpop.f32.mrb[84].mxu0  ;;  %v23598_v28 = vpop.f32.mrb[84].mxu1 }
 0x5fa   :  { %25658 = vst [vmem:[#allocation152_spill] sm:$0xff] %v23596_v29  ;;  %25659 = vst [vmem:[#allocation153_spill] sm:$0xff] %v23598_v28  ;;  %v23600_v12 = vpop.f32.mrb[85].mxu0  ;;  %v23602_v17 = vpop.f32.mrb[85].mxu1 }
 0x5fb   :  { %25660 = vst [vmem:[#allocation154_spill] sm:$0xff] %v23600_v12  ;;  %25661 = vst [vmem:[#allocation155_spill] sm:$0xff] %v23602_v17  ;;  %v23604_v25 = vpop.f32.mrb[86].mxu0  ;;  %v23606_v16 = vpop.f32.mrb[86].mxu1 }
 0x5fc   :  { %25662 = vst [vmem:[#allocation156_spill] sm:$0xff] %v23604_v25  ;;  %25663 = vst [vmem:[#allocation157_spill] sm:$0xff] %v23606_v16  ;;  %v23608_v59 = vpop.f32.mrb[87].mxu0  ;;  %v23610_v61 = vpop.f32.mrb[87].mxu1 }
 0x5fd   :  { %25664 = vst [vmem:[#allocation158_spill] sm:$0xff] %v23608_v59  ;;  %25665 = vst [vmem:[#allocation159_spill] sm:$0xff] %v23610_v61 }
 0x5fe   :  { %17096 = vmatmul.mubr.msk.bf16.gmra.mrb[192].mxu0 %vm613_vm0, %v23059_v31  ;;  %17126 = vmatmul.mubr.msk.bf16.gmra.mrb[192].mxu1 %vm613_vm0, %v23059_v31 }
 0x5ff   :  { %5712 = vmatprep.mubr.bf16.mxu0 %v25551_v15  ;;  %6045 = vmatprep.mubr.bf16.mxu1 %v25551_v15 }
 0x601   :  { %v23618_v30 = vpop.f32.mrb[88].mxu0  ;;  %v23620_v17 = vpop.f32.mrb[88].mxu1 }
 0x602   :  { %25666 = vst [vmem:[#allocation160_spill] sm:$0xff] %v23618_v30  ;;  %25667 = vst [vmem:[#allocation161_spill] sm:$0xff] %v23620_v17  ;;  %v23622_v25 = vpop.f32.mrb[89].mxu0  ;;  %v23624_v16 = vpop.f32.mrb[89].mxu1 }
 0x603   :  { %25668 = vst [vmem:[#allocation162_spill] sm:$0xff] %v23622_v25  ;;  %25669 = vst [vmem:[#allocation163_spill] sm:$0xff] %v23624_v16  ;;  %v23626_v59 = vpop.f32.mrb[90].mxu0  ;;  %v23628_v61 = vpop.f32.mrb[90].mxu1 }
 0x604   :  { %25670 = vst [vmem:[#allocation164_spill] sm:$0xff] %v23626_v59  ;;  %25671 = vst [vmem:[#allocation165_spill] sm:$0xff] %v23628_v61  ;;  %v23630_v12 = vpop.f32.mrb[91].mxu0  ;;  %v23632_v28 = vpop.f32.mrb[91].mxu1 }
 0x605   :  { %25672 = vst [vmem:[#allocation166_spill] sm:$0xff] %v23630_v12  ;;  %25673 = vst [vmem:[#allocation167_spill] sm:$0xff] %v23632_v28 }
 0x606   :  { %17097 = vmatmul.mubr.msk.bf16.gmra.mrb[196].mxu0 %vm613_vm0, %v23067_v32  ;;  %17127 = vmatmul.mubr.msk.bf16.gmra.mrb[196].mxu1 %vm613_vm0, %v23067_v32 }
 0x607   :  { %5722 = vmatprep.mubr.bf16.mxu0 %v25551_v15  ;;  %6055 = vmatprep.mubr.bf16.mxu1 %v25551_v15 }
 0x609   :  { %v23640_v31 = vpop.f32.mrb[92].mxu0  ;;  %v23642_v16 = vpop.f32.mrb[92].mxu1 }
 0x60a   :  { %25674 = vst [vmem:[#allocation168_spill] sm:$0xff] %v23640_v31  ;;  %25675 = vst [vmem:[#allocation169_spill] sm:$0xff] %v23642_v16  ;;  %v23644_v59 = vpop.f32.mrb[93].mxu0  ;;  %v23646_v61 = vpop.f32.mrb[93].mxu1 }
 0x60b   :  { %25676 = vst [vmem:[#allocation170_spill] sm:$0xff] %v23644_v59  ;;  %25677 = vst [vmem:[#allocation171_spill] sm:$0xff] %v23646_v61  ;;  %v23648_v12 = vpop.f32.mrb[94].mxu0  ;;  %v23650_v28 = vpop.f32.mrb[94].mxu1 }
 0x60c   :  { %25678 = vst [vmem:[#allocation172_spill] sm:$0xff] %v23648_v12  ;;  %25679 = vst [vmem:[#allocation173_spill] sm:$0xff] %v23650_v28  ;;  %v23652_v25 = vpop.f32.mrb[95].mxu0  ;;  %v23654_v17 = vpop.f32.mrb[95].mxu1 }
 0x60d   :  { %25680 = vst [vmem:[#allocation174_spill] sm:$0xff] %v23652_v25  ;;  %25681 = vst [vmem:[#allocation175_spill] sm:$0xff] %v23654_v17 }
 0x60e   :  { %17098 = vmatmul.mubr.msk.bf16.gmra.mrb[200].mxu0 %vm613_vm0, %v23075_v33  ;;  %17128 = vmatmul.mubr.msk.bf16.gmra.mrb[200].mxu1 %vm613_vm0, %v23075_v33 }
 0x60f   :  { %5732 = vmatprep.mubr.bf16.mxu0 %v25551_v15  ;;  %6065 = vmatprep.mubr.bf16.mxu1 %v25551_v15 }
 0x611   :  { %v23662_v32 = vpop.f32.mrb[96].mxu0  ;;  %v23664_v61 = vpop.f32.mrb[96].mxu1 }
 0x612   :  { %25682 = vst [vmem:[#allocation176_spill] sm:$0xff] %v23662_v32  ;;  %25683 = vst [vmem:[#allocation177_spill] sm:$0xff] %v23664_v61  ;;  %v23666_v12 = vpop.f32.mrb[97].mxu0  ;;  %v23668_v28 = vpop.f32.mrb[97].mxu1 }
 0x613   :  { %25684 = vst [vmem:[#allocation178_spill] sm:$0xff] %v23666_v12  ;;  %25685 = vst [vmem:[#allocation179_spill] sm:$0xff] %v23668_v28  ;;  %v23670_v25 = vpop.f32.mrb[98].mxu0  ;;  %v23672_v17 = vpop.f32.mrb[98].mxu1 }
 0x614   :  { %25686 = vst [vmem:[#allocation180_spill] sm:$0xff] %v23670_v25  ;;  %25687 = vst [vmem:[#allocation181_spill] sm:$0xff] %v23672_v17  ;;  %v23674_v59 = vpop.f32.mrb[99].mxu0  ;;  %v23676_v16 = vpop.f32.mrb[99].mxu1 }
 0x615   :  { %25688 = vst [vmem:[#allocation182_spill] sm:$0xff] %v23674_v59  ;;  %25689 = vst [vmem:[#allocation183_spill] sm:$0xff] %v23676_v16 }
 0x616   :  { %17099 = vmatmul.mubr.msk.bf16.gmra.mrb[204].mxu0 %vm613_vm0, %v23083_v34  ;;  %17129 = vmatmul.mubr.msk.bf16.gmra.mrb[204].mxu1 %vm613_vm0, %v23083_v34 }
 0x617   :  { %5742 = vmatprep.mubr.bf16.mxu0 %v25551_v15  ;;  %6075 = vmatprep.mubr.bf16.mxu1 %v25551_v15 }
 0x619   :  { %v23684_v33 = vpop.f32.mrb[100].mxu0  ;;  %v23686_v28 = vpop.f32.mrb[100].mxu1 }
 0x61a   :  { %25690 = vst [vmem:[#allocation184_spill] sm:$0xff] %v23684_v33  ;;  %25691 = vst [vmem:[#allocation185_spill] sm:$0xff] %v23686_v28  ;;  %v23688_v25 = vpop.f32.mrb[101].mxu0  ;;  %v23690_v17 = vpop.f32.mrb[101].mxu1 }
 0x61b   :  { %25692 = vst [vmem:[#allocation186_spill] sm:$0xff] %v23688_v25  ;;  %25693 = vst [vmem:[#allocation187_spill] sm:$0xff] %v23690_v17  ;;  %v23692_v59 = vpop.f32.mrb[102].mxu0  ;;  %v23694_v16 = vpop.f32.mrb[102].mxu1 }
 0x61c   :  { %25694 = vst [vmem:[#allocation188_spill] sm:$0xff] %v23692_v59  ;;  %25695 = vst [vmem:[#allocation189_spill] sm:$0xff] %v23694_v16  ;;  %v23696_v12 = vpop.f32.mrb[103].mxu0  ;;  %v23698_v61 = vpop.f32.mrb[103].mxu1 }
 0x61d   :  { %25696 = vst [vmem:[#allocation190_spill] sm:$0xff] %v23696_v12  ;;  %25697 = vst [vmem:[#allocation191_spill] sm:$0xff] %v23698_v61 }
 0x61e   :  { %17100 = vmatmul.mubr.msk.bf16.gmra.mrb[208].mxu0 %vm613_vm0, %v23091_v35  ;;  %17130 = vmatmul.mubr.msk.bf16.gmra.mrb[208].mxu1 %vm613_vm0, %v23091_v35 }
 0x61f   :  { %5752 = vmatprep.mubr.bf16.mxu0 %v25551_v15  ;;  %6085 = vmatprep.mubr.bf16.mxu1 %v25551_v15 }
 0x621   :  { %v23706_v34 = vpop.f32.mrb[104].mxu0  ;;  %v23708_v17 = vpop.f32.mrb[104].mxu1 }
 0x622   :  { %25698 = vst [vmem:[#allocation192_spill] sm:$0xff] %v23706_v34  ;;  %25699 = vst [vmem:[#allocation193_spill] sm:$0xff] %v23708_v17  ;;  %v23710_v59 = vpop.f32.mrb[105].mxu0  ;;  %v23712_v16 = vpop.f32.mrb[105].mxu1 }
 0x623   :  { %25700 = vst [vmem:[#allocation194_spill] sm:$0xff] %v23710_v59  ;;  %25701 = vst [vmem:[#allocation195_spill] sm:$0xff] %v23712_v16  ;;  %v23714_v12 = vpop.f32.mrb[106].mxu0  ;;  %v23716_v61 = vpop.f32.mrb[106].mxu1 }
 0x624   :  { %25702 = vst [vmem:[#allocation196_spill] sm:$0xff] %v23714_v12  ;;  %25703 = vst [vmem:[#allocation197_spill] sm:$0xff] %v23716_v61  ;;  %v23718_v25 = vpop.f32.mrb[107].mxu0  ;;  %v23720_v28 = vpop.f32.mrb[107].mxu1 }
 0x625   :  { %25704 = vst [vmem:[#allocation198_spill] sm:$0xff] %v23718_v25  ;;  %25705 = vst [vmem:[#allocation199_spill] sm:$0xff] %v23720_v28 }
 0x626   :  { %17101 = vmatmul.mubr.msk.bf16.gmra.mrb[212].mxu0 %vm613_vm0, %v23099_v36  ;;  %17131 = vmatmul.mubr.msk.bf16.gmra.mrb[212].mxu1 %vm613_vm0, %v23099_v36 }
 0x627   :  { %5762 = vmatprep.mubr.bf16.mxu0 %v25551_v15  ;;  %6095 = vmatprep.mubr.bf16.mxu1 %v25551_v15 }
 0x629   :  { %v23728_v35 = vpop.f32.mrb[108].mxu0  ;;  %v23730_v16 = vpop.f32.mrb[108].mxu1 }
 0x62a   :  { %25706 = vst [vmem:[#allocation200_spill] sm:$0xff] %v23728_v35  ;;  %25707 = vst [vmem:[#allocation201_spill] sm:$0xff] %v23730_v16  ;;  %v23732_v12 = vpop.f32.mrb[109].mxu0  ;;  %v23734_v61 = vpop.f32.mrb[109].mxu1 }
 0x62b   :  { %25708 = vst [vmem:[#allocation202_spill] sm:$0xff] %v23732_v12  ;;  %25709 = vst [vmem:[#allocation203_spill] sm:$0xff] %v23734_v61  ;;  %v23736_v25 = vpop.f32.mrb[110].mxu0  ;;  %v23738_v28 = vpop.f32.mrb[110].mxu1 }
 0x62c   :  { %25710 = vst [vmem:[#allocation204_spill] sm:$0xff] %v23736_v25  ;;  %25711 = vst [vmem:[#allocation205_spill] sm:$0xff] %v23738_v28  ;;  %v23740_v59 = vpop.f32.mrb[111].mxu0  ;;  %v23742_v17 = vpop.f32.mrb[111].mxu1 }
 0x62d   :  { %25712 = vst [vmem:[#allocation206_spill] sm:$0xff] %v23740_v59  ;;  %25713 = vst [vmem:[#allocation207_spill] sm:$0xff] %v23742_v17 }
 0x62e   :  { %17102 = vmatmul.mubr.msk.bf16.gmra.mrb[216].mxu0 %vm613_vm0, %v23107_v37  ;;  %17132 = vmatmul.mubr.msk.bf16.gmra.mrb[216].mxu1 %vm613_vm0, %v23107_v37 }
 0x62f   :  { %5772 = vmatprep.mubr.bf16.mxu0 %v25551_v15  ;;  %6105 = vmatprep.mubr.bf16.mxu1 %v25551_v15 }
 0x631   :  { %v4753_v36 = vpop.f32.mrb[112].mxu0  ;;  %v5086_v61 = vpop.f32.mrb[112].mxu1 }
 0x632   :  { %v4755_v12 = vpop.f32.mrb[113].mxu0  ;;  %v5088_v25 = vpop.f32.mrb[113].mxu1 }
 0x633   :  { %v4757_v16 = vpop.f32.mrb[114].mxu0  ;;  %v5090_v28 = vpop.f32.mrb[114].mxu1 }
 0x634   :  { %v4759_v35 = vpop.f32.mrb[115].mxu0  ;;  %v5092_v59 = vpop.f32.mrb[115].mxu1 }
 0x635   :  { %v6758_v59 = vlaneseq }
 0x636   :  { %17103 = vmatmul.mubr.msk.bf16.gmra.mrb[220].mxu0 %vm613_vm0, %v23115_v38  ;;  %17133 = vmatmul.mubr.msk.bf16.gmra.mrb[220].mxu1 %vm613_vm0, %v23115_v38 }
 0x637   :  { %5782 = vmatprep.mubr.bf16.mxu0 %v25551_v15  ;;  %6115 = vmatprep.mubr.bf16.mxu1 %v25551_v15 }
 0x639   :  { %v4763_v37 = vpop.f32.mrb[116].mxu0  ;;  %v5096_v17 = vpop.f32.mrb[116].mxu1 }
 0x63a   :  { %v4765_v36 = vpop.f32.mrb[117].mxu0  ;;  %v5098_v61 = vpop.f32.mrb[117].mxu1 }
 0x63b   :  { %v4767_v12 = vpop.f32.mrb[118].mxu0  ;;  %v5100_v25 = vpop.f32.mrb[118].mxu1 }
 0x63c   :  { %v4769_v16 = vpop.f32.mrb[119].mxu0  ;;  %v5102_v28 = vpop.f32.mrb[119].mxu1  ;;  %v23764_v12 = vshrl.u32 %v6758_v59, 7  ;;  %v6756_v59 = vld [vmem:[#allocation8] sm:$0xf] }
 0x63e   :  { %17104 = vmatmul.mubr.msk.bf16.gmra.mrb[224].mxu0 %vm613_vm0, %v23123_v39  ;;  %17134 = vmatmul.mubr.msk.bf16.gmra.mrb[224].mxu1 %vm613_vm0, %v23123_v39  ;;  %25714 = vst [vmem:[#allocation208_spill] sm:$0xff] %v23764_v12 }
 0x63f   :  { %5792 = vmatprep.mubr.bf16.mxu0 %v25551_v15  ;;  %6125 = vmatprep.mubr.bf16.mxu1 %v25551_v15 }
 0x641   :  { %v5524_v38 = vpop.f32.mrb[120].mxu0  ;;  %v5857_v35 = vpop.f32.mrb[120].mxu1 }
 0x642   :  { %v6396_v17 = vmax.f32 %v23131_v40, %v5524_v38  ;;  %v6398_v37 = vmax.f32 %v23133_v41, %v5857_v35  ;;  %v5526_v36 = vpop.f32.mrb[121].mxu0  ;;  %v5859_v61 = vpop.f32.mrb[121].mxu1 }
 0x643   :  { %v6397_v25 = vmax.f32 %v23135_v42, %v5526_v36  ;;  %v6399_v16 = vmax.f32 %v23137_v43, %v5859_v61  ;;  %v5528_v39 = vpop.f32.mrb[122].mxu0  ;;  %v5861_v28 = vpop.f32.mrb[122].mxu1  ;;  %v25507_v42 = vsub.s32 0, %v23764_v12  ;;  %v25508_v43 = vsub.s32 2, %v23764_v12 }
 0x644   :  { %v6400_v34 = vmax.f32 %v23141_v45, %v5528_v39  ;;  %v6402_v33 = vmax.f32 %v23143_v46, %v5861_v28  ;;  %v5530_v32 = vpop.f32.mrb[123].mxu0  ;;  %v5863_v31 = vpop.f32.mrb[123].mxu1  ;;  %v25509_v45 = vsub.s32 1, %v23764_v12  ;;  %v6772_v46 = vsub.s32 3, %v23764_v12 }
 0x645   :  { %v6401_v40 = vmax.f32 %v23145_v47, %v5530_v32  ;;  %v6403_v41 = vmax.f32 %v23147_v48, %v5863_v31  ;;  %v21008_v47 = vld [vmem:[#allocation9 + $0x454] ss:$12 sps:$4 sm:$0xff]   ;;  %v23790_v35 = vrot.slane %v6756_v59, %v25508_v43 }
 0x646   :  { %17105 = vmatmul.mubr.msk.bf16.gmra.mrb[228].mxu0 %vm613_vm0, %v23139_v44  ;;  %17135 = vmatmul.mubr.msk.bf16.gmra.mrb[228].mxu1 %vm613_vm0, %v23139_v44  ;;  %v23785_v44 = vrot.slane %v6756_v59, %v25507_v42  ;;  %v23795_v28 = vrot.slane %v6756_v59, %v25509_v45 }
 0x647   :  { %5802 = vmatprep.mubr.bf16.mxu0 %v25551_v15  ;;  %6135 = vmatprep.mubr.bf16.mxu1 %v25551_v15 }
 0x648   :  { %8266 = vmatprep.subr.bf16.mxu0 %v21008_v47  ;;  %v23798_v47 = vrot.slane %v6756_v59, %v6772_v46 }
 0x649   :  { %v5534_v48 = vpop.f32.mrb[124].mxu0  ;;  %v5867_v31 = vpop.f32.mrb[124].mxu1 }
 0x64a   :  { %v6404_v32 = vmax.f32 %v23155_v50, %v5534_v48  ;;  %v6406_v38 = vmax.f32 %v23157_v51, %v5867_v31  ;;  %v5536_v36 = vpop.f32.mrb[125].mxu0  ;;  %v5869_v61 = vpop.f32.mrb[125].mxu1 }
 0x64b   :  { %v6405_v39 = vmax.f32 %v23159_v52, %v5536_v36  ;;  %v6407_v50 = vmax.f32 %v23161_v1, %v5869_v61  ;;  %v5538_v48 = vpop.f32.mrb[126].mxu0  ;;  %v5871_v42 = vpop.f32.mrb[126].mxu1 }
 0x64c   :  { %v6636_v30 = vmax.f32 %v6396_v17, %v6404_v32  ;;  %v6638_v51 = vmax.f32 %v6398_v37, %v6406_v38  ;;  %v6408_v31 = vmax.f32 %v23165_v4, %v5538_v48  ;;  %v6410_v43 = vmax.f32 %v23167_v6, %v5871_v42  ;;  %v5540_v29 = vpop.f32.mrb[127].mxu0  ;;  %v5873_v20 = vpop.f32.mrb[127].mxu1 }
 0x64d   :  { %v6637_v14 = vmax.f32 %v6397_v25, %v6405_v39  ;;  %v6639_v52 = vmax.f32 %v6399_v16, %v6407_v50  ;;  %v6409_v36 = vmax.f32 %v23169_v8, %v5540_v29  ;;  %v6411_v45 = vmax.f32 %v23171_v54, %v5873_v20 }
 0x64e   :  { %v6778_v1 = vadd.f32 %v23785_v44, %v6636_v30  ;;  %v6780_v59 = vadd.f32 %v23790_v35, %v6638_v51  ;;  %v6640_v46 = vmax.f32 %v6400_v34, %v6408_v31  ;;  %v6642_v61 = vmax.f32 %v6402_v33, %v6410_v43  ;;  %17106 = vmatmul.mubr.msk.bf16.gmra.mrb[232].mxu0 %vm613_vm0, %v23163_v3 }
 0x64f   :  { %v6779_v4 = vadd.f32 %v23795_v28, %v6637_v14  ;;  %v6781_v6 = vadd.f32 %v23798_v47, %v6639_v52  ;;  %v6641_v17 = vmax.f32 %v6401_v40, %v6409_v36  ;;  %v6643_v37 = vmax.f32 %v6403_v41, %v6411_v45  ;;  %17136 = vmatmul.mubr.msk.bf16.gmra.mrb[232].mxu1 %vm613_vm0, %v23163_v3 }
 0x650   :  { %v6898_v8 = vmax.f32 %v6778_v1, 0.0  ;;  %v6900_v54 = vmax.f32 %v6780_v59, 0.0  ;;  %v6782_v20 = vadd.f32 %v23785_v44, %v6640_v46  ;;  %v6784_v29 = vadd.f32 %v23790_v35, %v6642_v61  ;;  %5812 = vmatprep.mubr.bf16.mxu0 %v25551_v15  ;;  %6145 = vmatprep.mubr.bf16.mxu1 %v25551_v15 }
 0x651   :  { %v6899_v30 = vmax.f32 %v6779_v4, 0.0  ;;  %v6901_v33 = vmax.f32 %v6781_v6, 0.0  ;;  %v6783_v14 = vadd.f32 %v23795_v28, %v6641_v17  ;;  %v6785_v34 = vadd.f32 %v23798_v47, %v6643_v37  ;;  %v5544_v25 = vpop.f32.mrb[128].mxu0  ;;  %v5877_v16 = vpop.f32.mrb[128].mxu1  ;;  %v25715_v4 = vld [vmem:[#allocation25_spill] sm:$0xff]  ;;  %v25717_v37 = vld [vmem:[#allocation27_spill] sm:$0xff] }
 0x652   :  { %v6902_v40 = vmax.f32 %v6782_v20, 0.0  ;;  %v6904_v3 = vmax.f32 %v6784_v29, 0.0  ;;  %v6412_v41 = vmax.f32 %v23179_v55, %v5544_v25  ;;  %v6414_v42 = vmax.f32 %v23181_v56, %v5877_v16  ;;  %v5546_v43 = vpop.f32.mrb[129].mxu0  ;;  %v5879_v45 = vpop.f32.mrb[129].mxu1  ;;  %v25718_v20 = vld [vmem:[#allocation28_spill] sm:$0xff] }
 0x653   :  { %v6903_v32 = vmax.f32 %v6783_v14, 0.0  ;;  %v6905_v38 = vmax.f32 %v6785_v34, 0.0  ;;  %v6413_v39 = vmax.f32 %v23183_v57, %v5546_v43  ;;  %v6415_v50 = vmax.f32 %v23185_v58, %v5879_v45  ;;  %v5548_v48 = vpop.f32.mrb[130].mxu0  ;;  %v5881_v51 = vpop.f32.mrb[130].mxu1  ;;  %v21867_v57 = vld [vmem:[#allocation3 + $0xf8] sm:$0xff]   ;;  %v25721_v43 = vld [vmem:[#allocation31_spill] sm:$0xff] }
 0x654   :  { %v7018_v31 = vpack.c.bf16 %v6902_v40, %v6898_v8  ;;  %v7020_v52 = vpack.c.bf16 %v6904_v3, %v6900_v54  ;;  %v6416_v36 = vmax.f32 %v23187_v63, %v5548_v48  ;;  %v6418_v1 = vmax.f32 %v23189_v10, %v5881_v51  ;;  %v5550_v59 = vpop.f32.mrb[131].mxu0  ;;  %v5883_v55 = vpop.f32.mrb[131].mxu1  ;;  %v25716_v10 = vld [vmem:[#allocation26_spill] sm:$0xff] }
 0x655   :  { %v7019_v46 = vpack.c.bf16 %v6903_v32, %v6899_v30  ;;  %v7021_v56 = vpack.c.bf16 %v6905_v38, %v6901_v33  ;;  %v6417_v61 = vmax.f32 %v23191_v11, %v5550_v59  ;;  %v6419_v6 = vmax.f32 %v25715_v4, %v5883_v55  ;;  %v25719_v30 = vld [vmem:[#allocation29_spill] sm:$0xff]  ;;  %v25720_v40 = vld [vmem:[#allocation30_spill] sm:$0xff] }
 0x656   :  { %7078 = vst [vmem:[#allocation2] sm:$0xff] %v7018_v31  ;;  %7080 = vst [vmem:[#allocation2 + $0x10] sm:$0xff] %v7020_v52  ;;  %17107 = vmatmul.mubr.msk.bf16.gmra.mrb[236].mxu0 %vm613_vm0, %v21867_v57  ;;  %v25722_v31 = vld [vmem:[#allocation32_spill] sm:$0xff]  ;;  %v25723_v59 = vld [vmem:[#allocation33_spill] sm:$0xff] }
 0x657   :  { %7079 = vst [vmem:[#allocation2 + $0x8] sm:$0xff] %v7019_v46  ;;  %7081 = vst.msk [vmem:[#allocation2 + $0x18] sm:$0xff] %vm613_vm0, %v7021_v56  ;;  %17137 = vmatmul.mubr.msk.bf16.gmra.mrb[236].mxu1 %vm613_vm0, %v21867_v57 }
 0x659   :  { %v5554_v58 = vpop.f32.mrb[132].mxu0  ;;  %v5887_v63 = vpop.f32.mrb[132].mxu1 }
 0x65a   :  { %v6420_v17 = vmax.f32 %v25716_v10, %v5554_v58  ;;  %v6422_v8 = vmax.f32 %v25717_v37, %v5887_v63  ;;  %v5556_v54 = vpop.f32.mrb[133].mxu0  ;;  %v5889_v11 = vpop.f32.mrb[133].mxu1 }
 0x65b   :  { %v6421_v29 = vmax.f32 %v25718_v20, %v5556_v54  ;;  %v6423_v33 = vmax.f32 %v25719_v30, %v5889_v11  ;;  %v5558_v14 = vpop.f32.mrb[134].mxu0  ;;  %v5891_v34 = vpop.f32.mrb[134].mxu1 }
 0x65c   :  { %v6644_v25 = vmax.f32 %v6412_v41, %v6420_v17  ;;  %v6646_v16 = vmax.f32 %v6414_v42, %v6422_v8  ;;  %v6424_v3 = vmax.f32 %v25720_v40, %v5558_v14  ;;  %v6426_v45 = vmax.f32 %v25721_v43, %v5891_v34  ;;  %v5560_v32 = vpop.f32.mrb[135].mxu0  ;;  %v5893_v38 = vpop.f32.mrb[135].mxu1  ;;  %v25725_v40 = vld [vmem:[#allocation35_spill] sm:$0xff] }
 0x65d   :  { %v6645_v48 = vmax.f32 %v6413_v39, %v6421_v29  ;;  %v6647_v51 = vmax.f32 %v6415_v50, %v6423_v33  ;;  %v6425_v52 = vmax.f32 %v25722_v31, %v5560_v32  ;;  %v6427_v55 = vmax.f32 %v25723_v59, %v5893_v38  ;;  %v25727_v31 = vld [vmem:[#allocation37_spill] sm:$0xff] }
 0x65e   :  { %v6786_v46 = vadd.f32 %v23785_v44, %v6644_v25  ;;  %v6788_v56 = vadd.f32 %v23790_v35, %v6646_v16  ;;  %v6648_v4 = vmax.f32 %v6416_v36, %v6424_v3  ;;  %v6650_v57 = vmax.f32 %v6418_v1, %v6426_v45  ;;  %v25724_v25 = vld [vmem:[#allocation34_spill] sm:$0xff] }
 0x65f   :  { %v6787_v41 = vadd.f32 %v23795_v28, %v6645_v48  ;;  %v6789_v42 = vadd.f32 %v23798_v47, %v6647_v51  ;;  %v6649_v58 = vmax.f32 %v6417_v61, %v6425_v52  ;;  %v6651_v63 = vmax.f32 %v6419_v6, %v6427_v55  ;;  %v25726_v48 = vld [vmem:[#allocation36_spill] sm:$0xff] }
 0x660   :  { %v6906_v10 = vmax.f32 %v6786_v46, 0.0  ;;  %v6908_v17 = vmax.f32 %v6788_v56, 0.0  ;;  %v6790_v39 = vadd.f32 %v23785_v44, %v6648_v4  ;;  %v6792_v50 = vadd.f32 %v23790_v35, %v6650_v57  ;;  %v25728_v46 = vld [vmem:[#allocation38_spill] sm:$0xff]  ;;  %v25729_v4 = vld [vmem:[#allocation39_spill] sm:$0xff] }
 0x661   :  { %v6907_v37 = vmax.f32 %v6787_v41, 0.0  ;;  %v6909_v8 = vmax.f32 %v6789_v42, 0.0  ;;  %v6791_v54 = vadd.f32 %v23795_v28, %v6649_v58  ;;  %v6793_v11 = vadd.f32 %v23798_v47, %v6651_v63  ;;  %v5564_v36 = vpop.f32.mrb[136].mxu0  ;;  %v5897_v1 = vpop.f32.mrb[136].mxu1  ;;  %v21006_v41 = vld [vmem:[#allocation9 + $0x450] ss:$12 sps:$4 sm:$0xff]  }
 0x662   :  { %v6910_v20 = vmax.f32 %v6790_v39, 0.0  ;;  %v6912_v29 = vmax.f32 %v6792_v50, 0.0  ;;  %v6428_v30 = vmax.f32 %v23221_v24, %v5564_v36  ;;  %v6430_v61 = vmax.f32 %v23223_v26, %v5897_v1  ;;  %v5566_v6 = vpop.f32.mrb[137].mxu0  ;;  %v5899_v33 = vpop.f32.mrb[137].mxu1  ;;  %v21009_v42 = vld [vmem:[#allocation9 + $0x458] ss:$12 sps:$4 sm:$0xff]  }
 0x663   :  { %v6911_v14 = vmax.f32 %v6791_v54, 0.0  ;;  %v6913_v34 = vmax.f32 %v6793_v11, 0.0  ;;  %v6429_v16 = vmax.f32 %v25724_v25, %v5566_v6  ;;  %v6431_v3 = vmax.f32 %v25725_v40, %v5899_v33  ;;  %v5568_v43 = vpop.f32.mrb[138].mxu0  ;;  %v5901_v45 = vpop.f32.mrb[138].mxu1  ;;  %v21012_v58 = vld [vmem:[#allocation9 + $0x46c] ss:$12 sps:$4 sm:$0xff]  }
 0x664   :  { %v7022_v32 = vpack.c.bf16 %v6910_v20, %v6906_v10  ;;  %v7024_v38 = vpack.c.bf16 %v6912_v29, %v6908_v17  ;;  %v6432_v51 = vmax.f32 %v25726_v48, %v5568_v43  ;;  %v6434_v52 = vmax.f32 %v25727_v31, %v5901_v45  ;;  %v5570_v59 = vpop.f32.mrb[139].mxu0  ;;  %v5903_v24 = vpop.f32.mrb[139].mxu1  ;;  %v21010_v17 = vld [vmem:[#allocation9 + $0x468] ss:$12 sps:$4 sm:$0xff]   ;;  %v21013_v54 = vld [vmem:[#allocation9 + $0x470] ss:$12 sps:$4 sm:$0xff]  }
 0x665   :  { %v7023_v55 = vpack.c.bf16 %v6911_v14, %v6907_v37  ;;  %v7025_v26 = vpack.c.bf16 %v6913_v34, %v6909_v8  ;;  %v6433_v56 = vmax.f32 %v25728_v46, %v5570_v59  ;;  %v6435_v57 = vmax.f32 %v25729_v4, %v5903_v24  ;;  %v25730_v11 = vld [vmem:[#allocation40_spill] sm:$0xff]  ;;  %v25731_v1 = vld [vmem:[#allocation41_spill] sm:$0xff]  ;;  %v25732_v25 = vld [vmem:[#allocation42_spill] sm:$0xff] }
 0x666   :  { %7082 = vst [vmem:[#allocation2 + $0x20] sm:$0xff] %v7022_v32  ;;  %7084 = vst [vmem:[#allocation2 + $0x30] sm:$0xff] %v7024_v38  ;;  %v21016_v33 = vld [vmem:[#allocation9 + $0x484] ss:$12 sps:$4 sm:$0xff]   ;;  %v25735_v59 = vld [vmem:[#allocation45_spill] sm:$0xff] }
 0x667   :  { %7083 = vst [vmem:[#allocation2 + $0x28] sm:$0xff] %v7023_v55  ;;  %7085 = vst.msk [vmem:[#allocation2 + $0x38] sm:$0xff] %vm613_vm0, %v7025_v26  ;;  %8145 = vmatprep.mubr.bf16.mxu0 %v7023_v55  ;;  %8451 = vmatprep.mubr.bf16.mxu1 %v7023_v55  ;;  %v25734_v48 = vld [vmem:[#allocation44_spill] sm:$0xff]  ;;  %v21014_v55 = vld [vmem:[#allocation9 + $0x480] ss:$12 sps:$4 sm:$0xff]  }
 0x668   :  { %8146 = vmatmul.mubr.bf16.vlgmr.msra.gmra.mrb[240].mxu0 %v7022_v32  ;;  %8452 = vmatmul.mubr.bf16.vlgmr.msra.gmra.mrb[240].mxu1 %v7022_v32  ;;  %v21017_v4 = vld [vmem:[#allocation9 + $0x488] ss:$12 sps:$4 sm:$0xff]  }
 0x669   :  { %v5574_v63 = vpop.f32.mrb[140].mxu0  ;;  %v5907_v10 = vpop.f32.mrb[140].mxu1  ;;  %8267 = vmatpush1.bf16.msra.mxu0 %v21006_v41  ;;  %8549 = vmatpush1.bf16.msra.mxu1 %v21009_v42  ;;  %v21020_v41 = vld [vmem:[#allocation9 + $0x49c] ss:$12 sps:$4 sm:$0xff]  }
 0x66a   :  { %v6436_v39 = vmax.f32 %v23243_v62, %v5574_v63  ;;  %v6438_v50 = vmax.f32 %v23245_v19, %v5907_v10  ;;  %v5576_v37 = vpop.f32.mrb[141].mxu0  ;;  %v5909_v8 = vpop.f32.mrb[141].mxu1  ;;  %8268 = vmatprep.subr.bf16.mxu0 %v21012_v58  ;;  %8550 = vmatprep.subr.bf16.mxu1 %v25551_v15  ;;  %v25733_v62 = vld [vmem:[#allocation43_spill] sm:$0xff] }
 0x66b   :  { %v6437_v36 = vmax.f32 %v25730_v11, %v5576_v37  ;;  %v6439_v20 = vmax.f32 %v25731_v1, %v5909_v8  ;;  %v5578_v29 = vpop.f32.mrb[142].mxu0  ;;  %v5911_v6 = vpop.f32.mrb[142].mxu1 }
 0x66c   :  { %v6652_v14 = vmax.f32 %v6428_v30, %v6436_v39  ;;  %v6654_v34 = vmax.f32 %v6430_v61, %v6438_v50  ;;  %v6440_v40 = vmax.f32 %v25732_v25, %v5578_v29  ;;  %v6442_v43 = vmax.f32 %v25733_v62, %v5911_v6  ;;  %v5580_v19 = vpop.f32.mrb[143].mxu0  ;;  %v5913_v45 = vpop.f32.mrb[143].mxu1 }
 0x66d   :  { %v6653_v32 = vmax.f32 %v6429_v16, %v6437_v36  ;;  %v6655_v38 = vmax.f32 %v6431_v3, %v6439_v20  ;;  %v6441_v31 = vmax.f32 %v25734_v48, %v5580_v19  ;;  %v6443_v24 = vmax.f32 %v25735_v59, %v5913_v45  ;;  %8269 = vmatpush1.bf16.msra.mxu0 %v21010_v17  ;;  %v25736_v20 = vld [vmem:[#allocation46_spill] sm:$0xff]  ;;  %v25739_v48 = vld [vmem:[#allocation49_spill] sm:$0xff] }
 0x66e   :  { %v6794_v26 = vadd.f32 %v23785_v44, %v6652_v14  ;;  %v6796_v46 = vadd.f32 %v23790_v35, %v6654_v34  ;;  %v6656_v30 = vmax.f32 %v6432_v51, %v6440_v40  ;;  %v6658_v61 = vmax.f32 %v6434_v52, %v6442_v43  ;;  %8551 = vmatpush1.bf16.msra.mxu1 %v21013_v54  ;;  %v21018_v51 = vld [vmem:[#allocation9 + $0x498] ss:$12 sps:$4 sm:$0xff]   ;;  %v21024_v14 = vld [vmem:[#allocation9 + $0x4b4] ss:$12 sps:$4 sm:$0xff]   ;;  %v25737_v40 = vld [vmem:[#allocation47_spill] sm:$0xff] }
 0x66f   :  { %v6795_v42 = vadd.f32 %v23795_v28, %v6653_v32  ;;  %v6797_v16 = vadd.f32 %v23798_v47, %v6655_v38  ;;  %v6657_v3 = vmax.f32 %v6433_v56, %v6441_v31  ;;  %v6659_v58 = vmax.f32 %v6435_v57, %v6443_v24  ;;  %8270 = vmatprep.subr.bf16.mxu0 %v21016_v33  ;;  %v21021_v57 = vld [vmem:[#allocation9 + $0x4a0] ss:$12 sps:$4 sm:$0xff]   ;;  %v25738_v43 = vld [vmem:[#allocation48_spill] sm:$0xff] }
 0x670   :  { %v6914_v63 = vmax.f32 %v6794_v26, 0.0  ;;  %v6916_v10 = vmax.f32 %v6796_v46, 0.0  ;;  %v6798_v17 = vadd.f32 %v23785_v44, %v6656_v30  ;;  %v6800_v39 = vadd.f32 %v23790_v35, %v6658_v61  ;;  %8552 = vmatprep.subr.bf16.mxu1 %v25551_v15  ;;  %v25740_v59 = vld [vmem:[#allocation50_spill] sm:$0xff]  ;;  %v25741_v61 = vld [vmem:[#allocation51_spill] sm:$0xff] }
 0x671   :  { %v6915_v52 = vmax.f32 %v6795_v42, 0.0  ;;  %v6917_v50 = vmax.f32 %v6797_v16, 0.0  ;;  %v6799_v37 = vadd.f32 %v23795_v28, %v6657_v3  ;;  %v6801_v8 = vadd.f32 %v23798_v47, %v6659_v58  ;;  %v23872_v54 = vpop.f32.mrb[144].mxu0  ;;  %v23874_v56 = vpop.f32.mrb[144].mxu1  ;;  %8271 = vmatpush1.bf16.msra.mxu0 %v21014_v55  ;;  %v21022_v16 = vld [vmem:[#allocation9 + $0x4b0] ss:$12 sps:$4 sm:$0xff]  }
 0x672   :  { %v6918_v11 = vmax.f32 %v6798_v17, 0.0  ;;  %v6920_v36 = vmax.f32 %v6800_v39, 0.0  ;;  %v6444_v1 = vmax.f32 %v23265_v7, %v23872_v54  ;;  %v6446_v29 = vmax.f32 %v25736_v20, %v23874_v56  ;;  %v5586_v6 = vpop.f32.mrb[145].mxu0  ;;  %v5919_v33 = vpop.f32.mrb[145].mxu1  ;;  %8553 = vmatpush1.bf16.msra.mxu1 %v21017_v4  ;;  %8272 = vmatprep.subr.bf16.mxu0 %v21020_v41  ;;  %v25742_v41 = vld [vmem:[#allocation52_spill] sm:$0xff]  ;;  %v25743_v39 = vld [vmem:[#allocation53_spill] sm:$0xff] }
 0x673   :  { %v6919_v34 = vmax.f32 %v6799_v37, 0.0  ;;  %v6921_v25 = vmax.f32 %v6801_v8, 0.0  ;;  %v6445_v62 = vmax.f32 %v25737_v40, %v5586_v6  ;;  %v6447_v19 = vmax.f32 %v25738_v43, %v5919_v33  ;;  %v5588_v45 = vpop.f32.mrb[146].mxu0  ;;  %v5921_v32 = vpop.f32.mrb[146].mxu1  ;;  %8554 = vmatprep.subr.bf16.mxu1 %v25551_v15  ;;  %v21025_v3 = vld [vmem:[#allocation9 + $0x4b8] ss:$12 sps:$4 sm:$0xff]  }
 0x674   :  { %v7026_v38 = vpack.c.bf16 %v6918_v11, %v6914_v63  ;;  %v7028_v7 = vpack.c.bf16 %v6920_v36, %v6916_v10  ;;  %v6448_v31 = vmax.f32 %v25739_v48, %v5588_v45  ;;  %v6450_v24 = vmax.f32 %v25740_v59, %v5921_v32  ;;  %v5590_v55 = vpop.f32.mrb[147].mxu0  ;;  %v5923_v26 = vpop.f32.mrb[147].mxu1  ;;  %v21028_v58 = vld [vmem:[#allocation9 + $0x4cc] ss:$12 sps:$4 sm:$0xff]   ;;  %v21026_v17 = vld [vmem:[#allocation9 + $0x4c8] ss:$12 sps:$4 sm:$0xff]  }
 0x675   :  { %v7027_v46 = vpack.c.bf16 %v6919_v34, %v6915_v52  ;;  %v7029_v30 = vpack.c.bf16 %v6921_v25, %v6917_v50  ;;  %v6449_v4 = vmax.f32 %v25741_v61, %v5590_v55  ;;  %v6451_v42 = vmax.f32 %v25742_v41, %v5923_v26  ;;  %8273 = vmatpush1.bf16.msra.mxu0 %v21018_v51  ;;  %v25744_v52 = vld [vmem:[#allocation54_spill] sm:$0xff]  ;;  %v21029_v54 = vld [vmem:[#allocation9 + $0x4d0] ss:$12 sps:$4 sm:$0xff]   ;;  %v25745_v56 = vld [vmem:[#allocation55_spill] sm:$0xff] }
 0x676   :  { %7086 = vst [vmem:[#allocation2 + $0x40] sm:$0xff] %v7026_v38  ;;  %7088 = vst [vmem:[#allocation2 + $0x50] sm:$0xff] %v7028_v7  ;;  %8555 = vmatpush1.bf16.msra.mxu1 %v21021_v57  ;;  %8274 = vmatprep.subr.bf16.mxu0 %v21024_v14  ;;  %v25746_v11 = vld [vmem:[#allocation56_spill] sm:$0xff]  ;;  %v25747_v25 = vld [vmem:[#allocation57_spill] sm:$0xff] }
 0x677   :  { %7087 = vst [vmem:[#allocation2 + $0x48] sm:$0xff] %v7027_v46  ;;  %7089 = vst.msk [vmem:[#allocation2 + $0x58] sm:$0xff] %vm613_vm0, %v7029_v30  ;;  %8155 = vmatprep.mubr.bf16.mxu0 %v7027_v46  ;;  %8459 = vmatprep.mubr.bf16.mxu1 %v7027_v46  ;;  %v21032_v33 = vld [vmem:[#allocation9 + $0x4e4] ss:$12 sps:$4 sm:$0xff]   ;;  %v25749_v59 = vld [vmem:[#allocation59_spill] sm:$0xff] }
 0x678   :  { %8156 = vmatmul.mubr.bf16.gmra.mrb[244].mxu0 %v7026_v38  ;;  %8460 = vmatmul.mubr.bf16.gmra.mrb[244].mxu1 %v7026_v38  ;;  %v25748_v43 = vld [vmem:[#allocation58_spill] sm:$0xff]  ;;  %v25750_v26 = vld [vmem:[#allocation60_spill] sm:$0xff] }
 0x679   :  { %v5594_v63 = vpop.f32.mrb[148].mxu0  ;;  %v5927_v10 = vpop.f32.mrb[148].mxu1  ;;  %8275 = vmatpush1.bf16.msra.mxu0 %v21022_v16  ;;  %8556 = vmatprep.subr.bf16.mxu1 %v25551_v15  ;;  %v21030_v30 = vld [vmem:[#allocation9 + $0x4e0] ss:$12 sps:$4 sm:$0xff]   ;;  %v21033_v16 = vld [vmem:[#allocation9 + $0x4e8] ss:$12 sps:$4 sm:$0xff]  }
 0x67a   :  { %v6452_v51 = vmax.f32 %v25743_v39, %v5594_v63  ;;  %v6454_v50 = vmax.f32 %v25744_v52, %v5927_v10  ;;  %v5596_v37 = vpop.f32.mrb[149].mxu0  ;;  %v5929_v8 = vpop.f32.mrb[149].mxu1  ;;  %8557 = vmatpush1.bf16.msra.mxu1 %v21025_v3  ;;  %8276 = vmatprep.subr.bf16.mxu0 %v21028_v58  ;;  %v21036_v3 = vld [vmem:[#allocation9 + $0x4fc] ss:$12 sps:$4 sm:$0xff]  }
 0x67b   :  { %v6453_v57 = vmax.f32 %v25745_v56, %v5596_v37  ;;  %v6455_v36 = vmax.f32 %v25746_v11, %v5929_v8  ;;  %v5598_v20 = vpop.f32.mrb[150].mxu0  ;;  %v5931_v6 = vpop.f32.mrb[150].mxu1  ;;  %8558 = vmatprep.subr.bf16.mxu1 %v25551_v15  ;;  %v25751_v56 = vld [vmem:[#allocation61_spill] sm:$0xff]  ;;  %v25752_v11 = vld [vmem:[#allocation62_spill] sm:$0xff] }
 0x67c   :  { %v6660_v14 = vmax.f32 %v6444_v1, %v6452_v51  ;;  %v6662_v34 = vmax.f32 %v6446_v29, %v6454_v50  ;;  %v6456_v40 = vmax.f32 %v25747_v25, %v5598_v20  ;;  %v6458_v45 = vmax.f32 %v25748_v43, %v5931_v6  ;;  %v5600_v32 = vpop.f32.mrb[151].mxu0  ;;  %v5933_v38 = vpop.f32.mrb[151].mxu1 }
 0x67d   :  { %v6661_v7 = vmax.f32 %v6445_v62, %v6453_v57  ;;  %v6663_v48 = vmax.f32 %v6447_v19, %v6455_v36  ;;  %v6457_v55 = vmax.f32 %v25749_v59, %v5600_v32  ;;  %v6459_v46 = vmax.f32 %v25750_v26, %v5933_v38  ;;  %8277 = vmatpush1.bf16.msra.mxu0 %v21026_v17 }
 0x67e   :  { %v6802_v61 = vadd.f32 %v23785_v44, %v6660_v14  ;;  %v6804_v41 = vadd.f32 %v23790_v35, %v6662_v34  ;;  %v6664_v1 = vmax.f32 %v6448_v31, %v6456_v40  ;;  %v6666_v29 = vmax.f32 %v6450_v24, %v6458_v45  ;;  %8559 = vmatpush1.bf16.msra.mxu1 %v21029_v54  ;;  %v25753_v34 = vld [vmem:[#allocation63_spill] sm:$0xff]  ;;  %v25754_v40 = vld [vmem:[#allocation64_spill] sm:$0xff] }
 0x67f   :  { %v6803_v58 = vadd.f32 %v23795_v28, %v6661_v7  ;;  %v6805_v62 = vadd.f32 %v23798_v47, %v6663_v48  ;;  %v6665_v19 = vmax.f32 %v6449_v4, %v6457_v55  ;;  %v6667_v63 = vmax.f32 %v6451_v42, %v6459_v46  ;;  %8278 = vmatprep.subr.bf16.mxu0 %v21032_v33  ;;  %v21034_v4 = vld [vmem:[#allocation9 + $0x4f8] ss:$12 sps:$4 sm:$0xff]  }
 0x680   :  { %v6922_v10 = vmax.f32 %v6802_v61, 0.0  ;;  %v6924_v39 = vmax.f32 %v6804_v41, 0.0  ;;  %v6806_v17 = vadd.f32 %v23785_v44, %v6664_v1  ;;  %v6808_v51 = vadd.f32 %v23790_v35, %v6666_v29  ;;  %8560 = vmatprep.subr.bf16.mxu1 %v25551_v15  ;;  %v25755_v48 = vld [vmem:[#allocation65_spill] sm:$0xff]  ;;  %v25756_v55 = vld [vmem:[#allocation66_spill] sm:$0xff]  ;;  %v25757_v29 = vld [vmem:[#allocation67_spill] sm:$0xff] }
 0x681   :  { %v6923_v31 = vmax.f32 %v6803_v58, 0.0  ;;  %v6925_v24 = vmax.f32 %v6805_v62, 0.0  ;;  %v6807_v52 = vadd.f32 %v23795_v28, %v6665_v19  ;;  %v6809_v50 = vadd.f32 %v23798_v47, %v6667_v63  ;;  %v5604_v37 = vpop.f32.mrb[152].mxu0  ;;  %v5937_v8 = vpop.f32.mrb[152].mxu1  ;;  %8279 = vmatpush1.bf16.msra.mxu0 %v21030_v30  ;;  %v21037_v61 = vld [vmem:[#allocation9 + $0x500] ss:$12 sps:$4 sm:$0xff]  }
 0x682   :  { %v6926_v42 = vmax.f32 %v6806_v17, 0.0  ;;  %v6928_v54 = vmax.f32 %v6808_v51, 0.0  ;;  %v6460_v57 = vmax.f32 %v25751_v56, %v5604_v37  ;;  %v6462_v36 = vmax.f32 %v25752_v11, %v5937_v8  ;;  %v5606_v20 = vpop.f32.mrb[153].mxu0  ;;  %v5939_v6 = vpop.f32.mrb[153].mxu1  ;;  %8561 = vmatpush1.bf16.msra.mxu1 %v21033_v16  ;;  %8280 = vmatprep.subr.bf16.mxu0 %v21036_v3  ;;  %v25758_v3 = vld [vmem:[#allocation68_spill] sm:$0xff]  ;;  %v25759_v8 = vld [vmem:[#allocation69_spill] sm:$0xff] }
 0x683   :  { %v6927_v33 = vmax.f32 %v6807_v52, 0.0  ;;  %v6929_v14 = vmax.f32 %v6809_v50, 0.0  ;;  %v6461_v25 = vmax.f32 %v25753_v34, %v5606_v20  ;;  %v6463_v43 = vmax.f32 %v25754_v40, %v5939_v6  ;;  %v5608_v45 = vpop.f32.mrb[154].mxu0  ;;  %v5941_v32 = vpop.f32.mrb[154].mxu1  ;;  %8562 = vmatprep.subr.bf16.mxu1 %v25551_v15  ;;  %v21038_v62 = vld [vmem:[#allocation9 + $0x510] ss:$12 sps:$4 sm:$0xff]  }
 0x684   :  { %v7030_v38 = vpack.c.bf16 %v6926_v42, %v6922_v10  ;;  %v7032_v7 = vpack.c.bf16 %v6928_v54, %v6924_v39  ;;  %v6464_v59 = vmax.f32 %v25755_v48, %v5608_v45  ;;  %v6466_v26 = vmax.f32 %v25756_v55, %v5941_v32  ;;  %v5610_v46 = vpop.f32.mrb[155].mxu0  ;;  %v5943_v30 = vpop.f32.mrb[155].mxu1  ;;  %v21040_v19 = vld [vmem:[#allocation9 + $0x514] ss:$12 sps:$4 sm:$0xff]   ;;  %v21041_v63 = vld [vmem:[#allocation9 + $0x518] ss:$12 sps:$4 sm:$0xff]  }
 0x685   :  { %v7031_v41 = vpack.c.bf16 %v6927_v33, %v6923_v31  ;;  %v7033_v1 = vpack.c.bf16 %v6929_v14, %v6925_v24  ;;  %v6465_v16 = vmax.f32 %v25757_v29, %v5610_v46  ;;  %v6467_v58 = vmax.f32 %v25758_v3, %v5943_v30  ;;  %8281 = vmatpush1.bf16.msra.mxu0 %v21034_v4  ;;  %v21044_v10 = vld [vmem:[#allocation9 + $0x52c] ss:$12 sps:$4 sm:$0xff]   ;;  %v21042_v50 = vld [vmem:[#allocation9 + $0x528] ss:$12 sps:$4 sm:$0xff]   ;;  %v25760_v20 = vld [vmem:[#allocation70_spill] sm:$0xff] }
 0x686   :  { %7090 = vst [vmem:[#allocation2 + $0x60] sm:$0xff] %v7030_v38  ;;  %7092 = vst [vmem:[#allocation2 + $0x70] sm:$0xff] %v7032_v7  ;;  %8563 = vmatpush1.bf16.msra.mxu1 %v21037_v61  ;;  %8282 = vmatprep.subr.bf16.mxu0 %v21040_v19  ;;  %v25761_v6 = vld [vmem:[#allocation71_spill] sm:$0xff]  ;;  %v21045_v34 = vld [vmem:[#allocation9 + $0x530] ss:$12 sps:$4 sm:$0xff]  }
 0x687   :  { %7091 = vst [vmem:[#allocation2 + $0x68] sm:$0xff] %v7031_v41  ;;  %7093 = vst.msk [vmem:[#allocation2 + $0x78] sm:$0xff] %vm613_vm0, %v7033_v1  ;;  %8165 = vmatprep.mubr.bf16.mxu0 %v7031_v41  ;;  %8467 = vmatprep.mubr.bf16.mxu1 %v7031_v41  ;;  %v25762_v32 = vld [vmem:[#allocation72_spill] sm:$0xff] }
 0x688   :  { %8166 = vmatmul.mubr.bf16.gmra.mrb[248].mxu0 %v7030_v38  ;;  %8468 = vmatmul.mubr.bf16.gmra.mrb[248].mxu1 %v7030_v38  ;;  %v25763_v38 = vld [vmem:[#allocation73_spill] sm:$0xff] }
 0x689   :  { %v5614_v39 = vpop.f32.mrb[156].mxu0  ;;  %v5947_v17 = vpop.f32.mrb[156].mxu1  ;;  %8564 = vmatprep.subr.bf16.mxu1 %v25551_v15  ;;  %8283 = vmatpush1.bf16.msra.mxu0 %v21038_v62  ;;  %v21046_v62 = vld [vmem:[#allocation9 + $0x540] ss:$12 sps:$4 sm:$0xff]  }
 0x68a   :  { %v6468_v51 = vmax.f32 %v23331_v60, %v5614_v39  ;;  %v6470_v31 = vmax.f32 %v23333_v2, %v5947_v17  ;;  %v5616_v24 = vpop.f32.mrb[157].mxu0  ;;  %v5949_v52 = vpop.f32.mrb[157].mxu1  ;;  %8565 = vmatpush1.bf16.msra.mxu1 %v21041_v63  ;;  %8284 = vmatprep.subr.bf16.mxu0 %v21044_v10 }
 0x68b   :  { %v6469_v37 = vmax.f32 %v23335_v53, %v5616_v24  ;;  %v6471_v4 = vmax.f32 %v25759_v8, %v5949_v52  ;;  %v5618_v42 = vpop.f32.mrb[158].mxu0  ;;  %v5951_v54 = vpop.f32.mrb[158].mxu1  ;;  %8566 = vmatprep.subr.bf16.mxu1 %v25551_v15 }
 0x68c   :  { %v6668_v56 = vmax.f32 %v6460_v57, %v6468_v51  ;;  %v6670_v11 = vmax.f32 %v6462_v36, %v6470_v31  ;;  %v6472_v60 = vmax.f32 %v25760_v20, %v5618_v42  ;;  %v6474_v2 = vmax.f32 %v25761_v6, %v5951_v54  ;;  %v5620_v33 = vpop.f32.mrb[159].mxu0  ;;  %v5953_v14 = vpop.f32.mrb[159].mxu1  ;;  %v25764_v31 = vld [vmem:[#allocation74_spill] sm:$0xff]  ;;  %v25766_v54 = vld [vmem:[#allocation76_spill] sm:$0xff] }
 0x68d   :  { %v6669_v40 = vmax.f32 %v6461_v25, %v6469_v37  ;;  %v6671_v45 = vmax.f32 %v6463_v43, %v6471_v4  ;;  %v6473_v53 = vmax.f32 %v25762_v32, %v5620_v33  ;;  %v6475_v7 = vmax.f32 %v25763_v38, %v5953_v14  ;;  %8285 = vmatpush1.bf16.msra.mxu0 %v21042_v50  ;;  %v21048_v25 = vld [vmem:[#allocation9 + $0x544] ss:$12 sps:$4 sm:$0xff]   ;;  %v25765_v4 = vld [vmem:[#allocation75_spill] sm:$0xff]  ;;  %v25767_v33 = vld [vmem:[#allocation77_spill] sm:$0xff] }
 0x68e   :  { %v6810_v48 = vadd.f32 %v23785_v44, %v6668_v56  ;;  %v6812_v55 = vadd.f32 %v23790_v35, %v6670_v11  ;;  %v6672_v46 = vmax.f32 %v6464_v59, %v6472_v60  ;;  %v6674_v57 = vmax.f32 %v6466_v26, %v6474_v2  ;;  %8567 = vmatpush1.bf16.msra.mxu1 %v21045_v34  ;;  %v21049_v59 = vld [vmem:[#allocation9 + $0x548] ss:$12 sps:$4 sm:$0xff]   ;;  %v21050_v32 = vld [vmem:[#allocation9 + $0x558] ss:$12 sps:$4 sm:$0xff]  }
 0x68f   :  { %v6811_v36 = vadd.f32 %v23795_v28, %v6669_v40  ;;  %v6813_v30 = vadd.f32 %v23798_v47, %v6671_v45  ;;  %v6673_v61 = vmax.f32 %v6465_v16, %v6473_v53  ;;  %v6675_v41 = vmax.f32 %v6467_v58, %v6475_v7  ;;  %8568 = vmatprep.subr.bf16.mxu1 %v25551_v15  ;;  %v21052_v60 = vld [vmem:[#allocation9 + $0x55c] ss:$12 sps:$4 sm:$0xff]  }
 0x690   :  { %v6930_v43 = vmax.f32 %v6810_v48, 0.0  ;;  %v6932_v1 = vmax.f32 %v6812_v55, 0.0  ;;  %v6814_v29 = vadd.f32 %v23785_v44, %v6672_v46  ;;  %v6816_v3 = vadd.f32 %v23790_v35, %v6674_v57  ;;  %8286 = vmatprep.subr.bf16.mxu0 %v21048_v25  ;;  %v25769_v7 = vld [vmem:[#allocation79_spill] sm:$0xff]  ;;  %v25770_v55 = vld [vmem:[#allocation80_spill] sm:$0xff]  ;;  %v21057_v25 = vld [vmem:[#allocation9 + $0x578] ss:$12 sps:$4 sm:$0xff]  }
 0x691   :  { %v6931_v26 = vmax.f32 %v6811_v36, 0.0  ;;  %v6933_v19 = vmax.f32 %v6813_v30, 0.0  ;;  %v6815_v63 = vadd.f32 %v23795_v28, %v6673_v61  ;;  %v6817_v10 = vadd.f32 %v23798_v47, %v6675_v41  ;;  %v5624_v16 = vpop.f32.mrb[160].mxu0  ;;  %v5957_v58 = vpop.f32.mrb[160].mxu1  ;;  %8287 = vmatpush1.bf16.msra.mxu0 %v21046_v62  ;;  %v21053_v57 = vld [vmem:[#allocation9 + $0x560] ss:$12 sps:$4 sm:$0xff]  }
 0x692   :  { %v6934_v39 = vmax.f32 %v6814_v29, 0.0  ;;  %v6936_v17 = vmax.f32 %v6816_v3, 0.0  ;;  %v6476_v51 = vmax.f32 %v23353_v49, %v5624_v16  ;;  %v6478_v24 = vmax.f32 %v25764_v31, %v5957_v58  ;;  %v5626_v52 = vpop.f32.mrb[161].mxu0  ;;  %v5959_v50 = vpop.f32.mrb[161].mxu1  ;;  %8569 = vmatpush1.bf16.msra.mxu1 %v21049_v59  ;;  %v25768_v49 = vld [vmem:[#allocation78_spill] sm:$0xff]  ;;  %8288 = vmatprep.subr.bf16.mxu0 %v21052_v60 }
 0x693   :  { %v6935_v37 = vmax.f32 %v6815_v63, 0.0  ;;  %v6937_v8 = vmax.f32 %v6817_v10, 0.0  ;;  %v6477_v42 = vmax.f32 %v25765_v4, %v5626_v52  ;;  %v6479_v56 = vmax.f32 %v25766_v54, %v5959_v50  ;;  %v5628_v11 = vpop.f32.mrb[162].mxu0  ;;  %v5961_v20 = vpop.f32.mrb[162].mxu1  ;;  %8570 = vmatprep.subr.bf16.mxu1 %v25551_v15  ;;  %v21056_v36 = vld [vmem:[#allocation9 + $0x574] ss:$12 sps:$4 sm:$0xff]  }
 0x694   :  { %v7034_v6 = vpack.c.bf16 %v6934_v39, %v6930_v43  ;;  %v7036_v2 = vpack.c.bf16 %v6936_v17, %v6932_v1  ;;  %v6480_v14 = vmax.f32 %v25767_v33, %v5628_v11  ;;  %v6482_v34 = vmax.f32 %v25768_v49, %v5961_v20  ;;  %v5630_v40 = vpop.f32.mrb[163].mxu0  ;;  %v5963_v45 = vpop.f32.mrb[163].mxu1  ;;  %v21054_v30 = vld [vmem:[#allocation9 + $0x570] ss:$12 sps:$4 sm:$0xff]   ;;  %v25772_v29 = vld [vmem:[#allocation82_spill] sm:$0xff] }
 0x695   :  { %v7035_v53 = vpack.c.bf16 %v6935_v37, %v6931_v26  ;;  %v7037_v38 = vpack.c.bf16 %v6937_v8, %v6933_v19  ;;  %v6481_v48 = vmax.f32 %v25769_v7, %v5630_v40  ;;  %v6483_v46 = vmax.f32 %v25770_v55, %v5963_v45  ;;  %8289 = vmatpush1.bf16.msra.mxu0 %v21050_v32  ;;  %v25771_v43 = vld [vmem:[#allocation81_spill] sm:$0xff]  ;;  %v25773_v26 = vld [vmem:[#allocation83_spill] sm:$0xff]  ;;  %v25774_v63 = vld [vmem:[#allocation84_spill] sm:$0xff] }
 0x696   :  { %7094 = vst [vmem:[#allocation2 + $0x80] sm:$0xff] %v7034_v6  ;;  %7096 = vst [vmem:[#allocation2 + $0x90] sm:$0xff] %v7036_v2  ;;  %8571 = vmatpush1.bf16.msra.mxu1 %v21053_v57  ;;  %8290 = vmatprep.subr.bf16.mxu0 %v21056_v36  ;;  %v21060_v39 = vld [vmem:[#allocation9 + $0x58c] ss:$12 sps:$4 sm:$0xff]   ;;  %v25776_v37 = vld [vmem:[#allocation86_spill] sm:$0xff] }
 0x697   :  { %7095 = vst [vmem:[#allocation2 + $0x88] sm:$0xff] %v7035_v53  ;;  %7097 = vst.msk [vmem:[#allocation2 + $0x98] sm:$0xff] %vm613_vm0, %v7037_v38  ;;  %8175 = vmatprep.mubr.bf16.mxu0 %v7035_v53  ;;  %8475 = vmatprep.mubr.bf16.mxu1 %v7035_v53  ;;  %v25775_v52 = vld [vmem:[#allocation85_spill] sm:$0xff]  ;;  %v21058_v11 = vld [vmem:[#allocation9 + $0x588] ss:$12 sps:$4 sm:$0xff]  }
 0x698   :  { %8176 = vmatmul.mubr.bf16.gmra.mrb[252].mxu0 %v7034_v6  ;;  %8476 = vmatmul.mubr.bf16.gmra.mrb[252].mxu1 %v7034_v6  ;;  %v25777_v6 = vld [vmem:[#allocation87_spill] sm:$0xff]  ;;  %v25778_v33 = vld [vmem:[#allocation88_spill] sm:$0xff] }
 0x699   :  { %v5634_v61 = vpop.f32.mrb[164].mxu0  ;;  %v5967_v41 = vpop.f32.mrb[164].mxu1  ;;  %8291 = vmatpush1.bf16.msra.mxu0 %v21054_v30  ;;  %8572 = vmatprep.subr.bf16.mxu1 %v25551_v15  ;;  %v21061_v40 = vld [vmem:[#allocation9 + $0x590] ss:$12 sps:$4 sm:$0xff]  }
 0x69a   :  { %v6484_v1 = vmax.f32 %v25771_v43, %v5634_v61  ;;  %v6486_v3 = vmax.f32 %v25772_v29, %v5967_v41  ;;  %v5636_v62 = vpop.f32.mrb[165].mxu0  ;;  %v5969_v59 = vpop.f32.mrb[165].mxu1  ;;  %8573 = vmatpush1.bf16.msra.mxu1 %v21057_v25  ;;  %8292 = vmatprep.subr.bf16.mxu0 %v21060_v39 }
 0x69b   :  { %v6485_v19 = vmax.f32 %v25773_v26, %v5636_v62  ;;  %v6487_v10 = vmax.f32 %v25774_v63, %v5969_v59  ;;  %v5638_v16 = vpop.f32.mrb[166].mxu0  ;;  %v5971_v58 = vpop.f32.mrb[166].mxu1  ;;  %8574 = vmatprep.subr.bf16.mxu1 %v25551_v15  ;;  %v25779_v26 = vld [vmem:[#allocation89_spill] sm:$0xff]  ;;  %v25780_v63 = vld [vmem:[#allocation90_spill] sm:$0xff] }
 0x69c   :  { %v6676_v17 = vmax.f32 %v6476_v51, %v6484_v1  ;;  %v6678_v31 = vmax.f32 %v6478_v24, %v6486_v3  ;;  %v6488_v50 = vmax.f32 %v25775_v52, %v5638_v16  ;;  %v6490_v8 = vmax.f32 %v25776_v37, %v5971_v58  ;;  %v5640_v4 = vpop.f32.mrb[167].mxu0  ;;  %v5973_v54 = vpop.f32.mrb[167].mxu1 }
 0x69d   :  { %v6677_v20 = vmax.f32 %v6477_v42, %v6485_v19  ;;  %v6679_v60 = vmax.f32 %v6479_v56, %v6487_v10  ;;  %v6489_v2 = vmax.f32 %v25777_v6, %v5640_v4  ;;  %v6491_v49 = vmax.f32 %v25778_v33, %v5973_v54  ;;  %8293 = vmatpush1.bf16.msra.mxu0 %v21058_v11  ;;  %v25783_v54 = vld [vmem:[#allocation93_spill] sm:$0xff]  ;;  %v21064_v6 = vld [vmem:[#allocation9 + $0x4] ss:$12 sps:$4 sm:$0xff]  }
 0x69e   :  { %v6818_v45 = vadd.f32 %v23785_v44, %v6676_v17  ;;  %v6820_v51 = vadd.f32 %v23790_v35, %v6678_v31  ;;  %v6680_v24 = vmax.f32 %v6480_v14, %v6488_v50  ;;  %v6682_v32 = vmax.f32 %v6482_v34, %v6490_v8  ;;  %8575 = vmatpush1.bf16.msra.mxu1 %v21061_v40  ;;  %v25781_v31 = vld [vmem:[#allocation91_spill] sm:$0xff]  ;;  %v25782_v50 = vld [vmem:[#allocation92_spill] sm:$0xff] }
 0x69f   :  { %v6819_v53 = vadd.f32 %v23795_v28, %v6677_v20  ;;  %v6821_v38 = vadd.f32 %v23798_v47, %v6679_v60  ;;  %v6681_v7 = vmax.f32 %v6481_v48, %v6489_v2  ;;  %v6683_v42 = vmax.f32 %v6483_v46, %v6491_v49  ;;  %v25784_v20 = vld [vmem:[#allocation94_spill] sm:$0xff]  ;;  %9193 = vmatprep.subr.bf16.mxu0 %v21064_v6  ;;  %v25785_v49 = vld [vmem:[#allocation95_spill] sm:$0xff] }
 0x6a0   :  { %v6938_v56 = vmax.f32 %v6818_v45, 0.0  ;;  %v6940_v55 = vmax.f32 %v6820_v51, 0.0  ;;  %v6822_v57 = vadd.f32 %v23785_v44, %v6680_v24  ;;  %v6824_v36 = vadd.f32 %v23790_v35, %v6682_v32  ;;  %v25786_v45 = vld [vmem:[#allocation96_spill] sm:$0xff]  ;;  %v25793_v6 = vld [vmem:[#allocation103_spill] sm:$0xff] }
 0x6a1   :  { %v6939_v30 = vmax.f32 %v6819_v53, 0.0  ;;  %v6941_v61 = vmax.f32 %v6821_v38, 0.0  ;;  %v6823_v14 = vadd.f32 %v23795_v28, %v6681_v7  ;;  %v6825_v34 = vadd.f32 %v23798_v47, %v6683_v42  ;;  %v5644_v41 = vpop.f32.mrb[168].mxu0  ;;  %v5977_v25 = vpop.f32.mrb[168].mxu1  ;;  %v25787_v53 = vld [vmem:[#allocation97_spill] sm:$0xff]  ;;  %v25788_v7 = vld [vmem:[#allocation98_spill] sm:$0xff] }
 0x6a2   :  { %v6942_v48 = vmax.f32 %v6822_v57, 0.0  ;;  %v6944_v46 = vmax.f32 %v6824_v36, 0.0  ;;  %v6492_v43 = vmax.f32 %v23397_v23, %v5644_v41  ;;  %v6494_v1 = vmax.f32 %v23399_v9, %v5977_v25  ;;  %v5646_v29 = vpop.f32.mrb[169].mxu0  ;;  %v5979_v3 = vpop.f32.mrb[169].mxu1 }
 0x6a3   :  { %v6943_v62 = vmax.f32 %v6823_v14, 0.0  ;;  %v6945_v59 = vmax.f32 %v6825_v34, 0.0  ;;  %v6493_v19 = vmax.f32 %v25779_v26, %v5646_v29  ;;  %v6495_v10 = vmax.f32 %v25780_v63, %v5979_v3  ;;  %v5648_v16 = vpop.f32.mrb[170].mxu0  ;;  %v5981_v58 = vpop.f32.mrb[170].mxu1  ;;  %v25790_v14 = vld [vmem:[#allocation100_spill] sm:$0xff]  ;;  %v25791_v29 = vld [vmem:[#allocation101_spill] sm:$0xff] }
 0x6a4   :  { %v7038_v39 = vpack.c.bf16 %v6942_v48, %v6938_v56  ;;  %v7040_v17 = vpack.c.bf16 %v6944_v46, %v6940_v55  ;;  %v6496_v52 = vmax.f32 %v25781_v31, %v5648_v16  ;;  %v6498_v37 = vmax.f32 %v25782_v50, %v5981_v58  ;;  %v5650_v8 = vpop.f32.mrb[171].mxu0  ;;  %v5983_v23 = vpop.f32.mrb[171].mxu1 }
 0x6a5   :  { %v7039_v4 = vpack.c.bf16 %v6943_v62, %v6939_v30  ;;  %v7041_v9 = vpack.c.bf16 %v6945_v59, %v6941_v61  ;;  %v6497_v11 = vmax.f32 %v25783_v54, %v5650_v8  ;;  %v6499_v60 = vmax.f32 %v25784_v20, %v5983_v23  ;;  %v25789_v30 = vld [vmem:[#allocation99_spill] sm:$0xff]  ;;  %v25792_v62 = vld [vmem:[#allocation102_spill] sm:$0xff] }
 0x6a6   :  { %7098 = vst [vmem:[#allocation2 + $0xa0] sm:$0xff] %v7038_v39  ;;  %7100 = vst [vmem:[#allocation2 + $0xb0] sm:$0xff] %v7040_v17 }
 0x6a7   :  { %7099 = vst [vmem:[#allocation2 + $0xa8] sm:$0xff] %v7039_v4  ;;  %7101 = vst.msk [vmem:[#allocation2 + $0xb8] sm:$0xff] %vm613_vm0, %v7041_v9  ;;  %8185 = vmatprep.mubr.bf16.mxu0 %v7039_v4  ;;  %8483 = vmatprep.mubr.bf16.mxu1 %v7039_v4 }
 0x6a8   :  { %8186 = vmatmul.mubr.bf16.gmra.mrb[0].mxu0 %v7038_v39  ;;  %8484 = vmatmul.mubr.bf16.gmra.mrb[0].mxu1 %v7038_v39 }
 0x6a9   :  { %v5654_v2 = vpop.f32.mrb[172].mxu0  ;;  %v5987_v33 = vpop.f32.mrb[172].mxu1 }
 0x6aa   :  { %v6500_v40 = vmax.f32 %v25785_v49, %v5654_v2  ;;  %v6502_v51 = vmax.f32 %v25786_v45, %v5987_v33  ;;  %v5656_v24 = vpop.f32.mrb[173].mxu0  ;;  %v5989_v32 = vpop.f32.mrb[173].mxu1 }
 0x6ab   :  { %v6501_v38 = vmax.f32 %v25787_v53, %v5656_v24  ;;  %v6503_v42 = vmax.f32 %v25788_v7, %v5989_v32  ;;  %v5658_v56 = vpop.f32.mrb[174].mxu0  ;;  %v5991_v55 = vpop.f32.mrb[174].mxu1  ;;  %v25796_v32 = vld [vmem:[#allocation106_spill] sm:$0xff] }
 0x6ac   :  { %v6684_v57 = vmax.f32 %v6492_v43, %v6500_v40  ;;  %v6686_v36 = vmax.f32 %v6494_v1, %v6502_v51  ;;  %v6504_v61 = vmax.f32 %v25789_v30, %v5658_v56  ;;  %v6506_v34 = vmax.f32 %v25790_v14, %v5991_v55  ;;  %v5660_v41 = vpop.f32.mrb[175].mxu0  ;;  %v5993_v25 = vpop.f32.mrb[175].mxu1  ;;  %v25795_v51 = vld [vmem:[#allocation105_spill] sm:$0xff]  ;;  %v25797_v55 = vld [vmem:[#allocation107_spill] sm:$0xff] }
 0x6ad   :  { %v6685_v48 = vmax.f32 %v6493_v19, %v6501_v38  ;;  %v6687_v46 = vmax.f32 %v6495_v10, %v6503_v42  ;;  %v6505_v3 = vmax.f32 %v25791_v29, %v5660_v41  ;;  %v6507_v59 = vmax.f32 %v25792_v62, %v5993_v25  ;;  %v25799_v25 = vld [vmem:[#allocation109_spill] sm:$0xff] }
 0x6ae   :  { %v6826_v26 = vadd.f32 %v23785_v44, %v6684_v57  ;;  %v6828_v63 = vadd.f32 %v23790_v35, %v6686_v36  ;;  %v6688_v16 = vmax.f32 %v6496_v52, %v6504_v61  ;;  %v6690_v58 = vmax.f32 %v6498_v37, %v6506_v34  ;;  %v25798_v36 = vld [vmem:[#allocation108_spill] sm:$0xff] }
 0x6af   :  { %v6827_v43 = vadd.f32 %v23795_v28, %v6685_v48  ;;  %v6829_v1 = vadd.f32 %v23798_v47, %v6687_v46  ;;  %v6689_v39 = vmax.f32 %v6497_v11, %v6505_v3  ;;  %v6691_v17 = vmax.f32 %v6499_v60, %v6507_v59  ;;  %v25794_v11 = vld [vmem:[#allocation104_spill] sm:$0xff]  ;;  %v25800_v46 = vld [vmem:[#allocation110_spill] sm:$0xff] }
 0x6b0   :  { %v6946_v31 = vmax.f32 %v6826_v26, 0.0  ;;  %v6948_v50 = vmax.f32 %v6828_v63, 0.0  ;;  %v6830_v19 = vadd.f32 %v23785_v44, %v6688_v16  ;;  %v6832_v10 = vadd.f32 %v23790_v35, %v6690_v58  ;;  %v21065_v3 = vld [vmem:[#allocation9 + $0xc8] ss:$12 sps:$4 sm:$0xff]  }
 0x6b1   :  { %v6947_v8 = vmax.f32 %v6827_v43, 0.0  ;;  %v6949_v23 = vmax.f32 %v6829_v1, 0.0  ;;  %v6831_v4 = vadd.f32 %v23795_v28, %v6689_v39  ;;  %v6833_v9 = vadd.f32 %v23798_v47, %v6691_v17  ;;  %v5664_v52 = vpop.f32.mrb[176].mxu0  ;;  %v5997_v37 = vpop.f32.mrb[176].mxu1  ;;  %18064 = vmatprep.subr.bf16.mxu1 %v21065_v3  ;;  %v25801_v26 = vld [vmem:[#allocation111_spill] sm:$0xff]  ;;  %v25802_v16 = vld [vmem:[#allocation112_spill] sm:$0xff] }
 0x6b2   :  { %v6950_v54 = vmax.f32 %v6830_v19, 0.0  ;;  %v6952_v20 = vmax.f32 %v6832_v10, 0.0  ;;  %v6508_v2 = vmax.f32 %v25793_v6, %v5664_v52  ;;  %v6510_v60 = vmax.f32 %v25794_v11, %v5997_v37  ;;  %v5666_v33 = vpop.f32.mrb[177].mxu0  ;;  %v5999_v49 = vpop.f32.mrb[177].mxu1  ;;  %v25803_v39 = vld [vmem:[#allocation113_spill] sm:$0xff]  ;;  %v25806_v52 = vld [vmem:[#allocation116_spill] sm:$0xff] }
 0x6b3   :  { %v6951_v40 = vmax.f32 %v6831_v4, 0.0  ;;  %v6953_v45 = vmax.f32 %v6833_v9, 0.0  ;;  %v6509_v24 = vmax.f32 %v25795_v51, %v5666_v33  ;;  %v6511_v53 = vmax.f32 %v25796_v32, %v5999_v49  ;;  %v5668_v38 = vpop.f32.mrb[178].mxu0  ;;  %v6001_v7 = vpop.f32.mrb[178].mxu1  ;;  %v25805_v4 = vld [vmem:[#allocation115_spill] sm:$0xff]  ;;  %v25807_v33 = vld [vmem:[#allocation117_spill] sm:$0xff] }
 0x6b4   :  { %v7042_v42 = vpack.c.bf16 %v6950_v54, %v6946_v31  ;;  %v7044_v56 = vpack.c.bf16 %v6952_v20, %v6948_v50  ;;  %v6512_v57 = vmax.f32 %v25797_v55, %v5668_v38  ;;  %v6514_v30 = vmax.f32 %v25798_v36, %v6001_v7  ;;  %v5670_v61 = vpop.f32.mrb[179].mxu0  ;;  %v6003_v14 = vpop.f32.mrb[179].mxu1  ;;  %v25804_v31 = vld [vmem:[#allocation114_spill] sm:$0xff]  ;;  %v25809_v3 = vld [vmem:[#allocation119_spill] sm:$0xff] }
 0x6b5   :  { %v7043_v34 = vpack.c.bf16 %v6951_v40, %v6947_v8  ;;  %v7045_v41 = vpack.c.bf16 %v6953_v45, %v6949_v23  ;;  %v6513_v48 = vmax.f32 %v25799_v25, %v5670_v61  ;;  %v6515_v29 = vmax.f32 %v25800_v46, %v6003_v14  ;;  %v25808_v40 = vld [vmem:[#allocation118_spill] sm:$0xff] }
 0x6b6   :  { %7102 = vst [vmem:[#allocation2 + $0xc0] sm:$0xff] %v7042_v42  ;;  %7104 = vst [vmem:[#allocation2 + $0xd0] sm:$0xff] %v7044_v56 }
 0x6b7   :  { %7103 = vst [vmem:[#allocation2 + $0xc8] sm:$0xff] %v7043_v34  ;;  %7105 = vst.msk [vmem:[#allocation2 + $0xd8] sm:$0xff] %vm613_vm0, %v7045_v41  ;;  %8195 = vmatprep.mubr.bf16.mxu0 %v7043_v34  ;;  %8491 = vmatprep.mubr.bf16.mxu1 %v7043_v34 }
 0x6b8   :  { %8196 = vmatmul.mubr.bf16.gmra.mrb[4].mxu0 %v7042_v42  ;;  %8492 = vmatmul.mubr.bf16.gmra.mrb[4].mxu1 %v7042_v42 }
 0x6b9   :  { %v5674_v62 = vpop.f32.mrb[180].mxu0  ;;  %v6007_v59 = vpop.f32.mrb[180].mxu1 }
 0x6ba   :  { %v6516_v63 = vmax.f32 %v25801_v26, %v5674_v62  ;;  %v6518_v58 = vmax.f32 %v25802_v16, %v6007_v59  ;;  %v5676_v43 = vpop.f32.mrb[181].mxu0  ;;  %v6009_v1 = vpop.f32.mrb[181].mxu1 }
 0x6bb   :  { %v6517_v17 = vmax.f32 %v25803_v39, %v5676_v43  ;;  %v6519_v50 = vmax.f32 %v25804_v31, %v6009_v1  ;;  %v5678_v19 = vpop.f32.mrb[182].mxu0  ;;  %v6011_v10 = vpop.f32.mrb[182].mxu1  ;;  %v25812_v1 = vld [vmem:[#allocation122_spill] sm:$0xff] }
 0x6bc   :  { %v6692_v8 = vmax.f32 %v6508_v2, %v6516_v63  ;;  %v6694_v23 = vmax.f32 %v6510_v60, %v6518_v58  ;;  %v6520_v9 = vmax.f32 %v25805_v4, %v5678_v19  ;;  %v6522_v37 = vmax.f32 %v25806_v52, %v6011_v10  ;;  %v5680_v54 = vpop.f32.mrb[183].mxu0  ;;  %v6013_v20 = vpop.f32.mrb[183].mxu1  ;;  %v25811_v58 = vld [vmem:[#allocation121_spill] sm:$0xff]  ;;  %v25813_v10 = vld [vmem:[#allocation123_spill] sm:$0xff] }
 0x6bd   :  { %v6693_v6 = vmax.f32 %v6509_v24, %v6517_v17  ;;  %v6695_v11 = vmax.f32 %v6511_v53, %v6519_v50  ;;  %v6521_v49 = vmax.f32 %v25807_v33, %v5680_v54  ;;  %v6523_v45 = vmax.f32 %v25808_v40, %v6013_v20  ;;  %v25815_v20 = vld [vmem:[#allocation125_spill] sm:$0xff] }
 0x6be   :  { %v6834_v51 = vadd.f32 %v23785_v44, %v6692_v8  ;;  %v6836_v32 = vadd.f32 %v23790_v35, %v6694_v23  ;;  %v6696_v38 = vmax.f32 %v6512_v57, %v6520_v9  ;;  %v6698_v7 = vmax.f32 %v6514_v30, %v6522_v37  ;;  %v25814_v23 = vld [vmem:[#allocation124_spill] sm:$0xff] }
 0x6bf   :  { %v6835_v2 = vadd.f32 %v23795_v28, %v6693_v6  ;;  %v6837_v60 = vadd.f32 %v23798_v47, %v6695_v11  ;;  %v6697_v42 = vmax.f32 %v6513_v48, %v6521_v49  ;;  %v6699_v56 = vmax.f32 %v6515_v29, %v6523_v45  ;;  %v25810_v48 = vld [vmem:[#allocation120_spill] sm:$0xff]  ;;  %v25816_v11 = vld [vmem:[#allocation126_spill] sm:$0xff]  ;;  %v25817_v45 = vld [vmem:[#allocation127_spill] sm:$0xff] }
 0x6c0   :  { %v6954_v55 = vmax.f32 %v6834_v51, 0.0  ;;  %v6956_v36 = vmax.f32 %v6836_v32, 0.0  ;;  %v6838_v24 = vadd.f32 %v23785_v44, %v6696_v38  ;;  %v6840_v53 = vadd.f32 %v23790_v35, %v6698_v7  ;;  %v25818_v32 = vld [vmem:[#allocation128_spill] sm:$0xff] }
 0x6c1   :  { %v6955_v61 = vmax.f32 %v6835_v2, 0.0  ;;  %v6957_v14 = vmax.f32 %v6837_v60, 0.0  ;;  %v6839_v34 = vadd.f32 %v23795_v28, %v6697_v42  ;;  %v6841_v41 = vadd.f32 %v23798_v47, %v6699_v56  ;;  %v5684_v57 = vpop.f32.mrb[184].mxu0  ;;  %v6017_v30 = vpop.f32.mrb[184].mxu1  ;;  %v25819_v42 = vld [vmem:[#allocation129_spill] sm:$0xff] }
 0x6c2   :  { %v6958_v25 = vmax.f32 %v6838_v24, 0.0  ;;  %v6960_v46 = vmax.f32 %v6840_v53, 0.0  ;;  %v6524_v62 = vmax.f32 %v25809_v3, %v5684_v57  ;;  %v6526_v29 = vmax.f32 %v25810_v48, %v6017_v30  ;;  %v5686_v59 = vpop.f32.mrb[185].mxu0  ;;  %v6019_v26 = vpop.f32.mrb[185].mxu1  ;;  %v25822_v3 = vld [vmem:[#allocation132_spill] sm:$0xff] }
 0x6c3   :  { %v6959_v63 = vmax.f32 %v6839_v34, 0.0  ;;  %v6961_v16 = vmax.f32 %v6841_v41, 0.0  ;;  %v6525_v43 = vmax.f32 %v25811_v58, %v5686_v59  ;;  %v6527_v39 = vmax.f32 %v25812_v1, %v6019_v26  ;;  %v5688_v17 = vpop.f32.mrb[186].mxu0  ;;  %v6021_v31 = vpop.f32.mrb[186].mxu1  ;;  %v25821_v34 = vld [vmem:[#allocation131_spill] sm:$0xff]  ;;  %v25823_v59 = vld [vmem:[#allocation133_spill] sm:$0xff] }
 0x6c4   :  { %v7046_v50 = vpack.c.bf16 %v6958_v25, %v6954_v55  ;;  %v7048_v19 = vpack.c.bf16 %v6960_v46, %v6956_v36  ;;  %v6528_v8 = vmax.f32 %v25813_v10, %v5688_v17  ;;  %v6530_v4 = vmax.f32 %v25814_v23, %v6021_v31  ;;  %v5690_v9 = vpop.f32.mrb[187].mxu0  ;;  %v6023_v52 = vpop.f32.mrb[187].mxu1 }
 0x6c5   :  { %v7047_v37 = vpack.c.bf16 %v6959_v63, %v6955_v61  ;;  %v7049_v54 = vpack.c.bf16 %v6961_v16, %v6957_v14  ;;  %v6529_v6 = vmax.f32 %v25815_v20, %v5690_v9  ;;  %v6531_v33 = vmax.f32 %v25816_v11, %v6023_v52  ;;  %v25820_v61 = vld [vmem:[#allocation130_spill] sm:$0xff] }
 0x6c6   :  { %7106 = vst [vmem:[#allocation2 + $0xe0] sm:$0xff] %v7046_v50  ;;  %7108 = vst [vmem:[#allocation2 + $0xf0] sm:$0xff] %v7048_v19 }
 0x6c7   :  { %7107 = vst [vmem:[#allocation2 + $0xe8] sm:$0xff] %v7047_v37  ;;  %7109 = vst.msk [vmem:[#allocation2 + $0xf8] sm:$0xff] %vm613_vm0, %v7049_v54  ;;  %8205 = vmatprep.mubr.bf16.mxu0 %v7047_v37  ;;  %8499 = vmatprep.mubr.bf16.mxu1 %v7047_v37  ;;  %v25824_v54 = vld [vmem:[#allocation134_spill] sm:$0xff] }
 0x6c8   :  { %8206 = vmatmul.mubr.bf16.gmra.mrb[8].mxu0 %v7046_v50  ;;  %8500 = vmatmul.mubr.bf16.gmra.mrb[8].mxu1 %v7046_v50 }
 0x6c9   :  { %v5694_v49 = vpop.f32.mrb[188].mxu0  ;;  %v6027_v40 = vpop.f32.mrb[188].mxu1 }
 0x6ca   :  { %v6532_v51 = vmax.f32 %v25817_v45, %v5694_v49  ;;  %v6534_v38 = vmax.f32 %v25818_v32, %v6027_v40  ;;  %v5696_v7 = vpop.f32.mrb[189].mxu0  ;;  %v6029_v2 = vpop.f32.mrb[189].mxu1 }
 0x6cb   :  { %v6533_v60 = vmax.f32 %v23511_v5, %v5696_v7  ;;  %v6535_v56 = vmax.f32 %v25819_v42, %v6029_v2  ;;  %v5698_v55 = vpop.f32.mrb[190].mxu0  ;;  %v6031_v36 = vpop.f32.mrb[190].mxu1 }
 0x6cc   :  { %v6700_v24 = vmax.f32 %v6524_v62, %v6532_v51  ;;  %v6702_v53 = vmax.f32 %v6526_v29, %v6534_v38  ;;  %v6536_v14 = vmax.f32 %v25820_v61, %v5698_v55  ;;  %v6538_v41 = vmax.f32 %v25821_v34, %v6031_v36  ;;  %v5700_v57 = vpop.f32.mrb[191].mxu0  ;;  %v6033_v30 = vpop.f32.mrb[191].mxu1  ;;  %v25826_v61 = vld [vmem:[#allocation136_spill] sm:$0xff]  ;;  %v25827_v34 = vld [vmem:[#allocation137_spill] sm:$0xff] }
 0x6cd   :  { %v6701_v25 = vmax.f32 %v6525_v43, %v6533_v60  ;;  %v6703_v46 = vmax.f32 %v6527_v39, %v6535_v56  ;;  %v6537_v48 = vmax.f32 %v25822_v3, %v5700_v57  ;;  %v6539_v26 = vmax.f32 %v25823_v59, %v6033_v30  ;;  %v25829_v3 = vld [vmem:[#allocation139_spill] sm:$0xff] }
 0x6ce   :  { %v6842_v5 = vadd.f32 %v23785_v44, %v6700_v24  ;;  %v6844_v63 = vadd.f32 %v23790_v35, %v6702_v53  ;;  %v6704_v16 = vmax.f32 %v6528_v8, %v6536_v14  ;;  %v6706_v58 = vmax.f32 %v6530_v4, %v6538_v41 }
 0x6cf   :  { %v6843_v62 = vadd.f32 %v23795_v28, %v6701_v25  ;;  %v6845_v29 = vadd.f32 %v23798_v47, %v6703_v46  ;;  %v6705_v1 = vmax.f32 %v6529_v6, %v6537_v48  ;;  %v6707_v17 = vmax.f32 %v6531_v33, %v6539_v26  ;;  %v25825_v6 = vld [vmem:[#allocation135_spill] sm:$0xff]  ;;  %v25828_v25 = vld [vmem:[#allocation138_spill] sm:$0xff] }
 0x6d0   :  { %v6962_v31 = vmax.f32 %v6842_v5, 0.0  ;;  %v6964_v50 = vmax.f32 %v6844_v63, 0.0  ;;  %v6846_v43 = vadd.f32 %v23785_v44, %v6704_v16  ;;  %v6848_v39 = vadd.f32 %v23790_v35, %v6706_v58  ;;  %v25830_v16 = vld [vmem:[#allocation140_spill] sm:$0xff] }
 0x6d1   :  { %v6963_v19 = vmax.f32 %v6843_v62, 0.0  ;;  %v6965_v10 = vmax.f32 %v6845_v29, 0.0  ;;  %v6847_v23 = vadd.f32 %v23795_v28, %v6705_v1  ;;  %v6849_v9 = vadd.f32 %v23798_v47, %v6707_v17  ;;  %v5704_v8 = vpop.f32.mrb[192].mxu0  ;;  %v6037_v4 = vpop.f32.mrb[192].mxu1  ;;  %v25831_v62 = vld [vmem:[#allocation141_spill] sm:$0xff] }
 0x6d2   :  { %v6966_v52 = vmax.f32 %v6846_v43, 0.0  ;;  %v6968_v37 = vmax.f32 %v6848_v39, 0.0  ;;  %v6540_v20 = vmax.f32 %v25824_v54, %v5704_v8  ;;  %v6542_v11 = vmax.f32 %v25825_v6, %v6037_v4  ;;  %v5706_v33 = vpop.f32.mrb[193].mxu0  ;;  %v6039_v49 = vpop.f32.mrb[193].mxu1  ;;  %v25833_v43 = vld [vmem:[#allocation143_spill] sm:$0xff] }
 0x6d3   :  { %v6967_v40 = vmax.f32 %v6847_v23, 0.0  ;;  %v6969_v45 = vmax.f32 %v6849_v9, 0.0  ;;  %v6541_v51 = vmax.f32 %v23533_v13, %v5706_v33  ;;  %v6543_v32 = vmax.f32 %v23535_v18, %v6039_v49  ;;  %v5708_v38 = vpop.f32.mrb[194].mxu0  ;;  %v6041_v7 = vpop.f32.mrb[194].mxu1 }
 0x6d4   :  { %v7050_v2 = vpack.c.bf16 %v6966_v52, %v6962_v31  ;;  %v7052_v60 = vpack.c.bf16 %v6968_v37, %v6964_v50  ;;  %v6544_v42 = vmax.f32 %v23537_v27, %v5708_v38  ;;  %v6546_v56 = vmax.f32 %v23539_v22, %v6041_v7  ;;  %v5710_v55 = vpop.f32.mrb[195].mxu0  ;;  %v6043_v36 = vpop.f32.mrb[195].mxu1  ;;  %v25832_v50 = vld [vmem:[#allocation142_spill] sm:$0xff] }
 0x6d5   :  { %v7051_v24 = vpack.c.bf16 %v6967_v40, %v6963_v19  ;;  %v7053_v53 = vpack.c.bf16 %v6969_v45, %v6965_v10  ;;  %v6545_v14 = vmax.f32 %v25826_v61, %v5710_v55  ;;  %v6547_v41 = vmax.f32 %v25827_v34, %v6043_v36  ;;  %v25836_v61 = vld [vmem:[#allocation146_spill] sm:$0xff]  ;;  %v25837_v34 = vld [vmem:[#allocation147_spill] sm:$0xff] }
 0x6d6   :  { %7110 = vst [vmem:[#allocation2 + $0x100] sm:$0xff] %v7050_v2  ;;  %7112 = vst [vmem:[#allocation2 + $0x110] sm:$0xff] %v7052_v60 }
 0x6d7   :  { %7111 = vst [vmem:[#allocation2 + $0x108] sm:$0xff] %v7051_v24  ;;  %7113 = vst.msk [vmem:[#allocation2 + $0x118] sm:$0xff] %vm613_vm0, %v7053_v53  ;;  %8215 = vmatprep.mubr.bf16.mxu0 %v7051_v24  ;;  %8507 = vmatprep.mubr.bf16.mxu1 %v7051_v24 }
 0x6d8   :  { %8216 = vmatmul.mubr.bf16.gmra.mrb[12].mxu0 %v7050_v2  ;;  %8508 = vmatmul.mubr.bf16.gmra.mrb[12].mxu1 %v7050_v2  ;;  %v25834_v2 = vld [vmem:[#allocation144_spill] sm:$0xff] }
 0x6d9   :  { %v5714_v13 = vpop.f32.mrb[196].mxu0  ;;  %v6047_v18 = vpop.f32.mrb[196].mxu1 }
 0x6da   :  { %v6548_v22 = vmax.f32 %v23551_v21, %v5714_v13  ;;  %v6550_v27 = vmax.f32 %v23553_v0, %v6047_v18  ;;  %v5716_v57 = vpop.f32.mrb[197].mxu0  ;;  %v6049_v30 = vpop.f32.mrb[197].mxu1 }
 0x6db   :  { %v6549_v46 = vmax.f32 %v25828_v25, %v5716_v57  ;;  %v6551_v48 = vmax.f32 %v25829_v3, %v6049_v30  ;;  %v5718_v59 = vpop.f32.mrb[198].mxu0  ;;  %v6051_v26 = vpop.f32.mrb[198].mxu1  ;;  %v25838_v57 = vld [vmem:[#allocation148_spill] sm:$0xff]  ;;  %v25839_v25 = vld [vmem:[#allocation149_spill] sm:$0xff] }
 0x6dc   :  { %v6708_v5 = vmax.f32 %v6540_v20, %v6548_v22  ;;  %v6710_v63 = vmax.f32 %v6542_v11, %v6550_v27  ;;  %v6552_v58 = vmax.f32 %v25830_v16, %v5718_v59  ;;  %v6554_v29 = vmax.f32 %v25831_v62, %v6051_v26  ;;  %v5720_v1 = vpop.f32.mrb[199].mxu0  ;;  %v6053_v17 = vpop.f32.mrb[199].mxu1  ;;  %v25841_v16 = vld [vmem:[#allocation151_spill] sm:$0xff] }
 0x6dd   :  { %v6709_v31 = vmax.f32 %v6541_v51, %v6549_v46  ;;  %v6711_v21 = vmax.f32 %v6543_v32, %v6551_v48  ;;  %v6553_v0 = vmax.f32 %v25832_v50, %v5720_v1  ;;  %v6555_v39 = vmax.f32 %v25833_v43, %v6053_v17  ;;  %v25842_v1 = vld [vmem:[#allocation152_spill] sm:$0xff]  ;;  %v25844_v43 = vld [vmem:[#allocation154_spill] sm:$0xff] }
 0x6de   :  { %v6850_v19 = vadd.f32 %v23785_v44, %v6708_v5  ;;  %v6852_v10 = vadd.f32 %v23790_v35, %v6710_v63  ;;  %v6712_v23 = vmax.f32 %v6544_v42, %v6552_v58  ;;  %v6714_v9 = vmax.f32 %v6546_v56, %v6554_v29  ;;  %v25835_v42 = vld [vmem:[#allocation145_spill] sm:$0xff]  ;;  %v25840_v5 = vld [vmem:[#allocation150_spill] sm:$0xff] }
 0x6df   :  { %v6851_v8 = vadd.f32 %v23795_v28, %v6709_v31  ;;  %v6853_v4 = vadd.f32 %v23798_v47, %v6711_v21  ;;  %v6713_v52 = vmax.f32 %v6545_v14, %v6553_v0  ;;  %v6715_v37 = vmax.f32 %v6547_v41, %v6555_v39  ;;  %v25843_v31 = vld [vmem:[#allocation153_spill] sm:$0xff] }
 0x6e0   :  { %v6970_v54 = vmax.f32 %v6850_v19, 0.0  ;;  %v6972_v20 = vmax.f32 %v6852_v10, 0.0  ;;  %v6854_v6 = vadd.f32 %v23785_v44, %v6712_v23  ;;  %v6856_v11 = vadd.f32 %v23790_v35, %v6714_v9  ;;  %v25845_v19 = vld [vmem:[#allocation155_spill] sm:$0xff] }
 0x6e1   :  { %v6971_v33 = vmax.f32 %v6851_v8, 0.0  ;;  %v6973_v49 = vmax.f32 %v6853_v4, 0.0  ;;  %v6855_v40 = vadd.f32 %v23795_v28, %v6713_v52  ;;  %v6857_v45 = vadd.f32 %v23798_v47, %v6715_v37  ;;  %v5724_v51 = vpop.f32.mrb[200].mxu0  ;;  %v6057_v32 = vpop.f32.mrb[200].mxu1  ;;  %v25846_v52 = vld [vmem:[#allocation156_spill] sm:$0xff] }
 0x6e2   :  { %v6974_v38 = vmax.f32 %v6854_v6, 0.0  ;;  %v6976_v7 = vmax.f32 %v6856_v11, 0.0  ;;  %v6556_v60 = vmax.f32 %v25834_v2, %v5724_v51  ;;  %v6558_v56 = vmax.f32 %v25835_v42, %v6057_v32  ;;  %v5726_v55 = vpop.f32.mrb[201].mxu0  ;;  %v6059_v36 = vpop.f32.mrb[201].mxu1  ;;  %v25849_v51 = vld [vmem:[#allocation159_spill] sm:$0xff] }
 0x6e3   :  { %v6975_v24 = vmax.f32 %v6855_v40, 0.0  ;;  %v6977_v53 = vmax.f32 %v6857_v45, 0.0  ;;  %v6557_v14 = vmax.f32 %v25836_v61, %v5726_v55  ;;  %v6559_v41 = vmax.f32 %v25837_v34, %v6059_v36  ;;  %v5728_v13 = vpop.f32.mrb[202].mxu0  ;;  %v6061_v18 = vpop.f32.mrb[202].mxu1  ;;  %v25848_v40 = vld [vmem:[#allocation158_spill] sm:$0xff] }
 0x6e4   :  { %v7054_v22 = vpack.c.bf16 %v6974_v38, %v6970_v54  ;;  %v7056_v27 = vpack.c.bf16 %v6976_v7, %v6972_v20  ;;  %v6560_v30 = vmax.f32 %v25838_v57, %v5728_v13  ;;  %v6562_v46 = vmax.f32 %v25839_v25, %v6061_v18  ;;  %v5730_v3 = vpop.f32.mrb[203].mxu0  ;;  %v6063_v48 = vpop.f32.mrb[203].mxu1  ;;  %v25847_v54 = vld [vmem:[#allocation157_spill] sm:$0xff]  ;;  %v25850_v25 = vld [vmem:[#allocation160_spill] sm:$0xff] }
 0x6e5   :  { %v7055_v59 = vpack.c.bf16 %v6975_v24, %v6971_v33  ;;  %v7057_v26 = vpack.c.bf16 %v6977_v53, %v6973_v49  ;;  %v6561_v63 = vmax.f32 %v25840_v5, %v5730_v3  ;;  %v6563_v58 = vmax.f32 %v25841_v16, %v6063_v48  ;;  %v25851_v3 = vld [vmem:[#allocation161_spill] sm:$0xff]  ;;  %v25852_v16 = vld [vmem:[#allocation162_spill] sm:$0xff] }
 0x6e6   :  { %7114 = vst [vmem:[#allocation2 + $0x120] sm:$0xff] %v7054_v22  ;;  %7116 = vst [vmem:[#allocation2 + $0x130] sm:$0xff] %v7056_v27 }
 0x6e7   :  { %7115 = vst [vmem:[#allocation2 + $0x128] sm:$0xff] %v7055_v59  ;;  %7117 = vst.msk [vmem:[#allocation2 + $0x138] sm:$0xff] %vm613_vm0, %v7057_v26  ;;  %8225 = vmatprep.mubr.bf16.mxu0 %v7055_v59  ;;  %8515 = vmatprep.mubr.bf16.mxu1 %v7055_v59 }
 0x6e8   :  { %8226 = vmatmul.mubr.bf16.gmra.mrb[16].mxu0 %v7054_v22  ;;  %8516 = vmatmul.mubr.bf16.gmra.mrb[16].mxu1 %v7054_v22 }
 0x6e9   :  { %v5734_v62 = vpop.f32.mrb[204].mxu0  ;;  %v6067_v29 = vpop.f32.mrb[204].mxu1 }
 0x6ea   :  { %v6564_v17 = vmax.f32 %v25842_v1, %v5734_v62  ;;  %v6566_v21 = vmax.f32 %v25843_v31, %v6067_v29  ;;  %v5736_v50 = vpop.f32.mrb[205].mxu0  ;;  %v6069_v0 = vpop.f32.mrb[205].mxu1  ;;  %v25853_v62 = vld [vmem:[#allocation163_spill] sm:$0xff] }
 0x6eb   :  { %v6565_v39 = vmax.f32 %v25844_v43, %v5736_v50  ;;  %v6567_v10 = vmax.f32 %v25845_v19, %v6069_v0  ;;  %v5738_v23 = vpop.f32.mrb[206].mxu0  ;;  %v6071_v9 = vpop.f32.mrb[206].mxu1  ;;  %v25854_v50 = vld [vmem:[#allocation164_spill] sm:$0xff]  ;;  %v25855_v43 = vld [vmem:[#allocation165_spill] sm:$0xff] }
 0x6ec   :  { %v6716_v8 = vmax.f32 %v6556_v60, %v6564_v17  ;;  %v6718_v4 = vmax.f32 %v6558_v56, %v6566_v21  ;;  %v6568_v37 = vmax.f32 %v25846_v52, %v5738_v23  ;;  %v6570_v20 = vmax.f32 %v25847_v54, %v6071_v9  ;;  %v5740_v6 = vpop.f32.mrb[207].mxu0  ;;  %v6073_v11 = vpop.f32.mrb[207].mxu1  ;;  %v25857_v52 = vld [vmem:[#allocation167_spill] sm:$0xff] }
 0x6ed   :  { %v6717_v33 = vmax.f32 %v6557_v14, %v6565_v39  ;;  %v6719_v49 = vmax.f32 %v6559_v41, %v6567_v10  ;;  %v6569_v45 = vmax.f32 %v25848_v40, %v5740_v6  ;;  %v6571_v32 = vmax.f32 %v25849_v51, %v6073_v11  ;;  %v25858_v6 = vld [vmem:[#allocation168_spill] sm:$0xff]  ;;  %v25860_v51 = vld [vmem:[#allocation170_spill] sm:$0xff] }
 0x6ee   :  { %v6858_v38 = vadd.f32 %v23785_v44, %v6716_v8  ;;  %v6860_v7 = vadd.f32 %v23790_v35, %v6718_v4  ;;  %v6720_v2 = vmax.f32 %v6560_v30, %v6568_v37  ;;  %v6722_v42 = vmax.f32 %v6562_v46, %v6570_v20  ;;  %v25856_v8 = vld [vmem:[#allocation166_spill] sm:$0xff] }
 0x6ef   :  { %v6859_v60 = vadd.f32 %v23795_v28, %v6717_v33  ;;  %v6861_v56 = vadd.f32 %v23798_v47, %v6719_v49  ;;  %v6721_v55 = vmax.f32 %v6561_v63, %v6569_v45  ;;  %v6723_v36 = vmax.f32 %v6563_v58, %v6571_v32  ;;  %v25859_v33 = vld [vmem:[#allocation169_spill] sm:$0xff] }
 0x6f0   :  { %v6978_v24 = vmax.f32 %v6858_v38, 0.0  ;;  %v6980_v53 = vmax.f32 %v6860_v7, 0.0  ;;  %v6862_v61 = vadd.f32 %v23785_v44, %v6720_v2  ;;  %v6864_v14 = vadd.f32 %v23790_v35, %v6722_v42  ;;  %v25861_v38 = vld [vmem:[#allocation171_spill] sm:$0xff] }
 0x6f1   :  { %v6979_v34 = vmax.f32 %v6859_v60, 0.0  ;;  %v6981_v41 = vmax.f32 %v6861_v56, 0.0  ;;  %v6863_v13 = vadd.f32 %v23795_v28, %v6721_v55  ;;  %v6865_v18 = vadd.f32 %v23798_v47, %v6723_v36  ;;  %v5744_v22 = vpop.f32.mrb[208].mxu0  ;;  %v6077_v27 = vpop.f32.mrb[208].mxu1  ;;  %v25862_v55 = vld [vmem:[#allocation172_spill] sm:$0xff] }
 0x6f2   :  { %v6982_v57 = vmax.f32 %v6862_v61, 0.0  ;;  %v6984_v30 = vmax.f32 %v6864_v14, 0.0  ;;  %v6572_v46 = vmax.f32 %v25850_v25, %v5744_v22  ;;  %v6574_v48 = vmax.f32 %v25851_v3, %v6077_v27  ;;  %v5746_v59 = vpop.f32.mrb[209].mxu0  ;;  %v6079_v26 = vpop.f32.mrb[209].mxu1  ;;  %v25865_v22 = vld [vmem:[#allocation175_spill] sm:$0xff] }
 0x6f3   :  { %v6983_v5 = vmax.f32 %v6863_v13, 0.0  ;;  %v6985_v63 = vmax.f32 %v6865_v18, 0.0  ;;  %v6573_v58 = vmax.f32 %v25852_v16, %v5746_v59  ;;  %v6575_v29 = vmax.f32 %v25853_v62, %v6079_v26  ;;  %v5748_v1 = vpop.f32.mrb[210].mxu0  ;;  %v6081_v17 = vpop.f32.mrb[210].mxu1  ;;  %v25864_v13 = vld [vmem:[#allocation174_spill] sm:$0xff] }
 0x6f4   :  { %v7058_v31 = vpack.c.bf16 %v6982_v57, %v6978_v24  ;;  %v7060_v21 = vpack.c.bf16 %v6984_v30, %v6980_v53  ;;  %v6576_v0 = vmax.f32 %v25854_v50, %v5748_v1  ;;  %v6578_v39 = vmax.f32 %v25855_v43, %v6081_v17  ;;  %v5750_v19 = vpop.f32.mrb[211].mxu0  ;;  %v6083_v10 = vpop.f32.mrb[211].mxu1  ;;  %v25863_v24 = vld [vmem:[#allocation173_spill] sm:$0xff]  ;;  %v25866_v43 = vld [vmem:[#allocation176_spill] sm:$0xff] }
 0x6f5   :  { %v7059_v23 = vpack.c.bf16 %v6983_v5, %v6979_v34  ;;  %v7061_v9 = vpack.c.bf16 %v6985_v63, %v6981_v41  ;;  %v6577_v4 = vmax.f32 %v25856_v8, %v5750_v19  ;;  %v6579_v37 = vmax.f32 %v25857_v52, %v6083_v10  ;;  %v25867_v19 = vld [vmem:[#allocation177_spill] sm:$0xff]  ;;  %v25868_v52 = vld [vmem:[#allocation178_spill] sm:$0xff] }
 0x6f6   :  { %7118 = vst [vmem:[#allocation2 + $0x140] sm:$0xff] %v7058_v31  ;;  %7120 = vst [vmem:[#allocation2 + $0x150] sm:$0xff] %v7060_v21 }
 0x6f7   :  { %7119 = vst [vmem:[#allocation2 + $0x148] sm:$0xff] %v7059_v23  ;;  %7121 = vst.msk [vmem:[#allocation2 + $0x158] sm:$0xff] %vm613_vm0, %v7061_v9  ;;  %8235 = vmatprep.mubr.bf16.mxu0 %v7059_v23  ;;  %8523 = vmatprep.mubr.bf16.mxu1 %v7059_v23 }
 0x6f8   :  { %8236 = vmatmul.mubr.bf16.gmra.mrb[20].mxu0 %v7058_v31  ;;  %8524 = vmatmul.mubr.bf16.gmra.mrb[20].mxu1 %v7058_v31 }
 0x6f9   :  { %v5754_v54 = vpop.f32.mrb[212].mxu0  ;;  %v6087_v20 = vpop.f32.mrb[212].mxu1 }
 0x6fa   :  { %v6580_v11 = vmax.f32 %v25858_v6, %v5754_v54  ;;  %v6582_v49 = vmax.f32 %v25859_v33, %v6087_v20  ;;  %v5756_v40 = vpop.f32.mrb[213].mxu0  ;;  %v6089_v45 = vpop.f32.mrb[213].mxu1  ;;  %v25869_v54 = vld [vmem:[#allocation179_spill] sm:$0xff] }
 0x6fb   :  { %v6581_v32 = vmax.f32 %v25860_v51, %v5756_v40  ;;  %v6583_v7 = vmax.f32 %v25861_v38, %v6089_v45  ;;  %v5758_v2 = vpop.f32.mrb[214].mxu0  ;;  %v6091_v42 = vpop.f32.mrb[214].mxu1  ;;  %v25870_v40 = vld [vmem:[#allocation180_spill] sm:$0xff]  ;;  %v25871_v51 = vld [vmem:[#allocation181_spill] sm:$0xff] }
 0x6fc   :  { %v6724_v60 = vmax.f32 %v6572_v46, %v6580_v11  ;;  %v6726_v56 = vmax.f32 %v6574_v48, %v6582_v49  ;;  %v6584_v36 = vmax.f32 %v25862_v55, %v5758_v2  ;;  %v6586_v53 = vmax.f32 %v25863_v24, %v6091_v42  ;;  %v5760_v61 = vpop.f32.mrb[215].mxu0  ;;  %v6093_v14 = vpop.f32.mrb[215].mxu1  ;;  %v25873_v55 = vld [vmem:[#allocation183_spill] sm:$0xff] }
 0x6fd   :  { %v6725_v34 = vmax.f32 %v6573_v58, %v6581_v32  ;;  %v6727_v41 = vmax.f32 %v6575_v29, %v6583_v7  ;;  %v6585_v18 = vmax.f32 %v25864_v13, %v5760_v61  ;;  %v6587_v27 = vmax.f32 %v25865_v22, %v6093_v14  ;;  %v25874_v61 = vld [vmem:[#allocation184_spill] sm:$0xff]  ;;  %v25876_v22 = vld [vmem:[#allocation186_spill] sm:$0xff] }
 0x6fe   :  { %v6866_v57 = vadd.f32 %v23785_v44, %v6724_v60  ;;  %v6868_v30 = vadd.f32 %v23790_v35, %v6726_v56  ;;  %v6728_v25 = vmax.f32 %v6576_v0, %v6584_v36  ;;  %v6730_v3 = vmax.f32 %v6578_v39, %v6586_v53  ;;  %v25872_v60 = vld [vmem:[#allocation182_spill] sm:$0xff] }
 0x6ff   :  { %v6867_v46 = vadd.f32 %v23795_v28, %v6725_v34  ;;  %v6869_v48 = vadd.f32 %v23798_v47, %v6727_v41  ;;  %v6729_v59 = vmax.f32 %v6577_v4, %v6585_v18  ;;  %v6731_v26 = vmax.f32 %v6579_v37, %v6587_v27  ;;  %v25875_v34 = vld [vmem:[#allocation185_spill] sm:$0xff] }
 0x700   :  { %v6986_v5 = vmax.f32 %v6866_v57, 0.0  ;;  %v6988_v63 = vmax.f32 %v6868_v30, 0.0  ;;  %v6870_v16 = vadd.f32 %v23785_v44, %v6728_v25  ;;  %v6872_v58 = vadd.f32 %v23790_v35, %v6730_v3  ;;  %v25877_v57 = vld [vmem:[#allocation187_spill] sm:$0xff] }
 0x701   :  { %v6987_v62 = vmax.f32 %v6867_v46, 0.0  ;;  %v6989_v29 = vmax.f32 %v6869_v48, 0.0  ;;  %v6871_v1 = vadd.f32 %v23795_v28, %v6729_v59  ;;  %v6873_v17 = vadd.f32 %v23798_v47, %v6731_v26  ;;  %v5764_v31 = vpop.f32.mrb[216].mxu0  ;;  %v6097_v21 = vpop.f32.mrb[216].mxu1  ;;  %v25878_v59 = vld [vmem:[#allocation188_spill] sm:$0xff] }
 0x702   :  { %v6990_v50 = vmax.f32 %v6870_v16, 0.0  ;;  %v6992_v0 = vmax.f32 %v6872_v58, 0.0  ;;  %v6588_v39 = vmax.f32 %v25866_v43, %v5764_v31  ;;  %v6590_v10 = vmax.f32 %v25867_v19, %v6097_v21  ;;  %v5766_v23 = vpop.f32.mrb[217].mxu0  ;;  %v6099_v9 = vpop.f32.mrb[217].mxu1  ;;  %v25881_v31 = vld [vmem:[#allocation191_spill] sm:$0xff] }
 0x703   :  { %v6991_v8 = vmax.f32 %v6871_v1, 0.0  ;;  %v6993_v4 = vmax.f32 %v6873_v17, 0.0  ;;  %v6589_v37 = vmax.f32 %v25868_v52, %v5766_v23  ;;  %v6591_v20 = vmax.f32 %v25869_v54, %v6099_v9  ;;  %v5768_v6 = vpop.f32.mrb[218].mxu0  ;;  %v6101_v11 = vpop.f32.mrb[218].mxu1  ;;  %v25880_v1 = vld [vmem:[#allocation190_spill] sm:$0xff] }
 0x704   :  { %v7062_v33 = vpack.c.bf16 %v6990_v50, %v6986_v5  ;;  %v7064_v49 = vpack.c.bf16 %v6992_v0, %v6988_v63  ;;  %v6592_v45 = vmax.f32 %v25870_v40, %v5768_v6  ;;  %v6594_v32 = vmax.f32 %v25871_v51, %v6101_v11  ;;  %v5770_v38 = vpop.f32.mrb[219].mxu0  ;;  %v6103_v7 = vpop.f32.mrb[219].mxu1  ;;  %v25879_v5 = vld [vmem:[#allocation189_spill] sm:$0xff]  ;;  %v25882_v51 = vld [vmem:[#allocation192_spill] sm:$0xff] }
 0x705   :  { %v7063_v2 = vpack.c.bf16 %v6991_v8, %v6987_v62  ;;  %v7065_v42 = vpack.c.bf16 %v6993_v4, %v6989_v29  ;;  %v6593_v56 = vmax.f32 %v25872_v60, %v5770_v38  ;;  %v6595_v36 = vmax.f32 %v25873_v55, %v6103_v7  ;;  %v25883_v38 = vld [vmem:[#allocation193_spill] sm:$0xff]  ;;  %v25884_v55 = vld [vmem:[#allocation194_spill] sm:$0xff] }
 0x706   :  { %7122 = vst [vmem:[#allocation2 + $0x160] sm:$0xff] %v7062_v33  ;;  %7124 = vst [vmem:[#allocation2 + $0x170] sm:$0xff] %v7064_v49 }
 0x707   :  { %7123 = vst [vmem:[#allocation2 + $0x168] sm:$0xff] %v7063_v2  ;;  %7125 = vst.msk [vmem:[#allocation2 + $0x178] sm:$0xff] %vm613_vm0, %v7065_v42  ;;  %8245 = vmatprep.mubr.bf16.mxu0 %v7063_v2  ;;  %8531 = vmatprep.mubr.bf16.mxu1 %v7063_v2 }
 0x708   :  { %8246 = vmatmul.mubr.bf16.gmra.mrb[24].mxu0 %v7062_v33  ;;  %8532 = vmatmul.mubr.bf16.gmra.mrb[24].mxu1 %v7062_v33 }
 0x709   :  { %v5774_v24 = vpop.f32.mrb[220].mxu0  ;;  %v6107_v53 = vpop.f32.mrb[220].mxu1 }
 0x70a   :  { %v6596_v14 = vmax.f32 %v25874_v61, %v5774_v24  ;;  %v6598_v41 = vmax.f32 %v25875_v34, %v6107_v53  ;;  %v5776_v13 = vpop.f32.mrb[221].mxu0  ;;  %v6109_v18 = vpop.f32.mrb[221].mxu1  ;;  %v25885_v24 = vld [vmem:[#allocation195_spill] sm:$0xff] }
 0x70b   :  { %v6597_v27 = vmax.f32 %v25876_v22, %v5776_v13  ;;  %v6599_v30 = vmax.f32 %v25877_v57, %v6109_v18  ;;  %v5778_v25 = vpop.f32.mrb[222].mxu0  ;;  %v6111_v3 = vpop.f32.mrb[222].mxu1  ;;  %v25886_v13 = vld [vmem:[#allocation196_spill] sm:$0xff]  ;;  %v25887_v22 = vld [vmem:[#allocation197_spill] sm:$0xff] }
 0x70c   :  { %v6732_v46 = vmax.f32 %v6588_v39, %v6596_v14  ;;  %v6734_v48 = vmax.f32 %v6590_v10, %v6598_v41  ;;  %v6600_v26 = vmax.f32 %v25878_v59, %v5778_v25  ;;  %v6602_v63 = vmax.f32 %v25879_v5, %v6111_v3  ;;  %v5780_v16 = vpop.f32.mrb[223].mxu0  ;;  %v6113_v58 = vpop.f32.mrb[223].mxu1  ;;  %v25889_v59 = vld [vmem:[#allocation199_spill] sm:$0xff]  ;;  %v7431_v5 = vld [vmem:[#allocation2 + $0x38] sm:$0xff] }
 0x70d   :  { %v6733_v62 = vmax.f32 %v6589_v37, %v6597_v27  ;;  %v6735_v29 = vmax.f32 %v6591_v20, %v6599_v30  ;;  %v6601_v17 = vmax.f32 %v25880_v1, %v5780_v16  ;;  %v6603_v21 = vmax.f32 %v25881_v31, %v6113_v58  ;;  %v25890_v58 = vld [vmem:[#allocation200_spill] sm:$0xff] }
 0x70e   :  { %v6874_v50 = vadd.f32 %v23785_v44, %v6732_v46  ;;  %v6876_v0 = vadd.f32 %v23790_v35, %v6734_v48  ;;  %v6736_v43 = vmax.f32 %v6592_v45, %v6600_v26  ;;  %v6738_v19 = vmax.f32 %v6594_v32, %v6602_v63  ;;  %v25888_v46 = vld [vmem:[#allocation198_spill] sm:$0xff] }
 0x70f   :  { %v6875_v39 = vadd.f32 %v23795_v28, %v6733_v62  ;;  %v6877_v10 = vadd.f32 %v23798_v47, %v6735_v29  ;;  %v6737_v23 = vmax.f32 %v6593_v56, %v6601_v17  ;;  %v6739_v9 = vmax.f32 %v6595_v36, %v6603_v21  ;;  %v25891_v29 = vld [vmem:[#allocation201_spill] sm:$0xff]  ;;  %v25892_v21 = vld [vmem:[#allocation202_spill] sm:$0xff] }
 0x710   :  { %v6994_v8 = vmax.f32 %v6874_v50, 0.0  ;;  %v6996_v4 = vmax.f32 %v6876_v0, 0.0  ;;  %v6878_v52 = vadd.f32 %v23785_v44, %v6736_v43  ;;  %v6880_v37 = vadd.f32 %v23790_v35, %v6738_v19  ;;  %v25893_v0 = vld [vmem:[#allocation203_spill] sm:$0xff] }
 0x711   :  { %v6995_v54 = vmax.f32 %v6875_v39, 0.0  ;;  %v6997_v20 = vmax.f32 %v6877_v10, 0.0  ;;  %v6879_v6 = vadd.f32 %v23795_v28, %v6737_v23  ;;  %v6881_v11 = vadd.f32 %v23798_v47, %v6739_v9  ;;  %v5784_v33 = vpop.f32.mrb[224].mxu0  ;;  %v6117_v49 = vpop.f32.mrb[224].mxu1  ;;  %v25894_v9 = vld [vmem:[#allocation204_spill] sm:$0xff] }
 0x712   :  { %v6998_v40 = vmax.f32 %v6878_v52, 0.0  ;;  %v7000_v45 = vmax.f32 %v6880_v37, 0.0  ;;  %v6604_v32 = vmax.f32 %v25882_v51, %v5784_v33  ;;  %v6606_v7 = vmax.f32 %v25883_v38, %v6117_v49  ;;  %v5786_v2 = vpop.f32.mrb[225].mxu0  ;;  %v6119_v42 = vpop.f32.mrb[225].mxu1  ;;  %v25897_v49 = vld [vmem:[#allocation207_spill] sm:$0xff] }
 0x713   :  { %v6999_v60 = vmax.f32 %v6879_v6, 0.0  ;;  %v7001_v56 = vmax.f32 %v6881_v11, 0.0  ;;  %v6605_v36 = vmax.f32 %v25884_v55, %v5786_v2  ;;  %v6607_v53 = vmax.f32 %v25885_v24, %v6119_v42  ;;  %v5788_v61 = vpop.f32.mrb[226].mxu0  ;;  %v6121_v14 = vpop.f32.mrb[226].mxu1  ;;  %v25896_v11 = vld [vmem:[#allocation206_spill] sm:$0xff] }
 0x714   :  { %v7066_v34 = vpack.c.bf16 %v6998_v40, %v6994_v8  ;;  %v24143_v41 = vpack.c.bf16 %v7000_v45, %v6996_v4  ;;  %v6608_v18 = vmax.f32 %v25886_v13, %v5788_v61  ;;  %v6610_v27 = vmax.f32 %v25887_v22, %v6121_v14  ;;  %v5790_v57 = vpop.f32.mrb[227].mxu0  ;;  %v6123_v30 = vpop.f32.mrb[227].mxu1  ;;  %v25895_v4 = vld [vmem:[#allocation205_spill] sm:$0xff] }
 0x715   :  { %v7067_v25 = vpack.c.bf16 %v6999_v60, %v6995_v54  ;;  %v7069_v3 = vpack.c.bf16 %v7001_v56, %v6997_v20  ;;  %v6609_v48 = vmax.f32 %v25888_v46, %v5790_v57  ;;  %v6611_v26 = vmax.f32 %v25889_v59, %v6123_v30  ;;  %v21069_v24 = vld [vmem:[#allocation9 + $0x1c] ss:$12 sps:$4 sm:$0xff]   ;;  %v7435_v13 = vld [vmem:[#allocation2 + $0x58] sm:$0xff]  ;;  %v21074_v46 = vld [vmem:[#allocation9 + $0x20] ss:$12 sps:$4 sm:$0xff]  }
 0x716   :  { %7126 = vst [vmem:[#allocation2 + $0x180] sm:$0xff] %v7066_v34  ;;  %7128 = vst [vmem:[#allocation2 + $0x190] sm:$0xff] %v24143_v41 }
 0x717   :  { %7127 = vst [vmem:[#allocation2 + $0x188] sm:$0xff] %v7067_v25  ;;  %7129 = vst.msk [vmem:[#allocation2 + $0x198] sm:$0xff] %vm613_vm0, %v7069_v3  ;;  %8255 = vmatprep.mubr.bf16.mxu0 %v7067_v25  ;;  %8539 = vmatprep.mubr.bf16.mxu1 %v7067_v25  ;;  %v21072_v3 = vld [vmem:[#allocation9 + $0x34] ss:$12 sps:$4 sm:$0xff]  }
 0x718   :  { %8256 = vmatmul.mubr.bf16.gmra.mrb[28].mxu0 %v7066_v34  ;;  %8540 = vmatmul.mubr.bf16.gmra.mrb[28].mxu1 %v7066_v34 }
 0x719   :  { %v5794_v63 = vpop.f32.mrb[228].mxu0  ;;  %v6127_v16 = vpop.f32.mrb[228].mxu1  ;;  %17228 = vmatprep.mubr.msk.bf16.mxu0 %vm613_vm0, %v7431_v5  ;;  %17240 = vmatprep.mubr.msk.bf16.mxu1 %vm613_vm0, %v7431_v5 }
 0x71a   :  { %v6612_v62 = vmax.f32 %v25890_v58, %v5794_v63  ;;  %v6614_v1 = vmax.f32 %v25891_v29, %v6127_v16  ;;  %v5796_v17 = vpop.f32.mrb[229].mxu0  ;;  %v6129_v31 = vpop.f32.mrb[229].mxu1 }
 0x71b   :  { %v6613_v50 = vmax.f32 %v25892_v21, %v5796_v17  ;;  %v6615_v43 = vmax.f32 %v25893_v0, %v6129_v31  ;;  %v5798_v19 = vpop.f32.mrb[230].mxu0  ;;  %v6131_v39 = vpop.f32.mrb[230].mxu1  ;;  %v21082_v0 = vld [vmem:[#allocation9 + $0x38] ss:$12 sps:$4 sm:$0xff]  }
 0x71c   :  { %v6740_v10 = vmax.f32 %v6604_v32, %v6612_v62  ;;  %v6742_v23 = vmax.f32 %v6606_v7, %v6614_v1  ;;  %v6616_v8 = vmax.f32 %v25894_v9, %v5798_v19  ;;  %v6618_v52 = vmax.f32 %v25895_v4, %v6131_v39  ;;  %v5800_v37 = vpop.f32.mrb[231].mxu0  ;;  %v6133_v54 = vpop.f32.mrb[231].mxu1  ;;  %v21062_v32 = vld [vmem:[#allocation9] ss:$12 sps:$4 sm:$0xff]   ;;  %v21066_v7 = vld [vmem:[#allocation9 + $0x8] ss:$12 sps:$4 sm:$0xff]  }
 0x71d   :  { %v6741_v20 = vmax.f32 %v6605_v36, %v6613_v50  ;;  %v6743_v6 = vmax.f32 %v6607_v53, %v6615_v43  ;;  %v6617_v33 = vmax.f32 %v25896_v11, %v5800_v37  ;;  %v6619_v40 = vmax.f32 %v25897_v49, %v6133_v54  ;;  %v7430_v36 = vld [vmem:[#allocation2 + $0x30] sm:$0xff]  ;;  %v21075_v4 = vld [vmem:[#allocation9 + $0x48] ss:$12 sps:$4 sm:$0xff]  }
 0x71e   :  { %v6882_v45 = vadd.f32 %v23785_v44, %v6740_v10  ;;  %v6884_v51 = vadd.f32 %v23790_v35, %v6742_v23  ;;  %v6744_v38 = vmax.f32 %v6608_v18, %v6616_v8  ;;  %v6746_v2 = vmax.f32 %v6610_v27, %v6618_v52  ;;  %v21073_v53 = vld [vmem:[#allocation9 + $0xe0] ss:$12 sps:$4 sm:$0xff]   ;;  %v21067_v18 = vld [vmem:[#allocation9 + $0x18] ss:$12 sps:$4 sm:$0xff]   ;;  %v21070_v50 = vld [vmem:[#allocation9 + $0x30] ss:$12 sps:$4 sm:$0xff]  }
 0x71f   :  { %v6883_v42 = vadd.f32 %v23795_v28, %v6741_v20  ;;  %v6885_v60 = vadd.f32 %v23798_v47, %v6743_v6  ;;  %v6745_v56 = vmax.f32 %v6609_v48, %v6617_v33  ;;  %v6747_v55 = vmax.f32 %v6611_v26, %v6619_v40  ;;  %v7434_v43 = vld [vmem:[#allocation2 + $0x50] sm:$0xff]  ;;  %v7439_v10 = vld [vmem:[#allocation2 + $0x78] sm:$0xff] }
 0x720   :  { %v7002_v61 = vmax.f32 %v6882_v45, 0.0  ;;  %v6886_v14 = vadd.f32 %v23785_v44, %v6744_v38  ;;  %v6888_v34 = vadd.f32 %v23790_v35, %v6746_v2  ;;  %8299 = vmatmul.mubr.bf16.vlgmr.msra.gmra.mrb[240].mxu0 %v7430_v36  ;;  %8581 = vmatmul.mubr.bf16.vlgmr.msra.gmra.mrb[32].mxu1 %v7430_v36  ;;  %v7004_v22 = vmax.f32 %v6884_v51, 0.0  ;;  %v21077_v19 = vld [vmem:[#allocation9 + $0x4c] ss:$12 sps:$4 sm:$0xff]   ;;  %v21089_v39 = vld [vmem:[#allocation9 + $0x110] ss:$12 sps:$4 sm:$0xff]  }
 0x721   :  { %v7003_v27 = vmax.f32 %v6883_v42, 0.0  ;;  %v6887_v57 = vadd.f32 %v23795_v28, %v6745_v56  ;;  %v6889_v30 = vadd.f32 %v23798_v47, %v6747_v55  ;;  %v5804_v25 = vpop.f32.mrb[232].mxu0  ;;  %17229 = vmatprep.mubr.msk.bf16.mxu0 %vm613_vm0, %v7435_v13  ;;  %17241 = vmatprep.mubr.msk.bf16.mxu1 %vm613_vm0, %v7435_v13  ;;  %v7005_v44 = vmax.f32 %v6885_v60, 0.0  ;;  %v21081_v47 = vld [vmem:[#allocation9 + $0xf8] ss:$12 sps:$4 sm:$0xff]   ;;  %v7438_v40 = vld [vmem:[#allocation2 + $0x70] sm:$0xff] }
 0x722   :  { %v7006_v48 = vmax.f32 %v6886_v14, 0.0  ;;  %v7008_v35 = vmax.f32 %v6888_v34, 0.0  ;;  %v6137_v59 = vpop.f32.mrb[232].mxu1  ;;  %v5806_v26 = vpop.f32.mrb[233].mxu0  ;;  %9194 = vmatpush1.bf16.msra.mxu0 %v21062_v32  ;;  %18065 = vmatpush3.bf16.msra.mxu1 %v21066_v7  ;;  %v21080_v54 = vld [vmem:[#allocation9 + $0x64] ss:$12 sps:$4 sm:$0xff]  }
 0x723   :  { %v7007_v5 = vmax.f32 %v6887_v57, 0.0  ;;  %v7009_v63 = vmax.f32 %v6889_v30, 0.0  ;;  %v6139_v16 = vpop.f32.mrb[233].mxu1  ;;  %v5808_v28 = vpop.f32.mrb[234].mxu0  ;;  %9195 = vmatprep.subr.bf16.mxu0 %v21069_v24  ;;  %18066 = vmatprep.subr.bf16.mxu1 %v21073_v53  ;;  %v21078_v33 = vld [vmem:[#allocation9 + $0x60] ss:$12 sps:$4 sm:$0xff]  }
 0x724   :  { %v7070_v58 = vpack.c.bf16 %v7006_v48, %v7002_v61  ;;  %v7072_v62 = vpack.c.bf16 %v7008_v35, %v7004_v22  ;;  %v6141_v29 = vpop.f32.mrb[234].mxu1  ;;  %v5810_v1 = vpop.f32.mrb[235].mxu0  ;;  %v21090_v49 = vld [vmem:[#allocation9 + $0x50] ss:$12 sps:$4 sm:$0xff]   ;;  %v21097_v51 = vld [vmem:[#allocation9 + $0x128] ss:$12 sps:$4 sm:$0xff]  }
 0x725   :  { %v7071_v17 = vpack.c.bf16 %v7007_v5, %v7003_v27  ;;  %v7073_v31 = vpack.c.bf16 %v7009_v63, %v7005_v44  ;;  %v6143_v21 = vpop.f32.mrb[235].mxu1  ;;  %v21085_v45 = vld [vmem:[#allocation9 + $0x7c] ss:$12 sps:$4 sm:$0xff]   ;;  %v7443_v38 = vld [vmem:[#allocation2 + $0x98] sm:$0xff]  ;;  %v21105_v42 = vld [vmem:[#allocation9 + $0x140] ss:$12 sps:$4 sm:$0xff]  }
 0x726   :  { %7130 = vst [vmem:[#allocation2 + $0x1a0] sm:$0xff] %v7070_v58  ;;  %7132 = vst [vmem:[#allocation2 + $0x1b0] sm:$0xff] %v7072_v62  ;;  %9196 = vmatpush1.bf16.msra.mxu0 %v21067_v18  ;;  %18067 = vmatpush3.bf16.msra.mxu1 %v21074_v46  ;;  %v21083_v2 = vld [vmem:[#allocation9 + $0x78] ss:$12 sps:$4 sm:$0xff]   ;;  %v21088_v32 = vld [vmem:[#allocation9 + $0x94] ss:$12 sps:$4 sm:$0xff]  }
 0x727   :  { %7131 = vst [vmem:[#allocation2 + $0x1a8] sm:$0xff] %v7071_v17  ;;  %7133 = vst.msk [vmem:[#allocation2 + $0x1b8] sm:$0xff] %vm613_vm0, %v7073_v31  ;;  %9197 = vmatprep.subr.bf16.mxu0 %v21072_v3  ;;  %18068 = vmatprep.subr.bf16.mxu1 %v21081_v47  ;;  %v21098_v7 = vld [vmem:[#allocation9 + $0x68] ss:$12 sps:$4 sm:$0xff]   ;;  %v21086_v60 = vld [vmem:[#allocation9 + $0x90] ss:$12 sps:$4 sm:$0xff]  }
 0x728   :  { %8309 = vmatmul.mubr.bf16.gmra.mrb[244].mxu0 %v7434_v43  ;;  %8589 = vmatmul.mubr.bf16.gmra.mrb[36].mxu1 %v7434_v43  ;;  %v21106_v56 = vld [vmem:[#allocation9 + $0x80] ss:$12 sps:$4 sm:$0xff]   ;;  %v21113_v24 = vld [vmem:[#allocation9 + $0x158] ss:$12 sps:$4 sm:$0xff]   ;;  %v21091_v61 = vld [vmem:[#allocation9 + $0xa8] ss:$12 sps:$4 sm:$0xff]  }
 0x729   :  { %v5814_v23 = vpop.f32.mrb[236].mxu0  ;;  %17230 = vmatprep.mubr.msk.bf16.mxu0 %vm613_vm0, %v7439_v10  ;;  %17242 = vmatprep.mubr.msk.bf16.mxu1 %vm613_vm0, %v7439_v10  ;;  %v7442_v55 = vld [vmem:[#allocation2 + $0x90] sm:$0xff]  ;;  %v7447_v53 = vld [vmem:[#allocation2 + $0xb8] sm:$0xff]  ;;  %v21101_v48 = vld [vmem:[#allocation9 + $0xdc] ss:$12 sps:$4 sm:$0xff]  }
 0x72a   :  { %v6147_v9 = vpop.f32.mrb[236].mxu1  ;;  %v5816_v8 = vpop.f32.mrb[237].mxu0  ;;  %9198 = vmatpush1.bf16.msra.mxu0 %v21070_v50  ;;  %18069 = vmatpush3.bf16.msra.mxu1 %v21082_v0  ;;  %v21093_v36 = vld [vmem:[#allocation9 + $0xac] ss:$12 sps:$4 sm:$0xff]   ;;  %v21096_v13 = vld [vmem:[#allocation9 + $0xc4] ss:$12 sps:$4 sm:$0xff]  }
 0x72b   :  { %v6149_v52 = vpop.f32.mrb[237].mxu1  ;;  %v5818_v37 = vpop.f32.mrb[238].mxu0  ;;  %9199 = vmatprep.subr.bf16.mxu0 %v21077_v19  ;;  %18070 = vmatprep.subr.bf16.mxu1 %v21089_v39  ;;  %v21114_v14 = vld [vmem:[#allocation9 + $0x98] ss:$12 sps:$4 sm:$0xff]   ;;  %v21121_v18 = vld [vmem:[#allocation9 + $0x170] ss:$12 sps:$4 sm:$0xff]  }
 0x72c   :  { %v6151_v20 = vpop.f32.mrb[238].mxu1  ;;  %v5820_v6 = vpop.f32.mrb[239].mxu0  ;;  %v21094_v25 = vld [vmem:[#allocation9 + $0xc0] ss:$12 sps:$4 sm:$0xff]   ;;  %v21122_v3 = vld [vmem:[#allocation9 + $0xb0] ss:$12 sps:$4 sm:$0xff]  }
 0x72d   :  { %v6153_v11 = vpop.f32.mrb[239].mxu1  ;;  %v7446_v44 = vld [vmem:[#allocation2 + $0xb0] sm:$0xff]  ;;  %v7451_v35 = vld [vmem:[#allocation2 + $0xd8] sm:$0xff]  ;;  %v21117_v43 = vld [vmem:[#allocation9 + $0x13c] ss:$12 sps:$4 sm:$0xff]  }
 0x72e   :  { %9200 = vmatpush1.bf16.msra.mxu0 %v21075_v4  ;;  %18071 = vmatpush3.bf16.msra.mxu1 %v21090_v49  ;;  %v21099_v59 = vld [vmem:[#allocation9 + $0xd8] ss:$12 sps:$4 sm:$0xff]   ;;  %v21104_v26 = vld [vmem:[#allocation9 + $0xf4] ss:$12 sps:$4 sm:$0xff]   ;;  %v21102_v5 = vld [vmem:[#allocation9 + $0xf0] ss:$12 sps:$4 sm:$0xff]  }
 0x72f   :  { %9201 = vmatprep.subr.bf16.mxu0 %v21080_v54  ;;  %18072 = vmatprep.subr.bf16.mxu1 %v21097_v51  ;;  %v7450_v63 = vld [vmem:[#allocation2 + $0xd0] sm:$0xff]  ;;  %v7455_v28 = vld [vmem:[#allocation2 + $0xf8] sm:$0xff] }
 0x730   :  { %8319 = vmatmul.mubr.bf16.gmra.mrb[248].mxu0 %v7438_v40  ;;  %8597 = vmatmul.mubr.bf16.gmra.mrb[40].mxu1 %v7438_v40  ;;  %v21109_v16 = vld [vmem:[#allocation9 + $0x10c] ss:$12 sps:$4 sm:$0xff]   ;;  %v21107_v47 = vld [vmem:[#allocation9 + $0x108] ss:$12 sps:$4 sm:$0xff]   ;;  %v21112_v62 = vld [vmem:[#allocation9 + $0x124] ss:$12 sps:$4 sm:$0xff]  }
 0x731   :  { %17231 = vmatprep.mubr.msk.bf16.mxu0 %vm613_vm0, %v7443_v38  ;;  %17243 = vmatprep.mubr.msk.bf16.mxu1 %vm613_vm0, %v7443_v38  ;;  %v21110_v21 = vld [vmem:[#allocation9 + $0x120] ss:$12 sps:$4 sm:$0xff]   ;;  %v7459_v19 = vld [vmem:[#allocation2 + $0x118] sm:$0xff]  ;;  %v21118_v23 = vld [vmem:[#allocation9 + $0x150] ss:$12 sps:$4 sm:$0xff]  }
 0x732   :  { %9202 = vmatpush1.bf16.msra.mxu0 %v21078_v33  ;;  %18073 = vmatpush3.bf16.msra.mxu1 %v21098_v7  ;;  %v7454_v0 = vld [vmem:[#allocation2 + $0xf0] sm:$0xff]  ;;  %v21115_v39 = vld [vmem:[#allocation9 + $0x138] ss:$12 sps:$4 sm:$0xff]   ;;  %v21120_v10 = vld [vmem:[#allocation9 + $0x154] ss:$12 sps:$4 sm:$0xff]  }
 0x733   :  { %9203 = vmatprep.subr.bf16.mxu0 %v21085_v45  ;;  %18074 = vmatprep.subr.bf16.mxu1 %v21105_v42  ;;  %v7458_v9 = vld [vmem:[#allocation2 + $0x110] sm:$0xff]  ;;  %v7463_v4 = vld [vmem:[#allocation2 + $0x138] sm:$0xff] }
 0x734   :  { %v21125_v8 = vld [vmem:[#allocation9 + $0x16c] ss:$12 sps:$4 sm:$0xff]   ;;  %v21123_v52 = vld [vmem:[#allocation9 + $0x168] ss:$12 sps:$4 sm:$0xff]   ;;  %v21128_v54 = vld [vmem:[#allocation9 + $0x184] ss:$12 sps:$4 sm:$0xff]  }
 0x735   :  { %v7462_v40 = vld [vmem:[#allocation2 + $0x130] sm:$0xff]  ;;  %v7467_v45 = vld [vmem:[#allocation2 + $0x158] sm:$0xff] }
 0x736   :  { %9204 = vmatpush1.bf16.msra.mxu0 %v21083_v2  ;;  %18075 = vmatpush3.bf16.msra.mxu1 %v21106_v56  ;;  %v7466_v51 = vld [vmem:[#allocation2 + $0x150] sm:$0xff]  ;;  %v7471_v38 = vld [vmem:[#allocation2 + $0x178] sm:$0xff] }
 0x737   :  { %9205 = vmatprep.subr.bf16.mxu0 %v21088_v32  ;;  %18076 = vmatprep.subr.bf16.mxu1 %v21113_v24  ;;  %v7139_v24 = vld [vmem:[#allocation2 + $0x8] sm:$0xff] }
 0x738   :  { %8329 = vmatmul.mubr.bf16.gmra.mrb[252].mxu0 %v7442_v55  ;;  %8605 = vmatmul.mubr.bf16.gmra.mrb[44].mxu1 %v7442_v55  ;;  %v7470_v55 = vld [vmem:[#allocation2 + $0x170] sm:$0xff] }
 0x739   :  { %17232 = vmatprep.mubr.msk.bf16.mxu0 %vm613_vm0, %v7447_v53  ;;  %17244 = vmatprep.mubr.msk.bf16.mxu1 %vm613_vm0, %v7447_v53 }
 0x73a   :  { %9206 = vmatpush1.bf16.msra.mxu0 %v21086_v60  ;;  %18077 = vmatpush3.bf16.msra.mxu1 %v21114_v14 }
 0x73b   :  { %v17992_v34 = vpop.f32.mrb[240].mxu1  ;;  %9207 = vmatprep.subr.bf16.mxu0 %v21093_v36  ;;  %18078 = vmatprep.subr.bf16.mxu1 %v21121_v18  ;;  %v7475_v36 = vld [vmem:[#allocation2 + $0x198] sm:$0xff] }
 0x73c   :  { %v17993_v22 = vpop.f32.mrb[241].mxu1 }
 0x73d   :  { %v24178_v27 = vadd.f32 %v17993_v22, %v17992_v34  ;;  %v17995_v57 = vpop.f32.mrb[242].mxu1  ;;  %v21129_v22 = vld [vmem:[#allocation9 + $0x188] ss:$12 sps:$4 sm:$0xff]  }
 0x73e   :  { %v17996_v30 = vpop.f32.mrb[243].mxu1  ;;  %9208 = vmatpush1.bf16.msra.mxu0 %v21091_v61  ;;  %18079 = vmatpush3.bf16.msra.mxu1 %v21122_v3  ;;  %v7143_v3 = vld [vmem:[#allocation2 + $0x28] sm:$0xff] }
 0x73f   :  { %v24180_v46 = vadd.f32 %v17996_v30, %v17995_v57  ;;  %9209 = vmatprep.subr.bf16.mxu0 %v21096_v13  ;;  %9628 = vmatprep.subr.bf16.mxu1 %v25551_v15  ;;  %v21126_v13 = vld [vmem:[#allocation9 + $0x180] ss:$12 sps:$4 sm:$0xff]  }
 0x740   :  { %8339 = vmatmul.mubr.bf16.gmra.mrb[0].mxu0 %v7446_v44  ;;  %8613 = vmatmul.mubr.bf16.gmra.mrb[48].mxu1 %v7446_v44  ;;  %v7138_v30 = vld [vmem:[#allocation2] sm:$0xff] }
 0x741   :  { %17233 = vmatprep.mubr.msk.bf16.mxu0 %vm613_vm0, %v7451_v35  ;;  %17245 = vmatprep.mubr.msk.bf16.mxu1 %vm613_vm0, %v7451_v35  ;;  %v21133_v44 = vld [vmem:[#allocation9 + $0x1a0] ss:$12 sps:$4 sm:$0xff]   ;;  %v21134_v35 = vld [vmem:[#allocation9 + $0x1b0] ss:$12 sps:$4 sm:$0xff]  }
 0x742   :  { %9210 = vmatpush1.bf16.msra.mxu0 %v21094_v25  ;;  %v21132_v25 = vld [vmem:[#allocation9 + $0x19c] ss:$12 sps:$4 sm:$0xff]  }
 0x743   :  { %9211 = vmatprep.subr.bf16.mxu0 %v21101_v48  ;;  %v21136_v48 = vld [vmem:[#allocation9 + $0x1b4] ss:$12 sps:$4 sm:$0xff]  }
 0x746   :  { %9212 = vmatpush1.bf16.msra.mxu0 %v21099_v59  ;;  %v21137_v59 = vld [vmem:[#allocation9 + $0x1b8] ss:$12 sps:$4 sm:$0xff]  }
 0x747   :  { %9213 = vmatprep.subr.bf16.mxu0 %v21104_v26  ;;  %v7142_v26 = vld [vmem:[#allocation2 + $0x20] sm:$0xff] }
 0x748   :  { %8349 = vmatmul.mubr.bf16.gmra.mrb[4].mxu0 %v7450_v63  ;;  %8621 = vmatmul.mubr.bf16.gmra.mrb[52].mxu1 %v7450_v63  ;;  %v7147_v63 = vld [vmem:[#allocation2 + $0x48] sm:$0xff] }
 0x749   :  { %17234 = vmatprep.mubr.msk.bf16.mxu0 %vm613_vm0, %v7455_v28  ;;  %17246 = vmatprep.mubr.msk.bf16.mxu1 %vm613_vm0, %v7455_v28  ;;  %v21141_v28 = vld [vmem:[#allocation9 + $0x1d0] ss:$12 sps:$4 sm:$0xff]  }
 0x74a   :  { %9214 = vmatpush1.bf16.msra.mxu0 %v21102_v5  ;;  %v21140_v5 = vld [vmem:[#allocation9 + $0x1cc] ss:$12 sps:$4 sm:$0xff]  }
 0x74b   :  { %v17998_v58 = vpop.f32.mrb[244].mxu1  ;;  %9215 = vmatprep.subr.bf16.mxu0 %v21109_v16  ;;  %v21138_v16 = vld [vmem:[#allocation9 + $0x1c8] ss:$12 sps:$4 sm:$0xff]  }
 0x74c   :  { %v17999_v29 = vpop.f32.mrb[245].mxu1 }
 0x74d   :  { %v24187_v1 = vadd.f32 %v17999_v29, %v17998_v58  ;;  %v18001_v17 = vpop.f32.mrb[246].mxu1  ;;  %v21144_v58 = vld [vmem:[#allocation9 + $0x1e4] ss:$12 sps:$4 sm:$0xff]  }
 0x74e   :  { %v18002_v31 = vpop.f32.mrb[247].mxu1  ;;  %9216 = vmatpush1.bf16.msra.mxu0 %v21107_v47 }
 0x74f   :  { %v24189_v50 = vadd.f32 %v18002_v31, %v18001_v17  ;;  %9217 = vmatprep.subr.bf16.mxu0 %v21112_v62 }
 0x750   :  { %8359 = vmatmul.mubr.bf16.gmra.mrb[8].mxu0 %v7454_v0  ;;  %8629 = vmatmul.mubr.bf16.gmra.mrb[56].mxu1 %v7454_v0  ;;  %v21145_v0 = vld [vmem:[#allocation9 + $0x1e8] ss:$12 sps:$4 sm:$0xff]  }
 0x751   :  { %17235 = vmatprep.mubr.msk.bf16.mxu0 %vm613_vm0, %v7459_v19  ;;  %17247 = vmatprep.mubr.msk.bf16.mxu1 %vm613_vm0, %v7459_v19  ;;  %v7146_v19 = vld [vmem:[#allocation2 + $0x40] sm:$0xff] }
 0x752   :  { %9218 = vmatpush1.bf16.msra.mxu0 %v21110_v21  ;;  %v21142_v21 = vld [vmem:[#allocation9 + $0x1e0] ss:$12 sps:$4 sm:$0xff]  }
 0x753   :  { %9219 = vmatprep.subr.bf16.mxu0 %v21117_v43 }
 0x756   :  { %9220 = vmatpush1.bf16.msra.mxu0 %v21115_v39  ;;  %v21148_v39 = vld [vmem:[#allocation9 + $0x1fc] ss:$12 sps:$4 sm:$0xff]  }
 0x757   :  { %9221 = vmatprep.subr.bf16.mxu0 %v21120_v10  ;;  %v7151_v10 = vld [vmem:[#allocation2 + $0x68] sm:$0xff] }
 0x758   :  { %8369 = vmatmul.mubr.bf16.gmra.mrb[12].mxu0 %v7458_v9  ;;  %8637 = vmatmul.mubr.bf16.gmra.mrb[60].mxu1 %v7458_v9  ;;  %v21149_v9 = vld [vmem:[#allocation9 + $0x200] ss:$12 sps:$4 sm:$0xff]  }
 0x759   :  { %17236 = vmatprep.mubr.msk.bf16.mxu0 %vm613_vm0, %v7463_v4  ;;  %17248 = vmatprep.mubr.msk.bf16.mxu1 %vm613_vm0, %v7463_v4  ;;  %v21150_v4 = vld [vmem:[#allocation9 + $0x210] ss:$12 sps:$4 sm:$0xff]  }
 0x75a   :  { %9222 = vmatpush1.bf16.msra.mxu0 %v21118_v23  ;;  %v21146_v23 = vld [vmem:[#allocation9 + $0x1f8] ss:$12 sps:$4 sm:$0xff]  }
 0x75b   :  { %v18004_v37 = vpop.f32.mrb[248].mxu1  ;;  %9223 = vmatprep.subr.bf16.mxu0 %v21125_v8  ;;  %v21152_v8 = vld [vmem:[#allocation9 + $0x214] ss:$12 sps:$4 sm:$0xff]  }
 0x75c   :  { %v18005_v20 = vpop.f32.mrb[249].mxu1 }
 0x75d   :  { %v24195_v6 = vadd.f32 %v18005_v20, %v18004_v37  ;;  %v18007_v11 = vpop.f32.mrb[250].mxu1  ;;  %v7150_v37 = vld [vmem:[#allocation2 + $0x60] sm:$0xff]  ;;  %v7155_v20 = vld [vmem:[#allocation2 + $0x88] sm:$0xff] }
 0x75e   :  { %v18008_v33 = vpop.f32.mrb[251].mxu1  ;;  %9224 = vmatpush1.bf16.msra.mxu0 %v21123_v52  ;;  %v21153_v52 = vld [vmem:[#allocation9 + $0x218] ss:$12 sps:$4 sm:$0xff]  }
 0x75f   :  { %v24197_v49 = vadd.f32 %v18008_v33, %v18007_v11  ;;  %9346 = vmatprep.subr.bf16.mxu0 %v21128_v54  ;;  %v21156_v54 = vld [vmem:[#allocation9 + $0x22c] ss:$12 sps:$4 sm:$0xff]   ;;  %v21154_v11 = vld [vmem:[#allocation9 + $0x228] ss:$12 sps:$4 sm:$0xff]   ;;  %v21157_v33 = vld [vmem:[#allocation9 + $0x230] ss:$12 sps:$4 sm:$0xff]  }
 0x760   :  { %8379 = vmatmul.mubr.bf16.gmra.mrb[16].mxu0 %v7462_v40  ;;  %8645 = vmatmul.mubr.bf16.gmra.mrb[64].mxu1 %v7462_v40 }
 0x761   :  { %17237 = vmatprep.mubr.msk.bf16.mxu0 %vm613_vm0, %v7467_v45  ;;  %17249 = vmatprep.mubr.msk.bf16.mxu1 %vm613_vm0, %v7467_v45  ;;  %v21160_v45 = vld [vmem:[#allocation9 + $0x244] ss:$12 sps:$4 sm:$0xff]  }
 0x768   :  { %8389 = vmatmul.mubr.bf16.gmra.mrb[20].mxu0 %v7466_v51  ;;  %8653 = vmatmul.mubr.bf16.gmra.mrb[68].mxu1 %v7466_v51 }
 0x769   :  { %17238 = vmatprep.mubr.msk.bf16.mxu0 %vm613_vm0, %v7471_v38  ;;  %17250 = vmatprep.mubr.msk.bf16.mxu1 %vm613_vm0, %v7471_v38 }
 0x76b   :  { %v18010_v2 = vpop.f32.mrb[252].mxu1 }
 0x76c   :  { %v18011_v32 = vpop.f32.mrb[253].mxu1 }
 0x76d   :  { %v24203_v7 = vadd.f32 %v18011_v32, %v18010_v2  ;;  %v18013_v42 = vpop.f32.mrb[254].mxu1 }
 0x76e   :  { %v18014_v60 = vpop.f32.mrb[255].mxu1 }
 0x76f   :  { %v24205_v56 = vadd.f32 %v18014_v60, %v18013_v42  ;;  %v21158_v42 = vld [vmem:[#allocation9 + $0x240] ss:$12 sps:$4 sm:$0xff]   ;;  %v21161_v60 = vld [vmem:[#allocation9 + $0x248] ss:$12 sps:$4 sm:$0xff]  }
 0x770   :  { %8399 = vmatmul.mubr.bf16.gmra.mrb[24].mxu0 %v7470_v55  ;;  %8661 = vmatmul.mubr.bf16.gmra.mrb[72].mxu1 %v7470_v55 }
 0x771   :  { %17239 = vmatprep.mubr.msk.bf16.mxu0 %vm613_vm0, %v7475_v36  ;;  %17251 = vmatprep.mubr.msk.bf16.mxu1 %vm613_vm0, %v7475_v36  ;;  %v7154_v36 = vld [vmem:[#allocation2 + $0x80] sm:$0xff] }
 0x778   :  { %8409 = vmatmul.mubr.bf16.gmra.mrb[28].mxu0 %v24143_v41  ;;  %8669 = vmatmul.mubr.bf16.gmra.mrb[76].mxu1 %v24143_v41  ;;  %v21130_v41 = vld [vmem:[#allocation9 + $0x198] ss:$12 sps:$4 sm:$0xff]  }
 0x779   :  { %9225 = vmatprep.mubr.bf16.mxu0 %v7139_v24  ;;  %9531 = vmatprep.mubr.bf16.mxu1 %v7139_v24  ;;  %v21164_v24 = vld [vmem:[#allocation9 + $0x25c] ss:$12 sps:$4 sm:$0xff]  }
 0x77b   :  { %v18016_v53 = vpop.f32.mrb[0].mxu1 }
 0x77c   :  { %v18017_v61 = vpop.f32.mrb[1].mxu1 }
 0x77d   :  { %v24211_v14 = vadd.f32 %v18017_v61, %v18016_v53  ;;  %v18019_v34 = vpop.f32.mrb[2].mxu1  ;;  %v7159_v53 = vld [vmem:[#allocation2 + $0xa8] sm:$0xff] }
 0x77e   :  { %v18020_v18 = vpop.f32.mrb[3].mxu1  ;;  %v21162_v61 = vld [vmem:[#allocation9 + $0x258] ss:$12 sps:$4 sm:$0xff]  }
 0x77f   :  { %v24213_v57 = vadd.f32 %v18020_v18, %v18019_v34  ;;  %v21165_v34 = vld [vmem:[#allocation9 + $0x260] ss:$12 sps:$4 sm:$0xff]   ;;  %v21166_v18 = vld [vmem:[#allocation9 + $0x270] ss:$12 sps:$4 sm:$0xff]  }
 0x780   :  { %9226 = vmatmul.mubr.bf16.vlgmr.msra.gmra.mrb[240].mxu0 %v7138_v30  ;;  %9532 = vmatmul.mubr.bf16.vlgmr.msra.gmra.mrb[80].mxu1 %v7138_v30  ;;  %v7158_v30 = vld [vmem:[#allocation2 + $0xa0] sm:$0xff] }
 0x781   :  { %9235 = vmatprep.mubr.bf16.mxu0 %v7143_v3  ;;  %9347 = vmatpush1.bf16.msra.mxu0 %v21126_v13  ;;  %v21168_v13 = vld [vmem:[#allocation9 + $0x274] ss:$12 sps:$4 sm:$0xff]  }
 0x782   :  { %9539 = vmatprep.mubr.bf16.mxu1 %v7143_v3  ;;  %9629 = vmatpush1.bf16.msra.mxu1 %v21129_v22  ;;  %v21169_v22 = vld [vmem:[#allocation9 + $0x278] ss:$12 sps:$4 sm:$0xff]  }
 0x783   :  { %9348 = vmatprep.subr.bf16.mxu0 %v21132_v25  ;;  %9630 = vmatprep.subr.bf16.mxu1 %v25551_v15  ;;  %v21172_v25 = vld [vmem:[#allocation9 + $0x28c] ss:$12 sps:$4 sm:$0xff]   ;;  %v7163_v3 = vld [vmem:[#allocation2 + $0xc8] sm:$0xff] }
 0x785   :  { %9349 = vmatpush1.bf16.msra.mxu0 %v21130_v41  ;;  %v21170_v41 = vld [vmem:[#allocation9 + $0x288] ss:$12 sps:$4 sm:$0xff]  }
 0x786   :  { %9631 = vmatpush1.bf16.msra.mxu1 %v21133_v44  ;;  %9350 = vmatprep.subr.bf16.mxu0 %v21136_v48  ;;  %v21173_v44 = vld [vmem:[#allocation9 + $0x290] ss:$12 sps:$4 sm:$0xff]  }
 0x787   :  { %9632 = vmatprep.subr.bf16.mxu1 %v25551_v15 }
 0x788   :  { %9236 = vmatmul.mubr.bf16.gmra.mrb[244].mxu0 %v7142_v26  ;;  %9540 = vmatmul.mubr.bf16.gmra.mrb[84].mxu1 %v7142_v26 }
 0x789   :  { %9245 = vmatprep.mubr.bf16.mxu0 %v7147_v63  ;;  %9547 = vmatprep.mubr.bf16.mxu1 %v7147_v63 }
 0x78a   :  { %9351 = vmatpush1.bf16.msra.mxu0 %v21134_v35  ;;  %9633 = vmatpush1.bf16.msra.mxu1 %v21137_v59  ;;  %v21176_v35 = vld [vmem:[#allocation9 + $0x2a4] ss:$12 sps:$4 sm:$0xff]  }
 0x78b   :  { %v18022_v47 = vpop.f32.mrb[4].mxu1  ;;  %9352 = vmatprep.subr.bf16.mxu0 %v21140_v5  ;;  %9634 = vmatprep.subr.bf16.mxu1 %v25551_v15 }
 0x78c   :  { %v18023_v62 = vpop.f32.mrb[5].mxu1 }
 0x78d   :  { %v24218_v29 = vadd.f32 %v18023_v62, %v18022_v47  ;;  %v18025_v17 = vpop.f32.mrb[6].mxu1  ;;  %v21180_v62 = vld [vmem:[#allocation9 + $0x2bc] ss:$12 sps:$4 sm:$0xff]  }
 0x78e   :  { %v18026_v31 = vpop.f32.mrb[7].mxu1  ;;  %9353 = vmatpush1.bf16.msra.mxu0 %v21138_v16  ;;  %9635 = vmatpush1.bf16.msra.mxu1 %v21141_v28  ;;  %v21174_v16 = vld [vmem:[#allocation9 + $0x2a0] ss:$12 sps:$4 sm:$0xff]   ;;  %v21177_v28 = vld [vmem:[#allocation9 + $0x2a8] ss:$12 sps:$4 sm:$0xff]  }
 0x78f   :  { %v24220_v43 = vadd.f32 %v18026_v31, %v18025_v17  ;;  %9354 = vmatprep.subr.bf16.mxu0 %v21144_v58  ;;  %9636 = vmatprep.subr.bf16.mxu1 %v25551_v15  ;;  %v7162_v58 = vld [vmem:[#allocation2 + $0xc0] sm:$0xff]  ;;  %v7167_v17 = vld [vmem:[#allocation2 + $0xe8] sm:$0xff] }
 0x790   :  { %9246 = vmatmul.mubr.bf16.gmra.mrb[248].mxu0 %v7146_v19  ;;  %9548 = vmatmul.mubr.bf16.gmra.mrb[88].mxu1 %v7146_v19  ;;  %v21178_v31 = vld [vmem:[#allocation9 + $0x2b8] ss:$12 sps:$4 sm:$0xff]   ;;  %v21185_v19 = vld [vmem:[#allocation9 + $0xc08] ss:$12 sps:$4 sm:$0xff]  }
 0x791   :  { %9255 = vmatprep.mubr.bf16.mxu0 %v7151_v10  ;;  %9555 = vmatprep.mubr.bf16.mxu1 %v7151_v10  ;;  %v7171_v10 = vld [vmem:[#allocation2 + $0x108] sm:$0xff] }
 0x792   :  { %9355 = vmatpush1.bf16.msra.mxu0 %v21142_v21  ;;  %9637 = vmatpush1.bf16.msra.mxu1 %v21145_v0  ;;  %v21181_v21 = vld [vmem:[#allocation9 + $0x2c0] ss:$12 sps:$4 sm:$0xff]   ;;  %v21184_v0 = vld [vmem:[#allocation9 + $0xb44] ss:$12 sps:$4 sm:$0xff]  }
 0x793   :  { %9356 = vmatprep.subr.bf16.mxu0 %v21148_v39  ;;  %9638 = vmatprep.subr.bf16.mxu1 %v25551_v15  ;;  %v7166_v39 = vld [vmem:[#allocation2 + $0xe0] sm:$0xff] }
 0x796   :  { %9357 = vmatpush1.bf16.msra.mxu0 %v21146_v23  ;;  %9639 = vmatpush1.bf16.msra.mxu1 %v21149_v9 }
 0x797   :  { %9358 = vmatprep.subr.bf16.mxu0 %v21152_v8  ;;  %9640 = vmatprep.subr.bf16.mxu1 %v25551_v15 }
 0x798   :  { %9256 = vmatmul.mubr.bf16.gmra.mrb[252].mxu0 %v7150_v37  ;;  %9556 = vmatmul.mubr.bf16.gmra.mrb[92].mxu1 %v7150_v37 }
 0x799   :  { %9265 = vmatprep.mubr.bf16.mxu0 %v7155_v20  ;;  %9563 = vmatprep.mubr.bf16.mxu1 %v7155_v20  ;;  %v7175_v20 = vld [vmem:[#allocation2 + $0x128] sm:$0xff] }
 0x79a   :  { %9359 = vmatpush1.bf16.msra.mxu0 %v21150_v4  ;;  %9641 = vmatpush1.bf16.msra.mxu1 %v21153_v52 }
 0x79b   :  { %v18028_v40 = vpop.f32.mrb[8].mxu1  ;;  %9360 = vmatprep.subr.bf16.mxu0 %v21156_v54  ;;  %9642 = vmatprep.subr.bf16.mxu1 %v25551_v15  ;;  %v7170_v54 = vld [vmem:[#allocation2 + $0x100] sm:$0xff] }
 0x79c   :  { %v18029_v51 = vpop.f32.mrb[9].mxu1 }
 0x79d   :  { %v24226_v38 = vadd.f32 %v18029_v51, %v18028_v40  ;;  %v18031_v2 = vpop.f32.mrb[10].mxu1 }
 0x79e   :  { %v18032_v32 = vpop.f32.mrb[11].mxu1  ;;  %9361 = vmatpush1.bf16.msra.mxu0 %v21154_v11  ;;  %9643 = vmatpush1.bf16.msra.mxu1 %v21157_v33  ;;  %v7174_v11 = vld [vmem:[#allocation2 + $0x120] sm:$0xff]  ;;  %v7179_v33 = vld [vmem:[#allocation2 + $0x148] sm:$0xff] }
 0x79f   :  { %v24228_v55 = vadd.f32 %v18032_v32, %v18031_v2  ;;  %9362 = vmatprep.subr.bf16.mxu0 %v21160_v45  ;;  %9644 = vmatprep.subr.bf16.mxu1 %v25551_v15 }
 0x7a0   :  { %9266 = vmatmul.mubr.bf16.gmra.mrb[0].mxu0 %v7154_v36  ;;  %9564 = vmatmul.mubr.bf16.gmra.mrb[96].mxu1 %v7154_v36  ;;  %v7183_v36 = vld [vmem:[#allocation2 + $0x168] sm:$0xff] }
 0x7a1   :  { %9275 = vmatprep.mubr.bf16.mxu0 %v7159_v53  ;;  %9571 = vmatprep.mubr.bf16.mxu1 %v7159_v53  ;;  %v7141_v53 = vld [vmem:[#allocation2 + $0x18] sm:$0xff] }
 0x7a2   :  { %9363 = vmatpush1.bf16.msra.mxu0 %v21158_v42  ;;  %9645 = vmatpush1.bf16.msra.mxu1 %v21161_v60  ;;  %v7178_v60 = vld [vmem:[#allocation2 + $0x140] sm:$0xff] }
 0x7a3   :  { %9364 = vmatprep.subr.bf16.mxu0 %v21164_v24  ;;  %9646 = vmatprep.subr.bf16.mxu1 %v25551_v15  ;;  %v7182_v24 = vld [vmem:[#allocation2 + $0x160] sm:$0xff] }
 0x7a6   :  { %9365 = vmatpush1.bf16.msra.mxu0 %v21162_v61  ;;  %9647 = vmatpush1.bf16.msra.mxu1 %v21165_v34 }
 0x7a7   :  { %9366 = vmatprep.subr.bf16.mxu0 %v21168_v13  ;;  %9648 = vmatprep.subr.bf16.mxu1 %v25551_v15 }
 0x7a8   :  { %9276 = vmatmul.mubr.bf16.gmra.mrb[4].mxu0 %v7158_v30  ;;  %9572 = vmatmul.mubr.bf16.gmra.mrb[100].mxu1 %v7158_v30  ;;  %v21182_v30 = vld [vmem:[#allocation9 + $0xb40] ss:$12 sps:$4 sm:$0xff]  }
 0x7a9   :  { %9285 = vmatprep.mubr.bf16.mxu0 %v7163_v3  ;;  %9579 = vmatprep.mubr.bf16.mxu1 %v7163_v3 }
 0x7aa   :  { %9367 = vmatpush1.bf16.msra.mxu0 %v21166_v18  ;;  %9649 = vmatpush1.bf16.msra.mxu1 %v21169_v22 }
 0x7ab   :  { %v18034_v48 = vpop.f32.mrb[12].mxu1  ;;  %9368 = vmatprep.subr.bf16.mxu0 %v21172_v25  ;;  %9650 = vmatprep.subr.bf16.mxu1 %v25551_v15  ;;  %v21186_v25 = vld [vmem:[#allocation9 + $0xb48] ss:$12 sps:$4 sm:$0xff]  }
 0x7ac   :  { %v18035_v59 = vpop.f32.mrb[13].mxu1 }
 0x7ad   :  { %v24234_v26 = vadd.f32 %v18035_v59, %v18034_v48  ;;  %v18037_v5 = vpop.f32.mrb[14].mxu1  ;;  %v21193_v48 = vld [vmem:[#allocation9 + $0xc20] ss:$12 sps:$4 sm:$0xff]   ;;  %v21187_v59 = vld [vmem:[#allocation9 + $0xb58] ss:$12 sps:$4 sm:$0xff]  }
 0x7ae   :  { %v18038_v63 = vpop.f32.mrb[15].mxu1  ;;  %9369 = vmatpush1.bf16.msra.mxu0 %v21170_v41  ;;  %9651 = vmatpush1.bf16.msra.mxu1 %v21173_v44  ;;  %v7140_v41 = vld [vmem:[#allocation2 + $0x10] sm:$0xff]  ;;  %v21189_v44 = vld [vmem:[#allocation9 + $0xb5c] ss:$12 sps:$4 sm:$0xff]  }
 0x7af   :  { %v24236_v47 = vadd.f32 %v18038_v63, %v18037_v5  ;;  %9370 = vmatprep.subr.bf16.mxu0 %v21176_v35  ;;  %9652 = vmatprep.subr.bf16.mxu1 %v25551_v15  ;;  %v7145_v35 = vld [vmem:[#allocation2 + $0x38] sm:$0xff]  ;;  %v21194_v5 = vld [vmem:[#allocation9 + $0xb60] ss:$12 sps:$4 sm:$0xff]  }
 0x7b0   :  { %9286 = vmatmul.mubr.bf16.gmra.mrb[8].mxu0 %v7162_v58  ;;  %9580 = vmatmul.mubr.bf16.gmra.mrb[104].mxu1 %v7162_v58  ;;  %v21192_v63 = vld [vmem:[#allocation9 + $0xb74] ss:$12 sps:$4 sm:$0xff]   ;;  %v21202_v58 = vld [vmem:[#allocation9 + $0xb78] ss:$12 sps:$4 sm:$0xff]  }
 0x7b1   :  { %9295 = vmatprep.mubr.bf16.mxu0 %v7167_v17  ;;  %9587 = vmatprep.mubr.bf16.mxu1 %v7167_v17  ;;  %v21197_v17 = vld [vmem:[#allocation9 + $0xb8c] ss:$12 sps:$4 sm:$0xff]  }
 0x7b2   :  { %9371 = vmatpush1.bf16.msra.mxu0 %v21174_v16  ;;  %9653 = vmatpush1.bf16.msra.mxu1 %v21177_v28  ;;  %v21201_v16 = vld [vmem:[#allocation9 + $0xc38] ss:$12 sps:$4 sm:$0xff]   ;;  %v21190_v28 = vld [vmem:[#allocation9 + $0xb70] ss:$12 sps:$4 sm:$0xff]  }
 0x7b3   :  { %9372 = vmatprep.subr.bf16.mxu0 %v21180_v62  ;;  %9654 = vmatprep.subr.bf16.mxu1 %v25551_v15  ;;  %v7144_v62 = vld [vmem:[#allocation2 + $0x30] sm:$0xff] }
 0x7b6   :  { %9373 = vmatpush1.bf16.msra.mxu0 %v21178_v31  ;;  %9655 = vmatpush1.bf16.msra.mxu1 %v21181_v21  ;;  %v21209_v31 = vld [vmem:[#allocation9 + $0xc50] ss:$12 sps:$4 sm:$0xff]   ;;  %v7149_v21 = vld [vmem:[#allocation2 + $0x58] sm:$0xff] }
 0x7b7   :  { %10358 = vmatprep.subr.bf16.mxu0 %v21184_v0  ;;  %18152 = vmatprep.subr.bf16.mxu1 %v21185_v19  ;;  %v21195_v0 = vld [vmem:[#allocation9 + $0xb88] ss:$12 sps:$4 sm:$0xff]   ;;  %v21210_v19 = vld [vmem:[#allocation9 + $0xb90] ss:$12 sps:$4 sm:$0xff]  }
 0x7b8   :  { %9296 = vmatmul.mubr.bf16.gmra.mrb[12].mxu0 %v7166_v39  ;;  %9588 = vmatmul.mubr.bf16.gmra.mrb[108].mxu1 %v7166_v39 }
 0x7b9   :  { %9305 = vmatprep.mubr.bf16.mxu0 %v7171_v10  ;;  %9595 = vmatprep.mubr.bf16.mxu1 %v7171_v10  ;;  %v21200_v10 = vld [vmem:[#allocation9 + $0xba4] ss:$12 sps:$4 sm:$0xff]  }
 0x7bb   :  { %v18040_v23 = vpop.f32.mrb[16].mxu1 }
 0x7bc   :  { %v18041_v9 = vpop.f32.mrb[17].mxu1 }
 0x7bd   :  { %v24240_v8 = vadd.f32 %v18041_v9, %v18040_v23  ;;  %v18043_v4 = vpop.f32.mrb[18].mxu1  ;;  %v21217_v23 = vld [vmem:[#allocation9 + $0xc68] ss:$12 sps:$4 sm:$0xff]  }
 0x7be   :  { %v18044_v52 = vpop.f32.mrb[19].mxu1 }
 0x7bf   :  { %v24242_v37 = vadd.f32 %v18044_v52, %v18043_v4 }
 0x7c0   :  { %9306 = vmatmul.mubr.bf16.gmra.mrb[16].mxu0 %v7170_v54  ;;  %9596 = vmatmul.mubr.bf16.gmra.mrb[112].mxu1 %v7170_v54 }
 0x7c1   :  { %9315 = vmatprep.mubr.bf16.mxu0 %v7175_v20  ;;  %9603 = vmatprep.mubr.bf16.mxu1 %v7175_v20  ;;  %v21198_v20 = vld [vmem:[#allocation9 + $0xba0] ss:$12 sps:$4 sm:$0xff]  }
 0x7c8   :  { %9316 = vmatmul.mubr.bf16.gmra.mrb[20].mxu0 %v7174_v11  ;;  %9604 = vmatmul.mubr.bf16.gmra.mrb[116].mxu1 %v7174_v11  ;;  %v21218_v11 = vld [vmem:[#allocation9 + $0xba8] ss:$12 sps:$4 sm:$0xff]  }
 0x7c9   :  { %9325 = vmatprep.mubr.bf16.mxu0 %v7179_v33  ;;  %9611 = vmatprep.mubr.bf16.mxu1 %v7179_v33 }
 0x7cb   :  { %v18046_v40 = vpop.f32.mrb[20].mxu1 }
 0x7cc   :  { %v18047_v45 = vpop.f32.mrb[21].mxu1 }
 0x7cd   :  { %v24244_v51 = vadd.f32 %v18047_v45, %v18046_v40  ;;  %v18049_v2 = vpop.f32.mrb[22].mxu1  ;;  %v7148_v40 = vld [vmem:[#allocation2 + $0x50] sm:$0xff]  ;;  %v21205_v45 = vld [vmem:[#allocation9 + $0xbbc] ss:$12 sps:$4 sm:$0xff]  }
 0x7ce   :  { %v18050_v32 = vpop.f32.mrb[23].mxu1 }
 0x7cf   :  { %v24246_v42 = vadd.f32 %v18050_v32, %v18049_v2  ;;  %v21225_v2 = vld [vmem:[#allocation9 + $0xc80] ss:$12 sps:$4 sm:$0xff]   ;;  %v7153_v32 = vld [vmem:[#allocation2 + $0x78] sm:$0xff] }
 0x7d0   :  { %9326 = vmatmul.mubr.bf16.gmra.mrb[24].mxu0 %v7178_v60  ;;  %9612 = vmatmul.mubr.bf16.gmra.mrb[120].mxu1 %v7178_v60  ;;  %v21203_v60 = vld [vmem:[#allocation9 + $0xbb8] ss:$12 sps:$4 sm:$0xff]  }
 0x7d1   :  { %9335 = vmatprep.mubr.bf16.mxu0 %v7183_v36  ;;  %9619 = vmatprep.mubr.bf16.mxu1 %v7183_v36  ;;  %v21226_v36 = vld [vmem:[#allocation9 + $0xbc0] ss:$12 sps:$4 sm:$0xff]  }
 0x7d8   :  { %9336 = vmatmul.mubr.bf16.gmra.mrb[28].mxu0 %v7182_v24  ;;  %9620 = vmatmul.mubr.bf16.gmra.mrb[124].mxu1 %v7182_v24  ;;  %v21208_v24 = vld [vmem:[#allocation9 + $0xbd4] ss:$12 sps:$4 sm:$0xff]  }
 0x7d9   :  { %17342 = vmatprep.mubr.msk.bf16.mxu0 %vm613_vm0, %v7141_v53  ;;  %17354 = vmatprep.mubr.msk.bf16.mxu1 %vm613_vm0, %v7141_v53  ;;  %v21233_v53 = vld [vmem:[#allocation9 + $0xc98] ss:$12 sps:$4 sm:$0xff]  }
 0x7db   :  { %v18052_v61 = vpop.f32.mrb[24].mxu1 }
 0x7dc   :  { %v18053_v34 = vpop.f32.mrb[25].mxu1 }
 0x7dd   :  { %v24250_v13 = vadd.f32 %v18053_v34, %v18052_v61  ;;  %v18055_v18 = vpop.f32.mrb[26].mxu1  ;;  %v21206_v61 = vld [vmem:[#allocation9 + $0xbd0] ss:$12 sps:$4 sm:$0xff]   ;;  %v21234_v34 = vld [vmem:[#allocation9 + $0xbd8] ss:$12 sps:$4 sm:$0xff]  }
 0x7de   :  { %v18056_v22 = vpop.f32.mrb[27].mxu1 }
 0x7df   :  { %v24252_v3 = vadd.f32 %v18056_v22, %v18055_v18  ;;  %v7152_v18 = vld [vmem:[#allocation2 + $0x70] sm:$0xff] }
 0x7e0   :  { %9379 = vmatmul.mubr.bf16.vlgmr.msra.gmra.mrb[240].mxu0 %v7140_v41  ;;  %9661 = vmatmul.mubr.bf16.vlgmr.msra.gmra.mrb[32].mxu1 %v7140_v41  ;;  %v21213_v22 = vld [vmem:[#allocation9 + $0xbec] ss:$12 sps:$4 sm:$0xff]   ;;  %v21211_v41 = vld [vmem:[#allocation9 + $0xbe8] ss:$12 sps:$4 sm:$0xff]  }
 0x7e1   :  { %17343 = vmatprep.mubr.msk.bf16.mxu0 %vm613_vm0, %v7145_v35  ;;  %17355 = vmatprep.mubr.msk.bf16.mxu1 %vm613_vm0, %v7145_v35  ;;  %v21214_v35 = vld [vmem:[#allocation9 + $0xc00] ss:$12 sps:$4 sm:$0xff]  }
 0x7e2   :  { %10359 = vmatpush1.bf16.msra.mxu0 %v21182_v30  ;;  %18153 = vmatpush3.bf16.msra.mxu1 %v21186_v25  ;;  %v21241_v30 = vld [vmem:[#allocation9 + $0xcb0] ss:$12 sps:$4 sm:$0xff]   ;;  %v7157_v25 = vld [vmem:[#allocation2 + $0x98] sm:$0xff] }
 0x7e3   :  { %10360 = vmatprep.subr.bf16.mxu0 %v21189_v44  ;;  %18154 = vmatprep.subr.bf16.mxu1 %v21193_v48  ;;  %v21242_v44 = vld [vmem:[#allocation9 + $0xbf0] ss:$12 sps:$4 sm:$0xff]  }
 0x7e4   :  { %v21216_v48 = vld [vmem:[#allocation9 + $0xc04] ss:$12 sps:$4 sm:$0xff]  }
 0x7e6   :  { %10361 = vmatpush1.bf16.msra.mxu0 %v21187_v59  ;;  %18155 = vmatpush3.bf16.msra.mxu1 %v21194_v5  ;;  %v7156_v59 = vld [vmem:[#allocation2 + $0x90] sm:$0xff]  ;;  %v21221_v5 = vld [vmem:[#allocation9 + $0xc1c] ss:$12 sps:$4 sm:$0xff]  }
 0x7e7   :  { %10362 = vmatprep.subr.bf16.mxu0 %v21192_v63  ;;  %18156 = vmatprep.subr.bf16.mxu1 %v21201_v16  ;;  %v7161_v63 = vld [vmem:[#allocation2 + $0xb8] sm:$0xff] }
 0x7e8   :  { %9389 = vmatmul.mubr.bf16.gmra.mrb[244].mxu0 %v7144_v62  ;;  %9669 = vmatmul.mubr.bf16.gmra.mrb[36].mxu1 %v7144_v62  ;;  %v21219_v16 = vld [vmem:[#allocation9 + $0xc18] ss:$12 sps:$4 sm:$0xff]   ;;  %v7160_v62 = vld [vmem:[#allocation2 + $0xb0] sm:$0xff] }
 0x7e9   :  { %17344 = vmatprep.mubr.msk.bf16.mxu0 %vm613_vm0, %v7149_v21  ;;  %17356 = vmatprep.mubr.msk.bf16.mxu1 %vm613_vm0, %v7149_v21  ;;  %v21227_v21 = vld [vmem:[#allocation9 + $0xc48] ss:$12 sps:$4 sm:$0xff]  }
 0x7ea   :  { %10363 = vmatpush1.bf16.msra.mxu0 %v21190_v28  ;;  %18157 = vmatpush3.bf16.msra.mxu1 %v21202_v58  ;;  %v21224_v28 = vld [vmem:[#allocation9 + $0xc34] ss:$12 sps:$4 sm:$0xff]   ;;  %v21222_v58 = vld [vmem:[#allocation9 + $0xc30] ss:$12 sps:$4 sm:$0xff]  }
 0x7eb   :  { %v18058_v39 = vpop.f32.mrb[28].mxu1  ;;  %10364 = vmatprep.subr.bf16.mxu0 %v21197_v17  ;;  %18158 = vmatprep.subr.bf16.mxu1 %v21209_v31  ;;  %v21229_v17 = vld [vmem:[#allocation9 + $0xc4c] ss:$12 sps:$4 sm:$0xff]  }
 0x7ec   :  { %v18059_v9 = vpop.f32.mrb[29].mxu1  ;;  %v7165_v31 = vld [vmem:[#allocation2 + $0xd8] sm:$0xff] }
 0x7ed   :  { %v24258_v4 = vadd.f32 %v18059_v9, %v18058_v39  ;;  %v18061_v52 = vpop.f32.mrb[30].mxu1  ;;  %v7164_v39 = vld [vmem:[#allocation2 + $0xd0] sm:$0xff]  ;;  %v21235_v9 = vld [vmem:[#allocation9 + $0xc78] ss:$12 sps:$4 sm:$0xff]  }
 0x7ee   :  { %v18062_v54 = vpop.f32.mrb[31].mxu1  ;;  %10365 = vmatpush1.bf16.msra.mxu0 %v21195_v0  ;;  %18159 = vmatpush3.bf16.msra.mxu1 %v21210_v19  ;;  %v21232_v0 = vld [vmem:[#allocation9 + $0xc64] ss:$12 sps:$4 sm:$0xff]   ;;  %v21230_v19 = vld [vmem:[#allocation9 + $0xc60] ss:$12 sps:$4 sm:$0xff]  }
 0x7ef   :  { %v24260_v33 = vadd.f32 %v18062_v54, %v18061_v52  ;;  %10366 = vmatprep.subr.bf16.mxu0 %v21200_v10  ;;  %18160 = vmatprep.subr.bf16.mxu1 %v21217_v23  ;;  %v21237_v10 = vld [vmem:[#allocation9 + $0xc7c] ss:$12 sps:$4 sm:$0xff]   ;;  %v7169_v23 = vld [vmem:[#allocation2 + $0xf8] sm:$0xff] }
 0x7f0   :  { %9399 = vmatmul.mubr.bf16.gmra.mrb[248].mxu0 %v7148_v40  ;;  %9677 = vmatmul.mubr.bf16.gmra.mrb[40].mxu1 %v7148_v40  ;;  %v21240_v52 = vld [vmem:[#allocation9 + $0xc94] ss:$12 sps:$4 sm:$0xff]   ;;  %v21238_v54 = vld [vmem:[#allocation9 + $0xc90] ss:$12 sps:$4 sm:$0xff]  }
 0x7f1   :  { %17345 = vmatprep.mubr.msk.bf16.mxu0 %vm613_vm0, %v7153_v32  ;;  %17357 = vmatprep.mubr.msk.bf16.mxu1 %vm613_vm0, %v7153_v32  ;;  %v7173_v40 = vld [vmem:[#allocation2 + $0x118] sm:$0xff]  ;;  %v7172_v32 = vld [vmem:[#allocation2 + $0x110] sm:$0xff] }
 0x7f2   :  { %10367 = vmatpush1.bf16.msra.mxu0 %v21198_v20  ;;  %18161 = vmatpush3.bf16.msra.mxu1 %v21218_v11  ;;  %v7168_v20 = vld [vmem:[#allocation2 + $0xf0] sm:$0xff] }
 0x7f3   :  { %10368 = vmatprep.subr.bf16.mxu0 %v21205_v45  ;;  %18162 = vmatprep.subr.bf16.mxu1 %v21225_v2  ;;  %v21245_v11 = vld [vmem:[#allocation9 + $0xcac] ss:$12 sps:$4 sm:$0xff]   ;;  %v21243_v45 = vld [vmem:[#allocation9 + $0xca8] ss:$12 sps:$4 sm:$0xff]   ;;  %v21248_v2 = vld [vmem:[#allocation9 + $0xcc4] ss:$12 sps:$4 sm:$0xff]  }
 0x7f6   :  { %10369 = vmatpush1.bf16.msra.mxu0 %v21203_v60  ;;  %18163 = vmatpush3.bf16.msra.mxu1 %v21226_v36  ;;  %v7177_v60 = vld [vmem:[#allocation2 + $0x138] sm:$0xff]  ;;  %v7176_v36 = vld [vmem:[#allocation2 + $0x130] sm:$0xff] }
 0x7f7   :  { %10370 = vmatprep.subr.bf16.mxu0 %v21208_v24  ;;  %18164 = vmatprep.subr.bf16.mxu1 %v21233_v53  ;;  %v7181_v24 = vld [vmem:[#allocation2 + $0x158] sm:$0xff]  ;;  %v7180_v53 = vld [vmem:[#allocation2 + $0x150] sm:$0xff] }
 0x7f8   :  { %9409 = vmatmul.mubr.bf16.gmra.mrb[252].mxu0 %v7152_v18  ;;  %9685 = vmatmul.mubr.bf16.gmra.mrb[44].mxu1 %v7152_v18  ;;  %v21868_v18 = vld [vmem:[#allocation2 + $0x28] sm:$0xff] }
 0x7f9   :  { %17346 = vmatprep.mubr.msk.bf16.mxu0 %vm613_vm0, %v7157_v25  ;;  %17358 = vmatprep.mubr.msk.bf16.mxu1 %vm613_vm0, %v7157_v25  ;;  %v21252_v25 = vld [vmem:[#allocation9 + $0xcdc] ss:$12 sps:$4 sm:$0xff]  }
 0x7fa   :  { %10371 = vmatpush1.bf16.msra.mxu0 %v21206_v61  ;;  %18165 = vmatpush3.bf16.msra.mxu1 %v21234_v34  ;;  %v7185_v61 = vld [vmem:[#allocation2 + $0x178] sm:$0xff]  ;;  %v7184_v34 = vld [vmem:[#allocation2 + $0x170] sm:$0xff] }
 0x7fb   :  { %10372 = vmatprep.subr.bf16.mxu0 %v21213_v22  ;;  %18166 = vmatprep.subr.bf16.mxu1 %v21241_v30  ;;  %v21246_v22 = vld [vmem:[#allocation9 + $0xcc0] ss:$12 sps:$4 sm:$0xff]   ;;  %v21249_v30 = vld [vmem:[#allocation9 + $0xcc8] ss:$12 sps:$4 sm:$0xff]  }
 0x7fe   :  { %10373 = vmatpush1.bf16.msra.mxu0 %v21211_v41  ;;  %18167 = vmatpush3.bf16.msra.mxu1 %v21242_v44  ;;  %v21869_v41 = vld [vmem:[#allocation2 + $0x20] sm:$0xff]  ;;  %v21870_v44 = vld [vmem:[#allocation2 + $0x48] sm:$0xff] }
 0x7ff   :  { %10374 = vmatprep.subr.bf16.mxu0 %v21216_v48  ;;  %10793 = vmatprep.subr.bf16.mxu1 %v25551_v15  ;;  %v21250_v48 = vld [vmem:[#allocation9 + $0xcd8] ss:$12 sps:$4 sm:$0xff]  }
 0x800   :  { %9419 = vmatmul.mubr.bf16.gmra.mrb[0].mxu0 %v7156_v59  ;;  %9693 = vmatmul.mubr.bf16.gmra.mrb[48].mxu1 %v7156_v59  ;;  %v21256_v59 = vld [vmem:[#allocation9 + $0xcf4] ss:$12 sps:$4 sm:$0xff]  }
 0x801   :  { %17347 = vmatprep.mubr.msk.bf16.mxu0 %vm613_vm0, %v7161_v63  ;;  %17359 = vmatprep.mubr.msk.bf16.mxu1 %vm613_vm0, %v7161_v63  ;;  %v21257_v63 = vld [vmem:[#allocation9 + $0xcf8] ss:$12 sps:$4 sm:$0xff]  }
 0x802   :  { %10375 = vmatpush1.bf16.msra.mxu0 %v21214_v35  ;;  %v21253_v35 = vld [vmem:[#allocation9 + $0xce0] ss:$12 sps:$4 sm:$0xff]  }
 0x803   :  { %10376 = vmatprep.subr.bf16.mxu0 %v21221_v5  ;;  %v21254_v5 = vld [vmem:[#allocation9 + $0xcf0] ss:$12 sps:$4 sm:$0xff]  }
 0x806   :  { %10377 = vmatpush1.bf16.msra.mxu0 %v21219_v16  ;;  %v21260_v16 = vld [vmem:[#allocation9 + $0xd0c] ss:$12 sps:$4 sm:$0xff]  }
 0x807   :  { %10378 = vmatprep.subr.bf16.mxu0 %v21224_v28  ;;  %v21871_v28 = vld [vmem:[#allocation2 + $0x40] sm:$0xff] }
 0x808   :  { %9429 = vmatmul.mubr.bf16.gmra.mrb[4].mxu0 %v7160_v62  ;;  %9701 = vmatmul.mubr.bf16.gmra.mrb[52].mxu1 %v7160_v62  ;;  %v21258_v62 = vld [vmem:[#allocation9 + $0xd08] ss:$12 sps:$4 sm:$0xff]  }
 0x809   :  { %17348 = vmatprep.mubr.msk.bf16.mxu0 %vm613_vm0, %v7165_v31  ;;  %17360 = vmatprep.mubr.msk.bf16.mxu1 %vm613_vm0, %v7165_v31  ;;  %v21264_v31 = vld [vmem:[#allocation9 + $0xd24] ss:$12 sps:$4 sm:$0xff]  }
 0x80a   :  { %10379 = vmatpush1.bf16.msra.mxu0 %v21222_v58  ;;  %v21872_v58 = vld [vmem:[#allocation2 + $0x68] sm:$0xff] }
 0x80b   :  { %10380 = vmatprep.subr.bf16.mxu0 %v21229_v17  ;;  %v21261_v17 = vld [vmem:[#allocation9 + $0xd10] ss:$12 sps:$4 sm:$0xff]  }
 0x80e   :  { %10381 = vmatpush1.bf16.msra.mxu0 %v21227_v21  ;;  %v21262_v21 = vld [vmem:[#allocation9 + $0xd20] ss:$12 sps:$4 sm:$0xff]  }
 0x80f   :  { %10382 = vmatprep.subr.bf16.mxu0 %v21232_v0  ;;  %v21265_v0 = vld [vmem:[#allocation9 + $0xd28] ss:$12 sps:$4 sm:$0xff]  }
 0x810   :  { %9439 = vmatmul.mubr.bf16.gmra.mrb[8].mxu0 %v7164_v39  ;;  %9709 = vmatmul.mubr.bf16.gmra.mrb[56].mxu1 %v7164_v39  ;;  %v21873_v39 = vld [vmem:[#allocation2 + $0x60] sm:$0xff] }
 0x811   :  { %17349 = vmatprep.mubr.msk.bf16.mxu0 %vm613_vm0, %v7169_v23  ;;  %17361 = vmatprep.mubr.msk.bf16.mxu1 %vm613_vm0, %v7169_v23  ;;  %v21266_v23 = vld [vmem:[#allocation9 + $0xd38] ss:$12 sps:$4 sm:$0xff]  }
 0x812   :  { %10383 = vmatpush1.bf16.msra.mxu0 %v21230_v19  ;;  %v21268_v19 = vld [vmem:[#allocation9 + $0xd3c] ss:$12 sps:$4 sm:$0xff]  }
 0x813   :  { %10384 = vmatprep.subr.bf16.mxu0 %v21237_v10  ;;  %v21874_v10 = vld [vmem:[#allocation2 + $0x88] sm:$0xff] }
 0x816   :  { %10385 = vmatpush1.bf16.msra.mxu0 %v21235_v9  ;;  %v21269_v9 = vld [vmem:[#allocation9 + $0xd40] ss:$12 sps:$4 sm:$0xff]  }
 0x817   :  { %10386 = vmatprep.subr.bf16.mxu0 %v21240_v52 }
 0x818   :  { %9449 = vmatmul.mubr.bf16.gmra.mrb[12].mxu0 %v7168_v20  ;;  %9717 = vmatmul.mubr.bf16.gmra.mrb[60].mxu1 %v7168_v20 }
 0x819   :  { %17350 = vmatprep.mubr.msk.bf16.mxu0 %vm613_vm0, %v7173_v40  ;;  %17362 = vmatprep.mubr.msk.bf16.mxu1 %vm613_vm0, %v7173_v40 }
 0x81a   :  { %10387 = vmatpush1.bf16.msra.mxu0 %v21238_v54  ;;  %v21272_v54 = vld [vmem:[#allocation9 + $0xd54] ss:$12 sps:$4 sm:$0xff]  }
 0x81b   :  { %10388 = vmatprep.subr.bf16.mxu0 %v21245_v11 }
 0x81e   :  { %10389 = vmatpush1.bf16.msra.mxu0 %v21243_v45 }
 0x81f   :  { %10511 = vmatprep.subr.bf16.mxu0 %v21248_v2  ;;  %v21270_v2 = vld [vmem:[#allocation9 + $0xd50] ss:$12 sps:$4 sm:$0xff]  }
 0x820   :  { %9459 = vmatmul.mubr.bf16.gmra.mrb[16].mxu0 %v7172_v32  ;;  %9725 = vmatmul.mubr.bf16.gmra.mrb[64].mxu1 %v7172_v32  ;;  %v21273_v32 = vld [vmem:[#allocation9 + $0xd58] ss:$12 sps:$4 sm:$0xff]  }
 0x821   :  { %17351 = vmatprep.mubr.msk.bf16.mxu0 %vm613_vm0, %v7177_v60  ;;  %17363 = vmatprep.mubr.msk.bf16.mxu1 %vm613_vm0, %v7177_v60 }
 0x828   :  { %9469 = vmatmul.mubr.bf16.gmra.mrb[20].mxu0 %v7176_v36  ;;  %9733 = vmatmul.mubr.bf16.gmra.mrb[68].mxu1 %v7176_v36  ;;  %v21276_v36 = vld [vmem:[#allocation9 + $0xd6c] ss:$12 sps:$4 sm:$0xff]  }
 0x829   :  { %17352 = vmatprep.mubr.msk.bf16.mxu0 %vm613_vm0, %v7181_v24  ;;  %17364 = vmatprep.mubr.msk.bf16.mxu1 %vm613_vm0, %v7181_v24 }
 0x830   :  { %9479 = vmatmul.mubr.bf16.gmra.mrb[24].mxu0 %v7180_v53  ;;  %9741 = vmatmul.mubr.bf16.gmra.mrb[72].mxu1 %v7180_v53  ;;  %v21875_v53 = vld [vmem:[#allocation2 + $0x80] sm:$0xff] }
 0x831   :  { %17353 = vmatprep.mubr.msk.bf16.mxu0 %vm613_vm0, %v7185_v61  ;;  %17365 = vmatprep.mubr.msk.bf16.mxu1 %vm613_vm0, %v7185_v61  ;;  %v21876_v61 = vld [vmem:[#allocation2 + $0xa8] sm:$0xff] }
 0x838   :  { %9489 = vmatmul.mubr.bf16.gmra.mrb[28].mxu0 %v7184_v34  ;;  %9749 = vmatmul.mubr.bf16.gmra.mrb[76].mxu1 %v7184_v34 }
 0x839   :  { %10390 = vmatprep.mubr.bf16.mxu0 %v21868_v18  ;;  %10696 = vmatprep.mubr.bf16.mxu1 %v21868_v18  ;;  %v21274_v18 = vld [vmem:[#allocation9 + $0xd68] ss:$12 sps:$4 sm:$0xff]  }
 0x840   :  { %10391 = vmatmul.mubr.bf16.vlgmr.msra.gmra.mrb[32].mxu0 %v21869_v41  ;;  %10697 = vmatmul.mubr.bf16.vlgmr.msra.gmra.mrb[128].mxu1 %v21869_v41 }
 0x841   :  { %10400 = vmatprep.mubr.bf16.mxu0 %v21870_v44  ;;  %10512 = vmatpush1.bf16.msra.mxu0 %v21246_v22  ;;  %v21277_v22 = vld [vmem:[#allocation9 + $0xd70] ss:$12 sps:$4 sm:$0xff]  }
 0x842   :  { %10704 = vmatprep.mubr.bf16.mxu1 %v21870_v44  ;;  %10794 = vmatpush1.bf16.msra.mxu1 %v21249_v30 }
 0x843   :  { %10513 = vmatprep.subr.bf16.mxu0 %v21252_v25  ;;  %10795 = vmatprep.subr.bf16.mxu1 %v25551_v15  ;;  %v21280_v25 = vld [vmem:[#allocation9 + $0xd84] ss:$12 sps:$4 sm:$0xff]  }
 0x845   :  { %10514 = vmatpush1.bf16.msra.mxu0 %v21250_v48 }
 0x846   :  { %10796 = vmatpush1.bf16.msra.mxu1 %v21253_v35  ;;  %10515 = vmatprep.subr.bf16.mxu0 %v21256_v59  ;;  %v21278_v35 = vld [vmem:[#allocation9 + $0xd80] ss:$12 sps:$4 sm:$0xff]   ;;  %v21281_v59 = vld [vmem:[#allocation9 + $0xd88] ss:$12 sps:$4 sm:$0xff]  }
 0x847   :  { %10797 = vmatprep.subr.bf16.mxu1 %v25551_v15 }
 0x848   :  { %10401 = vmatmul.mubr.bf16.gmra.mrb[36].mxu0 %v21871_v28  ;;  %10705 = vmatmul.mubr.bf16.gmra.mrb[132].mxu1 %v21871_v28  ;;  %v21878_v28 = vld [vmem:[#allocation2 + $0xc8] sm:$0xff] }
 0x849   :  { %10410 = vmatprep.mubr.bf16.mxu0 %v21872_v58  ;;  %10712 = vmatprep.mubr.bf16.mxu1 %v21872_v58 }
 0x84a   :  { %10516 = vmatpush1.bf16.msra.mxu0 %v21254_v5  ;;  %10798 = vmatpush1.bf16.msra.mxu1 %v21257_v63 }
 0x84b   :  { %10517 = vmatprep.subr.bf16.mxu0 %v21260_v16  ;;  %10799 = vmatprep.subr.bf16.mxu1 %v25551_v15  ;;  %v21877_v16 = vld [vmem:[#allocation2 + $0xa0] sm:$0xff] }
 0x84e   :  { %10518 = vmatpush1.bf16.msra.mxu0 %v21258_v62  ;;  %10800 = vmatpush1.bf16.msra.mxu1 %v21261_v17  ;;  %v21282_v62 = vld [vmem:[#allocation9 + $0xd98] ss:$12 sps:$4 sm:$0xff]   ;;  %v21285_v17 = vld [vmem:[#allocation9 + $0xda0] ss:$12 sps:$4 sm:$0xff]  }
 0x84f   :  { %10519 = vmatprep.subr.bf16.mxu0 %v21264_v31  ;;  %10801 = vmatprep.subr.bf16.mxu1 %v25551_v15 }
 0x850   :  { %10411 = vmatmul.mubr.bf16.gmra.mrb[40].mxu0 %v21873_v39  ;;  %10713 = vmatmul.mubr.bf16.gmra.mrb[136].mxu1 %v21873_v39 }
 0x851   :  { %10420 = vmatprep.mubr.bf16.mxu0 %v21874_v10  ;;  %10720 = vmatprep.mubr.bf16.mxu1 %v21874_v10  ;;  %v21286_v10 = vld [vmem:[#allocation9 + $0xdb0] ss:$12 sps:$4 sm:$0xff]  }
 0x852   :  { %10520 = vmatpush1.bf16.msra.mxu0 %v21262_v21  ;;  %10802 = vmatpush1.bf16.msra.mxu1 %v21265_v0  ;;  %v21288_v21 = vld [vmem:[#allocation9 + $0xdb4] ss:$12 sps:$4 sm:$0xff]  }
 0x853   :  { %v18080_v52 = vpop.f32.mrb[80].mxu1  ;;  %10521 = vmatprep.subr.bf16.mxu0 %v21268_v19  ;;  %10803 = vmatprep.subr.bf16.mxu1 %v25551_v15 }
 0x854   :  { %v18081_v20 = vpop.f32.mrb[81].mxu1 }
 0x855   :  { %v18082_v11 = vadd.f32 %v18081_v20, %v18080_v52  ;;  %v18083_v40 = vpop.f32.mrb[82].mxu1  ;;  %v21880_v20 = vld [vmem:[#allocation2 + $0xe8] sm:$0xff] }
 0x856   :  { %v18084_v45 = vpop.f32.mrb[83].mxu1  ;;  %10522 = vmatpush1.bf16.msra.mxu0 %v21266_v23  ;;  %10804 = vmatpush1.bf16.msra.mxu1 %v21269_v9  ;;  %v21289_v23 = vld [vmem:[#allocation9 + $0xdb8] ss:$12 sps:$4 sm:$0xff]  }
 0x857   :  { %v18085_v60 = vadd.f32 %v18084_v45, %v18083_v40  ;;  %10523 = vmatprep.subr.bf16.mxu0 %v21272_v54  ;;  %10805 = vmatprep.subr.bf16.mxu1 %v25551_v15  ;;  %v24288_v24 = vadd.f32 %v18082_v11, %v24178_v27  ;;  %v21879_v54 = vld [vmem:[#allocation2 + $0xc0] sm:$0xff]  ;;  %v21290_v40 = vld [vmem:[#allocation9 + $0xdc8] ss:$12 sps:$4 sm:$0xff]  }
 0x858   :  { %10421 = vmatmul.mubr.bf16.gmra.mrb[44].mxu0 %v21875_v53  ;;  %10721 = vmatmul.mubr.bf16.gmra.mrb[140].mxu1 %v21875_v53  ;;  %v21293_v45 = vld [vmem:[#allocation9 + $0xdd0] ss:$12 sps:$4 sm:$0xff]  }
 0x859   :  { %10430 = vmatprep.mubr.bf16.mxu0 %v21876_v61  ;;  %10728 = vmatprep.mubr.bf16.mxu1 %v21876_v61  ;;  %v24291_v34 = vadd.f32 %v18085_v60, %v24180_v46  ;;  %v21284_v46 = vld [vmem:[#allocation9 + $0xd9c] ss:$12 sps:$4 sm:$0xff]   ;;  %v21294_v61 = vld [vmem:[#allocation9 + $0xde0] ss:$12 sps:$4 sm:$0xff]  }
 0x85a   :  { %10524 = vmatpush1.bf16.msra.mxu0 %v21270_v2  ;;  %10806 = vmatpush1.bf16.msra.mxu1 %v21273_v32  ;;  %v21296_v32 = vld [vmem:[#allocation9 + $0xde4] ss:$12 sps:$4 sm:$0xff]  }
 0x85b   :  { %v18086_v30 = vpop.f32.mrb[84].mxu1  ;;  %10525 = vmatprep.subr.bf16.mxu0 %v21276_v36  ;;  %10807 = vmatprep.subr.bf16.mxu1 %v25551_v15 }
 0x85c   :  { %v18087_v27 = vpop.f32.mrb[85].mxu1 }
 0x85d   :  { %v18088_v41 = vadd.f32 %v18087_v27, %v18086_v30  ;;  %v18089_v44 = vpop.f32.mrb[86].mxu1  ;;  %v21882_v27 = vld [vmem:[#allocation2 + $0x108] sm:$0xff] }
 0x85e   :  { %v18090_v48 = vpop.f32.mrb[87].mxu1  ;;  %10526 = vmatpush1.bf16.msra.mxu0 %v21274_v18  ;;  %10808 = vmatpush1.bf16.msra.mxu1 %v21277_v22  ;;  %v21297_v18 = vld [vmem:[#allocation9 + $0xde8] ss:$12 sps:$4 sm:$0xff]  }
 0x85f   :  { %v18091_v5 = vadd.f32 %v18090_v48, %v18089_v44  ;;  %10527 = vmatprep.subr.bf16.mxu0 %v21280_v25  ;;  %10809 = vmatprep.subr.bf16.mxu1 %v25551_v15  ;;  %v24296_v63 = vadd.f32 %v18088_v41, %v24187_v1  ;;  %v21881_v25 = vld [vmem:[#allocation2 + $0xe0] sm:$0xff]  ;;  %v21298_v44 = vld [vmem:[#allocation9 + $0xdf8] ss:$12 sps:$4 sm:$0xff]  }
 0x860   :  { %10431 = vmatmul.mubr.bf16.gmra.mrb[48].mxu0 %v21877_v16  ;;  %10729 = vmatmul.mubr.bf16.gmra.mrb[144].mxu1 %v21877_v16  ;;  %v21301_v48 = vld [vmem:[#allocation9 + $0xe00] ss:$12 sps:$4 sm:$0xff]  }
 0x861   :  { %10440 = vmatprep.mubr.bf16.mxu0 %v21878_v28  ;;  %10736 = vmatprep.mubr.bf16.mxu1 %v21878_v28  ;;  %v24299_v58 = vadd.f32 %v18091_v5, %v24189_v50  ;;  %v21292_v50 = vld [vmem:[#allocation9 + $0xdcc] ss:$12 sps:$4 sm:$0xff]  }
 0x862   :  { %10528 = vmatpush1.bf16.msra.mxu0 %v21278_v35  ;;  %10810 = vmatpush1.bf16.msra.mxu1 %v21281_v59  ;;  %v21304_v59 = vld [vmem:[#allocation9 + $0x874] ss:$12 sps:$4 sm:$0xff]  }
 0x863   :  { %v18092_v31 = vpop.f32.mrb[88].mxu1  ;;  %10529 = vmatprep.subr.bf16.mxu0 %v21284_v46  ;;  %10811 = vmatprep.subr.bf16.mxu1 %v25551_v15 }
 0x864   :  { %v18093_v1 = vpop.f32.mrb[89].mxu1 }
 0x865   :  { %v18094_v0 = vadd.f32 %v18093_v1, %v18092_v31  ;;  %v18095_v19 = vpop.f32.mrb[90].mxu1  ;;  %v21884_v31 = vld [vmem:[#allocation2 + $0x128] sm:$0xff] }
 0x866   :  { %v18096_v39 = vpop.f32.mrb[91].mxu1  ;;  %10530 = vmatpush1.bf16.msra.mxu0 %v21282_v62  ;;  %10812 = vmatpush1.bf16.msra.mxu1 %v21285_v17  ;;  %v21883_v17 = vld [vmem:[#allocation2 + $0x100] sm:$0xff] }
 0x867   :  { %v18097_v9 = vadd.f32 %v18096_v39, %v18095_v19  ;;  %10531 = vmatprep.subr.bf16.mxu0 %v21288_v21  ;;  %10813 = vmatprep.subr.bf16.mxu1 %v25551_v15  ;;  %v24304_v52 = vadd.f32 %v18094_v0, %v24195_v6 }
 0x868   :  { %10441 = vmatmul.mubr.bf16.gmra.mrb[52].mxu0 %v21879_v54  ;;  %10737 = vmatmul.mubr.bf16.gmra.mrb[148].mxu1 %v21879_v54 }
 0x869   :  { %10450 = vmatprep.mubr.bf16.mxu0 %v21880_v20  ;;  %10744 = vmatprep.mubr.bf16.mxu1 %v21880_v20  ;;  %v24307_v11 = vadd.f32 %v18097_v9, %v24197_v49  ;;  %v21300_v49 = vld [vmem:[#allocation9 + $0xdfc] ss:$12 sps:$4 sm:$0xff]  }
 0x86a   :  { %10532 = vmatpush1.bf16.msra.mxu0 %v21286_v10  ;;  %10814 = vmatpush1.bf16.msra.mxu1 %v21289_v23 }
 0x86b   :  { %v18098_v2 = vpop.f32.mrb[92].mxu1  ;;  %10533 = vmatprep.subr.bf16.mxu0 %v21292_v50  ;;  %10815 = vmatprep.subr.bf16.mxu1 %v25551_v15  ;;  %v21886_v50 = vld [vmem:[#allocation2 + $0x148] sm:$0xff] }
 0x86c   :  { %v18099_v6 = vpop.f32.mrb[93].mxu1 }
 0x86d   :  { %v18100_v60 = vadd.f32 %v18099_v6, %v18098_v2  ;;  %v18101_v36 = vpop.f32.mrb[94].mxu1 }
 0x86e   :  { %v18102_v53 = vpop.f32.mrb[95].mxu1  ;;  %10534 = vmatpush1.bf16.msra.mxu0 %v21290_v40  ;;  %10816 = vmatpush1.bf16.msra.mxu1 %v21293_v45 }
 0x86f   :  { %v18103_v22 = vadd.f32 %v18102_v53, %v18101_v36  ;;  %10535 = vmatprep.subr.bf16.mxu0 %v21296_v32  ;;  %10817 = vmatprep.subr.bf16.mxu1 %v25551_v15  ;;  %v24312_v30 = vadd.f32 %v18100_v60, %v24203_v7  ;;  %v21305_v7 = vld [vmem:[#allocation9 + $0x938] ss:$12 sps:$4 sm:$0xff]  }
 0x870   :  { %10451 = vmatmul.mubr.bf16.gmra.mrb[56].mxu0 %v21881_v25  ;;  %10745 = vmatmul.mubr.bf16.gmra.mrb[152].mxu1 %v21881_v25  ;;  %v21888_v60 = vld [vmem:[#allocation2 + $0x168] sm:$0xff] }
 0x871   :  { %10460 = vmatprep.mubr.bf16.mxu0 %v21882_v27  ;;  %10752 = vmatprep.mubr.bf16.mxu1 %v21882_v27  ;;  %v24315_v41 = vadd.f32 %v18103_v22, %v24205_v56  ;;  %v21890_v27 = vld [vmem:[#allocation2 + $0x188] sm:$0xff] }
 0x872   :  { %10536 = vmatpush1.bf16.msra.mxu0 %v21294_v61  ;;  %10818 = vmatpush1.bf16.msra.mxu1 %v21297_v18 }
 0x873   :  { %v18104_v35 = vpop.f32.mrb[96].mxu1  ;;  %10537 = vmatprep.subr.bf16.mxu0 %v21300_v49  ;;  %10819 = vmatprep.subr.bf16.mxu1 %v25551_v15 }
 0x874   :  { %v18105_v5 = vpop.f32.mrb[97].mxu1 }
 0x875   :  { %v18106_v46 = vadd.f32 %v18105_v5, %v18104_v35  ;;  %v18107_v16 = vpop.f32.mrb[98].mxu1 }
 0x876   :  { %v18108_v28 = vpop.f32.mrb[99].mxu1  ;;  %10538 = vmatpush1.bf16.msra.mxu0 %v21298_v44  ;;  %10820 = vmatpush1.bf16.msra.mxu1 %v21301_v48 }
 0x877   :  { %v18109_v62 = vadd.f32 %v18108_v28, %v18107_v16  ;;  %11402 = vmatprep.subr.bf16.mxu0 %v21304_v59  ;;  %18240 = vmatprep.subr.bf16.mxu1 %v21305_v7  ;;  %v24319_v56 = vadd.f32 %v18106_v46, %v24211_v14  ;;  %v21885_v14 = vld [vmem:[#allocation2 + $0x120] sm:$0xff]  ;;  %v21892_v16 = vld [vmem:[#allocation2 + $0x38] sm:$0xff] }
 0x878   :  { %10461 = vmatmul.mubr.bf16.gmra.mrb[60].mxu0 %v21883_v17  ;;  %10753 = vmatmul.mubr.bf16.gmra.mrb[156].mxu1 %v21883_v17 }
 0x879   :  { %10470 = vmatprep.mubr.bf16.mxu0 %v21884_v31  ;;  %10760 = vmatprep.mubr.bf16.mxu1 %v21884_v31  ;;  %v24322_v21 = vadd.f32 %v18109_v62, %v24213_v57 }
 0x87b   :  { %v18110_v1 = vpop.f32.mrb[100].mxu1 }
 0x87c   :  { %v18111_v0 = vpop.f32.mrb[101].mxu1 }
 0x87d   :  { %v18112_v19 = vadd.f32 %v18111_v0, %v18110_v1  ;;  %v18113_v39 = vpop.f32.mrb[102].mxu1  ;;  %v21302_v0 = vld [vmem:[#allocation9 + $0x870] ss:$12 sps:$4 sm:$0xff]  }
 0x87e   :  { %v18114_v10 = vpop.f32.mrb[103].mxu1 }
 0x87f   :  { %v18115_v23 = vadd.f32 %v18114_v10, %v18113_v39  ;;  %v24325_v9 = vadd.f32 %v18112_v19, %v24218_v29  ;;  %v21887_v29 = vld [vmem:[#allocation2 + $0x140] sm:$0xff]  ;;  %v21306_v19 = vld [vmem:[#allocation9 + $0x878] ss:$12 sps:$4 sm:$0xff]  }
 0x880   :  { %10471 = vmatmul.mubr.bf16.gmra.mrb[64].mxu0 %v21885_v14  ;;  %10761 = vmatmul.mubr.bf16.gmra.mrb[160].mxu1 %v21885_v14  ;;  %v21309_v39 = vld [vmem:[#allocation9 + $0x88c] ss:$12 sps:$4 sm:$0xff]   ;;  %v21313_v10 = vld [vmem:[#allocation9 + $0x950] ss:$12 sps:$4 sm:$0xff]  }
 0x881   :  { %10480 = vmatprep.mubr.bf16.mxu0 %v21886_v50  ;;  %10768 = vmatprep.mubr.bf16.mxu1 %v21886_v50  ;;  %v24328_v54 = vadd.f32 %v18115_v23, %v24220_v43  ;;  %v21893_v14 = vld [vmem:[#allocation2 + $0x30] sm:$0xff]  ;;  %v21894_v50 = vld [vmem:[#allocation2 + $0x58] sm:$0xff] }
 0x883   :  { %v18116_v57 = vpop.f32.mrb[104].mxu1 }
 0x884   :  { %v18117_v20 = vpop.f32.mrb[105].mxu1 }
 0x885   :  { %v18118_v40 = vadd.f32 %v18117_v20, %v18116_v57  ;;  %v18119_v45 = vpop.f32.mrb[106].mxu1  ;;  %v21307_v57 = vld [vmem:[#allocation9 + $0x888] ss:$12 sps:$4 sm:$0xff]   ;;  %v21314_v20 = vld [vmem:[#allocation9 + $0x890] ss:$12 sps:$4 sm:$0xff]  }
 0x886   :  { %v18120_v2 = vpop.f32.mrb[107].mxu1 }
 0x887   :  { %v18121_v32 = vadd.f32 %v18120_v2, %v18119_v45  ;;  %v24331_v6 = vadd.f32 %v18118_v40, %v24226_v38  ;;  %v21889_v38 = vld [vmem:[#allocation2 + $0x160] sm:$0xff]  ;;  %v21312_v45 = vld [vmem:[#allocation9 + $0x8a4] ss:$12 sps:$4 sm:$0xff]  }
 0x888   :  { %10481 = vmatmul.mubr.bf16.gmra.mrb[68].mxu0 %v21887_v29  ;;  %10769 = vmatmul.mubr.bf16.gmra.mrb[164].mxu1 %v21887_v29 }
 0x889   :  { %10490 = vmatprep.mubr.bf16.mxu0 %v21888_v60  ;;  %10776 = vmatprep.mubr.bf16.mxu1 %v21888_v60  ;;  %v24334_v36 = vadd.f32 %v18121_v32, %v24228_v55 }
 0x88b   :  { %v18122_v43 = vpop.f32.mrb[108].mxu1 }
 0x88c   :  { %v18123_v53 = vpop.f32.mrb[109].mxu1 }
 0x88d   :  { %v18124_v61 = vadd.f32 %v18123_v53, %v18122_v43  ;;  %v18125_v18 = vpop.f32.mrb[110].mxu1  ;;  %v21310_v43 = vld [vmem:[#allocation9 + $0x8a0] ss:$12 sps:$4 sm:$0xff]   ;;  %v21322_v53 = vld [vmem:[#allocation9 + $0x8a8] ss:$12 sps:$4 sm:$0xff]  }
 0x88e   :  { %v18126_v22 = vpop.f32.mrb[111].mxu1 }
 0x88f   :  { %v18127_v49 = vadd.f32 %v18126_v22, %v18125_v18  ;;  %v24337_v25 = vadd.f32 %v18124_v61, %v24234_v26  ;;  %v21891_v26 = vld [vmem:[#allocation2 + $0x180] sm:$0xff] }
 0x890   :  { %10491 = vmatmul.mubr.bf16.gmra.mrb[72].mxu0 %v21889_v38  ;;  %10777 = vmatmul.mubr.bf16.gmra.mrb[168].mxu1 %v21889_v38  ;;  %v21329_v18 = vld [vmem:[#allocation9 + $0x980] ss:$12 sps:$4 sm:$0xff]   ;;  %v21896_v38 = vld [vmem:[#allocation2 + $0x78] sm:$0xff] }
 0x891   :  { %10500 = vmatprep.mubr.bf16.mxu0 %v21890_v27  ;;  %10784 = vmatprep.mubr.bf16.mxu1 %v21890_v27  ;;  %v24340_v44 = vadd.f32 %v18127_v49, %v24236_v47  ;;  %v21895_v49 = vld [vmem:[#allocation2 + $0x50] sm:$0xff] }
 0x893   :  { %25898 = vst [vmem:[#allocation25_spill] sm:$0xff] %v24340_v44  ;;  %v18128_v55 = vpop.f32.mrb[112].mxu1 }
 0x894   :  { %v18129_v48 = vpop.f32.mrb[113].mxu1 }
 0x895   :  { %v18130_v35 = vadd.f32 %v18129_v48, %v18128_v55  ;;  %v18131_v59 = vpop.f32.mrb[114].mxu1  ;;  %v21315_v55 = vld [vmem:[#allocation9 + $0x8b8] ss:$12 sps:$4 sm:$0xff]   ;;  %v21330_v48 = vld [vmem:[#allocation9 + $0x8c0] ss:$12 sps:$4 sm:$0xff]  }
 0x896   :  { %v18132_v7 = vpop.f32.mrb[115].mxu1 }
 0x897   :  { %v18133_v5 = vadd.f32 %v18132_v7, %v18131_v59  ;;  %v24343_v46 = vadd.f32 %v18130_v35, %v24240_v8  ;;  %v21320_v59 = vld [vmem:[#allocation9 + $0x8d4] ss:$12 sps:$4 sm:$0xff]  }
 0x898   :  { %10501 = vmatmul.mubr.bf16.gmra.mrb[76].mxu0 %v21891_v26  ;;  %10785 = vmatmul.mubr.bf16.gmra.mrb[172].mxu1 %v21891_v26 }
 0x899   :  { %25899 = vst [vmem:[#allocation26_spill] sm:$0xff] %v24343_v46  ;;  %17456 = vmatprep.mubr.msk.bf16.mxu0 %vm613_vm0, %v21892_v16  ;;  %17468 = vmatprep.mubr.msk.bf16.mxu1 %vm613_vm0, %v21892_v16  ;;  %v24348_v47 = vadd.f32 %v18133_v5, %v24242_v37  ;;  %v21521_v46 = vld [vmem:[#allocation9 + $0x7e8] ss:$12 sps:$4 sm:$0xff]  }
 0x89b   :  { %25900 = vst [vmem:[#allocation27_spill] sm:$0xff] %v24348_v47  ;;  %v18134_v28 = vpop.f32.mrb[116].mxu1  ;;  %v24510_v47 = vld [vmem:[#allocation2 + $0xa0] sm:$0xff] }
 0x89c   :  { %v18135_v62 = vpop.f32.mrb[117].mxu1 }
 0x89d   :  { %v18136_v17 = vadd.f32 %v18135_v62, %v18134_v28  ;;  %v18137_v31 = vpop.f32.mrb[118].mxu1  ;;  %v21318_v28 = vld [vmem:[#allocation9 + $0x8d0] ss:$12 sps:$4 sm:$0xff]   ;;  %v21338_v62 = vld [vmem:[#allocation9 + $0x8d8] ss:$12 sps:$4 sm:$0xff]  }
 0x89e   :  { %v18138_v1 = vpop.f32.mrb[119].mxu1 }
 0x89f   :  { %v18139_v8 = vadd.f32 %v18138_v1, %v18137_v31  ;;  %v24351_v23 = vadd.f32 %v18136_v17, %v24244_v51  ;;  %v21321_v51 = vld [vmem:[#allocation9 + $0x968] ss:$12 sps:$4 sm:$0xff]   ;;  %v21345_v31 = vld [vmem:[#allocation9 + $0x9b0] ss:$12 sps:$4 sm:$0xff]  }
 0x8a0   :  { %10544 = vmatmul.mubr.bf16.vlgmr.msra.gmra.mrb[32].mxu0 %v21893_v14  ;;  %10826 = vmatmul.mubr.bf16.vlgmr.msra.gmra.mrb[176].mxu1 %v21893_v14  ;;  %v21328_v14 = vld [vmem:[#allocation9 + $0x904] ss:$12 sps:$4 sm:$0xff]  }
 0x8a1   :  { %25901 = vst [vmem:[#allocation28_spill] sm:$0xff] %v24351_v23  ;;  %17457 = vmatprep.mubr.msk.bf16.mxu0 %vm613_vm0, %v21894_v50  ;;  %17469 = vmatprep.mubr.msk.bf16.mxu1 %vm613_vm0, %v21894_v50  ;;  %v24356_v37 = vadd.f32 %v18139_v8, %v24246_v42  ;;  %v21317_v42 = vld [vmem:[#allocation9 + $0x8bc] ss:$12 sps:$4 sm:$0xff]   ;;  %v21326_v50 = vld [vmem:[#allocation9 + $0x900] ss:$12 sps:$4 sm:$0xff]  }
 0x8a2   :  { %11403 = vmatpush1.bf16.msra.mxu0 %v21302_v0  ;;  %18241 = vmatpush3.bf16.msra.mxu1 %v21306_v19  ;;  %v21897_v0 = vld [vmem:[#allocation2 + $0x70] sm:$0xff]  ;;  %v21898_v19 = vld [vmem:[#allocation2 + $0x98] sm:$0xff] }
 0x8a3   :  { %25902 = vst [vmem:[#allocation29_spill] sm:$0xff] %v24356_v37  ;;  %v18140_v40 = vpop.f32.mrb[120].mxu1  ;;  %11404 = vmatprep.subr.bf16.mxu0 %v21309_v39  ;;  %18242 = vmatprep.subr.bf16.mxu1 %v21313_v10  ;;  %v21323_v39 = vld [vmem:[#allocation9 + $0x8e8] ss:$12 sps:$4 sm:$0xff]   ;;  %v21346_v10 = vld [vmem:[#allocation9 + $0x8f0] ss:$12 sps:$4 sm:$0xff]  }
 0x8a4   :  { %v18141_v2 = vpop.f32.mrb[121].mxu1  ;;  %v21513_v37 = vld [vmem:[#allocation9 + $0x7b8] ss:$12 sps:$4 sm:$0xff]  }
 0x8a5   :  { %v18142_v32 = vadd.f32 %v18141_v2, %v18140_v40  ;;  %v18143_v29 = vpop.f32.mrb[122].mxu1  ;;  %v21361_v40 = vld [vmem:[#allocation9 + $0x9e0] ss:$12 sps:$4 sm:$0xff]  }
 0x8a6   :  { %v18144_v60 = vpop.f32.mrb[123].mxu1  ;;  %11405 = vmatpush1.bf16.msra.mxu0 %v21307_v57  ;;  %18243 = vmatpush3.bf16.msra.mxu1 %v21314_v20  ;;  %v21354_v57 = vld [vmem:[#allocation9 + $0x908] ss:$12 sps:$4 sm:$0xff]   ;;  %v21362_v2 = vld [vmem:[#allocation9 + $0x920] ss:$12 sps:$4 sm:$0xff]  }
 0x8a7   :  { %v18145_v61 = vadd.f32 %v18144_v60, %v18143_v29  ;;  %11406 = vmatprep.subr.bf16.mxu0 %v21312_v45  ;;  %18244 = vmatprep.subr.bf16.mxu1 %v21321_v51  ;;  %v24359_v22 = vadd.f32 %v18142_v32, %v24250_v13  ;;  %v21337_v13 = vld [vmem:[#allocation9 + $0x998] ss:$12 sps:$4 sm:$0xff]   ;;  %v21333_v20 = vld [vmem:[#allocation9 + $0x91c] ss:$12 sps:$4 sm:$0xff]   ;;  %v21899_v45 = vld [vmem:[#allocation2 + $0x90] sm:$0xff] }
 0x8a8   :  { %10554 = vmatmul.mubr.bf16.gmra.mrb[36].mxu0 %v21895_v49  ;;  %10834 = vmatmul.mubr.bf16.gmra.mrb[180].mxu1 %v21895_v49  ;;  %v21331_v51 = vld [vmem:[#allocation9 + $0x918] ss:$12 sps:$4 sm:$0xff]   ;;  %v21336_v32 = vld [vmem:[#allocation9 + $0x934] ss:$12 sps:$4 sm:$0xff]   ;;  %v21334_v29 = vld [vmem:[#allocation9 + $0x930] ss:$12 sps:$4 sm:$0xff]  }
 0x8a9   :  { %25903 = vst [vmem:[#allocation30_spill] sm:$0xff] %v24359_v22  ;;  %17458 = vmatprep.mubr.msk.bf16.mxu0 %vm613_vm0, %v21896_v38  ;;  %17470 = vmatprep.mubr.msk.bf16.mxu1 %vm613_vm0, %v21896_v38  ;;  %v24364_v27 = vadd.f32 %v18145_v61, %v24252_v3  ;;  %v21325_v3 = vld [vmem:[#allocation9 + $0x8ec] ss:$12 sps:$4 sm:$0xff]   ;;  %v21339_v61 = vld [vmem:[#allocation9 + $0x948] ss:$12 sps:$4 sm:$0xff]  }
 0x8aa   :  { %11407 = vmatpush1.bf16.msra.mxu0 %v21310_v43  ;;  %18245 = vmatpush3.bf16.msra.mxu1 %v21322_v53  ;;  %v21341_v60 = vld [vmem:[#allocation9 + $0x94c] ss:$12 sps:$4 sm:$0xff]   ;;  %v21349_v49 = vld [vmem:[#allocation9 + $0x97c] ss:$12 sps:$4 sm:$0xff]  }
 0x8ab   :  { %25904 = vst [vmem:[#allocation31_spill] sm:$0xff] %v24364_v27  ;;  %v18146_v35 = vpop.f32.mrb[124].mxu1  ;;  %11408 = vmatprep.subr.bf16.mxu0 %v21317_v42  ;;  %18246 = vmatprep.subr.bf16.mxu1 %v21329_v18  ;;  %v21901_v43 = vld [vmem:[#allocation2 + $0xb0] sm:$0xff]  ;;  %v21902_v53 = vld [vmem:[#allocation2 + $0xd8] sm:$0xff] }
 0x8ac   :  { %v18147_v7 = vpop.f32.mrb[125].mxu1  ;;  %v21344_v42 = vld [vmem:[#allocation9 + $0x964] ss:$12 sps:$4 sm:$0xff]   ;;  %v21342_v18 = vld [vmem:[#allocation9 + $0x960] ss:$12 sps:$4 sm:$0xff]  }
 0x8ad   :  { %v18148_v5 = vadd.f32 %v18147_v7, %v18146_v35  ;;  %v18149_v26 = vpop.f32.mrb[126].mxu1  ;;  %v21903_v38 = vld [vmem:[#allocation2 + $0xd0] sm:$0xff]  ;;  %v21352_v35 = vld [vmem:[#allocation9 + $0x994] ss:$12 sps:$4 sm:$0xff]  }
 0x8ae   :  { %v18150_v16 = vpop.f32.mrb[127].mxu1  ;;  %11409 = vmatpush1.bf16.msra.mxu0 %v21315_v55  ;;  %18247 = vmatpush3.bf16.msra.mxu1 %v21330_v48  ;;  %v21904_v55 = vld [vmem:[#allocation2 + $0xf8] sm:$0xff]  ;;  %v21905_v7 = vld [vmem:[#allocation2 + $0xf0] sm:$0xff] }
 0x8af   :  { %v18151_v17 = vadd.f32 %v18150_v16, %v18149_v26  ;;  %11410 = vmatprep.subr.bf16.mxu0 %v21320_v59  ;;  %18248 = vmatprep.subr.bf16.mxu1 %v21337_v13  ;;  %v24367_v1 = vadd.f32 %v18148_v5, %v24258_v4  ;;  %v21353_v4 = vld [vmem:[#allocation9 + $0x9c8] ss:$12 sps:$4 sm:$0xff]   ;;  %v21347_v48 = vld [vmem:[#allocation9 + $0x978] ss:$12 sps:$4 sm:$0xff]   ;;  %v21350_v59 = vld [vmem:[#allocation9 + $0x990] ss:$12 sps:$4 sm:$0xff]  }
 0x8b0   :  { %10564 = vmatmul.mubr.bf16.gmra.mrb[40].mxu0 %v21897_v0  ;;  %10842 = vmatmul.mubr.bf16.gmra.mrb[184].mxu1 %v21897_v0  ;;  %v21357_v13 = vld [vmem:[#allocation9 + $0x9ac] ss:$12 sps:$4 sm:$0xff]   ;;  %v21355_v26 = vld [vmem:[#allocation9 + $0x9a8] ss:$12 sps:$4 sm:$0xff]   ;;  %v21360_v16 = vld [vmem:[#allocation9 + $0x9c4] ss:$12 sps:$4 sm:$0xff]  }
 0x8b1   :  { %25905 = vst [vmem:[#allocation32_spill] sm:$0xff] %v24367_v1  ;;  %17459 = vmatprep.mubr.msk.bf16.mxu0 %vm613_vm0, %v21898_v19  ;;  %17471 = vmatprep.mubr.msk.bf16.mxu1 %vm613_vm0, %v21898_v19  ;;  %v24372_v8 = vadd.f32 %v18151_v17, %v24260_v33  ;;  %v21900_v33 = vld [vmem:[#allocation2 + $0xb8] sm:$0xff]  ;;  %v21907_v17 = vld [vmem:[#allocation2 + $0x110] sm:$0xff] }
 0x8b2   :  { %11411 = vmatpush1.bf16.msra.mxu0 %v21318_v28  ;;  %18249 = vmatpush3.bf16.msra.mxu1 %v21338_v62  ;;  %v21906_v5 = vld [vmem:[#allocation2 + $0x118] sm:$0xff]  ;;  %v21358_v28 = vld [vmem:[#allocation9 + $0x9c0] ss:$12 sps:$4 sm:$0xff]   ;;  %v21365_v62 = vld [vmem:[#allocation9 + $0x9dc] ss:$12 sps:$4 sm:$0xff]  }
 0x8b3   :  { %25906 = vst [vmem:[#allocation33_spill] sm:$0xff] %v24372_v8  ;;  %11412 = vmatprep.subr.bf16.mxu0 %v21325_v3  ;;  %18250 = vmatprep.subr.bf16.mxu1 %v21345_v31  ;;  %v21908_v3 = vld [vmem:[#allocation2 + $0x138] sm:$0xff]  ;;  %v21909_v19 = vld [vmem:[#allocation2 + $0x130] sm:$0xff] }
 0x8b4   :  { %v21363_v31 = vld [vmem:[#allocation9 + $0x9d8] ss:$12 sps:$4 sm:$0xff]   ;;  %v21368_v0 = vld [vmem:[#allocation9 + $0x9f4] ss:$12 sps:$4 sm:$0xff]   ;;  %v21510_v22 = vld [vmem:[#allocation9 + $0x7b0] ss:$12 sps:$4 sm:$0xff]  }
 0x8b6   :  { %11413 = vmatpush1.bf16.msra.mxu0 %v21323_v39  ;;  %18251 = vmatpush3.bf16.msra.mxu1 %v21346_v10  ;;  %v21910_v39 = vld [vmem:[#allocation2 + $0x158] sm:$0xff]  ;;  %v21911_v10 = vld [vmem:[#allocation2 + $0x150] sm:$0xff] }
 0x8b7   :  { %11414 = vmatprep.subr.bf16.mxu0 %v21328_v14  ;;  %18252 = vmatprep.subr.bf16.mxu1 %v21353_v4  ;;  %v21912_v14 = vld [vmem:[#allocation2 + $0x178] sm:$0xff]  ;;  %v21913_v4 = vld [vmem:[#allocation2 + $0x170] sm:$0xff] }
 0x8b8   :  { %10574 = vmatmul.mubr.bf16.gmra.mrb[44].mxu0 %v21899_v45  ;;  %10850 = vmatmul.mubr.bf16.gmra.mrb[188].mxu1 %v21899_v45  ;;  %v21369_v45 = vld [vmem:[#allocation9 + $0x9f8] ss:$12 sps:$4 sm:$0xff]  }
 0x8b9   :  { %17460 = vmatprep.mubr.msk.bf16.mxu0 %vm613_vm0, %v21900_v33  ;;  %17472 = vmatprep.mubr.msk.bf16.mxu1 %vm613_vm0, %v21900_v33  ;;  %v21372_v33 = vld [vmem:[#allocation9 + $0xa0c] ss:$12 sps:$4 sm:$0xff]  }
 0x8ba   :  { %11415 = vmatpush1.bf16.msra.mxu0 %v21326_v50  ;;  %18253 = vmatpush3.bf16.msra.mxu1 %v21354_v57  ;;  %v21914_v50 = vld [vmem:[#allocation2 + $0x198] sm:$0xff]  ;;  %v21915_v57 = vld [vmem:[#allocation2 + $0x190] sm:$0xff] }
 0x8bb   :  { %11416 = vmatprep.subr.bf16.mxu0 %v21333_v20  ;;  %18254 = vmatprep.subr.bf16.mxu1 %v21361_v40  ;;  %v21916_v20 = vld [vmem:[#allocation2 + $0x8] sm:$0xff]  ;;  %v21366_v40 = vld [vmem:[#allocation9 + $0x9f0] ss:$12 sps:$4 sm:$0xff]  }
 0x8be   :  { %11417 = vmatpush1.bf16.msra.mxu0 %v21331_v51  ;;  %18255 = vmatpush3.bf16.msra.mxu1 %v21362_v2  ;;  %v21917_v51 = vld [vmem:[#allocation2] sm:$0xff]  ;;  %v21918_v2 = vld [vmem:[#allocation2 + $0x28] sm:$0xff] }
 0x8bf   :  { %11418 = vmatprep.subr.bf16.mxu0 %v21336_v32  ;;  %11837 = vmatprep.subr.bf16.mxu1 %v25551_v15  ;;  %v21370_v32 = vld [vmem:[#allocation9 + $0xa08] ss:$12 sps:$4 sm:$0xff]  }
 0x8c0   :  { %10584 = vmatmul.mubr.bf16.gmra.mrb[48].mxu0 %v21901_v43  ;;  %10858 = vmatmul.mubr.bf16.gmra.mrb[192].mxu1 %v21901_v43  ;;  %v21374_v43 = vld [vmem:[#allocation9 + $0xa20] ss:$12 sps:$4 sm:$0xff]  }
 0x8c1   :  { %17461 = vmatprep.mubr.msk.bf16.mxu0 %vm613_vm0, %v21902_v53  ;;  %17473 = vmatprep.mubr.msk.bf16.mxu1 %vm613_vm0, %v21902_v53  ;;  %v21377_v53 = vld [vmem:[#allocation9 + $0xa28] ss:$12 sps:$4 sm:$0xff]  }
 0x8c2   :  { %11419 = vmatpush1.bf16.msra.mxu0 %v21334_v29  ;;  %v21373_v29 = vld [vmem:[#allocation9 + $0xa10] ss:$12 sps:$4 sm:$0xff]  }
 0x8c3   :  { %11420 = vmatprep.subr.bf16.mxu0 %v21341_v60  ;;  %v21376_v60 = vld [vmem:[#allocation9 + $0xa24] ss:$12 sps:$4 sm:$0xff]  }
 0x8c6   :  { %11421 = vmatpush1.bf16.msra.mxu0 %v21339_v61  ;;  %v21380_v61 = vld [vmem:[#allocation9 + $0xa3c] ss:$12 sps:$4 sm:$0xff]  }
 0x8c7   :  { %11422 = vmatprep.subr.bf16.mxu0 %v21344_v42  ;;  %v21919_v42 = vld [vmem:[#allocation2 + $0x20] sm:$0xff] }
 0x8c8   :  { %10594 = vmatmul.mubr.bf16.gmra.mrb[52].mxu0 %v21903_v38  ;;  %10866 = vmatmul.mubr.bf16.gmra.mrb[196].mxu1 %v21903_v38  ;;  %v21381_v38 = vld [vmem:[#allocation9 + $0xa40] ss:$12 sps:$4 sm:$0xff]  }
 0x8c9   :  { %17462 = vmatprep.mubr.msk.bf16.mxu0 %vm613_vm0, %v21904_v55  ;;  %17474 = vmatprep.mubr.msk.bf16.mxu1 %vm613_vm0, %v21904_v55  ;;  %v21384_v55 = vld [vmem:[#allocation9 + $0xa54] ss:$12 sps:$4 sm:$0xff]  }
 0x8ca   :  { %11423 = vmatpush1.bf16.msra.mxu0 %v21342_v18  ;;  %v21920_v18 = vld [vmem:[#allocation2 + $0x48] sm:$0xff] }
 0x8cb   :  { %11424 = vmatprep.subr.bf16.mxu0 %v21349_v49  ;;  %v21378_v49 = vld [vmem:[#allocation9 + $0xa38] ss:$12 sps:$4 sm:$0xff]  }
 0x8ce   :  { %11425 = vmatpush1.bf16.msra.mxu0 %v21347_v48  ;;  %v21382_v48 = vld [vmem:[#allocation9 + $0xa50] ss:$12 sps:$4 sm:$0xff]  }
 0x8cf   :  { %11426 = vmatprep.subr.bf16.mxu0 %v21352_v35  ;;  %v21385_v35 = vld [vmem:[#allocation9 + $0xa58] ss:$12 sps:$4 sm:$0xff]  }
 0x8d0   :  { %10604 = vmatmul.mubr.bf16.gmra.mrb[56].mxu0 %v21905_v7  ;;  %10874 = vmatmul.mubr.bf16.gmra.mrb[200].mxu1 %v21905_v7  ;;  %v21922_v7 = vld [vmem:[#allocation2 + $0x68] sm:$0xff] }
 0x8d1   :  { %17463 = vmatprep.mubr.msk.bf16.mxu0 %vm613_vm0, %v21906_v5  ;;  %17475 = vmatprep.mubr.msk.bf16.mxu1 %vm613_vm0, %v21906_v5  ;;  %v21386_v5 = vld [vmem:[#allocation9 + $0xa68] ss:$12 sps:$4 sm:$0xff]  }
 0x8d2   :  { %11427 = vmatpush1.bf16.msra.mxu0 %v21350_v59  ;;  %v21388_v59 = vld [vmem:[#allocation9 + $0xa6c] ss:$12 sps:$4 sm:$0xff]  }
 0x8d3   :  { %11428 = vmatprep.subr.bf16.mxu0 %v21357_v13  ;;  %v21921_v13 = vld [vmem:[#allocation2 + $0x40] sm:$0xff] }
 0x8d6   :  { %11429 = vmatpush1.bf16.msra.mxu0 %v21355_v26  ;;  %v21389_v26 = vld [vmem:[#allocation9 + $0xa70] ss:$12 sps:$4 sm:$0xff]  }
 0x8d7   :  { %11430 = vmatprep.subr.bf16.mxu0 %v21360_v16 }
 0x8d8   :  { %10614 = vmatmul.mubr.bf16.gmra.mrb[60].mxu0 %v21907_v17  ;;  %10882 = vmatmul.mubr.bf16.gmra.mrb[204].mxu1 %v21907_v17 }
 0x8d9   :  { %17464 = vmatprep.mubr.msk.bf16.mxu0 %vm613_vm0, %v21908_v3  ;;  %17476 = vmatprep.mubr.msk.bf16.mxu1 %vm613_vm0, %v21908_v3 }
 0x8da   :  { %11431 = vmatpush1.bf16.msra.mxu0 %v21358_v28  ;;  %v21392_v28 = vld [vmem:[#allocation9 + $0xa84] ss:$12 sps:$4 sm:$0xff]  }
 0x8db   :  { %11432 = vmatprep.subr.bf16.mxu0 %v21365_v62 }
 0x8de   :  { %11433 = vmatpush1.bf16.msra.mxu0 %v21363_v31 }
 0x8df   :  { %11555 = vmatprep.subr.bf16.mxu0 %v21368_v0  ;;  %v21390_v0 = vld [vmem:[#allocation9 + $0xa80] ss:$12 sps:$4 sm:$0xff]  }
 0x8e0   :  { %10624 = vmatmul.mubr.bf16.gmra.mrb[64].mxu0 %v21909_v19  ;;  %10890 = vmatmul.mubr.bf16.gmra.mrb[208].mxu1 %v21909_v19  ;;  %v21393_v19 = vld [vmem:[#allocation9 + $0xa88] ss:$12 sps:$4 sm:$0xff]  }
 0x8e1   :  { %17465 = vmatprep.mubr.msk.bf16.mxu0 %vm613_vm0, %v21910_v39  ;;  %17477 = vmatprep.mubr.msk.bf16.mxu1 %vm613_vm0, %v21910_v39 }
 0x8e8   :  { %10634 = vmatmul.mubr.bf16.gmra.mrb[68].mxu0 %v21911_v10  ;;  %10898 = vmatmul.mubr.bf16.gmra.mrb[212].mxu1 %v21911_v10  ;;  %v21396_v10 = vld [vmem:[#allocation9 + $0xa9c] ss:$12 sps:$4 sm:$0xff]  }
 0x8e9   :  { %17466 = vmatprep.mubr.msk.bf16.mxu0 %vm613_vm0, %v21912_v14  ;;  %17478 = vmatprep.mubr.msk.bf16.mxu1 %vm613_vm0, %v21912_v14  ;;  %v21923_v14 = vld [vmem:[#allocation2 + $0x60] sm:$0xff] }
 0x8f0   :  { %10644 = vmatmul.mubr.bf16.gmra.mrb[72].mxu0 %v21913_v4  ;;  %10906 = vmatmul.mubr.bf16.gmra.mrb[216].mxu1 %v21913_v4  ;;  %v21924_v4 = vld [vmem:[#allocation2 + $0x88] sm:$0xff] }
 0x8f1   :  { %17467 = vmatprep.mubr.msk.bf16.mxu0 %vm613_vm0, %v21914_v50  ;;  %17479 = vmatprep.mubr.msk.bf16.mxu1 %vm613_vm0, %v21914_v50  ;;  %v21394_v50 = vld [vmem:[#allocation9 + $0xa98] ss:$12 sps:$4 sm:$0xff]  }
 0x8f8   :  { %10654 = vmatmul.mubr.bf16.gmra.mrb[76].mxu0 %v21915_v57  ;;  %10914 = vmatmul.mubr.bf16.gmra.mrb[220].mxu1 %v21915_v57  ;;  %v21397_v57 = vld [vmem:[#allocation9 + $0xaa0] ss:$12 sps:$4 sm:$0xff]  }
 0x8f9   :  { %11434 = vmatprep.mubr.bf16.mxu0 %v21916_v20  ;;  %11740 = vmatprep.mubr.bf16.mxu1 %v21916_v20 }
 0x900   :  { %11435 = vmatmul.mubr.bf16.vlgmr.msra.gmra.mrb[32].mxu0 %v21917_v51  ;;  %11741 = vmatmul.mubr.bf16.vlgmr.msra.gmra.mrb[224].mxu1 %v21917_v51 }
 0x901   :  { %11444 = vmatprep.mubr.bf16.mxu0 %v21918_v2  ;;  %11556 = vmatpush1.bf16.msra.mxu0 %v21366_v40  ;;  %v21400_v40 = vld [vmem:[#allocation9 + $0xab4] ss:$12 sps:$4 sm:$0xff]  }
 0x902   :  { %11748 = vmatprep.mubr.bf16.mxu1 %v21918_v2  ;;  %11838 = vmatpush1.bf16.msra.mxu1 %v21369_v45 }
 0x903   :  { %11557 = vmatprep.subr.bf16.mxu0 %v21372_v33  ;;  %11839 = vmatprep.subr.bf16.mxu1 %v25551_v15 }
 0x905   :  { %11558 = vmatpush1.bf16.msra.mxu0 %v21370_v32  ;;  %v21398_v32 = vld [vmem:[#allocation9 + $0xab0] ss:$12 sps:$4 sm:$0xff]  }
 0x906   :  { %11840 = vmatpush1.bf16.msra.mxu1 %v21373_v29  ;;  %11559 = vmatprep.subr.bf16.mxu0 %v21376_v60  ;;  %v21401_v29 = vld [vmem:[#allocation9 + $0xab8] ss:$12 sps:$4 sm:$0xff]  }
 0x907   :  { %11841 = vmatprep.subr.bf16.mxu1 %v25551_v15 }
 0x908   :  { %11445 = vmatmul.mubr.bf16.gmra.mrb[36].mxu0 %v21919_v42  ;;  %11749 = vmatmul.mubr.bf16.gmra.mrb[228].mxu1 %v21919_v42  ;;  %v21402_v42 = vld [vmem:[#allocation9 + $0xac8] ss:$12 sps:$4 sm:$0xff]  }
 0x909   :  { %11454 = vmatprep.mubr.bf16.mxu0 %v21920_v18  ;;  %11756 = vmatprep.mubr.bf16.mxu1 %v21920_v18  ;;  %v21405_v18 = vld [vmem:[#allocation9 + $0xad0] ss:$12 sps:$4 sm:$0xff]  }
 0x90a   :  { %11560 = vmatpush1.bf16.msra.mxu0 %v21374_v43  ;;  %11842 = vmatpush1.bf16.msra.mxu1 %v21377_v53  ;;  %v21404_v43 = vld [vmem:[#allocation9 + $0xacc] ss:$12 sps:$4 sm:$0xff]   ;;  %v21925_v53 = vld [vmem:[#allocation2 + $0x80] sm:$0xff] }
 0x90b   :  { %11561 = vmatprep.subr.bf16.mxu0 %v21380_v61  ;;  %11843 = vmatprep.subr.bf16.mxu1 %v25551_v15  ;;  %v21926_v61 = vld [vmem:[#allocation2 + $0xa8] sm:$0xff] }
 0x90e   :  { %11562 = vmatpush1.bf16.msra.mxu0 %v21378_v49  ;;  %11844 = vmatpush1.bf16.msra.mxu1 %v21381_v38  ;;  %v21408_v38 = vld [vmem:[#allocation9 + $0xae4] ss:$12 sps:$4 sm:$0xff]  }
 0x90f   :  { %11563 = vmatprep.subr.bf16.mxu0 %v21384_v55  ;;  %11845 = vmatprep.subr.bf16.mxu1 %v25551_v15 }
 0x910   :  { %11455 = vmatmul.mubr.bf16.gmra.mrb[40].mxu0 %v21921_v13  ;;  %11757 = vmatmul.mubr.bf16.gmra.mrb[232].mxu1 %v21921_v13  ;;  %v21406_v13 = vld [vmem:[#allocation9 + $0xae0] ss:$12 sps:$4 sm:$0xff]  }
 0x911   :  { %11464 = vmatprep.mubr.bf16.mxu0 %v21922_v7  ;;  %11764 = vmatprep.mubr.bf16.mxu1 %v21922_v7  ;;  %v21409_v7 = vld [vmem:[#allocation9 + $0xae8] ss:$12 sps:$4 sm:$0xff]  }
 0x912   :  { %11564 = vmatpush1.bf16.msra.mxu0 %v21382_v48  ;;  %11846 = vmatpush1.bf16.msra.mxu1 %v21385_v35 }
 0x913   :  { %v18168_v16 = vpop.f32.mrb[128].mxu1  ;;  %11565 = vmatprep.subr.bf16.mxu0 %v21388_v59  ;;  %11847 = vmatprep.subr.bf16.mxu1 %v25551_v15 }
 0x914   :  { %v18169_v62 = vpop.f32.mrb[129].mxu1 }
 0x915   :  { %v24396_v17 = vadd.f32 %v18169_v62, %v18168_v16  ;;  %v18171_v3 = vpop.f32.mrb[130].mxu1  ;;  %v21927_v16 = vld [vmem:[#allocation2 + $0xa0] sm:$0xff]  ;;  %v21410_v62 = vld [vmem:[#allocation9 + $0xaf8] ss:$12 sps:$4 sm:$0xff]  }
 0x916   :  { %v18172_v31 = vpop.f32.mrb[131].mxu1  ;;  %11566 = vmatpush1.bf16.msra.mxu0 %v21386_v5  ;;  %11848 = vmatpush1.bf16.msra.mxu1 %v21389_v26  ;;  %v21412_v26 = vld [vmem:[#allocation9 + $0xafc] ss:$12 sps:$4 sm:$0xff]  }
 0x917   :  { %v24398_v39 = vadd.f32 %v18172_v31, %v18171_v3  ;;  %11567 = vmatprep.subr.bf16.mxu0 %v21392_v28  ;;  %11849 = vmatprep.subr.bf16.mxu1 %v25551_v15  ;;  %v21928_v28 = vld [vmem:[#allocation2 + $0xc8] sm:$0xff]  ;;  %v21413_v3 = vld [vmem:[#allocation9 + $0xb00] ss:$12 sps:$4 sm:$0xff]  }
 0x918   :  { %11465 = vmatmul.mubr.bf16.gmra.mrb[44].mxu0 %v21923_v14  ;;  %11765 = vmatmul.mubr.bf16.gmra.mrb[236].mxu1 %v21923_v14 }
 0x919   :  { %11474 = vmatprep.mubr.bf16.mxu0 %v21924_v4  ;;  %11772 = vmatprep.mubr.bf16.mxu1 %v21924_v4 }
 0x91a   :  { %11568 = vmatpush1.bf16.msra.mxu0 %v21390_v0  ;;  %11850 = vmatpush1.bf16.msra.mxu1 %v21393_v19  ;;  %v21416_v0 = vld [vmem:[#allocation9 + $0xb14] ss:$12 sps:$4 sm:$0xff]  }
 0x91b   :  { %v18174_v20 = vpop.f32.mrb[132].mxu1  ;;  %11569 = vmatprep.subr.bf16.mxu0 %v21396_v10  ;;  %11851 = vmatprep.subr.bf16.mxu1 %v25551_v15 }
 0x91c   :  { %v18175_v45 = vpop.f32.mrb[133].mxu1 }
 0x91d   :  { %v24402_v33 = vadd.f32 %v18175_v45, %v18174_v20  ;;  %v18177_v51 = vpop.f32.mrb[134].mxu1  ;;  %v21929_v45 = vld [vmem:[#allocation2 + $0xc0] sm:$0xff] }
 0x91e   :  { %v18178_v2 = vpop.f32.mrb[135].mxu1  ;;  %11570 = vmatpush1.bf16.msra.mxu0 %v21394_v50  ;;  %11852 = vmatpush1.bf16.msra.mxu1 %v21397_v57  ;;  %v21414_v50 = vld [vmem:[#allocation9 + $0xb10] ss:$12 sps:$4 sm:$0xff]   ;;  %v21417_v57 = vld [vmem:[#allocation9 + $0xb18] ss:$12 sps:$4 sm:$0xff]  }
 0x91f   :  { %v24404_v60 = vadd.f32 %v18178_v2, %v18177_v51  ;;  %11571 = vmatprep.subr.bf16.mxu0 %v21400_v40  ;;  %11853 = vmatprep.subr.bf16.mxu1 %v25551_v15  ;;  %v21420_v40 = vld [vmem:[#allocation9 + $0xb2c] ss:$12 sps:$4 sm:$0xff]   ;;  %v21930_v51 = vld [vmem:[#allocation2 + $0xe8] sm:$0xff] }
 0x920   :  { %11475 = vmatmul.mubr.bf16.gmra.mrb[48].mxu0 %v21925_v53  ;;  %11773 = vmatmul.mubr.bf16.gmra.mrb[240].mxu1 %v21925_v53  ;;  %v21418_v2 = vld [vmem:[#allocation9 + $0xb28] ss:$12 sps:$4 sm:$0xff]  }
 0x921   :  { %11484 = vmatprep.mubr.bf16.mxu0 %v21926_v61  ;;  %11780 = vmatprep.mubr.bf16.mxu1 %v21926_v61  ;;  %v21425_v53 = vld [vmem:[#allocation9 + $0x668] ss:$12 sps:$4 sm:$0xff]  }
 0x922   :  { %11572 = vmatpush1.bf16.msra.mxu0 %v21398_v32  ;;  %11854 = vmatpush1.bf16.msra.mxu1 %v21401_v29  ;;  %v21421_v32 = vld [vmem:[#allocation9 + $0xb30] ss:$12 sps:$4 sm:$0xff]  }
 0x923   :  { %v18180_v49 = vpop.f32.mrb[136].mxu1  ;;  %11573 = vmatprep.subr.bf16.mxu0 %v21404_v43  ;;  %11855 = vmatprep.subr.bf16.mxu1 %v25551_v15  ;;  %v21424_v43 = vld [vmem:[#allocation9 + $0x5a4] ss:$12 sps:$4 sm:$0xff]  }
 0x924   :  { %v18181_v55 = vpop.f32.mrb[137].mxu1 }
 0x925   :  { %v24408_v48 = vadd.f32 %v18181_v55, %v18180_v49  ;;  %v18183_v35 = vpop.f32.mrb[138].mxu1  ;;  %v21931_v55 = vld [vmem:[#allocation2 + $0xe0] sm:$0xff] }
 0x926   :  { %v18184_v59 = vpop.f32.mrb[139].mxu1  ;;  %11574 = vmatpush1.bf16.msra.mxu0 %v21402_v42  ;;  %11856 = vmatpush1.bf16.msra.mxu1 %v21405_v18 }
 0x927   :  { %v24410_v5 = vadd.f32 %v18184_v59, %v18183_v35  ;;  %11575 = vmatprep.subr.bf16.mxu0 %v21408_v38  ;;  %11857 = vmatprep.subr.bf16.mxu1 %v25551_v15  ;;  %v21932_v35 = vld [vmem:[#allocation2 + $0x108] sm:$0xff] }
 0x928   :  { %11485 = vmatmul.mubr.bf16.gmra.mrb[52].mxu0 %v21927_v16  ;;  %11781 = vmatmul.mubr.bf16.gmra.mrb[244].mxu1 %v21927_v16 }
 0x929   :  { %11494 = vmatprep.mubr.bf16.mxu0 %v21928_v28  ;;  %11788 = vmatprep.mubr.bf16.mxu1 %v21928_v28 }
 0x92a   :  { %11576 = vmatpush1.bf16.msra.mxu0 %v21406_v13  ;;  %11858 = vmatpush1.bf16.msra.mxu1 %v21409_v7 }
 0x92b   :  { %v18186_v31 = vpop.f32.mrb[140].mxu1  ;;  %11577 = vmatprep.subr.bf16.mxu0 %v21412_v26  ;;  %11859 = vmatprep.subr.bf16.mxu1 %v25551_v15 }
 0x92c   :  { %v18187_v19 = vpop.f32.mrb[141].mxu1 }
 0x92d   :  { %v24414_v10 = vadd.f32 %v18187_v19, %v18186_v31  ;;  %v18189_v14 = vpop.f32.mrb[142].mxu1 }
 0x92e   :  { %v18190_v4 = vpop.f32.mrb[143].mxu1  ;;  %11578 = vmatpush1.bf16.msra.mxu0 %v21410_v62  ;;  %11860 = vmatpush1.bf16.msra.mxu1 %v21413_v3  ;;  %v21933_v62 = vld [vmem:[#allocation2 + $0x100] sm:$0xff]  ;;  %v21934_v3 = vld [vmem:[#allocation2 + $0x128] sm:$0xff] }
 0x92f   :  { %v24416_v20 = vadd.f32 %v18190_v4, %v18189_v14  ;;  %11579 = vmatprep.subr.bf16.mxu0 %v21416_v0  ;;  %11861 = vmatprep.subr.bf16.mxu1 %v25551_v15 }
 0x930   :  { %11495 = vmatmul.mubr.bf16.gmra.mrb[56].mxu0 %v21929_v45  ;;  %11789 = vmatmul.mubr.bf16.gmra.mrb[248].mxu1 %v21929_v45 }
 0x931   :  { %11504 = vmatprep.mubr.bf16.mxu0 %v21930_v51  ;;  %11796 = vmatprep.mubr.bf16.mxu1 %v21930_v51 }
 0x932   :  { %11580 = vmatpush1.bf16.msra.mxu0 %v21414_v50  ;;  %11862 = vmatpush1.bf16.msra.mxu1 %v21417_v57  ;;  %v21935_v57 = vld [vmem:[#allocation2 + $0x120] sm:$0xff] }
 0x933   :  { %v18192_v29 = vpop.f32.mrb[144].mxu1  ;;  %11581 = vmatprep.subr.bf16.mxu0 %v21420_v40  ;;  %11863 = vmatprep.subr.bf16.mxu1 %v25551_v15  ;;  %v21936_v40 = vld [vmem:[#allocation2 + $0x148] sm:$0xff] }
 0x934   :  { %v18193_v61 = vpop.f32.mrb[145].mxu1 }
 0x935   :  { %v24420_v42 = vadd.f32 %v18193_v61, %v18192_v29  ;;  %v18195_v18 = vpop.f32.mrb[146].mxu1  ;;  %v21938_v61 = vld [vmem:[#allocation2 + $0x168] sm:$0xff] }
 0x936   :  { %v18196_v49 = vpop.f32.mrb[147].mxu1  ;;  %11582 = vmatpush1.bf16.msra.mxu0 %v21418_v2  ;;  %11864 = vmatpush1.bf16.msra.mxu1 %v21421_v32 }
 0x937   :  { %v24422_v38 = vadd.f32 %v18196_v49, %v18195_v18  ;;  %12652 = vmatprep.subr.bf16.mxu0 %v21424_v43  ;;  %18328 = vmatprep.subr.bf16.mxu1 %v21425_v53  ;;  %v21937_v53 = vld [vmem:[#allocation2 + $0x140] sm:$0xff] }
 0x938   :  { %11505 = vmatmul.mubr.bf16.gmra.mrb[60].mxu0 %v21931_v55  ;;  %11797 = vmatmul.mubr.bf16.gmra.mrb[252].mxu1 %v21931_v55 }
 0x939   :  { %11514 = vmatprep.mubr.bf16.mxu0 %v21932_v35  ;;  %11804 = vmatprep.mubr.bf16.mxu1 %v21932_v35 }
 0x93b   :  { %v18198_v59 = vpop.f32.mrb[148].mxu1 }
 0x93c   :  { %v18199_v13 = vpop.f32.mrb[149].mxu1 }
 0x93d   :  { %v24424_v7 = vadd.f32 %v18199_v13, %v18198_v59  ;;  %v18201_v26 = vpop.f32.mrb[150].mxu1 }
 0x93e   :  { %v18202_v16 = vpop.f32.mrb[151].mxu1 }
 0x93f   :  { %v24426_v28 = vadd.f32 %v18202_v16, %v18201_v26  ;;  %v21939_v26 = vld [vmem:[#allocation2 + $0x160] sm:$0xff]  ;;  %v21940_v16 = vld [vmem:[#allocation2 + $0x18] sm:$0xff] }
 0x940   :  { %11515 = vmatmul.mubr.bf16.gmra.mrb[64].mxu0 %v21933_v62  ;;  %11805 = vmatmul.mubr.bf16.gmra.mrb[0].mxu1 %v21933_v62 }
 0x941   :  { %11524 = vmatprep.mubr.bf16.mxu0 %v21934_v3  ;;  %11812 = vmatprep.mubr.bf16.mxu1 %v21934_v3 }
 0x943   :  { %v18204_v31 = vpop.f32.mrb[152].mxu1 }
 0x944   :  { %v18205_v0 = vpop.f32.mrb[153].mxu1 }
 0x945   :  { %v24428_v19 = vadd.f32 %v18205_v0, %v18204_v31  ;;  %v18207_v14 = vpop.f32.mrb[154].mxu1 }
 0x946   :  { %v18208_v4 = vpop.f32.mrb[155].mxu1 }
 0x947   :  { %v24430_v50 = vadd.f32 %v18208_v4, %v18207_v14  ;;  %v21422_v4 = vld [vmem:[#allocation9 + $0x5a0] ss:$12 sps:$4 sm:$0xff]  }
 0x948   :  { %11525 = vmatmul.mubr.bf16.gmra.mrb[68].mxu0 %v21935_v57  ;;  %11813 = vmatmul.mubr.bf16.gmra.mrb[4].mxu1 %v21935_v57  ;;  %v21426_v57 = vld [vmem:[#allocation9 + $0x5a8] ss:$12 sps:$4 sm:$0xff]  }
 0x949   :  { %11534 = vmatprep.mubr.bf16.mxu0 %v21936_v40  ;;  %11820 = vmatprep.mubr.bf16.mxu1 %v21936_v40 }
 0x94b   :  { %v18210_v45 = vpop.f32.mrb[156].mxu1 }
 0x94c   :  { %v18211_v51 = vpop.f32.mrb[157].mxu1 }
 0x94d   :  { %v24432_v2 = vadd.f32 %v18211_v51, %v18210_v45  ;;  %v18213_v32 = vpop.f32.mrb[158].mxu1  ;;  %v21429_v45 = vld [vmem:[#allocation9 + $0x5bc] ss:$12 sps:$4 sm:$0xff]   ;;  %v21433_v51 = vld [vmem:[#allocation9 + $0x680] ss:$12 sps:$4 sm:$0xff]  }
 0x94e   :  { %v18214_v29 = vpop.f32.mrb[159].mxu1 }
 0x94f   :  { %v24434_v43 = vadd.f32 %v18214_v29, %v18213_v32  ;;  %v21941_v32 = vld [vmem:[#allocation2 + $0x10] sm:$0xff]  ;;  %v21942_v29 = vld [vmem:[#allocation2 + $0x38] sm:$0xff] }
 0x950   :  { %11535 = vmatmul.mubr.bf16.gmra.mrb[72].mxu0 %v21937_v53  ;;  %11821 = vmatmul.mubr.bf16.gmra.mrb[8].mxu1 %v21937_v53  ;;  %v21427_v53 = vld [vmem:[#allocation9 + $0x5b8] ss:$12 sps:$4 sm:$0xff]  }
 0x951   :  { %11544 = vmatprep.mubr.bf16.mxu0 %v21938_v61  ;;  %11828 = vmatprep.mubr.bf16.mxu1 %v21938_v61  ;;  %v21434_v61 = vld [vmem:[#allocation9 + $0x5c0] ss:$12 sps:$4 sm:$0xff]  }
 0x953   :  { %v18216_v18 = vpop.f32.mrb[160].mxu1 }
 0x954   :  { %v18217_v49 = vpop.f32.mrb[161].mxu1 }
 0x955   :  { %v24436_v55 = vadd.f32 %v18217_v49, %v18216_v18  ;;  %v18219_v35 = vpop.f32.mrb[162].mxu1  ;;  %v21432_v49 = vld [vmem:[#allocation9 + $0x5d4] ss:$12 sps:$4 sm:$0xff]  }
 0x956   :  { %v18220_v59 = vpop.f32.mrb[163].mxu1 }
 0x957   :  { %v24438_v13 = vadd.f32 %v18220_v59, %v18219_v35  ;;  %v21441_v35 = vld [vmem:[#allocation9 + $0x698] ss:$12 sps:$4 sm:$0xff]  }
 0x958   :  { %11545 = vmatmul.mubr.bf16.gmra.mrb[76].mxu0 %v21939_v26  ;;  %11829 = vmatmul.mubr.bf16.gmra.mrb[12].mxu1 %v21939_v26 }
 0x959   :  { %17570 = vmatprep.mubr.msk.bf16.mxu0 %vm613_vm0, %v21940_v16  ;;  %17582 = vmatprep.mubr.msk.bf16.mxu1 %vm613_vm0, %v21940_v16 }
 0x95b   :  { %v18222_v62 = vpop.f32.mrb[164].mxu1 }
 0x95c   :  { %v18223_v3 = vpop.f32.mrb[165].mxu1 }
 0x95d   :  { %v24442_v31 = vadd.f32 %v18223_v3, %v18222_v62  ;;  %v18225_v0 = vpop.f32.mrb[166].mxu1  ;;  %v21430_v3 = vld [vmem:[#allocation9 + $0x5d0] ss:$12 sps:$4 sm:$0xff]  }
 0x95e   :  { %v18226_v14 = vpop.f32.mrb[167].mxu1 }
 0x95f   :  { %v24444_v40 = vadd.f32 %v18226_v14, %v18225_v0  ;;  %v21442_v0 = vld [vmem:[#allocation9 + $0x5d8] ss:$12 sps:$4 sm:$0xff]  }
 0x960   :  { %11588 = vmatmul.mubr.bf16.vlgmr.msra.gmra.mrb[32].mxu0 %v21941_v32  ;;  %11870 = vmatmul.mubr.bf16.vlgmr.msra.gmra.mrb[176].mxu1 %v21941_v32  ;;  %v21943_v32 = vld [vmem:[#allocation2 + $0x30] sm:$0xff] }
 0x961   :  { %17571 = vmatprep.mubr.msk.bf16.mxu0 %vm613_vm0, %v21942_v29  ;;  %17583 = vmatprep.mubr.msk.bf16.mxu1 %vm613_vm0, %v21942_v29  ;;  %v21450_v29 = vld [vmem:[#allocation9 + $0x5f0] ss:$12 sps:$4 sm:$0xff]  }
 0x962   :  { %12653 = vmatpush1.bf16.msra.mxu0 %v21422_v4  ;;  %18329 = vmatpush3.bf16.msra.mxu1 %v21426_v57  ;;  %v21437_v4 = vld [vmem:[#allocation9 + $0x5ec] ss:$12 sps:$4 sm:$0xff]   ;;  %v21449_v57 = vld [vmem:[#allocation9 + $0x6b0] ss:$12 sps:$4 sm:$0xff]  }
 0x963   :  { %v18228_v18 = vpop.f32.mrb[168].mxu1  ;;  %12654 = vmatprep.subr.bf16.mxu0 %v21429_v45  ;;  %18330 = vmatprep.subr.bf16.mxu1 %v21433_v51  ;;  %v21944_v45 = vld [vmem:[#allocation2 + $0x58] sm:$0xff] }
 0x964   :  { %v18229_v59 = vpop.f32.mrb[169].mxu1  ;;  %v21435_v51 = vld [vmem:[#allocation9 + $0x5e8] ss:$12 sps:$4 sm:$0xff]  }
 0x965   :  { %v24448_v26 = vadd.f32 %v18229_v59, %v18228_v18  ;;  %v18231_v16 = vpop.f32.mrb[170].mxu1  ;;  %v21457_v18 = vld [vmem:[#allocation9 + $0x6c8] ss:$12 sps:$4 sm:$0xff]  }
 0x966   :  { %v18232_v62 = vpop.f32.mrb[171].mxu1  ;;  %12655 = vmatpush1.bf16.msra.mxu0 %v21427_v53  ;;  %18331 = vmatpush3.bf16.msra.mxu1 %v21434_v61  ;;  %v21440_v61 = vld [vmem:[#allocation9 + $0x604] ss:$12 sps:$4 sm:$0xff]  }
 0x967   :  { %v24450_v14 = vadd.f32 %v18232_v62, %v18231_v16  ;;  %12656 = vmatprep.subr.bf16.mxu0 %v21432_v49  ;;  %18332 = vmatprep.subr.bf16.mxu1 %v21441_v35  ;;  %v21438_v62 = vld [vmem:[#allocation9 + $0x600] ss:$12 sps:$4 sm:$0xff]  }
 0x968   :  { %11598 = vmatmul.mubr.bf16.gmra.mrb[36].mxu0 %v21943_v32  ;;  %11878 = vmatmul.mubr.bf16.gmra.mrb[180].mxu1 %v21943_v32  ;;  %v21458_v32 = vld [vmem:[#allocation9 + $0x608] ss:$12 sps:$4 sm:$0xff]  }
 0x969   :  { %17572 = vmatprep.mubr.msk.bf16.mxu0 %vm613_vm0, %v21944_v45  ;;  %17584 = vmatprep.mubr.msk.bf16.mxu1 %vm613_vm0, %v21944_v45  ;;  %v21945_v45 = vld [vmem:[#allocation2 + $0x50] sm:$0xff] }
 0x96a   :  { %12657 = vmatpush1.bf16.msra.mxu0 %v21430_v3  ;;  %18333 = vmatpush3.bf16.msra.mxu1 %v21442_v0  ;;  %v21445_v3 = vld [vmem:[#allocation9 + $0x61c] ss:$12 sps:$4 sm:$0xff]   ;;  %v21465_v0 = vld [vmem:[#allocation9 + $0x6e0] ss:$12 sps:$4 sm:$0xff]  }
 0x96b   :  { %v18234_v53 = vpop.f32.mrb[172].mxu1  ;;  %12658 = vmatprep.subr.bf16.mxu0 %v21437_v4  ;;  %18334 = vmatprep.subr.bf16.mxu1 %v21449_v57  ;;  %v21946_v4 = vld [vmem:[#allocation2 + $0x78] sm:$0xff] }
 0x96c   :  { %v18235_v49 = vpop.f32.mrb[173].mxu1  ;;  %v21443_v57 = vld [vmem:[#allocation9 + $0x618] ss:$12 sps:$4 sm:$0xff]  }
 0x96d   :  { %v24454_v35 = vadd.f32 %v18235_v49, %v18234_v53  ;;  %v18237_v59 = vpop.f32.mrb[174].mxu1  ;;  %v21473_v53 = vld [vmem:[#allocation9 + $0x6f8] ss:$12 sps:$4 sm:$0xff]  }
 0x96e   :  { %v18238_v16 = vpop.f32.mrb[175].mxu1  ;;  %12659 = vmatpush1.bf16.msra.mxu0 %v21435_v51  ;;  %18335 = vmatpush3.bf16.msra.mxu1 %v21450_v29  ;;  %v21466_v51 = vld [vmem:[#allocation9 + $0x620] ss:$12 sps:$4 sm:$0xff]  }
 0x96f   :  { %v24456_v12 = vadd.f32 %v18238_v16, %v18237_v59  ;;  %12660 = vmatprep.subr.bf16.mxu0 %v21440_v61  ;;  %18336 = vmatprep.subr.bf16.mxu1 %v21457_v18  ;;  %v21448_v29 = vld [vmem:[#allocation9 + $0x634] ss:$12 sps:$4 sm:$0xff]   ;;  %v21446_v61 = vld [vmem:[#allocation9 + $0x630] ss:$12 sps:$4 sm:$0xff]   ;;  %v21474_v18 = vld [vmem:[#allocation9 + $0x638] ss:$12 sps:$4 sm:$0xff]  }
 0x970   :  { %11608 = vmatmul.mubr.bf16.gmra.mrb[40].mxu0 %v21945_v45  ;;  %11886 = vmatmul.mubr.bf16.gmra.mrb[184].mxu1 %v21945_v45  ;;  %v21453_v49 = vld [vmem:[#allocation9 + $0x64c] ss:$12 sps:$4 sm:$0xff]   ;;  %v21481_v59 = vld [vmem:[#allocation9 + $0x710] ss:$12 sps:$4 sm:$0xff]  }
 0x971   :  { %17573 = vmatprep.mubr.msk.bf16.mxu0 %vm613_vm0, %v21946_v4  ;;  %17585 = vmatprep.mubr.msk.bf16.mxu1 %vm613_vm0, %v21946_v4  ;;  %v21947_v16 = vld [vmem:[#allocation2 + $0x70] sm:$0xff]  ;;  %v21948_v45 = vld [vmem:[#allocation2 + $0x98] sm:$0xff]  ;;  %v21461_v4 = vld [vmem:[#allocation9 + $0x67c] ss:$12 sps:$4 sm:$0xff]  }
 0x972   :  { %12661 = vmatpush1.bf16.msra.mxu0 %v21438_v62  ;;  %18337 = vmatpush3.bf16.msra.mxu1 %v21458_v32  ;;  %v21451_v62 = vld [vmem:[#allocation9 + $0x648] ss:$12 sps:$4 sm:$0xff]   ;;  %v21482_v32 = vld [vmem:[#allocation9 + $0x650] ss:$12 sps:$4 sm:$0xff]  }
 0x973   :  { %12662 = vmatprep.subr.bf16.mxu0 %v21445_v3  ;;  %18338 = vmatprep.subr.bf16.mxu1 %v21465_v0  ;;  %v21456_v3 = vld [vmem:[#allocation9 + $0x664] ss:$12 sps:$4 sm:$0xff]   ;;  %v21454_v0 = vld [vmem:[#allocation9 + $0x660] ss:$12 sps:$4 sm:$0xff]  }
 0x976   :  { %12663 = vmatpush1.bf16.msra.mxu0 %v21443_v57  ;;  %18339 = vmatpush3.bf16.msra.mxu1 %v21466_v51  ;;  %v21949_v57 = vld [vmem:[#allocation2 + $0x90] sm:$0xff]  ;;  %v21950_v51 = vld [vmem:[#allocation2 + $0xb8] sm:$0xff] }
 0x977   :  { %12664 = vmatprep.subr.bf16.mxu0 %v21448_v29  ;;  %18340 = vmatprep.subr.bf16.mxu1 %v21473_v53  ;;  %v21459_v29 = vld [vmem:[#allocation9 + $0x678] ss:$12 sps:$4 sm:$0xff]   ;;  %v21464_v53 = vld [vmem:[#allocation9 + $0x694] ss:$12 sps:$4 sm:$0xff]  }
 0x978   :  { %11618 = vmatmul.mubr.bf16.gmra.mrb[44].mxu0 %v21947_v16  ;;  %11894 = vmatmul.mubr.bf16.gmra.mrb[188].mxu1 %v21947_v16  ;;  %v21467_v16 = vld [vmem:[#allocation9 + $0x6a8] ss:$12 sps:$4 sm:$0xff]  }
 0x979   :  { %17574 = vmatprep.mubr.msk.bf16.mxu0 %vm613_vm0, %v21948_v45  ;;  %17586 = vmatprep.mubr.msk.bf16.mxu1 %vm613_vm0, %v21948_v45  ;;  %v21472_v45 = vld [vmem:[#allocation9 + $0x6c4] ss:$12 sps:$4 sm:$0xff]  }
 0x97a   :  { %12665 = vmatpush1.bf16.msra.mxu0 %v21446_v61  ;;  %18341 = vmatpush3.bf16.msra.mxu1 %v21474_v18  ;;  %v21462_v61 = vld [vmem:[#allocation9 + $0x690] ss:$12 sps:$4 sm:$0xff]   ;;  %v21469_v18 = vld [vmem:[#allocation9 + $0x6ac] ss:$12 sps:$4 sm:$0xff]  }
 0x97b   :  { %12666 = vmatprep.subr.bf16.mxu0 %v21453_v49  ;;  %18342 = vmatprep.subr.bf16.mxu1 %v21481_v59  ;;  %v21951_v49 = vld [vmem:[#allocation2 + $0xb0] sm:$0xff]  ;;  %v21952_v59 = vld [vmem:[#allocation2 + $0xd8] sm:$0xff] }
 0x97e   :  { %12667 = vmatpush1.bf16.msra.mxu0 %v21451_v62  ;;  %18343 = vmatpush3.bf16.msra.mxu1 %v21482_v32  ;;  %v21470_v62 = vld [vmem:[#allocation9 + $0x6c0] ss:$12 sps:$4 sm:$0xff]   ;;  %v21477_v32 = vld [vmem:[#allocation9 + $0x6dc] ss:$12 sps:$4 sm:$0xff]  }
 0x97f   :  { %12668 = vmatprep.subr.bf16.mxu0 %v21456_v3  ;;  %13087 = vmatprep.subr.bf16.mxu1 %v25551_v15  ;;  %v21953_v3 = vld [vmem:[#allocation2 + $0xd0] sm:$0xff] }
 0x980   :  { %11628 = vmatmul.mubr.bf16.gmra.mrb[48].mxu0 %v21949_v57  ;;  %11902 = vmatmul.mubr.bf16.gmra.mrb[192].mxu1 %v21949_v57  ;;  %v21480_v57 = vld [vmem:[#allocation9 + $0x6f4] ss:$12 sps:$4 sm:$0xff]  }
 0x981   :  { %17575 = vmatprep.mubr.msk.bf16.mxu0 %vm613_vm0, %v21950_v51  ;;  %17587 = vmatprep.mubr.msk.bf16.mxu1 %vm613_vm0, %v21950_v51  ;;  %v21478_v51 = vld [vmem:[#allocation9 + $0x6f0] ss:$12 sps:$4 sm:$0xff]  }
 0x982   :  { %12669 = vmatpush1.bf16.msra.mxu0 %v21454_v0  ;;  %v21954_v0 = vld [vmem:[#allocation2 + $0xf8] sm:$0xff] }
 0x983   :  { %12670 = vmatprep.subr.bf16.mxu0 %v21461_v4  ;;  %v21475_v4 = vld [vmem:[#allocation9 + $0x6d8] ss:$12 sps:$4 sm:$0xff]  }
 0x986   :  { %12671 = vmatpush1.bf16.msra.mxu0 %v21459_v29  ;;  %v21485_v29 = vld [vmem:[#allocation9 + $0x70c] ss:$12 sps:$4 sm:$0xff]  }
 0x987   :  { %12672 = vmatprep.subr.bf16.mxu0 %v21464_v53  ;;  %v21955_v53 = vld [vmem:[#allocation2 + $0xf0] sm:$0xff] }
 0x988   :  { %11638 = vmatmul.mubr.bf16.gmra.mrb[52].mxu0 %v21951_v49  ;;  %11910 = vmatmul.mubr.bf16.gmra.mrb[196].mxu1 %v21951_v49  ;;  %v21488_v49 = vld [vmem:[#allocation9 + $0x724] ss:$12 sps:$4 sm:$0xff]  }
 0x989   :  { %17576 = vmatprep.mubr.msk.bf16.mxu0 %vm613_vm0, %v21952_v59  ;;  %17588 = vmatprep.mubr.msk.bf16.mxu1 %vm613_vm0, %v21952_v59  ;;  %v21957_v59 = vld [vmem:[#allocation2 + $0x110] sm:$0xff] }
 0x98a   :  { %12673 = vmatpush1.bf16.msra.mxu0 %v21462_v61  ;;  %v21956_v61 = vld [vmem:[#allocation2 + $0x118] sm:$0xff] }
 0x98b   :  { %12674 = vmatprep.subr.bf16.mxu0 %v21469_v18  ;;  %v21483_v18 = vld [vmem:[#allocation9 + $0x708] ss:$12 sps:$4 sm:$0xff]  }
 0x98e   :  { %12675 = vmatpush1.bf16.msra.mxu0 %v21467_v16  ;;  %v21958_v16 = vld [vmem:[#allocation2 + $0x138] sm:$0xff] }
 0x98f   :  { %12676 = vmatprep.subr.bf16.mxu0 %v21472_v45  ;;  %v21959_v45 = vld [vmem:[#allocation2 + $0x130] sm:$0xff] }
 0x990   :  { %11648 = vmatmul.mubr.bf16.gmra.mrb[56].mxu0 %v21953_v3  ;;  %11918 = vmatmul.mubr.bf16.gmra.mrb[200].mxu1 %v21953_v3  ;;  %v21962_v3 = vld [vmem:[#allocation2 + $0x178] sm:$0xff] }
 0x991   :  { %17577 = vmatprep.mubr.msk.bf16.mxu0 %vm613_vm0, %v21954_v0  ;;  %17589 = vmatprep.mubr.msk.bf16.mxu1 %vm613_vm0, %v21954_v0  ;;  %v21963_v0 = vld [vmem:[#allocation2 + $0x170] sm:$0xff] }
 0x992   :  { %12677 = vmatpush1.bf16.msra.mxu0 %v21470_v62  ;;  %v21960_v62 = vld [vmem:[#allocation2 + $0x158] sm:$0xff] }
 0x993   :  { %12678 = vmatprep.subr.bf16.mxu0 %v21477_v32  ;;  %v21961_v32 = vld [vmem:[#allocation2 + $0x150] sm:$0xff] }
 0x996   :  { %12679 = vmatpush1.bf16.msra.mxu0 %v21475_v4  ;;  %v24477_v4 = vld [vmem:[#allocation2 + $0x48] sm:$0xff] }
 0x997   :  { %12680 = vmatprep.subr.bf16.mxu0 %v21480_v57  ;;  %v21486_v57 = vld [vmem:[#allocation9 + $0x720] ss:$12 sps:$4 sm:$0xff]  }
 0x998   :  { %11658 = vmatmul.mubr.bf16.gmra.mrb[60].mxu0 %v21955_v53  ;;  %11926 = vmatmul.mubr.bf16.gmra.mrb[204].mxu1 %v21955_v53  ;;  %v21492_v53 = vld [vmem:[#allocation9 + $0x73c] ss:$12 sps:$4 sm:$0xff]  }
 0x999   :  { %17578 = vmatprep.mubr.msk.bf16.mxu0 %vm613_vm0, %v21956_v61  ;;  %17590 = vmatprep.mubr.msk.bf16.mxu1 %vm613_vm0, %v21956_v61  ;;  %v24485_v61 = vld [vmem:[#allocation2 + $0x68] sm:$0xff] }
 0x99a   :  { %12681 = vmatpush1.bf16.msra.mxu0 %v21478_v51  ;;  %v21489_v51 = vld [vmem:[#allocation9 + $0x728] ss:$12 sps:$4 sm:$0xff]  }
 0x99b   :  { %12682 = vmatprep.subr.bf16.mxu0 %v21485_v29  ;;  %v24481_v29 = vld [vmem:[#allocation2 + $0x40] sm:$0xff] }
 0x99e   :  { %12683 = vmatpush1.bf16.msra.mxu0 %v21483_v18  ;;  %v21490_v18 = vld [vmem:[#allocation9 + $0x738] ss:$12 sps:$4 sm:$0xff]  }
 0x99f   :  { %12805 = vmatprep.subr.bf16.mxu0 %v21488_v49  ;;  %v21493_v49 = vld [vmem:[#allocation9 + $0x740] ss:$12 sps:$4 sm:$0xff]  }
 0x9a0   :  { %11668 = vmatmul.mubr.bf16.gmra.mrb[64].mxu0 %v21957_v59  ;;  %11934 = vmatmul.mubr.bf16.gmra.mrb[208].mxu1 %v21957_v59  ;;  %v21496_v59 = vld [vmem:[#allocation9 + $0x754] ss:$12 sps:$4 sm:$0xff]  }
 0x9a1   :  { %17579 = vmatprep.mubr.msk.bf16.mxu0 %vm613_vm0, %v21958_v16  ;;  %17591 = vmatprep.mubr.msk.bf16.mxu1 %vm613_vm0, %v21958_v16  ;;  %v21494_v16 = vld [vmem:[#allocation9 + $0x750] ss:$12 sps:$4 sm:$0xff]  }
 0x9a8   :  { %11678 = vmatmul.mubr.bf16.gmra.mrb[68].mxu0 %v21959_v45  ;;  %11942 = vmatmul.mubr.bf16.gmra.mrb[212].mxu1 %v21959_v45  ;;  %v21497_v45 = vld [vmem:[#allocation9 + $0x758] ss:$12 sps:$4 sm:$0xff]  }
 0x9a9   :  { %17580 = vmatprep.mubr.msk.bf16.mxu0 %vm613_vm0, %v21960_v62  ;;  %17592 = vmatprep.mubr.msk.bf16.mxu1 %vm613_vm0, %v21960_v62  ;;  %v24490_v62 = vld [vmem:[#allocation2 + $0x60] sm:$0xff] }
 0x9b0   :  { %11688 = vmatmul.mubr.bf16.gmra.mrb[72].mxu0 %v21961_v32  ;;  %11950 = vmatmul.mubr.bf16.gmra.mrb[216].mxu1 %v21961_v32  ;;  %v21500_v32 = vld [vmem:[#allocation9 + $0x76c] ss:$12 sps:$4 sm:$0xff]  }
 0x9b1   :  { %17581 = vmatprep.mubr.msk.bf16.mxu0 %vm613_vm0, %v21962_v3  ;;  %17593 = vmatprep.mubr.msk.bf16.mxu1 %vm613_vm0, %v21962_v3  ;;  %v24495_v3 = vld [vmem:[#allocation2 + $0x88] sm:$0xff] }
 0x9b8   :  { %11698 = vmatmul.mubr.bf16.gmra.mrb[76].mxu0 %v21963_v0  ;;  %11958 = vmatmul.mubr.bf16.gmra.mrb[220].mxu1 %v21963_v0  ;;  %v21498_v0 = vld [vmem:[#allocation9 + $0x768] ss:$12 sps:$4 sm:$0xff]  }
 0x9b9   :  { %12684 = vmatprep.mubr.bf16.mxu0 %v24477_v4  ;;  %12990 = vmatprep.mubr.bf16.mxu1 %v24477_v4 }
 0x9c0   :  { %12685 = vmatmul.mubr.bf16.vlgmr.msra.gmra.mrb[240].mxu0 %v24481_v29  ;;  %12991 = vmatmul.mubr.bf16.vlgmr.msra.gmra.mrb[16].mxu1 %v24481_v29 }
 0x9c1   :  { %12694 = vmatprep.mubr.bf16.mxu0 %v24485_v61  ;;  %12806 = vmatpush1.bf16.msra.mxu0 %v21486_v57  ;;  %v21501_v57 = vld [vmem:[#allocation9 + $0x770] ss:$12 sps:$4 sm:$0xff]  }
 0x9c2   :  { %12998 = vmatprep.mubr.bf16.mxu1 %v24485_v61  ;;  %13088 = vmatpush1.bf16.msra.mxu1 %v21489_v51  ;;  %v21504_v51 = vld [vmem:[#allocation9 + $0x784] ss:$12 sps:$4 sm:$0xff]  }
 0x9c3   :  { %12807 = vmatprep.subr.bf16.mxu0 %v21492_v53  ;;  %13089 = vmatprep.subr.bf16.mxu1 %v25551_v15  ;;  %v21502_v53 = vld [vmem:[#allocation9 + $0x780] ss:$12 sps:$4 sm:$0xff]  }
 0x9c5   :  { %12808 = vmatpush1.bf16.msra.mxu0 %v21490_v18  ;;  %v21505_v18 = vld [vmem:[#allocation9 + $0x788] ss:$12 sps:$4 sm:$0xff]  }
 0x9c6   :  { %13090 = vmatpush1.bf16.msra.mxu1 %v21493_v49  ;;  %12809 = vmatprep.subr.bf16.mxu0 %v21496_v59  ;;  %v24500_v49 = vld [vmem:[#allocation2 + $0x80] sm:$0xff] }
 0x9c7   :  { %13091 = vmatprep.subr.bf16.mxu1 %v25551_v15  ;;  %v21508_v59 = vld [vmem:[#allocation9 + $0x79c] ss:$12 sps:$4 sm:$0xff]  }
 0x9c8   :  { %12695 = vmatmul.mubr.bf16.gmra.mrb[244].mxu0 %v24490_v62  ;;  %12999 = vmatmul.mubr.bf16.gmra.mrb[20].mxu1 %v24490_v62 }
 0x9c9   :  { %12704 = vmatprep.mubr.bf16.mxu0 %v24495_v3  ;;  %13006 = vmatprep.mubr.bf16.mxu1 %v24495_v3 }
 0x9ca   :  { %12810 = vmatpush1.bf16.msra.mxu0 %v21494_v16  ;;  %13092 = vmatpush1.bf16.msra.mxu1 %v21497_v45  ;;  %v24505_v16 = vld [vmem:[#allocation2 + $0xa8] sm:$0xff] }
 0x9cb   :  { %12811 = vmatprep.subr.bf16.mxu0 %v21500_v32  ;;  %13093 = vmatprep.subr.bf16.mxu1 %v25551_v15  ;;  %v21506_v45 = vld [vmem:[#allocation9 + $0x798] ss:$12 sps:$4 sm:$0xff]   ;;  %v21509_v32 = vld [vmem:[#allocation9 + $0x7a0] ss:$12 sps:$4 sm:$0xff]  }
 0x9ce   :  { %12812 = vmatpush1.bf16.msra.mxu0 %v21498_v0  ;;  %13094 = vmatpush1.bf16.msra.mxu1 %v21501_v57  ;;  %v21512_v57 = vld [vmem:[#allocation9 + $0x7b4] ss:$12 sps:$4 sm:$0xff]  }
 0x9cf   :  { %12813 = vmatprep.subr.bf16.mxu0 %v21504_v51  ;;  %13095 = vmatprep.subr.bf16.mxu1 %v25551_v15 }
 0x9d0   :  { %12705 = vmatmul.mubr.bf16.gmra.mrb[248].mxu0 %v24500_v49  ;;  %13007 = vmatmul.mubr.bf16.gmra.mrb[24].mxu1 %v24500_v49 }
 0x9d1   :  { %12714 = vmatprep.mubr.bf16.mxu0 %v24505_v16  ;;  %13014 = vmatprep.mubr.bf16.mxu1 %v24505_v16 }
 0x9d2   :  { %12814 = vmatpush1.bf16.msra.mxu0 %v21502_v53  ;;  %13096 = vmatpush1.bf16.msra.mxu1 %v21505_v18  ;;  %v21516_v53 = vld [vmem:[#allocation9 + $0x7cc] ss:$12 sps:$4 sm:$0xff]  }
 0x9d3   :  { %v18256_v0 = vpop.f32.mrb[224].mxu1  ;;  %12815 = vmatprep.subr.bf16.mxu0 %v21508_v59  ;;  %13097 = vmatprep.subr.bf16.mxu1 %v25551_v15  ;;  %v24518_v59 = vld [vmem:[#allocation2 + $0xc8] sm:$0xff] }
 0x9d4   :  { %v18257_v51 = vpop.f32.mrb[225].mxu1 }
 0x9d5   :  { %v18258_v8 = vadd.f32 %v18257_v51, %v18256_v0  ;;  %v18259_v1 = vpop.f32.mrb[226].mxu1 }
 0x9d6   :  { %v18260_v27 = vpop.f32.mrb[227].mxu1  ;;  %12816 = vmatpush1.bf16.msra.mxu0 %v21506_v45  ;;  %13098 = vmatpush1.bf16.msra.mxu1 %v21509_v32  ;;  %v21517_v45 = vld [vmem:[#allocation9 + $0x7d0] ss:$12 sps:$4 sm:$0xff]  }
 0x9d7   :  { %v18261_v23 = vadd.f32 %v18260_v27, %v18259_v1  ;;  %12817 = vmatprep.subr.bf16.mxu0 %v21512_v57  ;;  %13099 = vmatprep.subr.bf16.mxu1 %v25551_v15  ;;  %v24514_v18 = vadd.f32 %v18258_v8, %v24396_v17  ;;  %v21514_v1 = vld [vmem:[#allocation9 + $0x7c8] ss:$12 sps:$4 sm:$0xff]   ;;  %v21520_v8 = vld [vmem:[#allocation9 + $0x7e4] ss:$12 sps:$4 sm:$0xff]  }
 0x9d8   :  { %12715 = vmatmul.mubr.bf16.gmra.mrb[252].mxu0 %v24510_v47  ;;  %13015 = vmatmul.mubr.bf16.gmra.mrb[28].mxu1 %v24510_v47 }
 0x9d9   :  { %25907 = vst [vmem:[#allocation34_spill] sm:$0xff] %v24514_v18  ;;  %12724 = vmatprep.mubr.bf16.mxu0 %v24518_v59  ;;  %13022 = vmatprep.mubr.bf16.mxu1 %v24518_v59  ;;  %v24523_v27 = vadd.f32 %v18261_v23, %v24398_v39  ;;  %v21518_v18 = vld [vmem:[#allocation9 + $0x7e0] ss:$12 sps:$4 sm:$0xff]   ;;  %v24534_v39 = vld [vmem:[#allocation2 + $0xe8] sm:$0xff] }
 0x9da   :  { %12818 = vmatpush1.bf16.msra.mxu0 %v21510_v22  ;;  %13100 = vmatpush1.bf16.msra.mxu1 %v21513_v37  ;;  %v24526_v23 = vld [vmem:[#allocation2 + $0xc0] sm:$0xff] }
 0x9db   :  { %25908 = vst [vmem:[#allocation35_spill] sm:$0xff] %v24523_v27  ;;  %v18262_v32 = vpop.f32.mrb[228].mxu1  ;;  %12819 = vmatprep.subr.bf16.mxu0 %v21516_v53  ;;  %13101 = vmatprep.subr.bf16.mxu1 %v25551_v15  ;;  %v21524_v37 = vld [vmem:[#allocation9 + $0x7fc] ss:$12 sps:$4 sm:$0xff]  }
 0x9dc   :  { %v18263_v17 = vpop.f32.mrb[229].mxu1  ;;  %v21557_v27 = vld [vmem:[#allocation9 + $0xe5c] ss:$12 sps:$4 sm:$0xff]  }
 0x9dd   :  { %v18264_v0 = vadd.f32 %v18263_v17, %v18262_v32  ;;  %v18265_v57 = vpop.f32.mrb[230].mxu1 }
 0x9de   :  { %v18266_v51 = vpop.f32.mrb[231].mxu1  ;;  %12820 = vmatpush1.bf16.msra.mxu0 %v21514_v1  ;;  %13102 = vmatpush1.bf16.msra.mxu1 %v21517_v45  ;;  %v21522_v1 = vld [vmem:[#allocation9 + $0x7f8] ss:$12 sps:$4 sm:$0xff]   ;;  %v21525_v45 = vld [vmem:[#allocation9 + $0x800] ss:$12 sps:$4 sm:$0xff]  }
 0x9df   :  { %v18267_v44 = vadd.f32 %v18266_v51, %v18265_v57  ;;  %12821 = vmatprep.subr.bf16.mxu0 %v21520_v8  ;;  %13103 = vmatprep.subr.bf16.mxu1 %v25551_v15  ;;  %v24530_v22 = vadd.f32 %v18264_v0, %v24402_v33  ;;  %v21528_v33 = vld [vmem:[#allocation9 + $0x814] ss:$12 sps:$4 sm:$0xff]   ;;  %v21526_v51 = vld [vmem:[#allocation9 + $0x810] ss:$12 sps:$4 sm:$0xff]  }
 0x9e0   :  { %12725 = vmatmul.mubr.bf16.gmra.mrb[0].mxu0 %v24526_v23  ;;  %13023 = vmatmul.mubr.bf16.gmra.mrb[80].mxu1 %v24526_v23 }
 0x9e1   :  { %25909 = vst [vmem:[#allocation36_spill] sm:$0xff] %v24530_v22  ;;  %12734 = vmatprep.mubr.bf16.mxu0 %v24534_v39  ;;  %13030 = vmatprep.mubr.bf16.mxu1 %v24534_v39  ;;  %v24539_v53 = vadd.f32 %v18267_v44, %v24404_v60  ;;  %v21529_v22 = vld [vmem:[#allocation9 + $0x818] ss:$12 sps:$4 sm:$0xff]  }
 0x9e2   :  { %12822 = vmatpush1.bf16.msra.mxu0 %v21518_v18  ;;  %13104 = vmatpush1.bf16.msra.mxu1 %v21521_v46  ;;  %v24545_v46 = vld [vmem:[#allocation2 + $0xe0] sm:$0xff]  ;;  %v21532_v18 = vld [vmem:[#allocation9 + $0x82c] ss:$12 sps:$4 sm:$0xff]  }
 0x9e3   :  { %25910 = vst [vmem:[#allocation37_spill] sm:$0xff] %v24539_v53  ;;  %v18268_v32 = vpop.f32.mrb[232].mxu1  ;;  %12823 = vmatprep.subr.bf16.mxu0 %v21524_v37  ;;  %13105 = vmatprep.subr.bf16.mxu1 %v25551_v15  ;;  %v24550_v37 = vld [vmem:[#allocation2 + $0x108] sm:$0xff] }
 0x9e4   :  { %v18269_v8 = vpop.f32.mrb[233].mxu1 }
 0x9e5   :  { %v18270_v17 = vadd.f32 %v18269_v8, %v18268_v32  ;;  %v18271_v0 = vpop.f32.mrb[234].mxu1 }
 0x9e6   :  { %v18272_v57 = vpop.f32.mrb[235].mxu1  ;;  %12824 = vmatpush1.bf16.msra.mxu0 %v21522_v1  ;;  %13106 = vmatpush1.bf16.msra.mxu1 %v21525_v45  ;;  %v21533_v45 = vld [vmem:[#allocation9 + $0x830] ss:$12 sps:$4 sm:$0xff]  }
 0x9e7   :  { %v24543_v44 = vadd.f32 %v18270_v17, %v24408_v48  ;;  %v18273_v60 = vadd.f32 %v18272_v57, %v18271_v0  ;;  %12825 = vmatprep.subr.bf16.mxu0 %v21528_v33  ;;  %13107 = vmatprep.subr.bf16.mxu1 %v25551_v15  ;;  %v21530_v48 = vld [vmem:[#allocation9 + $0x828] ss:$12 sps:$4 sm:$0xff]   ;;  %v21536_v33 = vld [vmem:[#allocation9 + $0x844] ss:$12 sps:$4 sm:$0xff]  }
 0x9e8   :  { %12735 = vmatmul.mubr.bf16.gmra.mrb[4].mxu0 %v24545_v46  ;;  %13031 = vmatmul.mubr.bf16.gmra.mrb[84].mxu1 %v24545_v46 }
 0x9e9   :  { %25911 = vst [vmem:[#allocation38_spill] sm:$0xff] %v24543_v44  ;;  %v24553_v1 = vadd.f32 %v18273_v60, %v24410_v5  ;;  %12744 = vmatprep.mubr.bf16.mxu0 %v24550_v37  ;;  %13038 = vmatprep.mubr.bf16.mxu1 %v24550_v37  ;;  %v21534_v5 = vld [vmem:[#allocation9 + $0x840] ss:$12 sps:$4 sm:$0xff]   ;;  %v21537_v60 = vld [vmem:[#allocation9 + $0x848] ss:$12 sps:$4 sm:$0xff]  }
 0x9ea   :  { %12826 = vmatpush1.bf16.msra.mxu0 %v21526_v51  ;;  %13108 = vmatpush1.bf16.msra.mxu1 %v21529_v22  ;;  %v24561_v22 = vld [vmem:[#allocation2 + $0x100] sm:$0xff] }
 0x9eb   :  { %25912 = vst [vmem:[#allocation39_spill] sm:$0xff] %v24553_v1  ;;  %v18274_v32 = vpop.f32.mrb[236].mxu1  ;;  %12827 = vmatprep.subr.bf16.mxu0 %v21532_v18  ;;  %13109 = vmatprep.subr.bf16.mxu1 %v25551_v15  ;;  %v21540_v18 = vld [vmem:[#allocation9 + $0x85c] ss:$12 sps:$4 sm:$0xff]  }
 0x9ec   :  { %v18275_v8 = vpop.f32.mrb[237].mxu1 }
 0x9ed   :  { %v18276_v17 = vadd.f32 %v18275_v8, %v18274_v32  ;;  %v18277_v0 = vpop.f32.mrb[238].mxu1  ;;  %v24566_v32 = vld [vmem:[#allocation2 + $0x128] sm:$0xff]  ;;  %v21544_v8 = vld [vmem:[#allocation9 + $0xe14] ss:$12 sps:$4 sm:$0xff]  }
 0x9ee   :  { %v18278_v57 = vpop.f32.mrb[239].mxu1  ;;  %12828 = vmatpush1.bf16.msra.mxu0 %v21530_v48  ;;  %13110 = vmatpush1.bf16.msra.mxu1 %v21533_v45  ;;  %v21541_v45 = vld [vmem:[#allocation9 + $0x860] ss:$12 sps:$4 sm:$0xff]  }
 0x9ef   :  { %v24559_v1 = vadd.f32 %v18276_v17, %v24414_v10  ;;  %v18279_v51 = vadd.f32 %v18278_v57, %v18277_v0  ;;  %12829 = vmatprep.subr.bf16.mxu0 %v21536_v33  ;;  %13111 = vmatprep.subr.bf16.mxu1 %v25551_v15  ;;  %v21538_v10 = vld [vmem:[#allocation9 + $0x858] ss:$12 sps:$4 sm:$0xff]  }
 0x9f0   :  { %12745 = vmatmul.mubr.bf16.gmra.mrb[8].mxu0 %v24561_v22  ;;  %13039 = vmatmul.mubr.bf16.gmra.mrb[88].mxu1 %v24561_v22  ;;  %v21545_v17 = vld [vmem:[#allocation9 + $0xed8] ss:$12 sps:$4 sm:$0xff]  }
 0x9f1   :  { %25913 = vst [vmem:[#allocation40_spill] sm:$0xff] %v24559_v1  ;;  %v24569_v48 = vadd.f32 %v18279_v51, %v24416_v20  ;;  %12754 = vmatprep.mubr.bf16.mxu0 %v24566_v32  ;;  %13046 = vmatprep.mubr.bf16.mxu1 %v24566_v32 }
 0x9f2   :  { %12830 = vmatpush1.bf16.msra.mxu0 %v21534_v5  ;;  %13112 = vmatpush1.bf16.msra.mxu1 %v21537_v60  ;;  %v24577_v5 = vld [vmem:[#allocation2 + $0x120] sm:$0xff]  ;;  %v24581_v60 = vld [vmem:[#allocation2 + $0x148] sm:$0xff] }
 0x9f3   :  { %25914 = vst [vmem:[#allocation41_spill] sm:$0xff] %v24569_v48  ;;  %v18280_v33 = vpop.f32.mrb[240].mxu1  ;;  %12831 = vmatprep.subr.bf16.mxu0 %v21540_v18  ;;  %13113 = vmatprep.subr.bf16.mxu1 %v25551_v15 }
 0x9f4   :  { %v18281_v0 = vpop.f32.mrb[241].mxu1 }
 0x9f5   :  { %v18282_v57 = vadd.f32 %v18281_v0, %v18280_v33  ;;  %v18283_v1 = vpop.f32.mrb[242].mxu1 }
 0x9f6   :  { %v18284_v44 = vpop.f32.mrb[243].mxu1  ;;  %12832 = vmatpush1.bf16.msra.mxu0 %v21538_v10  ;;  %13114 = vmatpush1.bf16.msra.mxu1 %v21541_v45 }
 0x9f7   :  { %v24575_v20 = vadd.f32 %v18282_v57, %v24420_v42  ;;  %v18285_v51 = vadd.f32 %v18284_v44, %v18283_v1  ;;  %13889 = vmatprep.subr.bf16.mxu0 %v21544_v8  ;;  %18416 = vmatprep.subr.bf16.mxu1 %v21545_v17  ;;  %v24591_v17 = vld [vmem:[#allocation2 + $0x140] sm:$0xff] }
 0x9f8   :  { %12755 = vmatmul.mubr.bf16.gmra.mrb[12].mxu0 %v24577_v5  ;;  %13047 = vmatmul.mubr.bf16.gmra.mrb[92].mxu1 %v24577_v5 }
 0x9f9   :  { %25915 = vst [vmem:[#allocation42_spill] sm:$0xff] %v24575_v20  ;;  %v24584_v18 = vadd.f32 %v18285_v51, %v24422_v38  ;;  %12764 = vmatprep.mubr.bf16.mxu0 %v24581_v60  ;;  %13054 = vmatprep.mubr.bf16.mxu1 %v24581_v60  ;;  %v24595_v38 = vld [vmem:[#allocation2 + $0x168] sm:$0xff] }
 0x9fb   :  { %25916 = vst [vmem:[#allocation43_spill] sm:$0xff] %v24584_v18  ;;  %v18286_v42 = vpop.f32.mrb[244].mxu1  ;;  %v24649_v18 = vld [vmem:[#allocation2 + $0x50] sm:$0xff] }
 0x9fc   :  { %v18287_v10 = vpop.f32.mrb[245].mxu1 }
 0x9fd   :  { %v18288_v44 = vadd.f32 %v18287_v10, %v18286_v42  ;;  %v18289_v1 = vpop.f32.mrb[246].mxu1 }
 0x9fe   :  { %v18290_v45 = vpop.f32.mrb[247].mxu1 }
 0x9ff   :  { %v24589_v33 = vadd.f32 %v18288_v44, %v24424_v7  ;;  %v18291_v8 = vadd.f32 %v18290_v45, %v18289_v1  ;;  %v24605_v45 = vld [vmem:[#allocation2 + $0x160] sm:$0xff] }
 0xa00   :  { %12765 = vmatmul.mubr.bf16.gmra.mrb[16].mxu0 %v24591_v17  ;;  %13055 = vmatmul.mubr.bf16.gmra.mrb[96].mxu1 %v24591_v17 }
 0xa01   :  { %25917 = vst [vmem:[#allocation44_spill] sm:$0xff] %v24589_v33  ;;  %v24598_v0 = vadd.f32 %v18291_v8, %v24426_v28  ;;  %12774 = vmatprep.mubr.bf16.mxu0 %v24595_v38  ;;  %13062 = vmatprep.mubr.bf16.mxu1 %v24595_v38  ;;  %v24609_v28 = vld [vmem:[#allocation2 + $0x188] sm:$0xff] }
 0xa03   :  { %25918 = vst [vmem:[#allocation45_spill] sm:$0xff] %v24598_v0  ;;  %v18292_v57 = vpop.f32.mrb[248].mxu1  ;;  %v24619_v0 = vld [vmem:[#allocation2 + $0x180] sm:$0xff] }
 0xa04   :  { %v18293_v51 = vpop.f32.mrb[249].mxu1 }
 0xa05   :  { %v18294_v7 = vadd.f32 %v18293_v51, %v18292_v57  ;;  %v18295_v42 = vpop.f32.mrb[250].mxu1 }
 0xa06   :  { %v18296_v10 = vpop.f32.mrb[251].mxu1 }
 0xa07   :  { %v24603_v44 = vadd.f32 %v18294_v7, %v24428_v19  ;;  %v18297_v1 = vadd.f32 %v18296_v10, %v18295_v42 }
 0xa08   :  { %12775 = vmatmul.mubr.bf16.gmra.mrb[20].mxu0 %v24605_v45  ;;  %13063 = vmatmul.mubr.bf16.gmra.mrb[100].mxu1 %v24605_v45 }
 0xa09   :  { %25919 = vst [vmem:[#allocation46_spill] sm:$0xff] %v24603_v44  ;;  %v24612_v8 = vadd.f32 %v18297_v1, %v24430_v50  ;;  %12784 = vmatprep.mubr.bf16.mxu0 %v24609_v28  ;;  %13070 = vmatprep.mubr.bf16.mxu1 %v24609_v28  ;;  %v24623_v50 = vld [vmem:[#allocation2 + $0x1a8] sm:$0xff] }
 0xa0b   :  { %25920 = vst [vmem:[#allocation47_spill] sm:$0xff] %v24612_v8  ;;  %v18298_v57 = vpop.f32.mrb[252].mxu1  ;;  %v24633_v8 = vld [vmem:[#allocation2 + $0x1a0] sm:$0xff] }
 0xa0c   :  { %v18299_v51 = vpop.f32.mrb[253].mxu1 }
 0xa0d   :  { %v18300_v19 = vadd.f32 %v18299_v51, %v18298_v57  ;;  %v18301_v7 = vpop.f32.mrb[254].mxu1 }
 0xa0e   :  { %v18302_v42 = vpop.f32.mrb[255].mxu1 }
 0xa0f   :  { %v24617_v10 = vadd.f32 %v18300_v19, %v24432_v2  ;;  %v18303_v44 = vadd.f32 %v18302_v42, %v18301_v7 }
 0xa10   :  { %12785 = vmatmul.mubr.bf16.gmra.mrb[24].mxu0 %v24619_v0  ;;  %13071 = vmatmul.mubr.bf16.gmra.mrb[104].mxu1 %v24619_v0 }
 0xa11   :  { %25921 = vst [vmem:[#allocation48_spill] sm:$0xff] %v24617_v10  ;;  %v24626_v1 = vadd.f32 %v18303_v44, %v24434_v43  ;;  %12794 = vmatprep.mubr.bf16.mxu0 %v24623_v50  ;;  %13078 = vmatprep.mubr.bf16.mxu1 %v24623_v50  ;;  %v24637_v43 = vld [vmem:[#allocation2 + $0x58] sm:$0xff] }
 0xa13   :  { %25922 = vst [vmem:[#allocation49_spill] sm:$0xff] %v24626_v1  ;;  %v18304_v57 = vpop.f32.mrb[0].mxu1 }
 0xa14   :  { %v18305_v51 = vpop.f32.mrb[1].mxu1 }
 0xa15   :  { %v18306_v2 = vadd.f32 %v18305_v51, %v18304_v57  ;;  %v18307_v19 = vpop.f32.mrb[2].mxu1 }
 0xa16   :  { %v18308_v7 = vpop.f32.mrb[3].mxu1 }
 0xa17   :  { %v24631_v42 = vadd.f32 %v18306_v2, %v24436_v55  ;;  %v18309_v10 = vadd.f32 %v18308_v7, %v18307_v19  ;;  %v21542_v7 = vld [vmem:[#allocation9 + $0xe10] ss:$12 sps:$4 sm:$0xff]  }
 0xa18   :  { %12795 = vmatmul.mubr.bf16.gmra.mrb[28].mxu0 %v24633_v8  ;;  %13079 = vmatmul.mubr.bf16.gmra.mrb[108].mxu1 %v24633_v8 }
 0xa19   :  { %25923 = vst [vmem:[#allocation50_spill] sm:$0xff] %v24631_v42  ;;  %v24640_v44 = vadd.f32 %v18309_v10, %v24438_v13  ;;  %17684 = vmatprep.mubr.msk.bf16.mxu0 %vm613_vm0, %v24637_v43  ;;  %17696 = vmatprep.mubr.msk.bf16.mxu1 %vm613_vm0, %v24637_v43  ;;  %v21546_v42 = vld [vmem:[#allocation9 + $0xe18] ss:$12 sps:$4 sm:$0xff]   ;;  %v21553_v10 = vld [vmem:[#allocation9 + $0xef0] ss:$12 sps:$4 sm:$0xff]  }
 0xa1a   :  { %v21549_v13 = vld [vmem:[#allocation9 + $0xe2c] ss:$12 sps:$4 sm:$0xff]  }
 0xa1b   :  { %25924 = vst [vmem:[#allocation51_spill] sm:$0xff] %v24640_v44  ;;  %v18310_v55 = vpop.f32.mrb[4].mxu1  ;;  %v24653_v44 = vld [vmem:[#allocation2 + $0x78] sm:$0xff] }
 0xa1c   :  { %v18311_v57 = vpop.f32.mrb[5].mxu1 }
 0xa1d   :  { %v18312_v51 = vadd.f32 %v18311_v57, %v18310_v55  ;;  %v18313_v2 = vpop.f32.mrb[6].mxu1  ;;  %v21554_v57 = vld [vmem:[#allocation9 + $0xe30] ss:$12 sps:$4 sm:$0xff]  }
 0xa1e   :  { %v18314_v19 = vpop.f32.mrb[7].mxu1 }
 0xa1f   :  { %v24647_v1 = vadd.f32 %v18312_v51, %v24442_v31  ;;  %v18315_v33 = vadd.f32 %v18314_v19, %v18313_v2  ;;  %v21547_v31 = vld [vmem:[#allocation9 + $0xe28] ss:$12 sps:$4 sm:$0xff]   ;;  %v21552_v2 = vld [vmem:[#allocation9 + $0xe44] ss:$12 sps:$4 sm:$0xff]  }
 0xa20   :  { %12838 = vmatmul.mubr.bf16.vlgmr.msra.gmra.mrb[240].mxu0 %v24649_v18  ;;  %13120 = vmatmul.mubr.bf16.vlgmr.msra.gmra.mrb[32].mxu1 %v24649_v18  ;;  %v21561_v19 = vld [vmem:[#allocation9 + $0xf08] ss:$12 sps:$4 sm:$0xff]  }
 0xa21   :  { %25925 = vst [vmem:[#allocation52_spill] sm:$0xff] %v24647_v1  ;;  %v24656_v55 = vadd.f32 %v18315_v33, %v24444_v40  ;;  %17685 = vmatprep.mubr.msk.bf16.mxu0 %vm613_vm0, %v24653_v44  ;;  %17697 = vmatprep.mubr.msk.bf16.mxu1 %vm613_vm0, %v24653_v44  ;;  %v21550_v33 = vld [vmem:[#allocation9 + $0xe40] ss:$12 sps:$4 sm:$0xff]  }
 0xa22   :  { %13890 = vmatpush1.bf16.msra.mxu0 %v21542_v7  ;;  %18417 = vmatpush3.bf16.msra.mxu1 %v21546_v42  ;;  %v24665_v42 = vld [vmem:[#allocation2 + $0x70] sm:$0xff] }
 0xa23   :  { %25926 = vst [vmem:[#allocation53_spill] sm:$0xff] %v24656_v55  ;;  %v18316_v51 = vpop.f32.mrb[8].mxu1  ;;  %13891 = vmatprep.subr.bf16.mxu0 %v21549_v13  ;;  %18418 = vmatprep.subr.bf16.mxu1 %v21553_v10  ;;  %v21562_v55 = vld [vmem:[#allocation9 + $0xe48] ss:$12 sps:$4 sm:$0xff]   ;;  %v21569_v13 = vld [vmem:[#allocation9 + $0xf20] ss:$12 sps:$4 sm:$0xff]  }
 0xa24   :  { %v18317_v1 = vpop.f32.mrb[9].mxu1 }
 0xa25   :  { %v18318_v20 = vadd.f32 %v18317_v1, %v18316_v51  ;;  %v18319_v48 = vpop.f32.mrb[10].mxu1  ;;  %v24669_v1 = vld [vmem:[#allocation2 + $0x98] sm:$0xff] }
 0xa26   :  { %v18320_v40 = vpop.f32.mrb[11].mxu1  ;;  %13892 = vmatpush1.bf16.msra.mxu0 %v21547_v31  ;;  %18419 = vmatpush3.bf16.msra.mxu1 %v21554_v57  ;;  %v21560_v31 = vld [vmem:[#allocation9 + $0xe74] ss:$12 sps:$4 sm:$0xff]   ;;  %v21577_v57 = vld [vmem:[#allocation9 + $0xf38] ss:$12 sps:$4 sm:$0xff]  }
 0xa27   :  { %v24663_v53 = vadd.f32 %v18318_v20, %v24448_v26  ;;  %v18321_v7 = vadd.f32 %v18320_v40, %v18319_v48  ;;  %13893 = vmatprep.subr.bf16.mxu0 %v21552_v2  ;;  %18420 = vmatprep.subr.bf16.mxu1 %v21561_v19  ;;  %v21555_v26 = vld [vmem:[#allocation9 + $0xe58] ss:$12 sps:$4 sm:$0xff]   ;;  %v21570_v48 = vld [vmem:[#allocation9 + $0xe60] ss:$12 sps:$4 sm:$0xff]   ;;  %v21558_v40 = vld [vmem:[#allocation9 + $0xe70] ss:$12 sps:$4 sm:$0xff]  }
 0xa28   :  { %12848 = vmatmul.mubr.bf16.gmra.mrb[244].mxu0 %v24665_v42  ;;  %13128 = vmatmul.mubr.bf16.gmra.mrb[36].mxu1 %v24665_v42 }
 0xa29   :  { %25927 = vst [vmem:[#allocation54_spill] sm:$0xff] %v24663_v53  ;;  %v24672_v10 = vadd.f32 %v18321_v7, %v24450_v14  ;;  %17686 = vmatprep.mubr.msk.bf16.mxu0 %vm613_vm0, %v24669_v1  ;;  %17698 = vmatprep.mubr.msk.bf16.mxu1 %vm613_vm0, %v24669_v1  ;;  %v21578_v7 = vld [vmem:[#allocation9 + $0xe78] ss:$12 sps:$4 sm:$0xff]   ;;  %v24681_v53 = vld [vmem:[#allocation2 + $0x90] sm:$0xff] }
 0xa2a   :  { %13894 = vmatpush1.bf16.msra.mxu0 %v21550_v33  ;;  %18421 = vmatpush3.bf16.msra.mxu1 %v21562_v55  ;;  %v21565_v55 = vld [vmem:[#allocation9 + $0xe8c] ss:$12 sps:$4 sm:$0xff]  }
 0xa2b   :  { %25928 = vst [vmem:[#allocation55_spill] sm:$0xff] %v24672_v10  ;;  %v18322_v20 = vpop.f32.mrb[12].mxu1  ;;  %13895 = vmatprep.subr.bf16.mxu0 %v21557_v27  ;;  %18422 = vmatprep.subr.bf16.mxu1 %v21569_v13  ;;  %v21585_v27 = vld [vmem:[#allocation9 + $0xf50] ss:$12 sps:$4 sm:$0xff]   ;;  %v24685_v13 = vld [vmem:[#allocation2 + $0xb8] sm:$0xff] }
 0xa2c   :  { %v18323_v51 = vpop.f32.mrb[13].mxu1 }
 0xa2d   :  { %v18324_v2 = vadd.f32 %v18323_v51, %v18322_v20  ;;  %v18325_v19 = vpop.f32.mrb[14].mxu1  ;;  %v21568_v20 = vld [vmem:[#allocation9 + $0xea4] ss:$12 sps:$4 sm:$0xff]   ;;  %v21594_v51 = vld [vmem:[#allocation9 + $0xea8] ss:$12 sps:$4 sm:$0xff]  }
 0xa2e   :  { %v18326_v14 = vpop.f32.mrb[15].mxu1  ;;  %13896 = vmatpush1.bf16.msra.mxu0 %v21555_v26  ;;  %18423 = vmatpush3.bf16.msra.mxu1 %v21570_v48  ;;  %v21586_v48 = vld [vmem:[#allocation9 + $0xe90] ss:$12 sps:$4 sm:$0xff]  }
 0xa2f   :  { %v24679_v10 = vadd.f32 %v18324_v2, %v24454_v35  ;;  %v18327_v33 = vadd.f32 %v18326_v14, %v18325_v19  ;;  %13897 = vmatprep.subr.bf16.mxu0 %v21560_v31  ;;  %18424 = vmatprep.subr.bf16.mxu1 %v21577_v57  ;;  %v21563_v35 = vld [vmem:[#allocation9 + $0xe88] ss:$12 sps:$4 sm:$0xff]   ;;  %v21566_v57 = vld [vmem:[#allocation9 + $0xea0] ss:$12 sps:$4 sm:$0xff]  }
 0xa30   :  { %12858 = vmatmul.mubr.bf16.gmra.mrb[248].mxu0 %v24681_v53  ;;  %13136 = vmatmul.mubr.bf16.gmra.mrb[40].mxu1 %v24681_v53  ;;  %v21593_v31 = vld [vmem:[#allocation9 + $0xf68] ss:$12 sps:$4 sm:$0xff]   ;;  %v21601_v19 = vld [vmem:[#allocation9 + $0xf80] ss:$12 sps:$4 sm:$0xff]  }
 0xa31   :  { %25929 = vst [vmem:[#allocation56_spill] sm:$0xff] %v24679_v10  ;;  %v24688_v26 = vadd.f32 %v18327_v33, %v24456_v12  ;;  %17687 = vmatprep.mubr.msk.bf16.mxu0 %vm613_vm0, %v24685_v13  ;;  %17699 = vmatprep.mubr.msk.bf16.mxu1 %vm613_vm0, %v24685_v13  ;;  %v24694_v12 = vld [vmem:[#allocation2 + $0xb0] sm:$0xff]  ;;  %v21573_v2 = vld [vmem:[#allocation9 + $0xebc] ss:$12 sps:$4 sm:$0xff]   ;;  %v24698_v14 = vld [vmem:[#allocation2 + $0xd8] sm:$0xff] }
 0xa32   :  { %13898 = vmatpush1.bf16.msra.mxu0 %v21558_v40  ;;  %18425 = vmatpush3.bf16.msra.mxu1 %v21578_v7  ;;  %v21571_v40 = vld [vmem:[#allocation9 + $0xeb8] ss:$12 sps:$4 sm:$0xff]   ;;  %v21602_v7 = vld [vmem:[#allocation9 + $0xec0] ss:$12 sps:$4 sm:$0xff]  }
 0xa33   :  { %25930 = vst [vmem:[#allocation57_spill] sm:$0xff] %v24688_v26  ;;  %13899 = vmatprep.subr.bf16.mxu0 %v21565_v55  ;;  %18426 = vmatprep.subr.bf16.mxu1 %v21585_v27  ;;  %v21576_v33 = vld [vmem:[#allocation9 + $0xed4] ss:$12 sps:$4 sm:$0xff]   ;;  %v21574_v55 = vld [vmem:[#allocation9 + $0xed0] ss:$12 sps:$4 sm:$0xff]  }
 0xa34   :  { %v24704_v27 = vld [vmem:[#allocation2 + $0xd0] sm:$0xff]  ;;  %v24739_v26 = vld [vmem:[#allocation2 + $0x158] sm:$0xff] }
 0xa35   :  { %25931 = vst [vmem:[#allocation58_spill] sm:$0xff] %v24739_v26  ;;  %v24775_v10 = vld [vmem:[#allocation2 + $0x1b0] sm:$0xff] }
 0xa36   :  { %13900 = vmatpush1.bf16.msra.mxu0 %v21563_v35  ;;  %18427 = vmatpush3.bf16.msra.mxu1 %v21586_v48  ;;  %v21581_v35 = vld [vmem:[#allocation9 + $0xeec] ss:$12 sps:$4 sm:$0xff]   ;;  %25938 = vst [vmem:[#allocation65_spill] sm:$0xff] %v24775_v10 }
 0xa37   :  { %13901 = vmatprep.subr.bf16.mxu0 %v21568_v20  ;;  %18428 = vmatprep.subr.bf16.mxu1 %v21593_v31  ;;  %v24709_v48 = vld [vmem:[#allocation2 + $0xf8] sm:$0xff]  ;;  %v21584_v31 = vld [vmem:[#allocation9 + $0xf04] ss:$12 sps:$4 sm:$0xff]  }
 0xa38   :  { %12868 = vmatmul.mubr.bf16.gmra.mrb[252].mxu0 %v24694_v12  ;;  %13144 = vmatmul.mubr.bf16.gmra.mrb[44].mxu1 %v24694_v12  ;;  %v21579_v20 = vld [vmem:[#allocation9 + $0xee8] ss:$12 sps:$4 sm:$0xff]  }
 0xa39   :  { %17688 = vmatprep.mubr.msk.bf16.mxu0 %vm613_vm0, %v24698_v14  ;;  %17700 = vmatprep.mubr.msk.bf16.mxu1 %vm613_vm0, %v24698_v14 }
 0xa3a   :  { %13902 = vmatpush1.bf16.msra.mxu0 %v21566_v57  ;;  %18429 = vmatpush3.bf16.msra.mxu1 %v21594_v51  ;;  %v21582_v57 = vld [vmem:[#allocation9 + $0xf00] ss:$12 sps:$4 sm:$0xff]  }
 0xa3b   :  { %13903 = vmatprep.subr.bf16.mxu0 %v21573_v2  ;;  %18430 = vmatprep.subr.bf16.mxu1 %v21601_v19  ;;  %v24715_v51 = vld [vmem:[#allocation2 + $0xf0] sm:$0xff]  ;;  %v21589_v2 = vld [vmem:[#allocation9 + $0xf1c] ss:$12 sps:$4 sm:$0xff]   ;;  %v24719_v19 = vld [vmem:[#allocation2 + $0x118] sm:$0xff] }
 0xa3e   :  { %13904 = vmatpush1.bf16.msra.mxu0 %v21571_v40  ;;  %18431 = vmatpush3.bf16.msra.mxu1 %v21602_v7  ;;  %v21587_v40 = vld [vmem:[#allocation9 + $0xf18] ss:$12 sps:$4 sm:$0xff]   ;;  %v21592_v7 = vld [vmem:[#allocation9 + $0xf34] ss:$12 sps:$4 sm:$0xff]  }
 0xa3f   :  { %13905 = vmatprep.subr.bf16.mxu0 %v21576_v33  ;;  %14324 = vmatprep.subr.bf16.mxu1 %v25551_v15  ;;  %v21590_v33 = vld [vmem:[#allocation9 + $0xf30] ss:$12 sps:$4 sm:$0xff]  }
 0xa40   :  { %12878 = vmatmul.mubr.bf16.gmra.mrb[0].mxu0 %v24704_v27  ;;  %13152 = vmatmul.mubr.bf16.gmra.mrb[48].mxu1 %v24704_v27 }
 0xa41   :  { %17689 = vmatprep.mubr.msk.bf16.mxu0 %vm613_vm0, %v24709_v48  ;;  %17701 = vmatprep.mubr.msk.bf16.mxu1 %vm613_vm0, %v24709_v48 }
 0xa42   :  { %13906 = vmatpush1.bf16.msra.mxu0 %v21574_v55  ;;  %v24725_v55 = vld [vmem:[#allocation2 + $0x110] sm:$0xff] }
 0xa43   :  { %13907 = vmatprep.subr.bf16.mxu0 %v21581_v35  ;;  %v21597_v35 = vld [vmem:[#allocation9 + $0xf4c] ss:$12 sps:$4 sm:$0xff]  }
 0xa46   :  { %13908 = vmatpush1.bf16.msra.mxu0 %v21579_v20  ;;  %v24729_v20 = vld [vmem:[#allocation2 + $0x138] sm:$0xff] }
 0xa47   :  { %13909 = vmatprep.subr.bf16.mxu0 %v21584_v31  ;;  %v21595_v31 = vld [vmem:[#allocation9 + $0xf48] ss:$12 sps:$4 sm:$0xff]  }
 0xa48   :  { %12888 = vmatmul.mubr.bf16.gmra.mrb[4].mxu0 %v24715_v51  ;;  %13160 = vmatmul.mubr.bf16.gmra.mrb[52].mxu1 %v24715_v51 }
 0xa49   :  { %17690 = vmatprep.mubr.msk.bf16.mxu0 %vm613_vm0, %v24719_v19  ;;  %17702 = vmatprep.mubr.msk.bf16.mxu1 %vm613_vm0, %v24719_v19 }
 0xa4a   :  { %13910 = vmatpush1.bf16.msra.mxu0 %v21582_v57  ;;  %v21600_v57 = vld [vmem:[#allocation9 + $0xf64] ss:$12 sps:$4 sm:$0xff]  }
 0xa4b   :  { %13911 = vmatprep.subr.bf16.mxu0 %v21589_v2  ;;  %v21598_v2 = vld [vmem:[#allocation9 + $0xf60] ss:$12 sps:$4 sm:$0xff]  }
 0xa4e   :  { %13912 = vmatpush1.bf16.msra.mxu0 %v21587_v40  ;;  %v24735_v40 = vld [vmem:[#allocation2 + $0x130] sm:$0xff] }
 0xa4f   :  { %13913 = vmatprep.subr.bf16.mxu0 %v21592_v7  ;;  %v21605_v7 = vld [vmem:[#allocation9 + $0xf7c] ss:$12 sps:$4 sm:$0xff]  }
 0xa50   :  { %12898 = vmatmul.mubr.bf16.gmra.mrb[8].mxu0 %v24725_v55  ;;  %13168 = vmatmul.mubr.bf16.gmra.mrb[56].mxu1 %v24725_v55 }
 0xa51   :  { %17691 = vmatprep.mubr.msk.bf16.mxu0 %vm613_vm0, %v24729_v20  ;;  %17703 = vmatprep.mubr.msk.bf16.mxu1 %vm613_vm0, %v24729_v20 }
 0xa52   :  { %13914 = vmatpush1.bf16.msra.mxu0 %v21590_v33  ;;  %v21603_v33 = vld [vmem:[#allocation9 + $0xf78] ss:$12 sps:$4 sm:$0xff]  }
 0xa53   :  { %13915 = vmatprep.subr.bf16.mxu0 %v21597_v35  ;;  %v21608_v35 = vld [vmem:[#allocation9 + $0xf94] ss:$12 sps:$4 sm:$0xff]  }
 0xa56   :  { %13916 = vmatpush1.bf16.msra.mxu0 %v21595_v31  ;;  %v24745_v31 = vld [vmem:[#allocation2 + $0x150] sm:$0xff] }
 0xa57   :  { %13917 = vmatprep.subr.bf16.mxu0 %v21600_v57  ;;  %25932 = vst [vmem:[#allocation59_spill] sm:$0xff] %v24745_v31  ;;  %v24749_v57 = vld [vmem:[#allocation2 + $0x178] sm:$0xff] }
 0xa58   :  { %12908 = vmatmul.mubr.bf16.gmra.mrb[12].mxu0 %v24735_v40  ;;  %13176 = vmatmul.mubr.bf16.gmra.mrb[60].mxu1 %v24735_v40  ;;  %25933 = vst [vmem:[#allocation60_spill] sm:$0xff] %v24749_v57 }
 0xa59   :  { %17692 = vmatprep.mubr.msk.bf16.mxu0 %vm613_vm0, %v24739_v26  ;;  %17704 = vmatprep.mubr.msk.bf16.mxu1 %vm613_vm0, %v24739_v26 }
 0xa5a   :  { %13918 = vmatpush1.bf16.msra.mxu0 %v21598_v2  ;;  %v24755_v2 = vld [vmem:[#allocation2 + $0x170] sm:$0xff] }
 0xa5b   :  { %13919 = vmatprep.subr.bf16.mxu0 %v21605_v7  ;;  %25934 = vst [vmem:[#allocation61_spill] sm:$0xff] %v24755_v2  ;;  %v24759_v7 = vld [vmem:[#allocation2 + $0x198] sm:$0xff] }
 0xa5c   :  { %25935 = vst [vmem:[#allocation62_spill] sm:$0xff] %v24759_v7 }
 0xa5e   :  { %13920 = vmatpush1.bf16.msra.mxu0 %v21603_v33  ;;  %v24765_v33 = vld [vmem:[#allocation2 + $0x190] sm:$0xff] }
 0xa5f   :  { %14042 = vmatprep.subr.bf16.mxu0 %v21608_v35  ;;  %25936 = vst [vmem:[#allocation63_spill] sm:$0xff] %v24765_v33  ;;  %v24769_v35 = vld [vmem:[#allocation2 + $0x1b8] sm:$0xff] }
 0xa60   :  { %12918 = vmatmul.mubr.bf16.gmra.mrb[16].mxu0 %v24745_v31  ;;  %13184 = vmatmul.mubr.bf16.gmra.mrb[64].mxu1 %v24745_v31  ;;  %25937 = vst [vmem:[#allocation64_spill] sm:$0xff] %v24769_v35  ;;  %v21617_v31 = vld [vmem:[#allocation9 + $0xfc8] ss:$12 sps:$4 sm:$0xff]  }
 0xa61   :  { %17693 = vmatprep.mubr.msk.bf16.mxu0 %vm613_vm0, %v24749_v57  ;;  %17705 = vmatprep.mubr.msk.bf16.mxu1 %vm613_vm0, %v24749_v57  ;;  %v21613_v57 = vld [vmem:[#allocation9 + $0xfb0] ss:$12 sps:$4 sm:$0xff]  }
 0xa68   :  { %12928 = vmatmul.mubr.bf16.gmra.mrb[20].mxu0 %v24755_v2  ;;  %13192 = vmatmul.mubr.bf16.gmra.mrb[68].mxu1 %v24755_v2  ;;  %v21612_v2 = vld [vmem:[#allocation9 + $0xfac] ss:$12 sps:$4 sm:$0xff]  }
 0xa69   :  { %17694 = vmatprep.mubr.msk.bf16.mxu0 %vm613_vm0, %v24759_v7  ;;  %17706 = vmatprep.mubr.msk.bf16.mxu1 %vm613_vm0, %v24759_v7  ;;  %v21606_v7 = vld [vmem:[#allocation9 + $0xf90] ss:$12 sps:$4 sm:$0xff]  }
 0xa70   :  { %12938 = vmatmul.mubr.bf16.gmra.mrb[24].mxu0 %v24765_v33  ;;  %13200 = vmatmul.mubr.bf16.gmra.mrb[72].mxu1 %v24765_v33  ;;  %v21609_v33 = vld [vmem:[#allocation9 + $0xf98] ss:$12 sps:$4 sm:$0xff]  }
 0xa71   :  { %17695 = vmatprep.mubr.msk.bf16.mxu0 %vm613_vm0, %v24769_v35  ;;  %17707 = vmatprep.mubr.msk.bf16.mxu1 %vm613_vm0, %v24769_v35  ;;  %v21610_v35 = vld [vmem:[#allocation9 + $0xfa8] ss:$12 sps:$4 sm:$0xff]  }
 0xa78   :  { %12948 = vmatmul.mubr.bf16.gmra.mrb[28].mxu0 %v24775_v10  ;;  %13208 = vmatmul.mubr.bf16.gmra.mrb[76].mxu1 %v24775_v10  ;;  %v21616_v10 = vld [vmem:[#allocation9 + $0xfc4] ss:$12 sps:$4 sm:$0xff]  }
 0xa79   :  { %13921 = vmatprep.mubr.bf16.mxu0 %v24477_v4  ;;  %14227 = vmatprep.mubr.bf16.mxu1 %v24477_v4  ;;  %v21614_v4 = vld [vmem:[#allocation9 + $0xfc0] ss:$12 sps:$4 sm:$0xff]  }
 0xa80   :  { %13922 = vmatmul.mubr.bf16.vlgmr.msra.gmra.mrb[32].mxu0 %v24481_v29  ;;  %14228 = vmatmul.mubr.bf16.vlgmr.msra.gmra.mrb[112].mxu1 %v24481_v29  ;;  %v21620_v29 = vld [vmem:[#allocation9 + $0xfdc] ss:$12 sps:$4 sm:$0xff]  }
 0xa81   :  { %13931 = vmatprep.mubr.bf16.mxu0 %v24485_v61  ;;  %14043 = vmatpush1.bf16.msra.mxu0 %v21606_v7  ;;  %v21625_v7 = vld [vmem:[#allocation9 + $0xff8] ss:$12 sps:$4 sm:$0xff]  }
 0xa82   :  { %14235 = vmatprep.mubr.bf16.mxu1 %v24485_v61  ;;  %14325 = vmatpush1.bf16.msra.mxu1 %v21609_v33  ;;  %v21618_v61 = vld [vmem:[#allocation9 + $0xfd8] ss:$12 sps:$4 sm:$0xff]  }
 0xa83   :  { %14044 = vmatprep.subr.bf16.mxu0 %v21612_v2  ;;  %14326 = vmatprep.subr.bf16.mxu1 %v25551_v15  ;;  %v21621_v2 = vld [vmem:[#allocation9 + $0xfe0] ss:$12 sps:$4 sm:$0xff]  }
 0xa85   :  { %14045 = vmatpush1.bf16.msra.mxu0 %v21610_v35  ;;  %v21632_v35 = vld [vmem:[#allocation9 + $0x1024] ss:$12 sps:$4 sm:$0xff]  }
 0xa86   :  { %14327 = vmatpush1.bf16.msra.mxu1 %v21613_v57  ;;  %14046 = vmatprep.subr.bf16.mxu0 %v21616_v10  ;;  %v21624_v10 = vld [vmem:[#allocation9 + $0xff4] ss:$12 sps:$4 sm:$0xff]   ;;  %v21622_v57 = vld [vmem:[#allocation9 + $0xff0] ss:$12 sps:$4 sm:$0xff]  }
 0xa87   :  { %14328 = vmatprep.subr.bf16.mxu1 %v25551_v15 }
 0xa88   :  { %13932 = vmatmul.mubr.bf16.gmra.mrb[36].mxu0 %v24490_v62  ;;  %14236 = vmatmul.mubr.bf16.gmra.mrb[116].mxu1 %v24490_v62  ;;  %v21628_v62 = vld [vmem:[#allocation9 + $0x100c] ss:$12 sps:$4 sm:$0xff]  }
 0xa89   :  { %13941 = vmatprep.mubr.bf16.mxu0 %v24495_v3  ;;  %14243 = vmatprep.mubr.bf16.mxu1 %v24495_v3  ;;  %v21626_v3 = vld [vmem:[#allocation9 + $0x1008] ss:$12 sps:$4 sm:$0xff]  }
 0xa8a   :  { %14047 = vmatpush1.bf16.msra.mxu0 %v21614_v4  ;;  %14329 = vmatpush1.bf16.msra.mxu1 %v21617_v31  ;;  %v21629_v31 = vld [vmem:[#allocation9 + $0x1010] ss:$12 sps:$4 sm:$0xff]  }
 0xa8b   :  { %14048 = vmatprep.subr.bf16.mxu0 %v21620_v29  ;;  %14330 = vmatprep.subr.bf16.mxu1 %v25551_v15 }
 0xa8e   :  { %14049 = vmatpush1.bf16.msra.mxu0 %v21618_v61  ;;  %14331 = vmatpush1.bf16.msra.mxu1 %v21621_v2 }
 0xa8f   :  { %14050 = vmatprep.subr.bf16.mxu0 %v21624_v10  ;;  %14332 = vmatprep.subr.bf16.mxu1 %v25551_v15  ;;  %v21633_v10 = vld [vmem:[#allocation9 + $0x1028] ss:$12 sps:$4 sm:$0xff]  }
 0xa90   :  { %13942 = vmatmul.mubr.bf16.gmra.mrb[40].mxu0 %v24500_v49  ;;  %14244 = vmatmul.mubr.bf16.gmra.mrb[120].mxu1 %v24500_v49  ;;  %v21630_v49 = vld [vmem:[#allocation9 + $0x1020] ss:$12 sps:$4 sm:$0xff]  }
 0xa91   :  { %13951 = vmatprep.mubr.bf16.mxu0 %v24505_v16  ;;  %14251 = vmatprep.mubr.bf16.mxu1 %v24505_v16  ;;  %v21636_v16 = vld [vmem:[#allocation9 + $0x103c] ss:$12 sps:$4 sm:$0xff]  }
 0xa92   :  { %14051 = vmatpush1.bf16.msra.mxu0 %v21622_v57  ;;  %14333 = vmatpush1.bf16.msra.mxu1 %v21625_v7 }
 0xa93   :  { %v18344_v33 = vpop.f32.mrb[16].mxu1  ;;  %14052 = vmatprep.subr.bf16.mxu0 %v21628_v62  ;;  %14334 = vmatprep.subr.bf16.mxu1 %v25551_v15  ;;  %v21634_v62 = vld [vmem:[#allocation9 + $0x1038] ss:$12 sps:$4 sm:$0xff]  }
 0xa94   :  { %v18345_v4 = vpop.f32.mrb[17].mxu1 }
 0xa95   :  { %v18346_v29 = vadd.f32 %v18345_v4, %v18344_v33  ;;  %v18347_v61 = vpop.f32.mrb[18].mxu1 }
 0xa96   :  { %v18348_v2 = vpop.f32.mrb[19].mxu1  ;;  %14053 = vmatpush1.bf16.msra.mxu0 %v21626_v3  ;;  %14335 = vmatpush1.bf16.msra.mxu1 %v21629_v31  ;;  %v21637_v3 = vld [vmem:[#allocation9 + $0x1040] ss:$12 sps:$4 sm:$0xff]  }
 0xa97   :  { %v18349_v26 = vadd.f32 %v18348_v2, %v18347_v61  ;;  %14054 = vmatprep.subr.bf16.mxu0 %v21632_v35  ;;  %14336 = vmatprep.subr.bf16.mxu1 %v25551_v15  ;;  %v24800_v57 = vadd.f32 %v24288_v24, %v18346_v29  ;;  %v21640_v24 = vld [vmem:[#allocation9 + $0x1054] ss:$12 sps:$4 sm:$0xff]   ;;  %v21638_v29 = vld [vmem:[#allocation9 + $0x1050] ss:$12 sps:$4 sm:$0xff]  }
 0xa98   :  { %13952 = vmatmul.mubr.bf16.gmra.mrb[44].mxu0 %v24510_v47  ;;  %14252 = vmatmul.mubr.bf16.gmra.mrb[124].mxu1 %v24510_v47 }
 0xa99   :  { %13961 = vmatprep.mubr.bf16.mxu0 %v24518_v59  ;;  %14259 = vmatprep.mubr.bf16.mxu1 %v24518_v59  ;;  %v24807_v7 = vadd.f32 %v24291_v34, %v18349_v26  ;;  %v21641_v59 = vld [vmem:[#allocation9 + $0x1058] ss:$12 sps:$4 sm:$0xff]  }
 0xa9a   :  { %14055 = vmatpush1.bf16.msra.mxu0 %v21630_v49  ;;  %14337 = vmatpush1.bf16.msra.mxu1 %v21633_v10  ;;  %v21644_v34 = vld [vmem:[#allocation9 + $0x106c] ss:$12 sps:$4 sm:$0xff]   ;;  %v21642_v49 = vld [vmem:[#allocation9 + $0x1068] ss:$12 sps:$4 sm:$0xff]   ;;  %v21645_v10 = vld [vmem:[#allocation9 + $0x1070] ss:$12 sps:$4 sm:$0xff]  }
 0xa9b   :  { %v18350_v31 = vpop.f32.mrb[20].mxu1  ;;  %14056 = vmatprep.subr.bf16.mxu0 %v21636_v16  ;;  %14338 = vmatprep.subr.bf16.mxu1 %v25551_v15 }
 0xa9c   :  { %v18351_v33 = vpop.f32.mrb[21].mxu1 }
 0xa9d   :  { %v18352_v35 = vadd.f32 %v18351_v33, %v18350_v31  ;;  %v18353_v4 = vpop.f32.mrb[22].mxu1 }
 0xa9e   :  { %v18354_v47 = vpop.f32.mrb[23].mxu1  ;;  %14057 = vmatpush1.bf16.msra.mxu0 %v21634_v62  ;;  %14339 = vmatpush1.bf16.msra.mxu1 %v21637_v3 }
 0xa9f   :  { %v18355_v61 = vadd.f32 %v18354_v47, %v18353_v4  ;;  %14058 = vmatprep.subr.bf16.mxu0 %v21640_v24  ;;  %14340 = vmatprep.subr.bf16.mxu1 %v25551_v15  ;;  %v24812_v26 = vadd.f32 %v24296_v63, %v18352_v35  ;;  %v21648_v63 = vld [vmem:[#allocation9 + $0x1084] ss:$12 sps:$4 sm:$0xff]   ;;  %v21646_v24 = vld [vmem:[#allocation9 + $0x1080] ss:$12 sps:$4 sm:$0xff]  }
 0xaa0   :  { %13962 = vmatmul.mubr.bf16.gmra.mrb[48].mxu0 %v24526_v23  ;;  %14260 = vmatmul.mubr.bf16.gmra.mrb[128].mxu1 %v24526_v23  ;;  %v21650_v47 = vld [vmem:[#allocation9 + $0x1098] ss:$12 sps:$4 sm:$0xff]  }
 0xaa1   :  { %13971 = vmatprep.mubr.bf16.mxu0 %v24534_v39  ;;  %14267 = vmatprep.mubr.bf16.mxu1 %v24534_v39  ;;  %v24819_v2 = vadd.f32 %v24299_v58, %v18355_v61  ;;  %v21649_v39 = vld [vmem:[#allocation9 + $0x1088] ss:$12 sps:$4 sm:$0xff]  }
 0xaa2   :  { %14059 = vmatpush1.bf16.msra.mxu0 %v21638_v29  ;;  %14341 = vmatpush1.bf16.msra.mxu1 %v21641_v59  ;;  %v21652_v58 = vld [vmem:[#allocation9 + $0x109c] ss:$12 sps:$4 sm:$0xff]   ;;  %v21653_v29 = vld [vmem:[#allocation9 + $0x10a0] ss:$12 sps:$4 sm:$0xff]  }
 0xaa3   :  { %v18356_v16 = vpop.f32.mrb[24].mxu1  ;;  %14060 = vmatprep.subr.bf16.mxu0 %v21644_v34  ;;  %14342 = vmatprep.subr.bf16.mxu1 %v25551_v15 }
 0xaa4   :  { %v18357_v62 = vpop.f32.mrb[25].mxu1 }
 0xaa5   :  { %v18358_v3 = vadd.f32 %v18357_v62, %v18356_v16  ;;  %v18359_v31 = vpop.f32.mrb[26].mxu1 }
 0xaa6   :  { %v18360_v23 = vpop.f32.mrb[27].mxu1  ;;  %14061 = vmatpush1.bf16.msra.mxu0 %v21642_v49  ;;  %14343 = vmatpush1.bf16.msra.mxu1 %v21645_v10  ;;  %v21654_v10 = vld [vmem:[#allocation9 + $0x10b0] ss:$12 sps:$4 sm:$0xff]  }
 0xaa7   :  { %v18361_v33 = vadd.f32 %v18360_v23, %v18359_v31  ;;  %14062 = vmatprep.subr.bf16.mxu0 %v21648_v63  ;;  %14344 = vmatprep.subr.bf16.mxu1 %v25551_v15  ;;  %v24824_v35 = vadd.f32 %v24304_v52, %v18358_v3  ;;  %v21656_v52 = vld [vmem:[#allocation9 + $0x10b4] ss:$12 sps:$4 sm:$0xff]   ;;  %v21661_v31 = vld [vmem:[#allocation9 + $0x10d0] ss:$12 sps:$4 sm:$0xff]  }
 0xaa8   :  { %13972 = vmatmul.mubr.bf16.gmra.mrb[52].mxu0 %v24545_v46  ;;  %14268 = vmatmul.mubr.bf16.gmra.mrb[132].mxu1 %v24545_v46  ;;  %v21658_v3 = vld [vmem:[#allocation9 + $0x10c8] ss:$12 sps:$4 sm:$0xff]  }
 0xaa9   :  { %13981 = vmatprep.mubr.bf16.mxu0 %v24550_v37  ;;  %14275 = vmatprep.mubr.bf16.mxu1 %v24550_v37  ;;  %v24831_v4 = vadd.f32 %v24307_v11, %v18361_v33  ;;  %v21657_v37 = vld [vmem:[#allocation9 + $0x10b8] ss:$12 sps:$4 sm:$0xff]  }
 0xaaa   :  { %14063 = vmatpush1.bf16.msra.mxu0 %v21646_v24  ;;  %14345 = vmatpush1.bf16.msra.mxu1 %v21649_v39  ;;  %v21660_v11 = vld [vmem:[#allocation9 + $0x10cc] ss:$12 sps:$4 sm:$0xff]  }
 0xaab   :  { %v18362_v59 = vpop.f32.mrb[28].mxu1  ;;  %14064 = vmatprep.subr.bf16.mxu0 %v21652_v58  ;;  %14346 = vmatprep.subr.bf16.mxu1 %v25551_v15 }
 0xaac   :  { %v18363_v61 = vpop.f32.mrb[29].mxu1 }
 0xaad   :  { %v18364_v34 = vadd.f32 %v18363_v61, %v18362_v59  ;;  %v18365_v49 = vpop.f32.mrb[30].mxu1 }
 0xaae   :  { %v18366_v46 = vpop.f32.mrb[31].mxu1  ;;  %14065 = vmatpush1.bf16.msra.mxu0 %v21650_v47  ;;  %14347 = vmatpush1.bf16.msra.mxu1 %v21653_v29 }
 0xaaf   :  { %v18367_v16 = vadd.f32 %v18366_v46, %v18365_v49  ;;  %14066 = vmatprep.subr.bf16.mxu0 %v21656_v52  ;;  %14348 = vmatprep.subr.bf16.mxu1 %v25551_v15  ;;  %v24836_v63 = vadd.f32 %v24312_v30, %v18364_v34 }
 0xab0   :  { %13982 = vmatmul.mubr.bf16.gmra.mrb[56].mxu0 %v24561_v22  ;;  %14276 = vmatmul.mubr.bf16.gmra.mrb[136].mxu1 %v24561_v22 }
 0xab1   :  { %13991 = vmatprep.mubr.bf16.mxu0 %v24566_v32  ;;  %14283 = vmatprep.mubr.bf16.mxu1 %v24566_v32  ;;  %v24843_v62 = vadd.f32 %v24315_v41, %v18367_v16 }
 0xab2   :  { %14067 = vmatpush1.bf16.msra.mxu0 %v21654_v10  ;;  %14349 = vmatpush1.bf16.msra.mxu1 %v21657_v37 }
 0xab3   :  { %v18368_v23 = vpop.f32.mrb[80].mxu1  ;;  %14068 = vmatprep.subr.bf16.mxu0 %v21660_v11  ;;  %14350 = vmatprep.subr.bf16.mxu1 %v25551_v15 }
 0xab4   :  { %v18369_v30 = vpop.f32.mrb[81].mxu1 }
 0xab5   :  { %v18370_v24 = vadd.f32 %v18369_v30, %v18368_v23  ;;  %v18371_v39 = vpop.f32.mrb[82].mxu1 }
 0xab6   :  { %v18372_v33 = vpop.f32.mrb[83].mxu1  ;;  %14069 = vmatpush1.bf16.msra.mxu0 %v21658_v3  ;;  %14351 = vmatpush1.bf16.msra.mxu1 %v21661_v31 }
 0xab7   :  { %v18373_v22 = vadd.f32 %v18372_v33, %v18371_v39  ;;  %v24847_v32 = vadd.f32 %v24319_v56, %v18370_v24  ;;  %v25940_v39 = vld [vmem:[#allocation26_spill] sm:$0xff] }
 0xab8   :  { %13992 = vmatmul.mubr.bf16.gmra.mrb[60].mxu0 %v24577_v5  ;;  %14284 = vmatmul.mubr.bf16.gmra.mrb[140].mxu1 %v24577_v5 }
 0xab9   :  { %14001 = vmatprep.mubr.bf16.mxu0 %v24581_v60  ;;  %14291 = vmatprep.mubr.bf16.mxu1 %v24581_v60  ;;  %v24854_v15 = vadd.f32 %v24322_v21, %v18373_v22 }
 0xabb   :  { %v18374_v41 = vpop.f32.mrb[84].mxu1 }
 0xabc   :  { %v18375_v58 = vpop.f32.mrb[85].mxu1 }
 0xabd   :  { %v18376_v47 = vadd.f32 %v18375_v58, %v18374_v41  ;;  %v18377_v29 = vpop.f32.mrb[86].mxu1 }
 0xabe   :  { %v18378_v59 = vpop.f32.mrb[87].mxu1 }
 0xabf   :  { %v18379_v52 = vadd.f32 %v18378_v59, %v18377_v29  ;;  %v24857_v56 = vadd.f32 %v24325_v9, %v18376_v47  ;;  %v25942_v59 = vld [vmem:[#allocation28_spill] sm:$0xff] }
 0xac0   :  { %14002 = vmatmul.mubr.bf16.gmra.mrb[64].mxu0 %v24591_v17  ;;  %14292 = vmatmul.mubr.bf16.gmra.mrb[144].mxu1 %v24591_v17 }
 0xac1   :  { %14011 = vmatprep.mubr.bf16.mxu0 %v24595_v38  ;;  %14299 = vmatprep.mubr.bf16.mxu1 %v24595_v38  ;;  %v24864_v21 = vadd.f32 %v24328_v54, %v18379_v52 }
 0xac3   :  { %v18380_v5 = vpop.f32.mrb[88].mxu1 }
 0xac4   :  { %v18381_v60 = vpop.f32.mrb[89].mxu1 }
 0xac5   :  { %v18382_v61 = vadd.f32 %v18381_v60, %v18380_v5  ;;  %v18383_v34 = vpop.f32.mrb[90].mxu1 }
 0xac6   :  { %v18384_v49 = vpop.f32.mrb[91].mxu1 }
 0xac7   :  { %v18385_v46 = vadd.f32 %v18384_v49, %v18383_v34  ;;  %v24867_v9 = vadd.f32 %v24331_v6, %v18382_v61 }
 0xac8   :  { %14012 = vmatmul.mubr.bf16.gmra.mrb[68].mxu0 %v24605_v45  ;;  %14300 = vmatmul.mubr.bf16.gmra.mrb[148].mxu1 %v24605_v45  ;;  %v25939_v45 = vld [vmem:[#allocation25_spill] sm:$0xff] }
 0xac9   :  { %14021 = vmatprep.mubr.bf16.mxu0 %v24609_v28  ;;  %14307 = vmatprep.mubr.bf16.mxu1 %v24609_v28  ;;  %v24874_v54 = vadd.f32 %v24334_v36, %v18385_v46 }
 0xacb   :  { %v18386_v17 = vpop.f32.mrb[92].mxu1 }
 0xacc   :  { %v18387_v38 = vpop.f32.mrb[93].mxu1 }
 0xacd   :  { %v18388_v10 = vadd.f32 %v18387_v38, %v18386_v17  ;;  %v18389_v37 = vpop.f32.mrb[94].mxu1  ;;  %v25944_v17 = vld [vmem:[#allocation30_spill] sm:$0xff] }
 0xace   :  { %v18390_v16 = vpop.f32.mrb[95].mxu1 }
 0xacf   :  { %v18391_v11 = vadd.f32 %v18390_v16, %v18389_v37  ;;  %v24877_v6 = vadd.f32 %v24337_v25, %v18388_v10 }
 0xad0   :  { %14022 = vmatmul.mubr.bf16.gmra.mrb[72].mxu0 %v24619_v0  ;;  %14308 = vmatmul.mubr.bf16.gmra.mrb[152].mxu1 %v24619_v0  ;;  %v25941_v0 = vld [vmem:[#allocation27_spill] sm:$0xff] }
 0xad1   :  { %14031 = vmatprep.mubr.bf16.mxu0 %v24623_v50  ;;  %14315 = vmatprep.mubr.bf16.mxu1 %v24623_v50  ;;  %v24884_v36 = vadd.f32 %v25939_v45, %v18391_v11 }
 0xad3   :  { %v18392_v28 = vpop.f32.mrb[96].mxu1 }
 0xad4   :  { %v18393_v3 = vpop.f32.mrb[97].mxu1 }
 0xad5   :  { %v18394_v31 = vadd.f32 %v18393_v3, %v18392_v28  ;;  %v18395_v23 = vpop.f32.mrb[98].mxu1  ;;  %v25946_v3 = vld [vmem:[#allocation32_spill] sm:$0xff] }
 0xad6   :  { %v18396_v30 = vpop.f32.mrb[99].mxu1 }
 0xad7   :  { %v18397_v24 = vadd.f32 %v18396_v30, %v18395_v23  ;;  %v24887_v25 = vadd.f32 %v25940_v39, %v18394_v31 }
 0xad8   :  { %14032 = vmatmul.mubr.bf16.gmra.mrb[76].mxu0 %v24633_v8  ;;  %14316 = vmatmul.mubr.bf16.gmra.mrb[156].mxu1 %v24633_v8  ;;  %v25943_v8 = vld [vmem:[#allocation29_spill] sm:$0xff] }
 0xad9   :  { %17798 = vmatprep.mubr.msk.bf16.mxu0 %vm613_vm0, %v24637_v43  ;;  %17810 = vmatprep.mubr.msk.bf16.mxu1 %vm613_vm0, %v24637_v43  ;;  %v24896_v50 = vadd.f32 %v25941_v0, %v18397_v24 }
 0xadb   :  { %v18398_v33 = vpop.f32.mrb[100].mxu1 }
 0xadc   :  { %v18399_v22 = vpop.f32.mrb[101].mxu1 }
 0xadd   :  { %v18400_v41 = vadd.f32 %v18399_v22, %v18398_v33  ;;  %v18401_v58 = vpop.f32.mrb[102].mxu1 }
 0xade   :  { %v18402_v47 = vpop.f32.mrb[103].mxu1 }
 0xadf   :  { %v18403_v29 = vadd.f32 %v18402_v47, %v18401_v58  ;;  %v24899_v52 = vadd.f32 %v25942_v59, %v18400_v41  ;;  %v21662_v58 = vld [vmem:[#allocation12 + $0x100] sm:$0xff]  }
 0xae0   :  { %14075 = vmatmul.mubr.bf16.vlgmr.msra.gmra.mrb[32].mxu0 %v24649_v18  ;;  %14357 = vmatmul.mubr.bf16.vlgmr.msra.gmra.mrb[176].mxu1 %v24649_v18  ;;  %v25945_v18 = vld [vmem:[#allocation31_spill] sm:$0xff] }
 0xae1   :  { %17799 = vmatprep.mubr.msk.bf16.mxu0 %vm613_vm0, %v24653_v44  ;;  %17811 = vmatprep.mubr.msk.bf16.mxu1 %vm613_vm0, %v24653_v44  ;;  %v24908_v43 = vadd.f32 %v25943_v8, %v18403_v29 }
 0xae2   :  { %18504 = vmatprep.subr.bf16.mxu0 %v21662_v58  ;;  %v21668_v58 = vld [vmem:[#allocation12 + $0x110] sm:$0xff]  }
 0xae3   :  { %v18404_v5 = vpop.f32.mrb[104].mxu1 }
 0xae4   :  { %v18405_v60 = vpop.f32.mrb[105].mxu1 }
 0xae5   :  { %v18406_v61 = vadd.f32 %v18405_v60, %v18404_v5  ;;  %v18407_v34 = vpop.f32.mrb[106].mxu1 }
 0xae6   :  { %v18408_v49 = vpop.f32.mrb[107].mxu1 }
 0xae7   :  { %v18409_v46 = vadd.f32 %v18408_v49, %v18407_v34  ;;  %v24911_v38 = vadd.f32 %v25944_v17, %v18406_v61  ;;  %v25528_v34 = vmov 0.0   ;;  %v21664_v49 = vld [vmem:[#allocation12 + $0x140] sm:$0xff]  }
 0xae8   :  { %14085 = vmatmul.mubr.bf16.gmra.mrb[36].mxu0 %v24665_v42  ;;  %14365 = vmatmul.mubr.bf16.gmra.mrb[180].mxu1 %v24665_v42  ;;  %v25947_v42 = vld [vmem:[#allocation33_spill] sm:$0xff] }
 0xae9   :  { %17800 = vmatprep.mubr.msk.bf16.mxu0 %vm613_vm0, %v24669_v1  ;;  %17812 = vmatprep.mubr.msk.bf16.mxu1 %vm613_vm0, %v24669_v1  ;;  %v24920_v44 = vadd.f32 %v25945_v18, %v18409_v46 }
 0xaea   :  { %18699 = vmatprep.subr.bf16.mxu1 %v25528_v34 }
 0xaeb   :  { %v18410_v10 = vpop.f32.mrb[108].mxu1  ;;  %18700 = vmatpush3.bf16.msra.mxu1 %v21664_v49 }
 0xaec   :  { %v18411_v37 = vpop.f32.mrb[109].mxu1  ;;  %18701 = vmatprep.subr.bf16.mxu1 %v25528_v34 }
 0xaed   :  { %v18412_v16 = vadd.f32 %v18411_v37, %v18410_v10  ;;  %v18413_v11 = vpop.f32.mrb[110].mxu1 }
 0xaee   :  { %v18414_v45 = vpop.f32.mrb[111].mxu1 }
 0xaef   :  { %v18415_v28 = vadd.f32 %v18414_v45, %v18413_v11  ;;  %v24923_v31 = vadd.f32 %v25946_v3, %v18412_v16  ;;  %v21665_v11 = vld [vmem:[#allocation12 + $0x108] sm:$0xff]  }
 0xaf0   :  { %14095 = vmatmul.mubr.bf16.gmra.mrb[40].mxu0 %v24681_v53  ;;  %14373 = vmatmul.mubr.bf16.gmra.mrb[184].mxu1 %v24681_v53  ;;  %v21666_v45 = vld [vmem:[#allocation12 + $0xc8] sm:$0xff]  }
 0xaf1   :  { %17801 = vmatprep.mubr.msk.bf16.mxu0 %vm613_vm0, %v24685_v13  ;;  %17813 = vmatprep.mubr.msk.bf16.mxu1 %vm613_vm0, %v24685_v13  ;;  %v24932_v1 = vadd.f32 %v25947_v42, %v18415_v28  ;;  %v21667_v28 = vld [vmem:[#allocation12 + $0x148] sm:$0xff]  }
 0xaf2   :  { %18702 = vmatpush3.bf16.msra.mxu1 %v21667_v28 }
 0xaf3   :  { %v24934_v23 = vpop.f32.mrb[240].mxu0  ;;  %v13121_v30 = vpop.f32.mrb[32].mxu1  ;;  %18703 = vmatprep.subr.bf16.mxu1 %v25528_v34 }
 0xaf4   :  { %v24937_v24 = vadd.f32 %v24800_v57, %v13121_v30  ;;  %v24939_v39 = vpop.f32.mrb[241].mxu0  ;;  %v13123_v0 = vpop.f32.mrb[33].mxu1 }
 0xaf5   :  { %v24941_v33 = vpop.f32.mrb[242].mxu0  ;;  %v13124_v53 = vpop.f32.mrb[34].mxu1 }
 0xaf6   :  { %v24944_v22 = vadd.f32 %v24807_v7, %v13124_v53  ;;  %v24946_v41 = vpop.f32.mrb[243].mxu0  ;;  %v13126_v13 = vpop.f32.mrb[35].mxu1  ;;  %v21663_v7 = vld [vmem:[#allocation12 + $0xc0] sm:$0xff]  }
 0xaf7   :  { %18505 = vmatpush3.bf16.msra.mxu0 %v21663_v7 }
 0xaf8   :  { %14105 = vmatmul.mubr.bf16.gmra.mrb[44].mxu0 %v24694_v12  ;;  %14381 = vmatmul.mubr.bf16.gmra.mrb[188].mxu1 %v24694_v12 }
 0xaf9   :  { %17802 = vmatprep.mubr.msk.bf16.mxu0 %vm613_vm0, %v24698_v14  ;;  %17814 = vmatprep.mubr.msk.bf16.mxu1 %vm613_vm0, %v24698_v14 }
 0xafa   :  { %18506 = vmatprep.subr.bf16.mxu0 %v21665_v11 }
 0xafb   :  { %v24954_v57 = vpop.f32.mrb[244].mxu0  ;;  %v13129_v47 = vpop.f32.mrb[36].mxu1  ;;  %18507 = vmatpush3.bf16.msra.mxu0 %v21666_v45 }
 0xafc   :  { %v24957_v29 = vadd.f32 %v24812_v26, %v13129_v47  ;;  %v24959_v59 = vpop.f32.mrb[245].mxu0  ;;  %v13131_v8 = vpop.f32.mrb[37].mxu1  ;;  %18508 = vmatprep.subr.bf16.mxu0 %v21668_v58  ;;  %v21672_v58 = vld [vmem:[#allocation12 + $0xd8] sm:$0xff]  }
 0xafd   :  { %v24961_v5 = vpop.f32.mrb[246].mxu0  ;;  %v13132_v12 = vpop.f32.mrb[38].mxu1 }
 0xafe   :  { %v24964_v60 = vadd.f32 %v24819_v2, %v13132_v12  ;;  %v24966_v61 = vpop.f32.mrb[247].mxu0  ;;  %v13134_v14 = vpop.f32.mrb[39].mxu1 }
 0xb00   :  { %14115 = vmatmul.mubr.bf16.gmra.mrb[48].mxu0 %v24704_v27  ;;  %14389 = vmatmul.mubr.bf16.gmra.mrb[192].mxu1 %v24704_v27 }
 0xb01   :  { %17803 = vmatprep.mubr.msk.bf16.mxu0 %vm613_vm0, %v24709_v48  ;;  %17815 = vmatprep.mubr.msk.bf16.mxu1 %vm613_vm0, %v24709_v48 }
 0xb03   :  { %v24975_v26 = vpop.f32.mrb[248].mxu0  ;;  %v13137_v2 = vpop.f32.mrb[40].mxu1 }
 0xb04   :  { %v24979_v46 = vadd.f32 %v24824_v35, %v13137_v2  ;;  %v24981_v17 = vpop.f32.mrb[249].mxu0  ;;  %v13139_v18 = vpop.f32.mrb[41].mxu1 }
 0xb05   :  { %v24983_v10 = vpop.f32.mrb[250].mxu0  ;;  %v13140_v27 = vpop.f32.mrb[42].mxu1  ;;  %v21670_v18 = vld [vmem:[#allocation12 + $0x150] sm:$0xff]  }
 0xb06   :  { %v24986_v37 = vadd.f32 %v24831_v4, %v13140_v27  ;;  %v24988_v16 = vpop.f32.mrb[251].mxu0  ;;  %v13142_v48 = vpop.f32.mrb[43].mxu1  ;;  %18704 = vmatpush3.bf16.msra.mxu1 %v21670_v18 }
 0xb07   :  { %18705 = vmatprep.subr.bf16.mxu1 %v25528_v34 }
 0xb08   :  { %14125 = vmatmul.mubr.bf16.gmra.mrb[52].mxu0 %v24715_v51  ;;  %14397 = vmatmul.mubr.bf16.gmra.mrb[196].mxu1 %v24715_v51 }
 0xb09   :  { %17804 = vmatprep.mubr.msk.bf16.mxu0 %vm613_vm0, %v24719_v19  ;;  %17816 = vmatprep.mubr.msk.bf16.mxu1 %vm613_vm0, %v24719_v19 }
 0xb0b   :  { %v24996_v35 = vpop.f32.mrb[252].mxu0  ;;  %v13145_v4 = vpop.f32.mrb[44].mxu1 }
 0xb0c   :  { %v25000_v3 = vadd.f32 %v24836_v63, %v13145_v4  ;;  %v25002_v42 = vpop.f32.mrb[253].mxu0  ;;  %v13147_v51 = vpop.f32.mrb[45].mxu1 }
 0xb0d   :  { %v25004_v30 = vpop.f32.mrb[254].mxu0  ;;  %v13148_v0 = vpop.f32.mrb[46].mxu1 }
 0xb0e   :  { %v25007_v53 = vadd.f32 %v24843_v62, %v13148_v0  ;;  %v25009_v19 = vpop.f32.mrb[255].mxu0  ;;  %v13150_v13 = vpop.f32.mrb[47].mxu1  ;;  %v21669_v62 = vld [vmem:[#allocation12 + $0xd0] sm:$0xff]  }
 0xb0f   :  { %18509 = vmatpush3.bf16.msra.mxu0 %v21669_v62  ;;  %v21671_v13 = vld [vmem:[#allocation12 + $0x118] sm:$0xff]   ;;  %v25952_v62 = vld [vmem:[#allocation59_spill] sm:$0xff] }
 0xb10   :  { %14135 = vmatmul.mubr.bf16.gmra.mrb[56].mxu0 %v24725_v55  ;;  %14405 = vmatmul.mubr.bf16.gmra.mrb[200].mxu1 %v24725_v55 }
 0xb11   :  { %17805 = vmatprep.mubr.msk.bf16.mxu0 %vm613_vm0, %v24729_v20  ;;  %17817 = vmatprep.mubr.msk.bf16.mxu1 %vm613_vm0, %v24729_v20 }
 0xb12   :  { %18510 = vmatprep.subr.bf16.mxu0 %v21671_v13  ;;  %v21674_v13 = vld [vmem:[#allocation12 + $0x120] sm:$0xff]  }
 0xb13   :  { %v25017_v63 = vpop.f32.mrb[0].mxu0  ;;  %v13153_v47 = vpop.f32.mrb[48].mxu1  ;;  %18511 = vmatpush3.bf16.msra.mxu0 %v21672_v58  ;;  %v25961_v58 = vld [vmem:[#allocation62_spill] sm:$0xff] }
 0xb14   :  { %v25020_v7 = vadd.f32 %v24847_v32, %v13153_v47  ;;  %v25022_v8 = vpop.f32.mrb[1].mxu0  ;;  %v13155_v12 = vpop.f32.mrb[49].mxu1  ;;  %v25948_v32 = vld [vmem:[#allocation58_spill] sm:$0xff]  ;;  %18512 = vmatprep.subr.bf16.mxu0 %v21674_v13 }
 0xb15   :  { %v25024_v14 = vpop.f32.mrb[2].mxu0  ;;  %v13156_v55 = vpop.f32.mrb[50].mxu1  ;;  %v21673_v47 = vld [vmem:[#allocation12 + $0x158] sm:$0xff]  }
 0xb16   :  { %v25027_v49 = vadd.f32 %v24854_v15, %v13156_v55  ;;  %v25029_v2 = vpop.f32.mrb[3].mxu0  ;;  %v13158_v20 = vpop.f32.mrb[51].mxu1  ;;  %18706 = vmatpush3.bf16.msra.mxu1 %v21673_v47  ;;  %v25960_v47 = vld [vmem:[#allocation61_spill] sm:$0xff] }
 0xb17   :  { %18707 = vmatprep.subr.bf16.mxu1 %v25528_v34 }
 0xb18   :  { %14145 = vmatmul.mubr.bf16.gmra.mrb[60].mxu0 %v24735_v40  ;;  %14413 = vmatmul.mubr.bf16.gmra.mrb[204].mxu1 %v24735_v40 }
 0xb19   :  { %17806 = vmatprep.mubr.msk.bf16.mxu0 %vm613_vm0, %v25948_v32  ;;  %17818 = vmatprep.mubr.msk.bf16.mxu1 %vm613_vm0, %v25948_v32 }
 0xb1b   :  { %v25037_v27 = vpop.f32.mrb[4].mxu0  ;;  %v13161_v48 = vpop.f32.mrb[52].mxu1 }
 0xb1c   :  { %v25041_v15 = vadd.f32 %v24857_v56, %v13161_v48  ;;  %v25043_v11 = vpop.f32.mrb[5].mxu0  ;;  %v13163_v45 = vpop.f32.mrb[53].mxu1  ;;  %v25953_v56 = vld [vmem:[#allocation60_spill] sm:$0xff] }
 0xb1d   :  { %v25045_v28 = vpop.f32.mrb[6].mxu0  ;;  %v13164_v40 = vpop.f32.mrb[54].mxu1 }
 0xb1e   :  { %25949 = vst [vmem:[#allocation66_spill] sm:$0xff] %v25045_v28  ;;  %v25048_v4 = vadd.f32 %v24864_v21, %v13164_v40  ;;  %v25050_v51 = vpop.f32.mrb[7].mxu0  ;;  %v13166_v0 = vpop.f32.mrb[55].mxu1 }
 0xb1f   :  { %25951 = vst [vmem:[#allocation68_spill] sm:$0xff] %v25050_v51  ;;  %v26011_v51 = vld [vmem:[#allocation47_spill] sm:$0xff] }
 0xb20   :  { %25950 = vst [vmem:[#allocation67_spill] sm:$0xff] %v25048_v4  ;;  %14155 = vmatmul.mubr.bf16.gmra.mrb[64].mxu0 %v25952_v62  ;;  %14421 = vmatmul.mubr.bf16.gmra.mrb[208].mxu1 %v25952_v62 }
 0xb21   :  { %17807 = vmatprep.mubr.msk.bf16.mxu0 %vm613_vm0, %v25953_v56  ;;  %17819 = vmatprep.mubr.msk.bf16.mxu1 %vm613_vm0, %v25953_v56 }
 0xb23   :  { %v25058_v21 = vpop.f32.mrb[8].mxu0  ;;  %v13169_v12 = vpop.f32.mrb[56].mxu1 }
 0xb24   :  { %25954 = vst [vmem:[#allocation69_spill] sm:$0xff] %v25058_v21  ;;  %v25062_v55 = vadd.f32 %v24867_v9, %v13169_v12  ;;  %v25064_v20 = vpop.f32.mrb[9].mxu0  ;;  %v13171_v18 = vpop.f32.mrb[57].mxu1  ;;  %v26007_v21 = vld [vmem:[#allocation45_spill] sm:$0xff] }
 0xb25   :  { %25956 = vst [vmem:[#allocation71_spill] sm:$0xff] %v25064_v20  ;;  %v25066_v32 = vpop.f32.mrb[10].mxu0  ;;  %v13172_v48 = vpop.f32.mrb[58].mxu1 }
 0xb26   :  { %25955 = vst [vmem:[#allocation70_spill] sm:$0xff] %v25062_v55  ;;  %25957 = vst [vmem:[#allocation72_spill] sm:$0xff] %v25066_v32  ;;  %v25069_v45 = vadd.f32 %v24874_v54, %v13172_v48  ;;  %v25071_v40 = vpop.f32.mrb[11].mxu0  ;;  %v13174_v0 = vpop.f32.mrb[59].mxu1  ;;  %v21675_v54 = vld [vmem:[#allocation12 + $0xe0] sm:$0xff]  }
 0xb27   :  { %25959 = vst [vmem:[#allocation74_spill] sm:$0xff] %v25071_v40  ;;  %18513 = vmatpush3.bf16.msra.mxu0 %v21675_v54  ;;  %v26003_v40 = vld [vmem:[#allocation41_spill] sm:$0xff]  ;;  %v26005_v32 = vld [vmem:[#allocation43_spill] sm:$0xff] }
 0xb28   :  { %25958 = vst [vmem:[#allocation73_spill] sm:$0xff] %v25069_v45  ;;  %14165 = vmatmul.mubr.bf16.gmra.mrb[68].mxu0 %v25960_v47  ;;  %14429 = vmatmul.mubr.bf16.gmra.mrb[212].mxu1 %v25960_v47 }
 0xb29   :  { %17808 = vmatprep.mubr.msk.bf16.mxu0 %vm613_vm0, %v25961_v58  ;;  %17820 = vmatprep.mubr.msk.bf16.mxu1 %vm613_vm0, %v25961_v58  ;;  %v21676_v58 = vld [vmem:[#allocation12 + $0x160] sm:$0xff]  }
 0xb2a   :  { %18708 = vmatpush3.bf16.msra.mxu1 %v21676_v58 }
 0xb2b   :  { %v25079_v9 = vpop.f32.mrb[12].mxu0  ;;  %v13177_v62 = vpop.f32.mrb[60].mxu1 }
 0xb2c   :  { %25962 = vst [vmem:[#allocation75_spill] sm:$0xff] %v25079_v9  ;;  %v25082_v56 = vadd.f32 %v24877_v6, %v13177_v62  ;;  %v25084_v12 = vpop.f32.mrb[13].mxu0  ;;  %v13179_v18 = vpop.f32.mrb[61].mxu1  ;;  %v25968_v9 = vld [vmem:[#allocation63_spill] sm:$0xff]  ;;  %v25969_v6 = vld [vmem:[#allocation64_spill] sm:$0xff] }
 0xb2d   :  { %25964 = vst [vmem:[#allocation77_spill] sm:$0xff] %v25084_v12  ;;  %v25086_v48 = vpop.f32.mrb[14].mxu0  ;;  %v13180_v0 = vpop.f32.mrb[62].mxu1  ;;  %v26001_v12 = vld [vmem:[#allocation39_spill] sm:$0xff] }
 0xb2e   :  { %25963 = vst [vmem:[#allocation76_spill] sm:$0xff] %v25082_v56  ;;  %25965 = vst [vmem:[#allocation78_spill] sm:$0xff] %v25086_v48  ;;  %v25089_v47 = vadd.f32 %v24884_v36, %v13180_v0  ;;  %v25091_v34 = vpop.f32.mrb[15].mxu0  ;;  %v13182_v13 = vpop.f32.mrb[63].mxu1  ;;  %v25971_v36 = vmov 0.0   ;;  %v21678_v56 = vld [vmem:[#allocation12 + $0xe8] sm:$0xff]  }
 0xb2f   :  { %25967 = vst [vmem:[#allocation80_spill] sm:$0xff] %v25091_v34  ;;  %18709 = vmatprep.subr.bf16.mxu1 %v25971_v36 }
 0xb30   :  { %25966 = vst [vmem:[#allocation79_spill] sm:$0xff] %v25089_v47  ;;  %14175 = vmatmul.mubr.bf16.gmra.mrb[72].mxu0 %v25968_v9  ;;  %14437 = vmatmul.mubr.bf16.gmra.mrb[216].mxu1 %v25968_v9 }
 0xb31   :  { %17809 = vmatprep.mubr.msk.bf16.mxu0 %vm613_vm0, %v25969_v6  ;;  %17821 = vmatprep.mubr.msk.bf16.mxu1 %vm613_vm0, %v25969_v6  ;;  %v25977_v6 = vld [vmem:[#allocation65_spill] sm:$0xff] }
 0xb33   :  { %v25099_v62 = vpop.f32.mrb[16].mxu0  ;;  %v13185_v54 = vpop.f32.mrb[64].mxu1 }
 0xb34   :  { %25970 = vst [vmem:[#allocation81_spill] sm:$0xff] %v25099_v62  ;;  %v25103_v18 = vadd.f32 %v24887_v25, %v13185_v54  ;;  %v25105_v0 = vpop.f32.mrb[17].mxu0  ;;  %v13187_v13 = vpop.f32.mrb[65].mxu1  ;;  %v21677_v62 = vld [vmem:[#allocation12 + $0x128] sm:$0xff]  }
 0xb35   :  { %25973 = vst [vmem:[#allocation83_spill] sm:$0xff] %v25105_v0  ;;  %v25107_v47 = vpop.f32.mrb[18].mxu0  ;;  %v13188_v9 = vpop.f32.mrb[66].mxu1  ;;  %v21679_v25 = vld [vmem:[#allocation12 + $0x168] sm:$0xff]   ;;  %18514 = vmatprep.subr.bf16.mxu0 %v21677_v62  ;;  %v26000_v0 = vld [vmem:[#allocation38_spill] sm:$0xff] }
 0xb36   :  { %25972 = vst [vmem:[#allocation82_spill] sm:$0xff] %v25103_v18  ;;  %25974 = vst [vmem:[#allocation84_spill] sm:$0xff] %v25107_v47  ;;  %v25110_v34 = vadd.f32 %v24896_v50, %v13188_v9  ;;  %v25112_v48 = vpop.f32.mrb[19].mxu0  ;;  %v13190_v58 = vpop.f32.mrb[67].mxu1  ;;  %18710 = vmatpush3.bf16.msra.mxu1 %v21679_v25  ;;  %18515 = vmatpush3.bf16.msra.mxu0 %v21678_v56 }
 0xb37   :  { %25976 = vst [vmem:[#allocation86_spill] sm:$0xff] %v25112_v48  ;;  %18711 = vmatprep.subr.bf16.mxu1 %v25971_v36 }
 0xb38   :  { %25975 = vst [vmem:[#allocation85_spill] sm:$0xff] %v25110_v34  ;;  %14185 = vmatmul.mubr.bf16.gmra.mrb[76].mxu0 %v25977_v6  ;;  %14445 = vmatmul.mubr.bf16.gmra.mrb[220].mxu1 %v25977_v6 }
 0xb39   :  { %18715 = vmatprep.mubr.msk.bf16.mxu1 %vm22213_vm1, %v25971_v36 }
 0xb3b   :  { %v25116_v54 = vpop.f32.mrb[20].mxu0  ;;  %v13193_v13 = vpop.f32.mrb[68].mxu1 }
 0xb3c   :  { %25978 = vst [vmem:[#allocation87_spill] sm:$0xff] %v25116_v54  ;;  %v25120_v50 = vadd.f32 %v24899_v52, %v13193_v13  ;;  %v25122_v9 = vpop.f32.mrb[21].mxu0  ;;  %v13195_v58 = vpop.f32.mrb[69].mxu1 }
 0xb3d   :  { %25980 = vst [vmem:[#allocation89_spill] sm:$0xff] %v25122_v9  ;;  %v25124_v34 = vpop.f32.mrb[22].mxu0  ;;  %v13196_v6 = vpop.f32.mrb[70].mxu1 }
 0xb3e   :  { %25979 = vst [vmem:[#allocation88_spill] sm:$0xff] %v25120_v50  ;;  %25981 = vst [vmem:[#allocation90_spill] sm:$0xff] %v25124_v34  ;;  %v25127_v48 = vadd.f32 %v24908_v43, %v13196_v6  ;;  %v25129_v62 = vpop.f32.mrb[23].mxu0  ;;  %v13198_v25 = vpop.f32.mrb[71].mxu1 }
 0xb3f   :  { %25983 = vst [vmem:[#allocation92_spill] sm:$0xff] %v25129_v62  ;;  %v21681_v25 = vld [vmem:[#allocation12 + $0xf0] sm:$0xff]  }
 0xb40   :  { %25982 = vst [vmem:[#allocation91_spill] sm:$0xff] %v25127_v48  ;;  %v21680_v48 = vld [vmem:[#allocation12 + $0x130] sm:$0xff]  }
 0xb41   :  { %v21682_v62 = vld [vmem:[#allocation12 + $0x170] sm:$0xff]   ;;  %18516 = vmatprep.subr.bf16.mxu0 %v21680_v48 }
 0xb42   :  { %18712 = vmatpush3.bf16.msra.mxu1 %v21682_v62  ;;  %18517 = vmatpush3.bf16.msra.mxu0 %v21681_v25 }
 0xb43   :  { %v25131_v54 = vpop.f32.mrb[24].mxu0  ;;  %v13201_v56 = vpop.f32.mrb[72].mxu1  ;;  %18713 = vmatprep.subr.bf16.mxu1 %v25971_v36 }
 0xb44   :  { %25984 = vst [vmem:[#allocation93_spill] sm:$0xff] %v25131_v54  ;;  %v25134_v18 = vadd.f32 %v24911_v38, %v13201_v56  ;;  %v25136_v52 = vpop.f32.mrb[25].mxu0  ;;  %v13203_v13 = vpop.f32.mrb[73].mxu1 }
 0xb45   :  { %25986 = vst [vmem:[#allocation95_spill] sm:$0xff] %v25136_v52  ;;  %v25138_v50 = vpop.f32.mrb[26].mxu0  ;;  %v13204_v58 = vpop.f32.mrb[74].mxu1 }
 0xb46   :  { %25985 = vst [vmem:[#allocation94_spill] sm:$0xff] %v25134_v18  ;;  %25987 = vst [vmem:[#allocation96_spill] sm:$0xff] %v25138_v50  ;;  %v25141_v34 = vadd.f32 %v24920_v44, %v13204_v58  ;;  %v25143_v43 = vpop.f32.mrb[27].mxu0  ;;  %v13206_v6 = vpop.f32.mrb[75].mxu1 }
 0xb47   :  { %25989 = vst [vmem:[#allocation98_spill] sm:$0xff] %v25143_v43 }
 0xb48   :  { %25988 = vst [vmem:[#allocation97_spill] sm:$0xff] %v25141_v34 }
 0xb4b   :  { %v25145_v54 = vpop.f32.mrb[28].mxu0  ;;  %v13209_v38 = vpop.f32.mrb[76].mxu1 }
 0xb4c   :  { %25990 = vst [vmem:[#allocation99_spill] sm:$0xff] %v25145_v54  ;;  %v25149_v56 = vadd.f32 %v24923_v31, %v13209_v38  ;;  %v25151_v13 = vpop.f32.mrb[29].mxu0  ;;  %v13211_v44 = vpop.f32.mrb[77].mxu1  ;;  %v25996_v31 = vld [vmem:[#allocation34_spill] sm:$0xff] }
 0xb4d   :  { %25992 = vst [vmem:[#allocation101_spill] sm:$0xff] %v25151_v13  ;;  %v25153_v58 = vpop.f32.mrb[30].mxu0  ;;  %v13212_v6 = vpop.f32.mrb[78].mxu1  ;;  %v21684_v44 = vld [vmem:[#allocation12 + $0xf8] sm:$0xff]  }
 0xb4e   :  { %25991 = vst [vmem:[#allocation100_spill] sm:$0xff] %v25149_v56  ;;  %25993 = vst [vmem:[#allocation102_spill] sm:$0xff] %v25153_v58  ;;  %v25156_v34 = vadd.f32 %v24932_v1, %v13212_v6  ;;  %v25158_v48 = vpop.f32.mrb[31].mxu0  ;;  %v13214_v62 = vpop.f32.mrb[79].mxu1  ;;  %v21683_v56 = vld [vmem:[#allocation12 + $0x138] sm:$0xff]   ;;  %v25997_v58 = vld [vmem:[#allocation35_spill] sm:$0xff] }
 0xb4f   :  { %25995 = vst [vmem:[#allocation104_spill] sm:$0xff] %v25158_v48  ;;  %v21685_v13 = vld [vmem:[#allocation12 + $0x178] sm:$0xff]   ;;  %v21686_v1 = vld [vmem:[#allocation12 + $0x40] sm:$0xff]   ;;  %18518 = vmatprep.subr.bf16.mxu0 %v21683_v56 }
 0xb50   :  { %25994 = vst [vmem:[#allocation103_spill] sm:$0xff] %v25156_v34  ;;  %18714 = vmatpush3.bf16.msra.mxu1 %v21685_v13  ;;  %18519 = vmatpush3.bf16.msra.mxu0 %v21684_v44 }
 0xb51   :  { %18535 = vmatprep.subr.bf16.mxu0 %v21686_v1  ;;  %18719 = vmatprep.subr.bf16.mxu1 %v25971_v36 }
 0xb53   :  { %v18432_v54 = vpop.f32.mrb[112].mxu1 }
 0xb54   :  { %v18433_v43 = vpop.f32.mrb[113].mxu1 }
 0xb55   :  { %v18434_v25 = vadd.f32 %v18433_v43, %v18432_v54  ;;  %v18435_v18 = vpop.f32.mrb[114].mxu1 }
 0xb56   :  { %v18436_v50 = vpop.f32.mrb[115].mxu1 }
 0xb57   :  { %v18437_v52 = vadd.f32 %v18436_v50, %v18435_v18  ;;  %v25161_v38 = vadd.f32 %v25996_v31, %v18434_v25  ;;  %v25998_v25 = vld [vmem:[#allocation36_spill] sm:$0xff] }
 0xb59   :  { %v25164_v9 = vadd.f32 %v25997_v58, %v18437_v52  ;;  %v25999_v58 = vld [vmem:[#allocation37_spill] sm:$0xff] }
 0xb5b   :  { %v18438_v6 = vpop.f32.mrb[116].mxu1 }
 0xb5c   :  { %v18439_v54 = vpop.f32.mrb[117].mxu1 }
 0xb5d   :  { %v18440_v18 = vadd.f32 %v18439_v54, %v18438_v6  ;;  %v18441_v50 = vpop.f32.mrb[118].mxu1 }
 0xb5e   :  { %v18442_v43 = vpop.f32.mrb[119].mxu1 }
 0xb5f   :  { %v18443_v62 = vadd.f32 %v18442_v43, %v18441_v50  ;;  %v25170_v52 = vadd.f32 %v25998_v25, %v18440_v18 }
 0xb61   :  { %v25173_v56 = vadd.f32 %v25999_v58, %v18443_v62  ;;  %v26002_v62 = vld [vmem:[#allocation40_spill] sm:$0xff] }
 0xb63   :  { %v18444_v13 = vpop.f32.mrb[120].mxu1 }
 0xb64   :  { %v18445_v31 = vpop.f32.mrb[121].mxu1 }
 0xb65   :  { %v18446_v44 = vadd.f32 %v18445_v31, %v18444_v13  ;;  %v18447_v34 = vpop.f32.mrb[122].mxu1 }
 0xb66   :  { %v18448_v48 = vpop.f32.mrb[123].mxu1 }
 0xb67   :  { %v18449_v47 = vadd.f32 %v18448_v48, %v18447_v34  ;;  %v25176_v1 = vadd.f32 %v26000_v0, %v18446_v44 }
 0xb69   :  { %v25179_v6 = vadd.f32 %v26001_v12, %v18449_v47  ;;  %v26004_v12 = vld [vmem:[#allocation42_spill] sm:$0xff] }
 0xb6b   :  { %v18450_v54 = vpop.f32.mrb[124].mxu1 }
 0xb6c   :  { %v18451_v50 = vpop.f32.mrb[125].mxu1 }
 0xb6d   :  { %v18452_v43 = vadd.f32 %v18451_v50, %v18450_v54  ;;  %v18453_v18 = vpop.f32.mrb[126].mxu1 }
 0xb6e   :  { %v18454_v25 = vpop.f32.mrb[127].mxu1 }
 0xb6f   :  { %v18455_v45 = vadd.f32 %v18454_v25, %v18453_v18  ;;  %v25182_v58 = vadd.f32 %v26002_v62, %v18452_v43 }
 0xb71   :  { %v25185_v13 = vadd.f32 %v26003_v40, %v18455_v45  ;;  %v26006_v45 = vld [vmem:[#allocation44_spill] sm:$0xff] }
 0xb73   :  { %v18456_v31 = vpop.f32.mrb[128].mxu1 }
 0xb74   :  { %v18457_v34 = vpop.f32.mrb[129].mxu1 }
 0xb75   :  { %v18458_v48 = vadd.f32 %v18457_v34, %v18456_v31  ;;  %v18459_v0 = vpop.f32.mrb[130].mxu1 }
 0xb76   :  { %v18460_v44 = vpop.f32.mrb[131].mxu1 }
 0xb77   :  { %v18461_v55 = vadd.f32 %v18460_v44, %v18459_v0  ;;  %v25188_v47 = vadd.f32 %v26004_v12, %v18458_v48 }
 0xb79   :  { %v25191_v54 = vadd.f32 %v26005_v32, %v18461_v55  ;;  %v26009_v55 = vld [vmem:[#allocation46_spill] sm:$0xff] }
 0xb7b   :  { %v18462_v50 = vpop.f32.mrb[132].mxu1 }
 0xb7c   :  { %v18463_v18 = vpop.f32.mrb[133].mxu1 }
 0xb7d   :  { %v18464_v25 = vadd.f32 %v18463_v18, %v18462_v50  ;;  %v18465_v43 = vpop.f32.mrb[134].mxu1 }
 0xb7e   :  { %v18466_v62 = vpop.f32.mrb[135].mxu1 }
 0xb7f   :  { %v18467_v20 = vadd.f32 %v18466_v62, %v18465_v43  ;;  %v25194_v40 = vadd.f32 %v26006_v45, %v18464_v25 }
 0xb81   :  { %v25197_v31 = vadd.f32 %v26007_v21, %v18467_v20  ;;  %v26013_v21 = vld [vmem:[#allocation48_spill] sm:$0xff] }
 0xb83   :  { %26008 = vst [vmem:[#allocation105_spill] sm:$0xff] %v25197_v31  ;;  %v18468_v34 = vpop.f32.mrb[136].mxu1  ;;  %v26015_v31 = vld [vmem:[#allocation49_spill] sm:$0xff] }
 0xb84   :  { %v18469_v0 = vpop.f32.mrb[137].mxu1 }
 0xb85   :  { %v18470_v44 = vadd.f32 %v18469_v0, %v18468_v34  ;;  %v18471_v48 = vpop.f32.mrb[138].mxu1 }
 0xb86   :  { %v18472_v12 = vpop.f32.mrb[139].mxu1 }
 0xb87   :  { %v18473_v4 = vadd.f32 %v18472_v12, %v18471_v48  ;;  %v25200_v32 = vadd.f32 %v26009_v55, %v18470_v44 }
 0xb89   :  { %26010 = vst [vmem:[#allocation106_spill] sm:$0xff] %v25200_v32  ;;  %v25203_v50 = vadd.f32 %v26011_v51, %v18473_v4  ;;  %v26017_v4 = vld [vmem:[#allocation50_spill] sm:$0xff] }
 0xb8b   :  { %26012 = vst [vmem:[#allocation107_spill] sm:$0xff] %v25203_v50  ;;  %v18474_v18 = vpop.f32.mrb[140].mxu1  ;;  %v26019_v50 = vld [vmem:[#allocation51_spill] sm:$0xff] }
 0xb8c   :  { %v18475_v43 = vpop.f32.mrb[141].mxu1 }
 0xb8d   :  { %v18476_v62 = vadd.f32 %v18475_v43, %v18474_v18  ;;  %v18477_v25 = vpop.f32.mrb[142].mxu1 }
 0xb8e   :  { %v18478_v45 = vpop.f32.mrb[143].mxu1 }
 0xb8f   :  { %v18479_v28 = vadd.f32 %v18478_v45, %v18477_v25  ;;  %v25206_v20 = vadd.f32 %v26013_v21, %v18476_v62 }
 0xb91   :  { %26014 = vst [vmem:[#allocation108_spill] sm:$0xff] %v25206_v20  ;;  %v25209_v34 = vadd.f32 %v26015_v31, %v18479_v28  ;;  %v26021_v28 = vld [vmem:[#allocation52_spill] sm:$0xff] }
 0xb93   :  { %26016 = vst [vmem:[#allocation109_spill] sm:$0xff] %v25209_v34  ;;  %v18480_v0 = vpop.f32.mrb[144].mxu1  ;;  %v26023_v34 = vld [vmem:[#allocation53_spill] sm:$0xff] }
 0xb94   :  { %v18481_v48 = vpop.f32.mrb[145].mxu1 }
 0xb95   :  { %v18482_v12 = vadd.f32 %v18481_v48, %v18480_v0  ;;  %v18483_v44 = vpop.f32.mrb[146].mxu1 }
 0xb96   :  { %v18484_v55 = vpop.f32.mrb[147].mxu1 }
 0xb97   :  { %v18485_v32 = vadd.f32 %v18484_v55, %v18483_v44  ;;  %v25212_v51 = vadd.f32 %v26017_v4, %v18482_v12 }
 0xb99   :  { %26018 = vst [vmem:[#allocation110_spill] sm:$0xff] %v25212_v51  ;;  %v25215_v18 = vadd.f32 %v26019_v50, %v18485_v32  ;;  %v26025_v32 = vld [vmem:[#allocation54_spill] sm:$0xff] }
 0xb9b   :  { %26020 = vst [vmem:[#allocation111_spill] sm:$0xff] %v25215_v18  ;;  %v18486_v43 = vpop.f32.mrb[148].mxu1  ;;  %v26026_v18 = vld [vmem:[#allocation55_spill] sm:$0xff] }
 0xb9c   :  { %v18487_v25 = vpop.f32.mrb[149].mxu1 }
 0xb9d   :  { %v18488_v45 = vadd.f32 %v18487_v25, %v18486_v43  ;;  %v18489_v62 = vpop.f32.mrb[150].mxu1 }
 0xb9e   :  { %v18490_v21 = vpop.f32.mrb[151].mxu1 }
 0xb9f   :  { %v18491_v20 = vadd.f32 %v18490_v21, %v18489_v62  ;;  %v25218_v31 = vadd.f32 %v26021_v28, %v18488_v45 }
 0xba1   :  { %26022 = vst [vmem:[#allocation112_spill] sm:$0xff] %v25218_v31  ;;  %v25221_v0 = vadd.f32 %v26023_v34, %v18491_v20  ;;  %v26027_v20 = vld [vmem:[#allocation56_spill] sm:$0xff] }
 0xba3   :  { %26024 = vst [vmem:[#allocation113_spill] sm:$0xff] %v25221_v0  ;;  %v18492_v48 = vpop.f32.mrb[152].mxu1  ;;  %v26028_v0 = vld [vmem:[#allocation57_spill] sm:$0xff] }
 0xba4   :  { %v18493_v44 = vpop.f32.mrb[153].mxu1 }
 0xba5   :  { %v18494_v55 = vadd.f32 %v18493_v44, %v18492_v48  ;;  %v18495_v12 = vpop.f32.mrb[154].mxu1 }
 0xba6   :  { %v18496_v4 = vpop.f32.mrb[155].mxu1 }
 0xba7   :  { %v18497_v51 = vadd.f32 %v18496_v4, %v18495_v12  ;;  %v25224_v50 = vadd.f32 %v26025_v32, %v18494_v55 }
 0xba9   :  { %v25227_v43 = vadd.f32 %v26026_v18, %v18497_v51 }
 0xbab   :  { %v18498_v25 = vpop.f32.mrb[156].mxu1 }
 0xbac   :  { %v18499_v62 = vpop.f32.mrb[157].mxu1 }
 0xbad   :  { %v18500_v21 = vadd.f32 %v18499_v62, %v18498_v25  ;;  %v18501_v45 = vpop.f32.mrb[158].mxu1 }
 0xbae   :  { %v18502_v28 = vpop.f32.mrb[159].mxu1 }
 0xbaf   :  { %v18503_v31 = vadd.f32 %v18502_v28, %v18501_v45  ;;  %v25230_v34 = vadd.f32 %v26027_v20, %v18500_v21 }
 0xbb1   :  { %v25233_v48 = vadd.f32 %v26028_v0, %v18503_v31 }
 0xbb3   :  { %26029 = vst [vmem:[#allocation114_spill] sm:$0xff] %v25233_v48  ;;  %v14076_v44 = vpop.f32.mrb[32].mxu0  ;;  %v14358_v12 = vpop.f32.mrb[176].mxu1 }
 0xbb4   :  { %v14525_v55 = vmax.f32 %v24934_v23, %v14076_v44  ;;  %v18913_v4 = vadd.f32 %v25161_v38, %v14358_v12  ;;  %v14078_v51 = vpop.f32.mrb[33].mxu0  ;;  %v14360_v18 = vpop.f32.mrb[177].mxu1  ;;  %v14633_v44 = vld [vmem:[#allocation11] sm:$0x7] }
 0xbb5   :  { %v14526_v32 = vmax.f32 %v24939_v39, %v14078_v51  ;;  %v14080_v25 = vpop.f32.mrb[34].mxu0  ;;  %v14361_v62 = vpop.f32.mrb[178].mxu1  ;;  %v26030_v39 = vld [vmem:[#allocation208_spill] sm:$0xff] }
 0xbb6   :  { %v14527_v45 = vmax.f32 %v24937_v24, %v18913_v4  ;;  %v14528_v21 = vmax.f32 %v24941_v33, %v14080_v25  ;;  %v18916_v28 = vadd.f32 %v25164_v9, %v14361_v62  ;;  %v14082_v31 = vpop.f32.mrb[35].mxu0  ;;  %v14363_v0 = vpop.f32.mrb[179].mxu1  ;;  %v26031_v51 = vsub.s32 0, %v26030_v39 }
 0xbb7   :  { %v14529_v20 = vmax.f32 %v24946_v41, %v14082_v31  ;;  %v26032_v9 = vsub.s32 2, %v26030_v39 }
 0xbb8   :  { %v14530_v23 = vmax.f32 %v24944_v22, %v18916_v28  ;;  %v25246_v48 = vrot.slane %v14633_v44, %v26031_v51  ;;  %v26033_v22 = vsub.s32 1, %v26030_v39 }
 0xbb9   :  { %v25251_v25 = vrot.slane %v14633_v44, %v26032_v9 }
 0xbba   :  { %v25256_v62 = vrot.slane %v14633_v44, %v26033_v22 }
 0xbbb   :  { %v14086_v38 = vpop.f32.mrb[36].mxu0  ;;  %v14366_v12 = vpop.f32.mrb[180].mxu1 }
 0xbbc   :  { %v14531_v18 = vmax.f32 %v24954_v57, %v14086_v38  ;;  %v18919_v24 = vadd.f32 %v25170_v52, %v14366_v12  ;;  %v14088_v33 = vpop.f32.mrb[37].mxu0  ;;  %v14368_v4 = vpop.f32.mrb[181].mxu1 }
 0xbbd   :  { %v14532_v41 = vmax.f32 %v24959_v59, %v14088_v33  ;;  %v14090_v28 = vpop.f32.mrb[38].mxu0  ;;  %v14369_v57 = vpop.f32.mrb[182].mxu1 }
 0xbbe   :  { %v14597_v31 = vmax.f32 %v14525_v55, %v14531_v18  ;;  %v14533_v0 = vmax.f32 %v24957_v29, %v18919_v24  ;;  %v14534_v38 = vmax.f32 %v24961_v5, %v14090_v28  ;;  %v18922_v52 = vadd.f32 %v25173_v56, %v14369_v57  ;;  %v14092_v12 = vpop.f32.mrb[39].mxu0  ;;  %v14371_v51 = vpop.f32.mrb[183].mxu1 }
 0xbbf   :  { %v14598_v4 = vmax.f32 %v14526_v32, %v14532_v41  ;;  %v14535_v9 = vmax.f32 %v24966_v61, %v14092_v12 }
 0xbc0   :  { %v14650_v59 = vadd.f32 %v25246_v48, %v14597_v31  ;;  %v14599_v33 = vmax.f32 %v14527_v45, %v14533_v0  ;;  %v14600_v39 = vmax.f32 %v14528_v21, %v14534_v38  ;;  %v14536_v44 = vmax.f32 %v24964_v60, %v18922_v52 }
 0xbc1   :  { %v14651_v22 = vadd.f32 %v25256_v62, %v14598_v4  ;;  %v14601_v55 = vmax.f32 %v14529_v20, %v14535_v9 }
 0xbc2   :  { %v14652_v29 = vadd.f32 %v25251_v25, %v14599_v33  ;;  %v14653_v5 = vadd.f32 %v25246_v48, %v14600_v39  ;;  %v14602_v18 = vmax.f32 %v14530_v23, %v14536_v44  ;;  %v14686_v56 = vmax.f32 %v14650_v59, 0.0 }
 0xbc3   :  { %v14654_v24 = vadd.f32 %v25256_v62, %v14601_v55  ;;  %v14096_v32 = vpop.f32.mrb[40].mxu0  ;;  %v14374_v41 = vpop.f32.mrb[184].mxu1  ;;  %v14687_v61 = vmax.f32 %v14651_v22, 0.0 }
 0xbc4   :  { %v14689_v28 = vmax.f32 %v14653_v5, 0.0  ;;  %v14655_v45 = vadd.f32 %v25251_v25, %v14602_v18  ;;  %v14537_v21 = vmax.f32 %v24975_v26, %v14096_v32  ;;  %v14098_v60 = vpop.f32.mrb[41].mxu0  ;;  %v14376_v57 = vpop.f32.mrb[185].mxu1  ;;  %v14688_v31 = vmax.f32 %v14652_v29, 0.0 }
 0xbc5   :  { %v14690_v20 = vmax.f32 %v14654_v24, 0.0  ;;  %v18925_v0 = vadd.f32 %v25176_v1, %v14374_v41  ;;  %v14538_v38 = vmax.f32 %v24981_v17, %v14098_v60  ;;  %v14100_v23 = vpop.f32.mrb[42].mxu0  ;;  %v14377_v52 = vpop.f32.mrb[186].mxu1 }
 0xbc6   :  { %v25272_v12 = vpack.c.bf16 %v14689_v28, %v14686_v56  ;;  %v14691_v51 = vmax.f32 %v14655_v45, 0.0  ;;  %v14540_v4 = vmax.f32 %v24983_v10, %v14100_v23  ;;  %v18928_v9 = vadd.f32 %v25179_v6, %v14377_v52  ;;  %v14102_v59 = vpop.f32.mrb[43].mxu0  ;;  %v14379_v33 = vpop.f32.mrb[187].mxu1 }
 0xbc7   :  { %v14539_v26 = vmax.f32 %v24979_v46, %v18925_v0  ;;  %v14541_v39 = vmax.f32 %v24988_v16, %v14102_v59  ;;  %v25278_v44 = vpack.c.bf16 %v14690_v20, %v14687_v61 }
 0xbc8   :  { %v25280_v1 = vpack.c.bf16 %v14691_v51, %v14688_v31  ;;  %v14542_v17 = vmax.f32 %v24986_v37, %v18928_v9 }
 0xbcb   :  { %v14106_v22 = vpop.f32.mrb[44].mxu0  ;;  %v14382_v55 = vpop.f32.mrb[188].mxu1 }
 0xbcc   :  { %v14543_v29 = vmax.f32 %v24996_v35, %v14106_v22  ;;  %v18931_v10 = vadd.f32 %v25182_v58, %v14382_v55  ;;  %v14108_v5 = vpop.f32.mrb[45].mxu0  ;;  %v14384_v6 = vpop.f32.mrb[189].mxu1 }
 0xbcd   :  { %v14544_v18 = vmax.f32 %v25002_v42, %v14108_v5  ;;  %v14110_v56 = vpop.f32.mrb[46].mxu0  ;;  %v14385_v46 = vpop.f32.mrb[190].mxu1 }
 0xbce   :  { %v14603_v24 = vmax.f32 %v14537_v21, %v14543_v29  ;;  %v14545_v16 = vmax.f32 %v25000_v3, %v18931_v10  ;;  %v14546_v32 = vmax.f32 %v25004_v30, %v14110_v56  ;;  %v18934_v41 = vadd.f32 %v25185_v13, %v14385_v46  ;;  %v14112_v37 = vpop.f32.mrb[47].mxu0  ;;  %v14387_v61 = vpop.f32.mrb[191].mxu1  ;;  %v21687_v46 = vld [vmem:[#allocation12] sm:$0xff]  }
 0xbcf   :  { %v14604_v28 = vmax.f32 %v14538_v38, %v14544_v18  ;;  %v14547_v35 = vmax.f32 %v25009_v19, %v14112_v37 }
 0xbd0   :  { %v14656_v58 = vadd.f32 %v25246_v48, %v14603_v24  ;;  %v14605_v45 = vmax.f32 %v14539_v26, %v14545_v16  ;;  %v14606_v60 = vmax.f32 %v14540_v4, %v14546_v32  ;;  %v14548_v42 = vmax.f32 %v25007_v53, %v18934_v41  ;;  %v21688_v24 = vld [vmem:[#allocation12 + $0x80] sm:$0xff]   ;;  %v21689_v16 = vld [vmem:[#allocation12 + $0x48] sm:$0xff]  }
 0xbd1   :  { %v14657_v57 = vadd.f32 %v25256_v62, %v14604_v28  ;;  %v14607_v21 = vmax.f32 %v14541_v39, %v14547_v35  ;;  %v21690_v32 = vld [vmem:[#allocation12 + $0x8] sm:$0xff]  }
 0xbd2   :  { %v14658_v3 = vadd.f32 %v25251_v25, %v14605_v45  ;;  %v14659_v30 = vadd.f32 %v25246_v48, %v14606_v60  ;;  %v14608_v31 = vmax.f32 %v14542_v17, %v14548_v42  ;;  %v14692_v13 = vmax.f32 %v14656_v58, 0.0  ;;  %v21691_v41 = vld [vmem:[#allocation12 + $0x88] sm:$0xff]   ;;  %v26034_v60 = vld [vmem:[#allocation66_spill] sm:$0xff]  ;;  %v26035_v42 = vld [vmem:[#allocation105_spill] sm:$0xff] }
 0xbd3   :  { %v14660_v20 = vadd.f32 %v25256_v62, %v14607_v21  ;;  %v14116_v0 = vpop.f32.mrb[48].mxu0  ;;  %v14390_v38 = vpop.f32.mrb[192].mxu1  ;;  %v14693_v19 = vmax.f32 %v14657_v57, 0.0 }
 0xbd4   :  { %v14695_v23 = vmax.f32 %v14659_v30, 0.0  ;;  %v14661_v52 = vadd.f32 %v25251_v25, %v14608_v31  ;;  %v14549_v51 = vmax.f32 %v25017_v63, %v14116_v0  ;;  %v14118_v53 = vpop.f32.mrb[49].mxu0  ;;  %v14392_v4 = vpop.f32.mrb[193].mxu1  ;;  %v14694_v9 = vmax.f32 %v14658_v3, 0.0  ;;  %v26036_v30 = vld [vmem:[#allocation68_spill] sm:$0xff] }
 0xbd5   :  { %v14696_v59 = vmax.f32 %v14660_v20, 0.0  ;;  %v18937_v33 = vadd.f32 %v25188_v47, %v14390_v38  ;;  %v14550_v26 = vmax.f32 %v25022_v8, %v14118_v53  ;;  %v14120_v39 = vpop.f32.mrb[50].mxu0  ;;  %v14393_v17 = vpop.f32.mrb[194].mxu1 }
 0xbd6   :  { %v14725_v22 = vpack.c.bf16 %v14695_v23, %v14692_v13  ;;  %v14697_v55 = vmax.f32 %v14661_v52, 0.0  ;;  %v14552_v29 = vmax.f32 %v25024_v14, %v14120_v39  ;;  %v18940_v10 = vadd.f32 %v25191_v54, %v14393_v17  ;;  %v14122_v5 = vpop.f32.mrb[51].mxu0  ;;  %v14395_v6 = vpop.f32.mrb[195].mxu1  ;;  %v21694_v13 = vld [vmem:[#allocation12 + $0x90] sm:$0xff]   ;;  %v21696_v17 = vld [vmem:[#allocation12 + $0x18] sm:$0xff]  }
 0xbd7   :  { %v14551_v63 = vmax.f32 %v25020_v7, %v18937_v33  ;;  %v14553_v18 = vmax.f32 %v25029_v2, %v14122_v5  ;;  %v14726_v56 = vpack.c.bf16 %v14696_v59, %v14693_v19  ;;  %v26037_v19 = vld [vmem:[#allocation67_spill] sm:$0xff]  ;;  %v26038_v5 = vld [vmem:[#allocation69_spill] sm:$0xff] }
 0xbd8   :  { %v14727_v47 = vpack.c.bf16 %v14697_v55, %v14694_v9  ;;  %v14554_v8 = vmax.f32 %v25027_v49, %v18940_v10  ;;  %v21692_v49 = vld [vmem:[#allocation12 + $0x50] sm:$0xff]  }
 0xbd9   :  { %15013 = vmatprep.mubr.bf16.mxu0 %v14726_v56  ;;  %v21698_v56 = vld [vmem:[#allocation12 + $0x60] sm:$0xff]  }
 0xbda   :  { %15014 = vmatmul.mubr.bf16.vlgmr.msra.gmra.mrb[80].mxu0 %v14725_v22  ;;  %18716 = vmatmul.mubr.bf16.vlgmr.msra.gmra.mrb[160].mxu1 %v14727_v47  ;;  %v21697_v22 = vld [vmem:[#allocation12 + $0x98] sm:$0xff]  }
 0xbdb   :  { %18536 = vmatpush3.bf16.msra.mxu0 %v21687_v46  ;;  %18720 = vmatpush3.bf16.msra.mxu1 %v21688_v24  ;;  %v14126_v14 = vpop.f32.mrb[52].mxu0  ;;  %v14398_v54 = vpop.f32.mrb[196].mxu1  ;;  %v26039_v47 = vld [vmem:[#allocation106_spill] sm:$0xff] }
 0xbdc   :  { %v14555_v7 = vmax.f32 %v25037_v27, %v14126_v14  ;;  %v18943_v2 = vadd.f32 %v25194_v40, %v14398_v54  ;;  %15239 = vmatprep.mubr.bf16.mxu0 %v25278_v44  ;;  %v14128_v37 = vpop.f32.mrb[53].mxu0  ;;  %v14400_v61 = vpop.f32.mrb[197].mxu1  ;;  %18537 = vmatprep.subr.bf16.mxu0 %v21689_v16  ;;  %v26040_v16 = vld [vmem:[#allocation71_spill] sm:$0xff] }
 0xbdd   :  { %v14556_v28 = vmax.f32 %v25043_v11, %v14128_v37  ;;  %v14130_v35 = vpop.f32.mrb[54].mxu0  ;;  %v14401_v58 = vpop.f32.mrb[198].mxu1  ;;  %18721 = vmatprep.subr.bf16.mxu1 %v25971_v36  ;;  %18735 = vmatprep.mubr.msk.bf16.mxu1 %vm22213_vm1, %v25971_v36  ;;  %v21693_v11 = vld [vmem:[#allocation12 + $0x10] sm:$0xff]   ;;  %v26042_v61 = vld [vmem:[#allocation107_spill] sm:$0xff] }
 0xbde   :  { %v14609_v45 = vmax.f32 %v14549_v51, %v14555_v7  ;;  %v14557_v27 = vmax.f32 %v25041_v15, %v18943_v2  ;;  %v14558_v40 = vmax.f32 %v26034_v60, %v14130_v35  ;;  %v18946_v44 = vadd.f32 %v26035_v42, %v14401_v58  ;;  %v14132_v57 = vpop.f32.mrb[55].mxu0  ;;  %v14403_v21 = vpop.f32.mrb[199].mxu1  ;;  %v21695_v15 = vld [vmem:[#allocation12 + $0x58] sm:$0xff]   ;;  %v26041_v2 = vld [vmem:[#allocation72_spill] sm:$0xff]  ;;  %v21700_v42 = vld [vmem:[#allocation12 + $0xa0] sm:$0xff]  }
 0xbdf   :  { %v14610_v3 = vmax.f32 %v14550_v26, %v14556_v28  ;;  %v14559_v31 = vmax.f32 %v26036_v30, %v14132_v57  ;;  %18538 = vmatpush3.bf16.msra.mxu0 %v21690_v32  ;;  %18722 = vmatpush3.bf16.msra.mxu1 %v21691_v41  ;;  %v26043_v58 = vld [vmem:[#allocation70_spill] sm:$0xff]  ;;  %v26045_v21 = vld [vmem:[#allocation73_spill] sm:$0xff]  ;;  %v21701_v30 = vld [vmem:[#allocation12 + $0x68] sm:$0xff]  }
 0xbe0   :  { %v14662_v20 = vadd.f32 %v25246_v48, %v14609_v45  ;;  %v14611_v0 = vmax.f32 %v14551_v63, %v14557_v27  ;;  %v14612_v38 = vmax.f32 %v14552_v29, %v14558_v40  ;;  %v14560_v23 = vmax.f32 %v26037_v19, %v18946_v44  ;;  %18539 = vmatprep.subr.bf16.mxu0 %v21692_v49  ;;  %v26044_v27 = vld [vmem:[#allocation74_spill] sm:$0xff]  ;;  %v26047_v19 = vld [vmem:[#allocation108_spill] sm:$0xff] }
 0xbe1   :  { %v14663_v52 = vadd.f32 %v25256_v62, %v14610_v3  ;;  %v14613_v51 = vmax.f32 %v14553_v18, %v14559_v31  ;;  %18723 = vmatprep.subr.bf16.mxu1 %v25971_v36  ;;  %v21699_v40 = vld [vmem:[#allocation12 + $0x20] sm:$0xff]  }
 0xbe2   :  { %v14664_v53 = vadd.f32 %v25251_v25, %v14611_v0  ;;  %v14665_v4 = vadd.f32 %v25246_v48, %v14612_v38  ;;  %v14614_v9 = vmax.f32 %v14554_v8, %v14560_v23  ;;  %v14698_v59 = vmax.f32 %v14662_v20, 0.0  ;;  %v21703_v20 = vld [vmem:[#allocation12 + $0xa8] sm:$0xff]  }
 0xbe3   :  { %v14666_v33 = vadd.f32 %v25256_v62, %v14613_v51  ;;  %18540 = vmatpush3.bf16.msra.mxu0 %v21693_v11  ;;  %18724 = vmatpush3.bf16.msra.mxu1 %v21694_v13  ;;  %v14136_v26 = vpop.f32.mrb[56].mxu0  ;;  %v14406_v39 = vpop.f32.mrb[200].mxu1  ;;  %v14699_v55 = vmax.f32 %v14663_v52, 0.0  ;;  %v21702_v13 = vld [vmem:[#allocation12 + $0x28] sm:$0xff]   ;;  %v21704_v51 = vld [vmem:[#allocation12 + $0x70] sm:$0xff]  }
 0xbe4   :  { %v14701_v29 = vmax.f32 %v14665_v4, 0.0  ;;  %v14667_v10 = vadd.f32 %v25251_v25, %v14614_v9  ;;  %v14561_v6 = vmax.f32 %v26038_v5, %v14136_v26  ;;  %v14138_v63 = vpop.f32.mrb[57].mxu0  ;;  %v14408_v18 = vpop.f32.mrb[201].mxu1  ;;  %18541 = vmatprep.subr.bf16.mxu0 %v21695_v15  ;;  %18725 = vmatprep.subr.bf16.mxu1 %v25971_v36  ;;  %v14700_v46 = vmax.f32 %v14664_v53, 0.0  ;;  %v26046_v0 = vld [vmem:[#allocation75_spill] sm:$0xff]  ;;  %v26048_v53 = vld [vmem:[#allocation77_spill] sm:$0xff] }
 0xbe5   :  { %v14702_v24 = vmax.f32 %v14666_v33, 0.0  ;;  %v18949_v8 = vadd.f32 %v26039_v47, %v14406_v39  ;;  %v14562_v14 = vmax.f32 %v26040_v16, %v14138_v63  ;;  %v14140_v54 = vpop.f32.mrb[58].mxu0  ;;  %v14409_v32 = vpop.f32.mrb[202].mxu1  ;;  %v26049_v26 = vld [vmem:[#allocation76_spill] sm:$0xff] }
 0xbe6   :  { %v25328_v41 = vpack.c.bf16 %v14701_v29, %v14698_v59  ;;  %v14703_v7 = vmax.f32 %v14667_v10, 0.0  ;;  %v14564_v37 = vmax.f32 %v26041_v2, %v14140_v54  ;;  %v18952_v49 = vadd.f32 %v26042_v61, %v14409_v32  ;;  %v14142_v28 = vpop.f32.mrb[59].mxu0  ;;  %v14411_v35 = vpop.f32.mrb[203].mxu1  ;;  %v26052_v18 = vld [vmem:[#allocation80_spill] sm:$0xff]  ;;  %v21707_v32 = vld [vmem:[#allocation12 + $0x78] sm:$0xff]  }
 0xbe7   :  { %v14563_v45 = vmax.f32 %v26043_v58, %v18949_v8  ;;  %v14565_v60 = vmax.f32 %v26044_v27, %v14142_v28  ;;  %18542 = vmatpush3.bf16.msra.mxu0 %v21696_v17  ;;  %18726 = vmatpush3.bf16.msra.mxu1 %v21697_v22  ;;  %v25334_v44 = vpack.c.bf16 %v14702_v24, %v14699_v55  ;;  %v26050_v17 = vld [vmem:[#allocation78_spill] sm:$0xff]  ;;  %v26051_v55 = vld [vmem:[#allocation109_spill] sm:$0xff] }
 0xbe8   :  { %v25336_v57 = vpack.c.bf16 %v14703_v7, %v14700_v46  ;;  %v14566_v3 = vmax.f32 %v26045_v21, %v18952_v49  ;;  %18543 = vmatprep.subr.bf16.mxu0 %v21698_v56  ;;  %18727 = vmatprep.subr.bf16.mxu1 %v25971_v36  ;;  %v21705_v46 = vld [vmem:[#allocation12 + $0x30] sm:$0xff]   ;;  %v21709_v27 = vld [vmem:[#allocation12 + $0xb8] sm:$0xff]  }
 0xbe9   :  { %v21706_v24 = vld [vmem:[#allocation12 + $0xb0] sm:$0xff]  }
 0xbea   :  { %v26054_v21 = vld [vmem:[#allocation81_spill] sm:$0xff] }
 0xbeb   :  { %18544 = vmatpush3.bf16.msra.mxu0 %v21699_v40  ;;  %18728 = vmatpush3.bf16.msra.mxu1 %v21700_v42  ;;  %v14146_v31 = vpop.f32.mrb[60].mxu0  ;;  %v14414_v11 = vpop.f32.mrb[204].mxu1 }
 0xbec   :  { %v14567_v38 = vmax.f32 %v26046_v0, %v14146_v31  ;;  %v18955_v23 = vadd.f32 %v26047_v19, %v14414_v11  ;;  %v14148_v15 = vpop.f32.mrb[61].mxu0  ;;  %v14416_v52 = vpop.f32.mrb[205].mxu1  ;;  %18545 = vmatprep.subr.bf16.mxu0 %v21701_v30  ;;  %18729 = vmatprep.subr.bf16.mxu1 %v25971_v36  ;;  %v26055_v0 = vld [vmem:[#allocation110_spill] sm:$0xff]  ;;  %v26056_v19 = vld [vmem:[#allocation83_spill] sm:$0xff] }
 0xbed   :  { %v14568_v4 = vmax.f32 %v26048_v53, %v14148_v15  ;;  %v14150_v9 = vpop.f32.mrb[62].mxu0  ;;  %v14417_v59 = vpop.f32.mrb[206].mxu1 }
 0xbee   :  { %v14615_v33 = vmax.f32 %v14561_v6, %v14567_v38  ;;  %v14569_v39 = vmax.f32 %v26049_v26, %v18955_v23  ;;  %v14570_v22 = vmax.f32 %v26050_v17, %v14150_v9  ;;  %v18958_v29 = vadd.f32 %v26051_v55, %v14417_v59  ;;  %v14152_v10 = vpop.f32.mrb[63].mxu0  ;;  %v14419_v5 = vpop.f32.mrb[207].mxu1  ;;  %v26053_v6 = vld [vmem:[#allocation79_spill] sm:$0xff]  ;;  %v26059_v17 = vld [vmem:[#allocation82_spill] sm:$0xff] }
 0xbef   :  { %v14616_v63 = vmax.f32 %v14562_v14, %v14568_v4  ;;  %v14571_v56 = vmax.f32 %v26052_v18, %v14152_v10  ;;  %18546 = vmatpush3.bf16.msra.mxu0 %v21702_v13  ;;  %18730 = vmatpush3.bf16.msra.mxu1 %v21703_v20  ;;  %v26057_v4 = vld [vmem:[#allocation84_spill] sm:$0xff]  ;;  %v26058_v59 = vld [vmem:[#allocation111_spill] sm:$0xff]  ;;  %v26060_v55 = vld [vmem:[#allocation86_spill] sm:$0xff] }
 0xbf0   :  { %v14668_v47 = vadd.f32 %v25246_v48, %v14615_v33  ;;  %v14617_v8 = vmax.f32 %v14563_v45, %v14569_v39  ;;  %v14618_v16 = vmax.f32 %v14564_v37, %v14570_v22  ;;  %v14572_v54 = vmax.f32 %v26053_v6, %v18958_v29  ;;  %18547 = vmatprep.subr.bf16.mxu0 %v21704_v51  ;;  %v21708_v45 = vld [vmem:[#allocation12 + $0x38] sm:$0xff]   ;;  %v21711_v10 = vld [vmem:[#allocation12 + $0x180] sm:$0xff]  }
 0xbf1   :  { %v14669_v7 = vadd.f32 %v25256_v62, %v14616_v63  ;;  %v14619_v2 = vmax.f32 %v14565_v60, %v14571_v56  ;;  %18731 = vmatprep.subr.bf16.mxu1 %v25971_v36  ;;  %v26061_v18 = vld [vmem:[#allocation85_spill] sm:$0xff]  ;;  %v26062_v6 = vld [vmem:[#allocation87_spill] sm:$0xff] }
 0xbf2   :  { %v14670_v14 = vadd.f32 %v25251_v25, %v14617_v8  ;;  %v14671_v61 = vadd.f32 %v25246_v48, %v14618_v16  ;;  %v14620_v49 = vmax.f32 %v14566_v3, %v14572_v54  ;;  %v14704_v28 = vmax.f32 %v14668_v47, 0.0  ;;  %v21710_v3 = vld [vmem:[#allocation12 + $0x1c0] sm:$0xff]   ;;  %v21714_v16 = vld [vmem:[#allocation12 + $0x188] sm:$0xff]  }
 0xbf3   :  { %v14672_v35 = vadd.f32 %v25256_v62, %v14619_v2  ;;  %18548 = vmatpush3.bf16.msra.mxu0 %v21705_v46  ;;  %18732 = vmatpush3.bf16.msra.mxu1 %v21706_v24  ;;  %v14156_v37 = vpop.f32.mrb[64].mxu0  ;;  %v14422_v58 = vpop.f32.mrb[208].mxu1  ;;  %v14705_v40 = vmax.f32 %v14669_v7, 0.0  ;;  %v21712_v46 = vld [vmem:[#allocation12 + $0x200] sm:$0xff]   ;;  %v21713_v24 = vld [vmem:[#allocation12 + $0x1c8] sm:$0xff]  }
 0xbf4   :  { %v14707_v42 = vmax.f32 %v14671_v61, 0.0  ;;  %v14673_v60 = vadd.f32 %v25251_v25, %v14620_v49  ;;  %v14573_v30 = vmax.f32 %v26054_v21, %v14156_v37  ;;  %v14158_v31 = vpop.f32.mrb[65].mxu0  ;;  %v14424_v11 = vpop.f32.mrb[209].mxu1  ;;  %18549 = vmatprep.subr.bf16.mxu0 %v21707_v32  ;;  %18733 = vmatprep.subr.bf16.mxu1 %v25971_v36  ;;  %v14706_v13 = vmax.f32 %v14670_v14, 0.0  ;;  %v26063_v32 = vld [vmem:[#allocation112_spill] sm:$0xff]  ;;  %v26064_v49 = vld [vmem:[#allocation89_spill] sm:$0xff] }
 0xbf5   :  { %v14708_v20 = vmax.f32 %v14672_v35, 0.0  ;;  %v18961_v38 = vadd.f32 %v26055_v0, %v14422_v58  ;;  %v14574_v23 = vmax.f32 %v26056_v19, %v14158_v31  ;;  %v14160_v15 = vpop.f32.mrb[66].mxu0  ;;  %v14425_v52 = vpop.f32.mrb[210].mxu1  ;;  %v21715_v61 = vld [vmem:[#allocation12 + $0x208] sm:$0xff]  }
 0xbf6   :  { %v25360_v51 = vpack.c.bf16 %v14707_v42, %v14704_v28  ;;  %v14709_v53 = vmax.f32 %v14673_v60, 0.0  ;;  %v14576_v9 = vmax.f32 %v26057_v4, %v14160_v15  ;;  %v18964_v33 = vadd.f32 %v26058_v59, %v14425_v52  ;;  %v14162_v26 = vpop.f32.mrb[67].mxu0  ;;  %v14427_v39 = vpop.f32.mrb[211].mxu1  ;;  %v26065_v37 = vld [vmem:[#allocation88_spill] sm:$0xff]  ;;  %v26069_v19 = vld [vmem:[#allocation91_spill] sm:$0xff]  ;;  %v21719_v52 = vld [vmem:[#allocation12 + $0x1d8] sm:$0xff]  }
 0xbf7   :  { %v14575_v22 = vmax.f32 %v26059_v17, %v18961_v38  ;;  %v14577_v29 = vmax.f32 %v26060_v55, %v14162_v26  ;;  %18550 = vmatpush3.bf16.msra.mxu0 %v21708_v45  ;;  %18734 = vmatpush3.bf16.msra.mxu1 %v21709_v27  ;;  %v25366_v5 = vpack.c.bf16 %v14708_v20, %v14705_v40  ;;  %v26066_v45 = vld [vmem:[#allocation90_spill] sm:$0xff]  ;;  %v26067_v40 = vld [vmem:[#allocation113_spill] sm:$0xff]  ;;  %v26068_v11 = vld [vmem:[#allocation92_spill] sm:$0xff] }
 0xbf8   :  { %v25368_v63 = vpack.c.bf16 %v14709_v53, %v14706_v13  ;;  %v14578_v56 = vmax.f32 %v26061_v18, %v18964_v33  ;;  %18566 = vmatprep.subr.bf16.mxu0 %v21710_v3  ;;  %18739 = vmatprep.subr.bf16.mxu1 %v25971_v36  ;;  %v21717_v13 = vld [vmem:[#allocation12 + $0x190] sm:$0xff]  }
 0xbfa   :  { %15240 = vmatmul.mubr.bf16.vlgmr.msra.gmra.mrb[84].mxu0 %v25272_v12  ;;  %18736 = vmatmul.mubr.bf16.vlgmr.msra.gmra.mrb[164].mxu1 %v25280_v1  ;;  %v21716_v1 = vld [vmem:[#allocation12 + $0x1d0] sm:$0xff]  }
 0xbfb   :  { %18567 = vmatpush3.bf16.msra.mxu0 %v21711_v10  ;;  %15514 = vmatprep.mubr.bf16.mxu0 %v25334_v44  ;;  %v14166_v47 = vpop.f32.mrb[68].mxu0  ;;  %v14430_v8 = vpop.f32.mrb[212].mxu1 }
 0xbfc   :  { %18740 = vmatpush3.bf16.msra.mxu1 %v21712_v46  ;;  %v14579_v54 = vmax.f32 %v26062_v6, %v14166_v47  ;;  %v18967_v7 = vadd.f32 %v26063_v32, %v14430_v8  ;;  %v14168_v2 = vpop.f32.mrb[69].mxu0  ;;  %v14432_v14 = vpop.f32.mrb[213].mxu1  ;;  %18568 = vmatprep.subr.bf16.mxu0 %v21713_v24  ;;  %v21721_v8 = vld [vmem:[#allocation12 + $0x218] sm:$0xff]   ;;  %v26071_v32 = vld [vmem:[#allocation95_spill] sm:$0xff] }
 0xbfd   :  { %v14580_v28 = vmax.f32 %v26064_v49, %v14168_v2  ;;  %v14170_v12 = vpop.f32.mrb[70].mxu0  ;;  %v14433_v35 = vpop.f32.mrb[214].mxu1  ;;  %18741 = vmatprep.subr.bf16.mxu1 %v25971_v36  ;;  %18755 = vmatprep.mubr.msk.bf16.mxu1 %vm22213_vm1, %v25971_v36 }
 0xbfe   :  { %v14621_v44 = vmax.f32 %v14573_v30, %v14579_v54  ;;  %v14581_v58 = vmax.f32 %v26065_v37, %v18967_v7  ;;  %v14582_v27 = vmax.f32 %v26066_v45, %v14170_v12  ;;  %v18970_v42 = vadd.f32 %v26067_v40, %v14433_v35  ;;  %v14172_v60 = vpop.f32.mrb[71].mxu0  ;;  %v14435_v21 = vpop.f32.mrb[215].mxu1  ;;  %v21718_v30 = vld [vmem:[#allocation12 + $0x210] sm:$0xff]   ;;  %v26073_v37 = vld [vmem:[#allocation94_spill] sm:$0xff] }
 0xbff   :  { %v14622_v31 = vmax.f32 %v14574_v23, %v14580_v28  ;;  %v14583_v3 = vmax.f32 %v26068_v11, %v14172_v60  ;;  %18569 = vmatpush3.bf16.msra.mxu0 %v21714_v16  ;;  %v21722_v16 = vld [vmem:[#allocation12 + $0x1e0] sm:$0xff]   ;;  %v26072_v28 = vld [vmem:[#allocation96_spill] sm:$0xff]  ;;  %v26075_v60 = vld [vmem:[#allocation97_spill] sm:$0xff] }
 0xc00   :  { %v14674_v20 = vadd.f32 %v25246_v48, %v14621_v44  ;;  %v14623_v0 = vmax.f32 %v14575_v22, %v14581_v58  ;;  %v14624_v38 = vmax.f32 %v14576_v9, %v14582_v27  ;;  %v14584_v15 = vmax.f32 %v26069_v19, %v18970_v42  ;;  %18742 = vmatpush3.bf16.msra.mxu1 %v21715_v61  ;;  %v21720_v22 = vld [vmem:[#allocation12 + $0x198] sm:$0xff]   ;;  %v21725_v11 = vld [vmem:[#allocation12 + $0x1e8] sm:$0xff]  }
 0xc01   :  { %v14675_v53 = vadd.f32 %v25256_v62, %v14622_v31  ;;  %v14625_v4 = vmax.f32 %v14577_v29, %v14583_v3  ;;  %18570 = vmatprep.subr.bf16.mxu0 %v21716_v1  ;;  %18743 = vmatprep.subr.bf16.mxu1 %v25971_v36  ;;  %v26070_v29 = vld [vmem:[#allocation93_spill] sm:$0xff]  ;;  %v26074_v45 = vld [vmem:[#allocation98_spill] sm:$0xff] }
 0xc02   :  { %v14676_v23 = vadd.f32 %v25251_v25, %v14623_v0  ;;  %v14677_v59 = vadd.f32 %v25246_v48, %v14624_v38  ;;  %v14626_v33 = vmax.f32 %v14578_v56, %v14584_v15  ;;  %v14710_v26 = vmax.f32 %v14674_v20, 0.0  ;;  %v21724_v31 = vld [vmem:[#allocation12 + $0x220] sm:$0xff]  }
 0xc03   :  { %v14678_v39 = vadd.f32 %v25256_v62, %v14625_v4  ;;  %18571 = vmatpush3.bf16.msra.mxu0 %v21717_v13  ;;  %v14176_v9 = vpop.f32.mrb[72].mxu0  ;;  %v14438_v17 = vpop.f32.mrb[216].mxu1  ;;  %v14711_v55 = vmax.f32 %v14675_v53, 0.0  ;;  %v21726_v13 = vld [vmem:[#allocation12 + $0x1a8] sm:$0xff]  }
 0xc04   :  { %v14713_v10 = vmax.f32 %v14677_v59, 0.0  ;;  %v14679_v18 = vadd.f32 %v25251_v25, %v14626_v33  ;;  %18744 = vmatpush3.bf16.msra.mxu1 %v21718_v30  ;;  %v14585_v46 = vmax.f32 %v26070_v29, %v14176_v9  ;;  %v14178_v24 = vpop.f32.mrb[73].mxu0  ;;  %v14440_v47 = vpop.f32.mrb[217].mxu1  ;;  %18572 = vmatprep.subr.bf16.mxu0 %v21719_v52  ;;  %v14712_v56 = vmax.f32 %v14676_v23, 0.0  ;;  %v26076_v20 = vld [vmem:[#allocation99_spill] sm:$0xff]  ;;  %v26077_v52 = vld [vmem:[#allocation101_spill] sm:$0xff] }
 0xc05   :  { %v14714_v6 = vmax.f32 %v14678_v39, 0.0  ;;  %v18973_v54 = vadd.f32 %v25224_v50, %v14438_v17  ;;  %v14586_v7 = vmax.f32 %v26071_v32, %v14178_v24  ;;  %v14180_v2 = vpop.f32.mrb[74].mxu0  ;;  %v14441_v14 = vpop.f32.mrb[218].mxu1  ;;  %18745 = vmatprep.subr.bf16.mxu1 %v25971_v36  ;;  %v21723_v50 = vld [vmem:[#allocation12 + $0x1a0] sm:$0xff]   ;;  %v21727_v30 = vld [vmem:[#allocation12 + $0x228] sm:$0xff]   ;;  %v21728_v59 = vld [vmem:[#allocation12 + $0x1f0] sm:$0xff]  }
 0xc06   :  { %v25397_v61 = vpack.c.bf16 %v14713_v10, %v14710_v26  ;;  %v14715_v49 = vmax.f32 %v14679_v18, 0.0  ;;  %v14588_v12 = vmax.f32 %v26072_v28, %v14180_v2  ;;  %v18976_v35 = vadd.f32 %v25227_v43, %v14441_v14  ;;  %v14182_v1 = vpop.f32.mrb[75].mxu0  ;;  %v14443_v44 = vpop.f32.mrb[219].mxu1  ;;  %v26078_v26 = vld [vmem:[#allocation100_spill] sm:$0xff]  ;;  %v26079_v9 = vld [vmem:[#allocation102_spill] sm:$0xff] }
 0xc07   :  { %v14587_v58 = vmax.f32 %v26073_v37, %v18973_v54  ;;  %v14589_v27 = vmax.f32 %v26074_v45, %v14182_v1  ;;  %18573 = vmatpush3.bf16.msra.mxu0 %v21720_v22  ;;  %v25403_v40 = vpack.c.bf16 %v14714_v6, %v14711_v55  ;;  %v26080_v22 = vld [vmem:[#allocation114_spill] sm:$0xff]  ;;  %v26081_v29 = vld [vmem:[#allocation104_spill] sm:$0xff]  ;;  %v26082_v6 = vld [vmem:[#allocation103_spill] sm:$0xff] }
 0xc08   :  { %v25405_v42 = vpack.c.bf16 %v14715_v49, %v14712_v56  ;;  %v14590_v21 = vmax.f32 %v26075_v60, %v18976_v35  ;;  %18746 = vmatpush3.bf16.msra.mxu1 %v21721_v8  ;;  %18574 = vmatprep.subr.bf16.mxu0 %v21722_v16  ;;  %v21729_v47 = vld [vmem:[#allocation12 + $0x1b0] sm:$0xff]   ;;  %v21731_v32 = vld [vmem:[#allocation12 + $0x1f8] sm:$0xff]   ;;  %v21734_v45 = vld [vmem:[#allocation12 + $0x280] sm:$0xff]  }
 0xc09   :  { %18747 = vmatprep.subr.bf16.mxu1 %v25971_v36 }
 0xc0b   :  { %18575 = vmatpush3.bf16.msra.mxu0 %v21723_v50  ;;  %v14186_v43 = vpop.f32.mrb[76].mxu0  ;;  %v14446_v3 = vpop.f32.mrb[220].mxu1 }
 0xc0c   :  { %18748 = vmatpush3.bf16.msra.mxu1 %v21724_v31  ;;  %v14591_v0 = vmax.f32 %v26076_v20, %v14186_v43  ;;  %v18979_v38 = vadd.f32 %v25230_v34, %v14446_v3  ;;  %v14188_v19 = vpop.f32.mrb[77].mxu0  ;;  %v14448_v15 = vpop.f32.mrb[221].mxu1  ;;  %18576 = vmatprep.subr.bf16.mxu0 %v21725_v11  ;;  %v21737_v43 = vld [vmem:[#allocation12 + $0x288] sm:$0xff]   ;;  %v21740_v20 = vld [vmem:[#allocation12 + $0x290] sm:$0xff]  }
 0xc0d   :  { %v14592_v53 = vmax.f32 %v26077_v52, %v14188_v19  ;;  %v14190_v4 = vpop.f32.mrb[78].mxu0  ;;  %v14449_v23 = vpop.f32.mrb[222].mxu1  ;;  %18749 = vmatprep.subr.bf16.mxu1 %v25971_v36  ;;  %v21738_v3 = vld [vmem:[#allocation12 + $0x248] sm:$0xff]   ;;  %v21746_v19 = vld [vmem:[#allocation12 + $0x2a0] sm:$0xff]  }
 0xc0e   :  { %v14627_v33 = vmax.f32 %v14585_v46, %v14591_v0  ;;  %v14593_v39 = vmax.f32 %v26078_v26, %v18979_v38  ;;  %v14594_v17 = vmax.f32 %v26079_v9, %v14190_v4  ;;  %v18982_v55 = vadd.f32 %v26080_v22, %v14449_v23  ;;  %v14192_v10 = vpop.f32.mrb[79].mxu0  ;;  %v14451_v34 = vpop.f32.mrb[223].mxu1  ;;  %v21730_v46 = vld [vmem:[#allocation12 + $0x230] sm:$0xff]   ;;  %v21743_v38 = vld [vmem:[#allocation12 + $0x298] sm:$0xff]   ;;  %v21747_v15 = vld [vmem:[#allocation12 + $0x260] sm:$0xff]  }
 0xc0f   :  { %v14628_v18 = vmax.f32 %v14586_v7, %v14592_v53  ;;  %v14595_v24 = vmax.f32 %v26081_v29, %v14192_v10  ;;  %18577 = vmatpush3.bf16.msra.mxu0 %v21726_v13  ;;  %v21739_v13 = vld [vmem:[#allocation12 + $0x2c8] sm:$0xff]   ;;  %v21741_v0 = vld [vmem:[#allocation12 + $0x250] sm:$0xff]   ;;  %v21755_v26 = vld [vmem:[#allocation12 + $0x2b8] sm:$0xff]  }
 0xc10   :  { %v14680_v8 = vadd.f32 %v25246_v48, %v14627_v33  ;;  %v14629_v16 = vmax.f32 %v14587_v58, %v14593_v39  ;;  %v14630_v56 = vmax.f32 %v14588_v12, %v14594_v17  ;;  %v14596_v54 = vmax.f32 %v26082_v6, %v18982_v55  ;;  %18750 = vmatpush3.bf16.msra.mxu1 %v21727_v30  ;;  %v21732_v12 = vld [vmem:[#allocation12 + $0x1b8] sm:$0xff]   ;;  %v21748_v30 = vld [vmem:[#allocation12 + $0x2e0] sm:$0xff]   ;;  %v21749_v52 = vld [vmem:[#allocation12 + $0x2a8] sm:$0xff]  }
 0xc11   :  { %v14681_v2 = vadd.f32 %v25256_v62, %v14628_v18  ;;  %v14631_v14 = vmax.f32 %v14589_v27, %v14595_v24  ;;  %18578 = vmatprep.subr.bf16.mxu0 %v21728_v59  ;;  %18751 = vmatprep.subr.bf16.mxu1 %v25971_v36  ;;  %v21733_v58 = vld [vmem:[#allocation12 + $0x238] sm:$0xff]   ;;  %v21750_v53 = vld [vmem:[#allocation12 + $0x268] sm:$0xff]   ;;  %v21752_v23 = vld [vmem:[#allocation12 + $0x2b0] sm:$0xff]  }
 0xc12   :  { %v14682_v7 = vadd.f32 %v25251_v25, %v14629_v16  ;;  %v14683_v49 = vadd.f32 %v25246_v48, %v14630_v56  ;;  %v14632_v28 = vmax.f32 %v14590_v21, %v14596_v54  ;;  %v14716_v1 = vmax.f32 %v14680_v8, 0.0  ;;  %v21751_v4 = vld [vmem:[#allocation12 + $0x2e8] sm:$0xff]   ;;  %v21753_v59 = vld [vmem:[#allocation12 + $0x270] sm:$0xff]   ;;  %v21756_v39 = vld [vmem:[#allocation12 + $0x278] sm:$0xff]  }
 0xc13   :  { %v14684_v35 = vadd.f32 %v25256_v62, %v14631_v14  ;;  %18579 = vmatpush3.bf16.msra.mxu0 %v21729_v47  ;;  %v14717_v27 = vmax.f32 %v14681_v2, 0.0  ;;  %v21735_v62 = vld [vmem:[#allocation12 + $0x240] sm:$0xff]   ;;  %v21754_v33 = vld [vmem:[#allocation12 + $0x2f0] sm:$0xff]   ;;  %v21757_v9 = vld [vmem:[#allocation12 + $0x2f8] sm:$0xff]  }
 0xc14   :  { %v14719_v44 = vmax.f32 %v14683_v49, 0.0  ;;  %v14685_v37 = vadd.f32 %v25251_v25, %v14632_v28  ;;  %18752 = vmatpush3.bf16.msra.mxu1 %v21730_v46  ;;  %18580 = vmatprep.subr.bf16.mxu0 %v21731_v32  ;;  %v14718_v60 = vmax.f32 %v14682_v7, 0.0  ;;  %v21736_v25 = vld [vmem:[#allocation12 + $0x2c0] sm:$0xff]   ;;  %v21761_v10 = vld [vmem:[#allocation12 + $0x348] sm:$0xff]   ;;  %v21764_v29 = vld [vmem:[#allocation12 + $0x350] sm:$0xff]  }
 0xc15   :  { %v14720_v50 = vmax.f32 %v14684_v35, 0.0  ;;  %18753 = vmatprep.subr.bf16.mxu1 %v25971_v36  ;;  %v21758_v17 = vld [vmem:[#allocation12 + $0x340] sm:$0xff]   ;;  %v21762_v34 = vld [vmem:[#allocation12 + $0x308] sm:$0xff]   ;;  %v21765_v24 = vld [vmem:[#allocation12 + $0x310] sm:$0xff]  }
 0xc16   :  { %v25426_v31 = vpack.c.bf16 %v14719_v44, %v14716_v1  ;;  %v14721_v48 = vmax.f32 %v14685_v37, 0.0  ;;  %v21759_v22 = vld [vmem:[#allocation12 + $0x300] sm:$0xff]   ;;  %v21763_v18 = vld [vmem:[#allocation12 + $0x388] sm:$0xff]   ;;  %v21767_v47 = vld [vmem:[#allocation12 + $0x358] sm:$0xff]  }
 0xc17   :  { %18581 = vmatpush3.bf16.msra.mxu0 %v21732_v12  ;;  %v25428_v21 = vpack.c.bf16 %v14720_v50, %v14717_v27  ;;  %v21760_v55 = vld [vmem:[#allocation12 + $0x380] sm:$0xff]   ;;  %v21773_v6 = vld [vmem:[#allocation12 + $0x368] sm:$0xff]   ;;  %v21776_v32 = vld [vmem:[#allocation12 + $0x370] sm:$0xff]  }
 0xc18   :  { %v25430_v11 = vpack.c.bf16 %v14721_v48, %v14718_v60  ;;  %18754 = vmatpush3.bf16.msra.mxu1 %v21733_v58  ;;  %18597 = vmatprep.subr.bf16.mxu0 %v21734_v45  ;;  %v21770_v8 = vld [vmem:[#allocation12 + $0x360] sm:$0xff]   ;;  %v21774_v54 = vld [vmem:[#allocation12 + $0x328] sm:$0xff]   ;;  %v21777_v2 = vld [vmem:[#allocation12 + $0x330] sm:$0xff]  }
 0xc19   :  { %18759 = vmatprep.subr.bf16.mxu1 %v25971_v36  ;;  %v21771_v16 = vld [vmem:[#allocation12 + $0x320] sm:$0xff]   ;;  %v21775_v46 = vld [vmem:[#allocation12 + $0x3a8] sm:$0xff]   ;;  %v21778_v14 = vld [vmem:[#allocation12 + $0x3b0] sm:$0xff]  }
 0xc1a   :  { %15515 = vmatmul.mubr.bf16.vlgmr.msra.gmra.mrb[88].mxu0 %v25328_v41  ;;  %v21742_v41 = vld [vmem:[#allocation12 + $0x2d0] sm:$0xff]   ;;  %v21772_v56 = vld [vmem:[#allocation12 + $0x3a0] sm:$0xff]   ;;  %v21779_v7 = vld [vmem:[#allocation12 + $0x378] sm:$0xff]  }
 0xc1b   :  { %18756 = vmatmul.mubr.bf16.vlgmr.msra.gmra.mrb[168].mxu1 %v25336_v57  ;;  %18598 = vmatpush3.bf16.msra.mxu0 %v21735_v62  ;;  %v21744_v57 = vld [vmem:[#allocation12 + $0x258] sm:$0xff]   ;;  %v21782_v35 = vld [vmem:[#allocation12 + $0x400] sm:$0xff]   ;;  %v21785_v44 = vld [vmem:[#allocation12 + $0x408] sm:$0xff]  }
 0xc1c   :  { %15791 = vmatprep.mubr.bf16.mxu0 %v25366_v5  ;;  %18760 = vmatpush3.bf16.msra.mxu1 %v21736_v25  ;;  %v21745_v5 = vld [vmem:[#allocation12 + $0x2d8] sm:$0xff]   ;;  %v21783_v12 = vld [vmem:[#allocation12 + $0x3c0] sm:$0xff]   ;;  %v21786_v37 = vld [vmem:[#allocation12 + $0x3c8] sm:$0xff]  }
 0xc1d   :  { %18599 = vmatprep.subr.bf16.mxu0 %v21737_v43  ;;  %18761 = vmatprep.subr.bf16.mxu1 %v25971_v36  ;;  %v21780_v49 = vld [vmem:[#allocation12 + $0x338] sm:$0xff]   ;;  %v21784_v1 = vld [vmem:[#allocation12 + $0x440] sm:$0xff]   ;;  %v21787_v58 = vld [vmem:[#allocation12 + $0x448] sm:$0xff]  }
 0xc1e   :  { %18775 = vmatprep.mubr.msk.bf16.mxu1 %vm22213_vm1, %v25971_v36  ;;  %v21781_v28 = vld [vmem:[#allocation12 + $0x3b8] sm:$0xff]   ;;  %v21788_v45 = vld [vmem:[#allocation12 + $0x410] sm:$0xff]   ;;  %v21794_v48 = vld [vmem:[#allocation12 + $0x420] sm:$0xff]  }
 0xc1f   :  { %18600 = vmatpush3.bf16.msra.mxu0 %v21738_v3  ;;  %v21789_v27 = vld [vmem:[#allocation12 + $0x3d0] sm:$0xff]   ;;  %v21791_v50 = vld [vmem:[#allocation12 + $0x418] sm:$0xff]   ;;  %v21795_v62 = vld [vmem:[#allocation12 + $0x3e0] sm:$0xff]  }
 0xc20   :  { %18762 = vmatpush3.bf16.msra.mxu1 %v21739_v13  ;;  %18601 = vmatprep.subr.bf16.mxu0 %v21740_v20  ;;  %v21793_v60 = vld [vmem:[#allocation12 + $0x458] sm:$0xff]   ;;  %v21797_v25 = vld [vmem:[#allocation12 + $0x428] sm:$0xff]   ;;  %v21800_v13 = vld [vmem:[#allocation12 + $0x430] sm:$0xff]  }
 0xc21   :  { %18763 = vmatprep.subr.bf16.mxu1 %v25971_v36  ;;  %v21798_v43 = vld [vmem:[#allocation12 + $0x3e8] sm:$0xff]   ;;  %v21801_v20 = vld [vmem:[#allocation12 + $0x3f0] sm:$0xff]  }
 0xc22   :  { %v21799_v3 = vld [vmem:[#allocation12 + $0x468] sm:$0xff]  }
 0xc23   :  { %18602 = vmatpush3.bf16.msra.mxu0 %v21741_v0  ;;  %v21802_v0 = vld [vmem:[#allocation12 + $0x470] sm:$0xff]  }
 0xc24   :  { %18764 = vmatpush3.bf16.msra.mxu1 %v21742_v41  ;;  %18603 = vmatprep.subr.bf16.mxu0 %v21743_v38  ;;  %v21803_v41 = vld [vmem:[#allocation12 + $0x438] sm:$0xff]  }
 0xc25   :  { %18765 = vmatprep.subr.bf16.mxu1 %v25971_v36  ;;  %v21804_v38 = vld [vmem:[#allocation12 + $0x3f8] sm:$0xff]  }
 0xc27   :  { %18604 = vmatpush3.bf16.msra.mxu0 %v21744_v57  ;;  %v21805_v57 = vld [vmem:[#allocation12 + $0x478] sm:$0xff]  }
 0xc28   :  { %18766 = vmatpush3.bf16.msra.mxu1 %v21745_v5  ;;  %18605 = vmatprep.subr.bf16.mxu0 %v21746_v19 }
 0xc29   :  { %18767 = vmatprep.subr.bf16.mxu1 %v25971_v36 }
 0xc2b   :  { %18606 = vmatpush3.bf16.msra.mxu0 %v21747_v15 }
 0xc2c   :  { %18768 = vmatpush3.bf16.msra.mxu1 %v21748_v30  ;;  %18607 = vmatprep.subr.bf16.mxu0 %v21749_v52 }
 0xc2d   :  { %18769 = vmatprep.subr.bf16.mxu1 %v25971_v36 }
 0xc2f   :  { %18608 = vmatpush3.bf16.msra.mxu0 %v21750_v53 }
 0xc30   :  { %18770 = vmatpush3.bf16.msra.mxu1 %v21751_v4  ;;  %18609 = vmatprep.subr.bf16.mxu0 %v21752_v23 }
 0xc31   :  { %18771 = vmatprep.subr.bf16.mxu1 %v25971_v36 }
 0xc33   :  { %18610 = vmatpush3.bf16.msra.mxu0 %v21753_v59 }
 0xc34   :  { %18772 = vmatpush3.bf16.msra.mxu1 %v21754_v33  ;;  %18611 = vmatprep.subr.bf16.mxu0 %v21755_v26 }
 0xc35   :  { %18773 = vmatprep.subr.bf16.mxu1 %v25971_v36 }
 0xc37   :  { %18612 = vmatpush3.bf16.msra.mxu0 %v21756_v39 }
 0xc38   :  { %18774 = vmatpush3.bf16.msra.mxu1 %v21757_v9  ;;  %18628 = vmatprep.subr.bf16.mxu0 %v21758_v17  ;;  %v21806_v9 = vld [vmem:[#allocation15] sm:$0xff]   ;;  %v21809_v17 = vld [vmem:[#allocation15 + $0x18] sm:$0xff]  }
 0xc39   :  { %18779 = vmatprep.subr.bf16.mxu1 %v25971_v36 }
 0xc3a   :  { %15792 = vmatmul.mubr.bf16.vlgmr.msra.gmra.mrb[92].mxu0 %v25360_v51  ;;  %v21766_v51 = vld [vmem:[#allocation12 + $0x390] sm:$0xff]  }
 0xc3b   :  { %18776 = vmatmul.mubr.bf16.vlgmr.msra.gmra.mrb[172].mxu1 %v25368_v63  ;;  %18629 = vmatpush3.bf16.msra.mxu0 %v21759_v22  ;;  %v21768_v63 = vld [vmem:[#allocation12 + $0x318] sm:$0xff]  }
 0xc3c   :  { %16068 = vmatprep.mubr.bf16.mxu0 %v25403_v40  ;;  %18780 = vmatpush3.bf16.msra.mxu1 %v21760_v55  ;;  %v21769_v40 = vld [vmem:[#allocation12 + $0x398] sm:$0xff]  }
 0xc3d   :  { %18630 = vmatprep.subr.bf16.mxu0 %v21761_v10  ;;  %18781 = vmatprep.subr.bf16.mxu1 %v25971_v36 }
 0xc3e   :  { %18795 = vmatprep.mubr.msk.bf16.mxu1 %vm22213_vm1, %v25971_v36 }
 0xc3f   :  { %18631 = vmatpush3.bf16.msra.mxu0 %v21762_v34 }
 0xc40   :  { %18782 = vmatpush3.bf16.msra.mxu1 %v21763_v18  ;;  %18632 = vmatprep.subr.bf16.mxu0 %v21764_v29 }
 0xc41   :  { %18783 = vmatprep.subr.bf16.mxu1 %v25971_v36 }
 0xc43   :  { %18633 = vmatpush3.bf16.msra.mxu0 %v21765_v24 }
 0xc44   :  { %18784 = vmatpush3.bf16.msra.mxu1 %v21766_v51  ;;  %18634 = vmatprep.subr.bf16.mxu0 %v21767_v47 }
 0xc45   :  { %18785 = vmatprep.subr.bf16.mxu1 %v25971_v36 }
 0xc47   :  { %18635 = vmatpush3.bf16.msra.mxu0 %v21768_v63 }
 0xc48   :  { %18786 = vmatpush3.bf16.msra.mxu1 %v21769_v40  ;;  %18636 = vmatprep.subr.bf16.mxu0 %v21770_v8  ;;  %v21810_v8 = vld [vmem:[#allocation15 + $0x20] sm:$0xff]  }
 0xc49   :  { %18787 = vmatprep.subr.bf16.mxu1 %v25971_v36 }
 0xc4b   :  { %18637 = vmatpush3.bf16.msra.mxu0 %v21771_v16 }
 0xc4c   :  { %18788 = vmatpush3.bf16.msra.mxu1 %v21772_v56  ;;  %18638 = vmatprep.subr.bf16.mxu0 %v21773_v6 }
 0xc4d   :  { %18789 = vmatprep.subr.bf16.mxu1 %v25971_v36 }
 0xc4f   :  { %18639 = vmatpush3.bf16.msra.mxu0 %v21774_v54  ;;  %v21811_v54 = vld [vmem:[#allocation15 + $0x28] sm:$0xff]  }
 0xc50   :  { %18790 = vmatpush3.bf16.msra.mxu1 %v21775_v46  ;;  %18640 = vmatprep.subr.bf16.mxu0 %v21776_v32  ;;  %v21812_v46 = vld [vmem:[#allocation15 + $0x30] sm:$0xff]   ;;  %v21813_v32 = vld [vmem:[#allocation15 + $0x38] sm:$0xff]  }
 0xc51   :  { %18791 = vmatprep.subr.bf16.mxu1 %v25971_v36 }
 0xc53   :  { %18641 = vmatpush3.bf16.msra.mxu0 %v21777_v2 }
 0xc54   :  { %18792 = vmatpush3.bf16.msra.mxu1 %v21778_v14  ;;  %18642 = vmatprep.subr.bf16.mxu0 %v21779_v7 }
 0xc55   :  { %18793 = vmatprep.subr.bf16.mxu1 %v25971_v36 }
 0xc57   :  { %18643 = vmatpush3.bf16.msra.mxu0 %v21780_v49 }
 0xc58   :  { %18794 = vmatpush3.bf16.msra.mxu1 %v21781_v28  ;;  %18659 = vmatprep.subr.bf16.mxu0 %v21782_v35 }
 0xc59   :  { %18799 = vmatprep.subr.bf16.mxu1 %v25971_v36 }
 0xc5a   :  { %16069 = vmatmul.mubr.bf16.vlgmr.msra.gmra.mrb[96].mxu0 %v25397_v61  ;;  %v21790_v61 = vld [vmem:[#allocation12 + $0x450] sm:$0xff]  }
 0xc5b   :  { %18796 = vmatmul.mubr.bf16.vlgmr.msra.gmra.mrb[224].mxu1 %v25405_v42  ;;  %18660 = vmatpush3.bf16.msra.mxu0 %v21783_v12  ;;  %v21792_v42 = vld [vmem:[#allocation12 + $0x3d8] sm:$0xff]  }
 0xc5c   :  { %16345 = vmatprep.mubr.bf16.mxu0 %v25428_v21  ;;  %18800 = vmatpush3.bf16.msra.mxu1 %v21784_v1  ;;  %v21796_v21 = vld [vmem:[#allocation12 + $0x460] sm:$0xff]  }
 0xc5d   :  { %18661 = vmatprep.subr.bf16.mxu0 %v21785_v44  ;;  %18801 = vmatprep.subr.bf16.mxu1 %v25971_v36 }
 0xc5e   :  { %18815 = vmatprep.mubr.msk.bf16.mxu1 %vm22213_vm1, %v25971_v36 }
 0xc5f   :  { %18662 = vmatpush3.bf16.msra.mxu0 %v21786_v37 }
 0xc60   :  { %18802 = vmatpush3.bf16.msra.mxu1 %v21787_v58  ;;  %18663 = vmatprep.subr.bf16.mxu0 %v21788_v45 }
 0xc61   :  { %18803 = vmatprep.subr.bf16.mxu1 %v25971_v36 }
 0xc63   :  { %18664 = vmatpush3.bf16.msra.mxu0 %v21789_v27 }
 0xc64   :  { %18804 = vmatpush3.bf16.msra.mxu1 %v21790_v61  ;;  %18665 = vmatprep.subr.bf16.mxu0 %v21791_v50 }
 0xc65   :  { %18805 = vmatprep.subr.bf16.mxu1 %v25971_v36 }
 0xc67   :  { %18666 = vmatpush3.bf16.msra.mxu0 %v21792_v42 }
 0xc68   :  { %18806 = vmatpush3.bf16.msra.mxu1 %v21793_v60  ;;  %18667 = vmatprep.subr.bf16.mxu0 %v21794_v48 }
 0xc69   :  { %18807 = vmatprep.subr.bf16.mxu1 %v25971_v36 }
 0xc6b   :  { %18668 = vmatpush3.bf16.msra.mxu0 %v21795_v62 }
 0xc6c   :  { %18808 = vmatpush3.bf16.msra.mxu1 %v21796_v21  ;;  %18669 = vmatprep.subr.bf16.mxu0 %v21797_v25 }
 0xc6d   :  { %18809 = vmatprep.subr.bf16.mxu1 %v25971_v36 }
 0xc6f   :  { %18670 = vmatpush3.bf16.msra.mxu0 %v21798_v43 }
 0xc70   :  { %18810 = vmatpush3.bf16.msra.mxu1 %v21799_v3  ;;  %18671 = vmatprep.subr.bf16.mxu0 %v21800_v13 }
 0xc71   :  { %18811 = vmatprep.subr.bf16.mxu1 %v25971_v36 }
 0xc73   :  { %18672 = vmatpush3.bf16.msra.mxu0 %v21801_v20 }
 0xc74   :  { %18812 = vmatpush3.bf16.msra.mxu1 %v21802_v0  ;;  %18673 = vmatprep.subr.bf16.mxu0 %v21803_v41 }
 0xc75   :  { %18813 = vmatprep.subr.bf16.mxu1 %v25971_v36 }
 0xc77   :  { %18674 = vmatpush3.bf16.msra.mxu0 %v21804_v38 }
 0xc78   :  { %18814 = vmatpush3.bf16.msra.mxu1 %v21805_v57  ;;  %18819 = vmatprep.subr.bf16.mxu0 %v25971_v36 }
 0xc7a   :  { %16346 = vmatmul.mubr.bf16.vlgmr.msra.gmra.mrb[100].mxu0 %v25426_v31  ;;  %v21807_v31 = vld [vmem:[#allocation15 + $0x8] sm:$0xff]  }
 0xc7b   :  { %18816 = vmatmul.mubr.bf16.vlgmr.msra.gmra.mrb[228].mxu1 %v25430_v11  ;;  %18835 = vmatprep.mubr.msk.bf16.mxu0 %vm22213_vm1, %v25971_v36  ;;  %v21808_v11 = vld [vmem:[#allocation15 + $0x10] sm:$0xff]  }
 0xc7c   :  { %18820 = vmatpush3.bf16.msra.mxu0 %v21806_v9 }
 0xc7d   :  { %18821 = vmatprep.subr.bf16.mxu0 %v25971_v36 }
 0xc80   :  { %18822 = vmatpush3.bf16.msra.mxu0 %v21807_v31 }
 0xc81   :  { %18823 = vmatprep.subr.bf16.mxu0 %v25971_v36 }
 0xc84   :  { %18824 = vmatpush3.bf16.msra.mxu0 %v21808_v11 }
 0xc85   :  { %18825 = vmatprep.subr.bf16.mxu0 %v25971_v36 }
 0xc88   :  { %18826 = vmatpush3.bf16.msra.mxu0 %v21809_v17 }
 0xc89   :  { %18827 = vmatprep.subr.bf16.mxu0 %v25971_v36 }
 0xc8c   :  { %18828 = vmatpush3.bf16.msra.mxu0 %v21810_v8 }
 0xc8d   :  { %18829 = vmatprep.subr.bf16.mxu0 %v25971_v36 }
 0xc90   :  { %18830 = vmatpush3.bf16.msra.mxu0 %v21811_v54 }
 0xc91   :  { %18831 = vmatprep.subr.bf16.mxu0 %v25971_v36 }
 0xc94   :  { %18832 = vmatpush3.bf16.msra.mxu0 %v21812_v46  ;;  %v17967_v46 = vld [vmem:[#allocation17] ss:$0 sm:$0xff] }
 0xc95   :  { %18833 = vmatprep.subr.bf16.mxu0 %v25971_v36 }
 0xc98   :  { %18834 = vmatpush3.bf16.msra.mxu0 %v21813_v32 }
 0xcad   :  { %v18520_v5 = vpop.f32.mrb[80].mxu0  ;;  %v15056_v19 = vpop.f32.mrb[160].mxu1 }
 0xcae   :  { %v18521_v15 = vpop.f32.mrb[81].mxu0  ;;  %v18717_v30 = vpop.f32.mrb[161].mxu1 }
 0xcaf   :  { %v18522_v52 = vadd.f32 %v18521_v15, %v18520_v5  ;;  %v18523_v53 = vpop.f32.mrb[82].mxu0  ;;  %v15059_v4 = vpop.f32.mrb[162].mxu1 }
 0xcb0   :  { %v18524_v23 = vpop.f32.mrb[83].mxu0  ;;  %v18718_v59 = vpop.f32.mrb[163].mxu1 }
 0xcb1   :  { %v15057_v33 = vadd.f32 %v18522_v52, %v15056_v19  ;;  %v18525_v26 = vadd.f32 %v18524_v23, %v18523_v53 }
 0xcb3   :  { %v15060_v39 = vadd.f32 %v18525_v26, %v15059_v4 }
 0xccd   :  { %v18551_v22 = vpop.f32.mrb[84].mxu0  ;;  %v15282_v55 = vpop.f32.mrb[164].mxu1 }
 0xcce   :  { %v18552_v10 = vpop.f32.mrb[85].mxu0  ;;  %v18737_v34 = vpop.f32.mrb[165].mxu1 }
 0xccf   :  { %v18553_v18 = vadd.f32 %v18552_v10, %v18551_v22  ;;  %v18554_v29 = vpop.f32.mrb[86].mxu0  ;;  %v15285_v24 = vpop.f32.mrb[166].mxu1 }
 0xcd0   :  { %v18555_v51 = vpop.f32.mrb[87].mxu0  ;;  %v18738_v47 = vpop.f32.mrb[167].mxu1 }
 0xcd1   :  { %v15242_v63 = vadd.f32 %v18553_v18, %v15057_v33  ;;  %v18556_v40 = vadd.f32 %v18555_v51, %v18554_v29  ;;  %v17966_v51 = vld [vmem:[#allocation14] ss:$0 sm:$0xff] }
 0xcd3   :  { %v15283_v16 = vadd.f32 %v15282_v55, %v15242_v63  ;;  %v15245_v56 = vadd.f32 %v18556_v40, %v15060_v39 }
 0xcd5   :  { %v15286_v6 = vadd.f32 %v15285_v24, %v15245_v56 }
 0xced   :  { %v18582_v2 = vpop.f32.mrb[88].mxu0 }
 0xcee   :  { %v15557_v14 = vpop.f32.mrb[168].mxu1  ;;  %v18583_v7 = vpop.f32.mrb[89].mxu0 }
 0xcef   :  { %v18584_v49 = vadd.f32 %v18583_v7, %v18582_v2  ;;  %v18757_v28 = vpop.f32.mrb[169].mxu1  ;;  %v18585_v35 = vpop.f32.mrb[90].mxu0 }
 0xcf0   :  { %v15560_v12 = vpop.f32.mrb[170].mxu1  ;;  %v18586_v1 = vpop.f32.mrb[91].mxu0 }
 0xcf1   :  { %v15558_v44 = vadd.f32 %v18584_v49, %v15557_v14  ;;  %v18587_v37 = vadd.f32 %v18586_v1, %v18585_v35  ;;  %v18758_v58 = vpop.f32.mrb[171].mxu1 }
 0xcf3   :  { %v15564_v45 = vadd.f32 %v15558_v44, %v15283_v16  ;;  %v15561_v27 = vadd.f32 %v18587_v37, %v15560_v12 }
 0xcf5   :  { %v15565_v61 = vadd.f32 %v15561_v27, %v15286_v6 }
 0xd0d   :  { %v18613_v50 = vpop.f32.mrb[92].mxu0 }
 0xd0e   :  { %v15834_v42 = vpop.f32.mrb[172].mxu1  ;;  %v18614_v60 = vpop.f32.mrb[93].mxu0 }
 0xd0f   :  { %v18615_v48 = vadd.f32 %v18614_v60, %v18613_v50  ;;  %v18777_v36 = vpop.f32.mrb[173].mxu1  ;;  %v18616_v62 = vpop.f32.mrb[94].mxu0 }
 0xd10   :  { %v15837_v21 = vpop.f32.mrb[174].mxu1  ;;  %v18617_v25 = vpop.f32.mrb[95].mxu0 }
 0xd11   :  { %v15835_v43 = vadd.f32 %v18615_v48, %v15834_v42  ;;  %v18618_v3 = vadd.f32 %v18617_v25, %v18616_v62  ;;  %v18778_v13 = vpop.f32.mrb[175].mxu1 }
 0xd13   :  { %v15841_v20 = vadd.f32 %v15835_v43, %v15564_v45  ;;  %v15838_v0 = vadd.f32 %v18618_v3, %v15837_v21 }
 0xd15   :  { %v15842_v41 = vadd.f32 %v15838_v0, %v15565_v61 }
 0xd2d   :  { %v18644_v38 = vpop.f32.mrb[96].mxu0 }
 0xd2e   :  { %v16111_v57 = vpop.f32.mrb[224].mxu1  ;;  %v18645_v5 = vpop.f32.mrb[97].mxu0 }
 0xd2f   :  { %v18646_v19 = vadd.f32 %v18645_v5, %v18644_v38  ;;  %v18797_v15 = vpop.f32.mrb[225].mxu1  ;;  %v18647_v30 = vpop.f32.mrb[98].mxu0 }
 0xd30   :  { %v16114_v52 = vpop.f32.mrb[226].mxu1  ;;  %v18648_v53 = vpop.f32.mrb[99].mxu0 }
 0xd31   :  { %v16112_v4 = vadd.f32 %v18646_v19, %v16111_v57  ;;  %v18649_v23 = vadd.f32 %v18648_v53, %v18647_v30  ;;  %v18798_v59 = vpop.f32.mrb[227].mxu1 }
 0xd33   :  { %v16118_v33 = vadd.f32 %v16112_v4, %v15841_v20  ;;  %v16115_v26 = vadd.f32 %v18649_v23, %v16114_v52 }
 0xd35   :  { %v16119_v39 = vadd.f32 %v16115_v26, %v15842_v41 }
 0xd4d   :  { %v18675_v9 = vpop.f32.mrb[100].mxu0 }
 0xd4e   :  { %v16388_v31 = vpop.f32.mrb[228].mxu1  ;;  %v18676_v11 = vpop.f32.mrb[101].mxu0 }
 0xd4f   :  { %v18677_v17 = vadd.f32 %v18676_v11, %v18675_v9  ;;  %v18817_v22 = vpop.f32.mrb[229].mxu1  ;;  %v18678_v55 = vpop.f32.mrb[102].mxu0 }
 0xd50   :  { %v16391_v10 = vpop.f32.mrb[230].mxu1  ;;  %v18679_v34 = vpop.f32.mrb[103].mxu0 }
 0xd51   :  { %v16389_v18 = vadd.f32 %v18677_v17, %v16388_v31  ;;  %v18680_v29 = vadd.f32 %v18679_v34, %v18678_v55  ;;  %v18818_v24 = vpop.f32.mrb[231].mxu1 }
 0xd53   :  { %v16395_v47 = vadd.f32 %v16389_v18, %v16118_v33  ;;  %v16392_v63 = vadd.f32 %v18680_v29, %v16391_v10 }
 0xd55   :  { %v16404_v40 = vadd.f32 %v17966_v51, %v16395_v47  ;;  %v16396_v8 = vadd.f32 %v16392_v63, %v16119_v39 }
 0xd57   :  { %v16405_v16 = vadd.f32 %v17966_v51, %v16396_v8  ;;  %v16406_v56 = vmax.f32 %v16404_v40, 0.0 }
 0xd59   :  { %v16407_v6 = vmax.f32 %v16405_v16, 0.0 }
 0xd5b   :  { %v16408_v54 = vpack.c.bf16 %v16407_v6, %v16406_v56 }
 0xd5d   :  { %18836 = vmatmul.mubr.bf16.vlgmr.msra.gmra.mrb[104].mxu0 %v16408_v54 }
 0xe30   :  { %v16514_v32 = vpop.f32.mrb[104].mxu0 }
 0xe31   :  { %v16515_v2 = vadd.f32 %v17967_v46, %v16514_v32  ;;  %v18837_v14 = vpop.f32.mrb[105].mxu0 }
 0xe32   :  { %v16517_v7 = vpop.f32.mrb[106].mxu0 }
 0xe33   :  { %16521 = vst [vmem:[#allocation18] sm:$0xff] %v16515_v2  ;;  %v16518_v49 = vadd.f32 %v17967_v46, %v16517_v7  ;;  %v18838_v28 = vpop.f32.mrb[107].mxu0 }
 0xe35   :  { %16522 = vst [vmem:[#allocation18 + $0x8] sm:$0xff] %v16518_v49 }
 0xe36   :  { %22173 = shalt.err (!%p22170_p6)
}
 0xe37   :  { %s22174_s7 = scalar_lea.hbm %s25504_s9, 256 }
 0xe38   :  { %p22175_p7 = scmp.ne.s32.totalorder %s25504_s9, %s22174_s7  ;;  %p22178_p8 = scmp.lt.u32.totalorder %s22174_s7, %s25504_s9 }
 0xe3a   :  { %p22180_p9 = pnand %p22178_p8, %p22175_p7 }
 0xe3c   :  { %22183 = shalt.err (!%p22180_p9)
}
 0xe3d   :  { %s22215_s1 = smov 128   ;;  %s22216_s10 = smov 8  }
 0xe3e   :  { %16534 = dma.vmem_to_hbm [thread:$0]  %s16529_s28, 256, %s25504_s9, [#allocation5], %s22215_s1, %s22215_s1, %s22216_s10  }
 0xe3f   :  { %22194 = dma.done.wait [#allocation5], 256  }
 0xe40   :  { %22195 = vsyncadd [#allocation5], 4294967040 }
 0xe41   :  { %16538 = vsyncpa [#allocation4], 1 }
 0xe42   :  { %16539 = vsyncpa [#allocation7], 1 }
 0xe43   :  { %16540 = vsyncpa [#allocation10], 1 }
 0xe44   :  { %16541 = vsyncpa [#allocation13], 1 }
 0xe45   :  { %16542 = vsyncpa [#allocation16], 1 }
 0xe46   :  { %16543 = vsyncpa [#allocation5], 1 }

</bundles_post_ra>
